<compile_context>
chip_gen: v7x
topology: tpu7x:2x2x1
jax: 0.10.0
libtpu: 0.0.40
codegen_flags: <defaults>
</compile_context>

<pallas_src>
import functools

import jax
import jax.numpy as jnp
from jax import lax
from jax.experimental import pallas as pl
from jax.experimental.pallas import tpu as pltpu

EPS = 1e-5


# -------------------- fused DenseBlock Pallas kernel --------------------

def _dense_block_kernel(x_ref, s1_ref, b1_ref, w1_ref, b2_ref, w2_ref,
                        o_ref, pad_ref, *, depth, c_in, g, H, W, P):
    """Full DenseBlock forward for one image (one grid step), fully in VMEM."""
    R = H * W
    Ct = o_ref.shape[-1]
    tap_cols = pad_ref.shape[-1]                 # 9 * g

    # The output VMEM block doubles as the concatenated feature buffer:
    # zero-fill once, place the input channels at offset 0, then each layer
    # appends its g new channels in place (no per-layer HBM traffic).
    o_ref[0] = jnp.zeros((R, Ct), jnp.float32)
    o_ref[0, :, 0:c_in] = x_ref[0]

    # Shift scratch: zero only the halo rows; the middle R rows are fully
    # overwritten by every layer's 3x3 stage, so they never need clearing.
    pad_ref[0:P, :] = jnp.zeros((P, tap_cols), jnp.float32)
    pad_ref[P + R:P + R + P, :] = jnp.zeros((P, tap_cols), jnp.float32)

    # Left/right image-border masks for the dx = -1 / +1 taps, built from
    # iota in-kernel (no extra HBM inputs / DMAs).
    xi = lax.broadcasted_iota(jnp.int32, (R, 1), 0) % W
    mask_l = (xi > 0).astype(jnp.float32)
    mask_r = (xi < W - 1).astype(jnp.float32)

    for l in range(depth):                       # depth static -> unrolled
        feat = o_ref[0]                          # (R, Ct) concat features

        # BN1 (folded scale/bias, zero-padded past this layer's cin) + ReLU.
        h = jnp.maximum(feat * s1_ref[l] + b1_ref[l], 0.0)

        # 1x1 conv (BN2 scale folded into the weight) + BN2 bias + ReLU.
        mid = jnp.maximum(
            jnp.dot(h, w1_ref[l], preferred_element_type=jnp.float32)
            + b2_ref[l], 0.0)                                   # (R, bnc)

        # Reassociated 3x3 "same" conv: one (R,bnc)@(bnc,9g) matmul gives all
        # nine tap outputs; accumulate them with shifted, border-masked adds
        # of the (R, g) column groups via the zero-halo padded scratch.
        full = jnp.dot(mid, w2_ref[l], preferred_element_type=jnp.float32)
        pad_ref[P:P + R, :] = full
        acc = jnp.zeros((R, g), jnp.float32)
        for oy in (-1, 0, 1):
            for ox in (-1, 0, 1):
                tap = (oy + 1) * 3 + (ox + 1)
                start = P + oy * W + ox
                win = pad_ref[start:start + R, tap * g:(tap + 1) * g]
                if ox == -1:
                    win = win * mask_l
                elif ox == 1:
                    win = win * mask_r
                acc = acc + win

        # Drop this layer's g new channels in at its concat offset.
        o_ref[0, :, c_in + l * g:c_in + (l + 1) * g] = acc
    # F.dropout(p, training=False) is the identity in eval mode.


def dense_block_forward(x_nchw, layer_params):
    """Whole DenseBlock in a single pallas_call (grid over batch only)."""
    n, c_in, H, W = x_nchw.shape
    depth = len(layer_params)
    bnc = layer_params[0][2].shape[1]
    g = layer_params[0][5].shape[-1]
    Ct = c_in + depth * g
    R = H * W
    P = ((W + 1 + 7) // 8) * 8                   # halo rows, >= W+1, 8-aligned

    # Stack per-layer params, zero-padded to the full concat width, with BN2's
    # per-channel scale folded into the 1x1 weight.  Padded channels read
    # zeros of the (zero-initialized) feature buffer and contribute nothing.
    s1_all = jnp.zeros((depth, 1, Ct), jnp.float32)
    b1_all = jnp.zeros((depth, 1, Ct), jnp.float32)
    w1_all = jnp.zeros((depth, Ct, bnc), jnp.float32)
    b2_all = jnp.zeros((depth, 1, bnc), jnp.float32)
    w2_all = jnp.zeros((depth, bnc, 9 * g), jnp.float32)
    for l, (s1, b1, w1, s2, b2, w2) in enumerate(layer_params):
        cin_l = c_in + l * g
        s1_all = s1_all.at[l, 0, :cin_l].set(s1.reshape(-1))
        b1_all = b1_all.at[l, 0, :cin_l].set(b1.reshape(-1))
        w1_all = w1_all.at[l, :cin_l, :].set(w1 * s2.reshape(1, bnc))
        b2_all = b2_all.at[l, 0, :].set(b2.reshape(-1))
        # (3,3,bnc,g) HWIO -> (bnc, 9*g) with column index = tap*g + out_ch.
        w2_all = w2_all.at[l].set(
            w2.reshape(9, bnc, g).transpose(1, 0, 2).reshape(bnc, 9 * g))

    # Flat (n, H*W, C) presentation: no reshapes inside the kernel.
    x_flat = jnp.transpose(x_nchw, (0, 2, 3, 1)).reshape(n, R, c_in)

    kernel = functools.partial(_dense_block_kernel, depth=depth, c_in=c_in,
                               g=g, H=H, W=W, P=P)
    out = pl.pallas_call(
        kernel,
        out_shape=jax.ShapeDtypeStruct((n, R, Ct), jnp.float32),
        grid=(n,),
        in_specs=[
            pl.BlockSpec((1, R, c_in), lambda i: (i, 0, 0)),
            pl.BlockSpec((depth, 1, Ct), lambda i: (0, 0, 0)),
            pl.BlockSpec((depth, 1, Ct), lambda i: (0, 0, 0)),
            pl.BlockSpec((depth, Ct, bnc), lambda i: (0, 0, 0)),
            pl.BlockSpec((depth, 1, bnc), lambda i: (0, 0, 0)),
            pl.BlockSpec((depth, bnc, 9 * g), lambda i: (0, 0, 0)),
        ],
        out_specs=pl.BlockSpec((1, R, Ct), lambda i: (i, 0, 0)),
        scratch_shapes=[pltpu.VMEM((R + 2 * P, 9 * g), jnp.float32)],
        compiler_params=pltpu.CompilerParams(
            dimension_semantics=("parallel",),
            vmem_limit_bytes=32 * 1024 * 1024,     # safe on v5e/v6e/v7x
        ),
    )(x_flat, s1_all, b1_all, w1_all, b2_all, w2_all)

    return jnp.transpose(out.reshape(n, H, W, Ct), (0, 3, 1, 2))  # back to NCHW


# -------------------- deterministic parameter init --------------------

def init_dense_block_params(key, growth_rate, depth, input_channels, bn_size=4):
    params = []
    for i in range(depth):
        cin = input_channels + i * growth_rate
        bnc = bn_size * growth_rate
        ks = jax.random.split(jax.random.fold_in(key, i), 10)

        gamma1 = 1.0 + 0.1 * jax.random.normal(ks[0], (cin,), jnp.float32)
        beta1 = 0.1 * jax.random.normal(ks[1], (cin,), jnp.float32)
        mean1 = 0.1 * jax.random.normal(ks[2], (cin,), jnp.float32)
        var1 = 1.0 + 0.1 * jax.random.uniform(ks[3], (cin,), jnp.float32)

        w1 = jax.random.normal(ks[4], (cin, bnc), jnp.float32) / jnp.sqrt(cin)

        gamma2 = 1.0 + 0.1 * jax.random.normal(ks[5], (bnc,), jnp.float32)
        beta2 = 0.1 * jax.random.normal(ks[6], (bnc,), jnp.float32)
        mean2 = 0.1 * jax.random.normal(ks[7], (bnc,), jnp.float32)
        var2 = 1.0 + 0.1 * jax.random.uniform(ks[8], (bnc,), jnp.float32)

        w2 = jax.random.normal(ks[9], (3, 3, bnc, growth_rate), jnp.float32) / jnp.sqrt(9 * bnc)

        # Fold BatchNorm (running stats) into per-channel scale/bias.
        s1 = gamma1 / jnp.sqrt(var1 + EPS)
        bb1 = beta1 - mean1 * s1
        s2 = gamma2 / jnp.sqrt(var2 + EPS)
        bb2 = beta2 - mean2 * s2

        params.append((s1.reshape(1, cin), bb1.reshape(1, cin), w1,
                       s2.reshape(1, bnc), bb2.reshape(1, bnc), w2))
    return params


# -------------------- pure-JAX reference for verification --------------------

def reference_forward(x_nchw, layer_params):
    x = jnp.transpose(x_nchw, (0, 2, 3, 1))
    feats = [x]
    for (s1, b1, w1, s2, b2, w2) in layer_params:
        cat = jnp.concatenate(feats, axis=-1)
        h = jnp.maximum(cat * s1.reshape(1, 1, 1, -1) + b1.reshape(1, 1, 1, -1), 0.0)
        h = jnp.einsum('nhwc,cd->nhwd', h, w1)
        h = jnp.maximum(h * s2.reshape(1, 1, 1, -1) + b2.reshape(1, 1, 1, -1), 0.0)
        h = lax.conv_general_dilated(h, w2, window_strides=(1, 1), padding='SAME',
                                     dimension_numbers=('NHWC', 'HWIO', 'NHWC'))
        feats.append(h)
    out = jnp.concatenate(feats, axis=-1)
    return jnp.transpose(out, (0, 3, 1, 2))


# -------------------- main --------------------

if __name__ == "__main__":
    growth_rate = 4
    depth = 3
    input_channels = 4
    bn_size = 4

    key = jax.random.PRNGKey(0)
    k_x, k_p = jax.random.split(key)

    x = jax.random.normal(k_x, (2, input_channels, 16, 16), jnp.float32)  # NCHW like PyTorch
    params = init_dense_block_params(k_p, growth_rate, depth, input_channels, bn_size)

    fwd = jax.jit(dense_block_forward)
    out = jax.block_until_ready(fwd(x, params))

    ref = jax.block_until_ready(reference_forward(x, params))

    assert out.shape == (2, input_channels + depth * growth_rate, 16, 16), out.shape
    assert jnp.allclose(out, ref, rtol=1e-3, atol=1e-3), float(jnp.max(jnp.abs(out - ref)))

    print("KERNEL_OK")
</pallas_src>

<mosaic_0001>
module attributes {stable_mosaic.version = 11 : i64} {
  func.func @_dense_block_kernel(%arg0: i32, %arg1: memref<1x256x4xf32, #tpu.memory_space<vmem>>, %arg2: memref<3x1x16xf32, #tpu.memory_space<vmem>>, %arg3: memref<3x1x16xf32, #tpu.memory_space<vmem>>, %arg4: memref<3x16x16xf32, #tpu.memory_space<vmem>>, %arg5: memref<3x1x16xf32, #tpu.memory_space<vmem>>, %arg6: memref<3x16x36xf32, #tpu.memory_space<vmem>>, %arg7: memref<1x256x16xf32, #tpu.memory_space<vmem>>, %arg8: memref<304x36xf32, #tpu.memory_space<vmem>>) attributes {dimension_semantics = [#tpu.dimension_semantics<parallel>], iteration_bounds = array<i64: 2>, scalar_prefetch = 0 : i64, scratch_operands = 1 : i64, tpu.core_type = #tpu.core_type<tc>, window_params = [{transform_indices = @transform_0, window_bounds = array<i64: 1, 256, 4>}, {pipeline_mode = #tpu.pipeline_mode<synchronous>, transform_indices = @transform_1, window_bounds = array<i64: 3, 1, 16>}, {pipeline_mode = #tpu.pipeline_mode<synchronous>, transform_indices = @transform_2, window_bounds = array<i64: 3, 1, 16>}, {pipeline_mode = #tpu.pipeline_mode<synchronous>, transform_indices = @transform_3, window_bounds = array<i64: 3, 16, 16>}, {pipeline_mode = #tpu.pipeline_mode<synchronous>, transform_indices = @transform_4, window_bounds = array<i64: 3, 1, 16>}, {pipeline_mode = #tpu.pipeline_mode<synchronous>, transform_indices = @transform_5, window_bounds = array<i64: 3, 16, 36>}, {transform_indices = @transform_6, window_bounds = array<i64: 1, 256, 16>}]} {
    %cst = arith.constant 0.000000e+00 : f32
    %0 = vector.broadcast %cst : f32 to vector<256x16xf32>
    %c0 = arith.constant 0 : index
    %c0_0 = arith.constant 0 : index
    %c0_1 = arith.constant 0 : index
    %1 = vector.load %arg7[%c0, %c0_0, %c0_1] : memref<1x256x16xf32, #tpu.memory_space<vmem>>, vector<1x256x16xf32>
    %2 = vector.shape_cast %1 : vector<1x256x16xf32> to vector<256x16xf32>
    %3 = vector.shape_cast %0 : vector<256x16xf32> to vector<1x256x16xf32>
    tpu.vector_store %arg7[%c0, %c0_0, %c0_1], %3 {strides = array<i32>} : memref<1x256x16xf32, #tpu.memory_space<vmem>>, vector<1x256x16xf32>,
    %c0_2 = arith.constant 0 : index
    %c0_3 = arith.constant 0 : index
    %c0_4 = arith.constant 0 : index
    %4 = vector.load %arg1[%c0_2, %c0_3, %c0_4] : memref<1x256x4xf32, #tpu.memory_space<vmem>>, vector<1x256x4xf32>
    %5 = vector.shape_cast %4 : vector<1x256x4xf32> to vector<256x4xf32>
    %c0_5 = arith.constant 0 : index
    %c0_6 = arith.constant 0 : index
    %c0_7 = arith.constant 0 : index
    %6 = vector.load %arg7[%c0_5, %c0_6, %c0_7] : memref<1x256x16xf32, #tpu.memory_space<vmem>>, vector<1x256x4xf32>
    %7 = vector.shape_cast %6 : vector<1x256x4xf32> to vector<256x4xf32>
    %8 = vector.shape_cast %5 : vector<256x4xf32> to vector<1x256x4xf32>
    tpu.vector_store %arg7[%c0_5, %c0_6, %c0_7], %8 {strides = array<i32>} : memref<1x256x16xf32, #tpu.memory_space<vmem>>, vector<1x256x4xf32>,
    %cst_8 = arith.constant 0.000000e+00 : f32
    %9 = vector.broadcast %cst_8 : f32 to vector<24x36xf32>
    %c0_9 = arith.constant 0 : index
    %c0_10 = arith.constant 0 : index
    %10 = vector.load %arg8[%c0_9, %c0_10] : memref<304x36xf32, #tpu.memory_space<vmem>>, vector<24x36xf32>
    tpu.vector_store %arg8[%c0_9, %c0_10], %9 {strides = array<i32>} : memref<304x36xf32, #tpu.memory_space<vmem>>, vector<24x36xf32>,
    %cst_11 = arith.constant 0.000000e+00 : f32
    %11 = vector.broadcast %cst_11 : f32 to vector<24x36xf32>
    %c280 = arith.constant 280 : index
    %c0_12 = arith.constant 0 : index
    %12 = vector.load %arg8[%c280, %c0_12] : memref<304x36xf32, #tpu.memory_space<vmem>>, vector<24x36xf32>
    tpu.vector_store %arg8[%c280, %c0_12], %11 {strides = array<i32>} : memref<304x36xf32, #tpu.memory_space<vmem>>, vector<24x36xf32>,
    %13 = tpu.iota {dimensions = array<i32: 0>} : vector<256x1xi32>
    %c16_i32 = arith.constant 16 : i32
    %c0_i32 = arith.constant 0 : i32
    %14 = arith.cmpi eq, %c16_i32, %c0_i32 : i32
    %c1_i32 = arith.constant 1 : i32
    %15 = arith.select %14, %c1_i32, %c16_i32 : i32
    %16 = vector.broadcast %15 : i32 to vector<256x1xi32>
    %17 = arith.remsi %13, %16 : vector<256x1xi32>
    %c0_i32_13 = arith.constant 0 : i32
    %18 = vector.broadcast %c0_i32_13 : i32 to vector<256x1xi32>
    %19 = arith.cmpi ne, %17, %18 : vector<256x1xi32>
    %c0_i32_14 = arith.constant 0 : i32
    %20 = vector.broadcast %c0_i32_14 : i32 to vector<256x1xi32>
    %21 = arith.cmpi slt, %17, %20 : vector<256x1xi32>
    %c0_i32_15 = arith.constant 0 : i32
    %22 = arith.cmpi slt, %15, %c0_i32_15 : i32
    %23 = vector.broadcast %22 : i1 to vector<256x1xi1>
    %24 = vector.broadcast %23 : vector<256x1xi1> to vector<256x1xi1>
    %25 = arith.xori %21, %24 : vector<256x1xi1>
    %26 = arith.andi %25, %19 : vector<256x1xi1>
    %27 = vector.broadcast %15 : i32 to vector<256x1xi32>
    %28 = arith.addi %17, %27 : vector<256x1xi32>
    %29 = arith.select %26, %28, %17 : vector<256x1xi1>, vector<256x1xi32>
    %c0_i32_16 = arith.constant 0 : i32
    %30 = vector.broadcast %c0_i32_16 : i32 to vector<256x1xi32>
    %31 = arith.cmpi sgt, %29, %30 : vector<256x1xi32>
    %32 = arith.extui %31 : vector<256x1xi1> to vector<256x1xi32>
    %33 = arith.sitofp %32 : vector<256x1xi32> to vector<256x1xf32>
    %c15_i32 = arith.constant 15 : i32
    %34 = vector.broadcast %c15_i32 : i32 to vector<256x1xi32>
    %35 = arith.cmpi slt, %29, %34 : vector<256x1xi32>
    %36 = arith.extui %35 : vector<256x1xi1> to vector<256x1xi32>
    %37 = arith.sitofp %36 : vector<256x1xi32> to vector<256x1xf32>
    %c0_17 = arith.constant 0 : index
    %c0_18 = arith.constant 0 : index
    %c0_19 = arith.constant 0 : index
    %38 = vector.load %arg7[%c0_17, %c0_18, %c0_19] : memref<1x256x16xf32, #tpu.memory_space<vmem>>, vector<1x256x16xf32>
    %39 = vector.shape_cast %38 : vector<1x256x16xf32> to vector<256x16xf32>
    %c0_20 = arith.constant 0 : index
    %c0_21 = arith.constant 0 : index
    %c0_22 = arith.constant 0 : index
    %40 = vector.load %arg2[%c0_20, %c0_21, %c0_22] : memref<3x1x16xf32, #tpu.memory_space<vmem>>, vector<1x1x16xf32>
    %41 = vector.shape_cast %40 : vector<1x1x16xf32> to vector<1x16xf32>
    %42 = vector.broadcast %41 : vector<1x16xf32> to vector<256x16xf32>
    %43 = arith.mulf %39, %42 : vector<256x16xf32>
    %c0_23 = arith.constant 0 : index
    %c0_24 = arith.constant 0 : index
    %c0_25 = arith.constant 0 : index
    %44 = vector.load %arg3[%c0_23, %c0_24, %c0_25] : memref<3x1x16xf32, #tpu.memory_space<vmem>>, vector<1x1x16xf32>
    %45 = vector.shape_cast %44 : vector<1x1x16xf32> to vector<1x16xf32>
    %46 = vector.broadcast %45 : vector<1x16xf32> to vector<256x16xf32>
    %47 = arith.addf %43, %46 : vector<256x16xf32>
    %cst_26 = arith.constant 0.000000e+00 : f32
    %48 = vector.broadcast %cst_26 : f32 to vector<256x16xf32>
    %49 = arith.maximumf %47, %48 : vector<256x16xf32>
    %c0_27 = arith.constant 0 : index
    %c0_28 = arith.constant 0 : index
    %c0_29 = arith.constant 0 : index
    %50 = vector.load %arg4[%c0_27, %c0_28, %c0_29] : memref<3x16x16xf32, #tpu.memory_space<vmem>>, vector<1x16x16xf32>
    %51 = vector.shape_cast %50 : vector<1x16x16xf32> to vector<16x16xf32>
    %cst_30 = arith.constant dense<0.000000e+00> : vector<256x16xf32>
    %52 = tpu.matmul %49, %51, %cst_30 {dimension_numbers = #tpu.dot_dimension_numbers<[1], [0], [0], [1], [0, 0, 1, 1], [], []>} : vector<256x16xf32>, vector<16x16xf32>, vector<256x16xf32> -> vector<256x16xf32>
    %c0_31 = arith.constant 0 : index
    %c0_32 = arith.constant 0 : index
    %c0_33 = arith.constant 0 : index
    %53 = vector.load %arg5[%c0_31, %c0_32, %c0_33] : memref<3x1x16xf32, #tpu.memory_space<vmem>>, vector<1x1x16xf32>
    %54 = vector.shape_cast %53 : vector<1x1x16xf32> to vector<1x16xf32>
    %55 = vector.broadcast %54 : vector<1x16xf32> to vector<256x16xf32>
    %56 = arith.addf %52, %55 : vector<256x16xf32>
    %cst_34 = arith.constant 0.000000e+00 : f32
    %57 = vector.broadcast %cst_34 : f32 to vector<256x16xf32>
    %58 = arith.maximumf %56, %57 : vector<256x16xf32>
    %c0_35 = arith.constant 0 : index
    %c0_36 = arith.constant 0 : index
    %c0_37 = arith.constant 0 : index
    %59 = vector.load %arg6[%c0_35, %c0_36, %c0_37] : memref<3x16x36xf32, #tpu.memory_space<vmem>>, vector<1x16x36xf32>
    %60 = vector.shape_cast %59 : vector<1x16x36xf32> to vector<16x36xf32>
    %cst_38 = arith.constant dense<0.000000e+00> : vector<256x36xf32>
    %61 = tpu.matmul %58, %60, %cst_38 {dimension_numbers = #tpu.dot_dimension_numbers<[1], [0], [0], [1], [0, 0, 1, 1], [], []>} : vector<256x16xf32>, vector<16x36xf32>, vector<256x36xf32> -> vector<256x36xf32>
    %c24 = arith.constant 24 : index
    %c0_39 = arith.constant 0 : index
    %62 = vector.load %arg8[%c24, %c0_39] : memref<304x36xf32, #tpu.memory_space<vmem>>, vector<256x36xf32>
    tpu.vector_store %arg8[%c24, %c0_39], %61 {strides = array<i32>} : memref<304x36xf32, #tpu.memory_space<vmem>>, vector<256x36xf32>,
    %cst_40 = arith.constant 0.000000e+00 : f32
    %63 = vector.broadcast %cst_40 : f32 to vector<256x4xf32>
    %c7 = arith.constant 7 : index
    %c0_41 = arith.constant 0 : index
    %64 = vector.load %arg8[%c7, %c0_41] : memref<304x36xf32, #tpu.memory_space<vmem>>, vector<256x4xf32>
    %65 = vector.broadcast %33 : vector<256x1xf32> to vector<256x4xf32>
    %66 = arith.mulf %64, %65 : vector<256x4xf32>
    %67 = arith.addf %63, %66 : vector<256x4xf32>
    %c8 = arith.constant 8 : index
    %c4 = arith.constant 4 : index
    %68 = vector.load %arg8[%c8, %c4] : memref<304x36xf32, #tpu.memory_space<vmem>>, vector<256x4xf32>
    %69 = arith.addf %67, %68 : vector<256x4xf32>
    %c9 = arith.constant 9 : index
    %c8_42 = arith.constant 8 : index
    %70 = vector.load %arg8[%c9, %c8_42] : memref<304x36xf32, #tpu.memory_space<vmem>>, vector<256x4xf32>
    %71 = vector.broadcast %37 : vector<256x1xf32> to vector<256x4xf32>
    %72 = arith.mulf %70, %71 : vector<256x4xf32>
    %73 = arith.addf %69, %72 : vector<256x4xf32>
    %c23 = arith.constant 23 : index
    %c12 = arith.constant 12 : index
    %74 = vector.load %arg8[%c23, %c12] : memref<304x36xf32, #tpu.memory_space<vmem>>, vector<256x4xf32>
    %75 = vector.broadcast %33 : vector<256x1xf32> to vector<256x4xf32>
    %76 = arith.mulf %74, %75 : vector<256x4xf32>
    %77 = arith.addf %73, %76 : vector<256x4xf32>
    %c24_43 = arith.constant 24 : index
    %c16 = arith.constant 16 : index
    %78 = vector.load %arg8[%c24_43, %c16] : memref<304x36xf32, #tpu.memory_space<vmem>>, vector<256x4xf32>
    %79 = arith.addf %77, %78 : vector<256x4xf32>
    %c25 = arith.constant 25 : index
    %c20 = arith.constant 20 : index
    %80 = vector.load %arg8[%c25, %c20] : memref<304x36xf32, #tpu.memory_space<vmem>>, vector<256x4xf32>
    %81 = vector.broadcast %37 : vector<256x1xf32> to vector<256x4xf32>
    %82 = arith.mulf %80, %81 : vector<256x4xf32>
    %83 = arith.addf %79, %82 : vector<256x4xf32>
    %c39 = arith.constant 39 : index
    %c24_44 = arith.constant 24 : index
    %84 = vector.load %arg8[%c39, %c24_44] : memref<304x36xf32, #tpu.memory_space<vmem>>, vector<256x4xf32>
    %85 = vector.broadcast %33 : vector<256x1xf32> to vector<256x4xf32>
    %86 = arith.mulf %84, %85 : vector<256x4xf32>
    %87 = arith.addf %83, %86 : vector<256x4xf32>
    %c40 = arith.constant 40 : index
    %c28 = arith.constant 28 : index
    %88 = vector.load %arg8[%c40, %c28] : memref<304x36xf32, #tpu.memory_space<vmem>>, vector<256x4xf32>
    %89 = arith.addf %87, %88 : vector<256x4xf32>
    %c41 = arith.constant 41 : index
    %c32 = arith.constant 32 : index
    %90 = vector.load %arg8[%c41, %c32] : memref<304x36xf32, #tpu.memory_space<vmem>>, vector<256x4xf32>
    %91 = vector.broadcast %37 : vector<256x1xf32> to vector<256x4xf32>
    %92 = arith.mulf %90, %91 : vector<256x4xf32>
    %93 = arith.addf %89, %92 : vector<256x4xf32>
    %c0_45 = arith.constant 0 : index
    %c0_46 = arith.constant 0 : index
    %c4_47 = arith.constant 4 : index
    %94 = vector.load %arg7[%c0_45, %c0_46, %c4_47] : memref<1x256x16xf32, #tpu.memory_space<vmem>>, vector<1x256x4xf32>
    %95 = vector.shape_cast %94 : vector<1x256x4xf32> to vector<256x4xf32>
    %96 = vector.shape_cast %93 : vector<256x4xf32> to vector<1x256x4xf32>
    tpu.vector_store %arg7[%c0_45, %c0_46, %c4_47], %96 {strides = array<i32>} : memref<1x256x16xf32, #tpu.memory_space<vmem>>, vector<1x256x4xf32>,
    %c0_48 = arith.constant 0 : index
    %c0_49 = arith.constant 0 : index
    %c0_50 = arith.constant 0 : index
    %97 = vector.load %arg7[%c0_48, %c0_49, %c0_50] : memref<1x256x16xf32, #tpu.memory_space<vmem>>, vector<1x256x16xf32>
    %98 = vector.shape_cast %97 : vector<1x256x16xf32> to vector<256x16xf32>
    %c1 = arith.constant 1 : index
    %c0_51 = arith.constant 0 : index
    %c0_52 = arith.constant 0 : index
    %99 = vector.load %arg2[%c1, %c0_51, %c0_52] : memref<3x1x16xf32, #tpu.memory_space<vmem>>, vector<1x1x16xf32>
    %100 = vector.shape_cast %99 : vector<1x1x16xf32> to vector<1x16xf32>
    %101 = vector.broadcast %100 : vector<1x16xf32> to vector<256x16xf32>
    %102 = arith.mulf %98, %101 : vector<256x16xf32>
    %c1_53 = arith.constant 1 : index
    %c0_54 = arith.constant 0 : index
    %c0_55 = arith.constant 0 : index
    %103 = vector.load %arg3[%c1_53, %c0_54, %c0_55] : memref<3x1x16xf32, #tpu.memory_space<vmem>>, vector<1x1x16xf32>
    %104 = vector.shape_cast %103 : vector<1x1x16xf32> to vector<1x16xf32>
    %105 = vector.broadcast %104 : vector<1x16xf32> to vector<256x16xf32>
    %106 = arith.addf %102, %105 : vector<256x16xf32>
    %cst_56 = arith.constant 0.000000e+00 : f32
    %107 = vector.broadcast %cst_56 : f32 to vector<256x16xf32>
    %108 = arith.maximumf %106, %107 : vector<256x16xf32>
    %c1_57 = arith.constant 1 : index
    %c0_58 = arith.constant 0 : index
    %c0_59 = arith.constant 0 : index
    %109 = vector.load %arg4[%c1_57, %c0_58, %c0_59] : memref<3x16x16xf32, #tpu.memory_space<vmem>>, vector<1x16x16xf32>
    %110 = vector.shape_cast %109 : vector<1x16x16xf32> to vector<16x16xf32>
    %cst_60 = arith.constant dense<0.000000e+00> : vector<256x16xf32>
    %111 = tpu.matmul %108, %110, %cst_60 {dimension_numbers = #tpu.dot_dimension_numbers<[1], [0], [0], [1], [0, 0, 1, 1], [], []>} : vector<256x16xf32>, vector<16x16xf32>, vector<256x16xf32> -> vector<256x16xf32>
    %c1_61 = arith.constant 1 : index
    %c0_62 = arith.constant 0 : index
    %c0_63 = arith.constant 0 : index
    %112 = vector.load %arg5[%c1_61, %c0_62, %c0_63] : memref<3x1x16xf32, #tpu.memory_space<vmem>>, vector<1x1x16xf32>
    %113 = vector.shape_cast %112 : vector<1x1x16xf32> to vector<1x16xf32>
    %114 = vector.broadcast %113 : vector<1x16xf32> to vector<256x16xf32>
    %115 = arith.addf %111, %114 : vector<256x16xf32>
    %cst_64 = arith.constant 0.000000e+00 : f32
    %116 = vector.broadcast %cst_64 : f32 to vector<256x16xf32>
    %117 = arith.maximumf %115, %116 : vector<256x16xf32>
    %c1_65 = arith.constant 1 : index
    %c0_66 = arith.constant 0 : index
    %c0_67 = arith.constant 0 : index
    %118 = vector.load %arg6[%c1_65, %c0_66, %c0_67] : memref<3x16x36xf32, #tpu.memory_space<vmem>>, vector<1x16x36xf32>
    %119 = vector.shape_cast %118 : vector<1x16x36xf32> to vector<16x36xf32>
    %cst_68 = arith.constant dense<0.000000e+00> : vector<256x36xf32>
    %120 = tpu.matmul %117, %119, %cst_68 {dimension_numbers = #tpu.dot_dimension_numbers<[1], [0], [0], [1], [0, 0, 1, 1], [], []>} : vector<256x16xf32>, vector<16x36xf32>, vector<256x36xf32> -> vector<256x36xf32>
    %c24_69 = arith.constant 24 : index
    %c0_70 = arith.constant 0 : index
    %121 = vector.load %arg8[%c24_69, %c0_70] : memref<304x36xf32, #tpu.memory_space<vmem>>, vector<256x36xf32>
    tpu.vector_store %arg8[%c24_69, %c0_70], %120 {strides = array<i32>} : memref<304x36xf32, #tpu.memory_space<vmem>>, vector<256x36xf32>,
    %cst_71 = arith.constant 0.000000e+00 : f32
    %122 = vector.broadcast %cst_71 : f32 to vector<256x4xf32>
    %c7_72 = arith.constant 7 : index
    %c0_73 = arith.constant 0 : index
    %123 = vector.load %arg8[%c7_72, %c0_73] : memref<304x36xf32, #tpu.memory_space<vmem>>, vector<256x4xf32>
    %124 = vector.broadcast %33 : vector<256x1xf32> to vector<256x4xf32>
    %125 = arith.mulf %123, %124 : vector<256x4xf32>
    %126 = arith.addf %122, %125 : vector<256x4xf32>
    %c8_74 = arith.constant 8 : index
    %c4_75 = arith.constant 4 : index
    %127 = vector.load %arg8[%c8_74, %c4_75] : memref<304x36xf32, #tpu.memory_space<vmem>>, vector<256x4xf32>
    %128 = arith.addf %126, %127 : vector<256x4xf32>
    %c9_76 = arith.constant 9 : index
    %c8_77 = arith.constant 8 : index
    %129 = vector.load %arg8[%c9_76, %c8_77] : memref<304x36xf32, #tpu.memory_space<vmem>>, vector<256x4xf32>
    %130 = vector.broadcast %37 : vector<256x1xf32> to vector<256x4xf32>
    %131 = arith.mulf %129, %130 : vector<256x4xf32>
    %132 = arith.addf %128, %131 : vector<256x4xf32>
    %c23_78 = arith.constant 23 : index
    %c12_79 = arith.constant 12 : index
    %133 = vector.load %arg8[%c23_78, %c12_79] : memref<304x36xf32, #tpu.memory_space<vmem>>, vector<256x4xf32>
    %134 = vector.broadcast %33 : vector<256x1xf32> to vector<256x4xf32>
    %135 = arith.mulf %133, %134 : vector<256x4xf32>
    %136 = arith.addf %132, %135 : vector<256x4xf32>
    %c24_80 = arith.constant 24 : index
    %c16_81 = arith.constant 16 : index
    %137 = vector.load %arg8[%c24_80, %c16_81] : memref<304x36xf32, #tpu.memory_space<vmem>>, vector<256x4xf32>
    %138 = arith.addf %136, %137 : vector<256x4xf32>
    %c25_82 = arith.constant 25 : index
    %c20_83 = arith.constant 20 : index
    %139 = vector.load %arg8[%c25_82, %c20_83] : memref<304x36xf32, #tpu.memory_space<vmem>>, vector<256x4xf32>
    %140 = vector.broadcast %37 : vector<256x1xf32> to vector<256x4xf32>
    %141 = arith.mulf %139, %140 : vector<256x4xf32>
    %142 = arith.addf %138, %141 : vector<256x4xf32>
    %c39_84 = arith.constant 39 : index
    %c24_85 = arith.constant 24 : index
    %143 = vector.load %arg8[%c39_84, %c24_85] : memref<304x36xf32, #tpu.memory_space<vmem>>, vector<256x4xf32>
    %144 = vector.broadcast %33 : vector<256x1xf32> to vector<256x4xf32>
    %145 = arith.mulf %143, %144 : vector<256x4xf32>
    %146 = arith.addf %142, %145 : vector<256x4xf32>
    %c40_86 = arith.constant 40 : index
    %c28_87 = arith.constant 28 : index
    %147 = vector.load %arg8[%c40_86, %c28_87] : memref<304x36xf32, #tpu.memory_space<vmem>>, vector<256x4xf32>
    %148 = arith.addf %146, %147 : vector<256x4xf32>
    %c41_88 = arith.constant 41 : index
    %c32_89 = arith.constant 32 : index
    %149 = vector.load %arg8[%c41_88, %c32_89] : memref<304x36xf32, #tpu.memory_space<vmem>>, vector<256x4xf32>
    %150 = vector.broadcast %37 : vector<256x1xf32> to vector<256x4xf32>
    %151 = arith.mulf %149, %150 : vector<256x4xf32>
    %152 = arith.addf %148, %151 : vector<256x4xf32>
    %c0_90 = arith.constant 0 : index
    %c0_91 = arith.constant 0 : index
    %c8_92 = arith.constant 8 : index
    %153 = vector.load %arg7[%c0_90, %c0_91, %c8_92] : memref<1x256x16xf32, #tpu.memory_space<vmem>>, vector<1x256x4xf32>
    %154 = vector.shape_cast %153 : vector<1x256x4xf32> to vector<256x4xf32>
    %155 = vector.shape_cast %152 : vector<256x4xf32> to vector<1x256x4xf32>
    tpu.vector_store %arg7[%c0_90, %c0_91, %c8_92], %155 {strides = array<i32>} : memref<1x256x16xf32, #tpu.memory_space<vmem>>, vector<1x256x4xf32>,
    %c0_93 = arith.constant 0 : index
    %c0_94 = arith.constant 0 : index
    %c0_95 = arith.constant 0 : index
    %156 = vector.load %arg7[%c0_93, %c0_94, %c0_95] : memref<1x256x16xf32, #tpu.memory_space<vmem>>, vector<1x256x16xf32>
    %157 = vector.shape_cast %156 : vector<1x256x16xf32> to vector<256x16xf32>
    %c2 = arith.constant 2 : index
    %c0_96 = arith.constant 0 : index
    %c0_97 = arith.constant 0 : index
    %158 = vector.load %arg2[%c2, %c0_96, %c0_97] : memref<3x1x16xf32, #tpu.memory_space<vmem>>, vector<1x1x16xf32>
    %159 = vector.shape_cast %158 : vector<1x1x16xf32> to vector<1x16xf32>
    %160 = vector.broadcast %159 : vector<1x16xf32> to vector<256x16xf32>
    %161 = arith.mulf %157, %160 : vector<256x16xf32>
    %c2_98 = arith.constant 2 : index
    %c0_99 = arith.constant 0 : index
    %c0_100 = arith.constant 0 : index
    %162 = vector.load %arg3[%c2_98, %c0_99, %c0_100] : memref<3x1x16xf32, #tpu.memory_space<vmem>>, vector<1x1x16xf32>
    %163 = vector.shape_cast %162 : vector<1x1x16xf32> to vector<1x16xf32>
    %164 = vector.broadcast %163 : vector<1x16xf32> to vector<256x16xf32>
    %165 = arith.addf %161, %164 : vector<256x16xf32>
    %cst_101 = arith.constant 0.000000e+00 : f32
    %166 = vector.broadcast %cst_101 : f32 to vector<256x16xf32>
    %167 = arith.maximumf %165, %166 : vector<256x16xf32>
    %c2_102 = arith.constant 2 : index
    %c0_103 = arith.constant 0 : index
    %c0_104 = arith.constant 0 : index
    %168 = vector.load %arg4[%c2_102, %c0_103, %c0_104] : memref<3x16x16xf32, #tpu.memory_space<vmem>>, vector<1x16x16xf32>
    %169 = vector.shape_cast %168 : vector<1x16x16xf32> to vector<16x16xf32>
    %cst_105 = arith.constant dense<0.000000e+00> : vector<256x16xf32>
    %170 = tpu.matmul %167, %169, %cst_105 {dimension_numbers = #tpu.dot_dimension_numbers<[1], [0], [0], [1], [0, 0, 1, 1], [], []>} : vector<256x16xf32>, vector<16x16xf32>, vector<256x16xf32> -> vector<256x16xf32>
    %c2_106 = arith.constant 2 : index
    %c0_107 = arith.constant 0 : index
    %c0_108 = arith.constant 0 : index
    %171 = vector.load %arg5[%c2_106, %c0_107, %c0_108] : memref<3x1x16xf32, #tpu.memory_space<vmem>>, vector<1x1x16xf32>
    %172 = vector.shape_cast %171 : vector<1x1x16xf32> to vector<1x16xf32>
    %173 = vector.broadcast %172 : vector<1x16xf32> to vector<256x16xf32>
    %174 = arith.addf %170, %173 : vector<256x16xf32>
    %cst_109 = arith.constant 0.000000e+00 : f32
    %175 = vector.broadcast %cst_109 : f32 to vector<256x16xf32>
    %176 = arith.maximumf %174, %175 : vector<256x16xf32>
    %c2_110 = arith.constant 2 : index
    %c0_111 = arith.constant 0 : index
    %c0_112 = arith.constant 0 : index
    %177 = vector.load %arg6[%c2_110, %c0_111, %c0_112] : memref<3x16x36xf32, #tpu.memory_space<vmem>>, vector<1x16x36xf32>
    %178 = vector.shape_cast %177 : vector<1x16x36xf32> to vector<16x36xf32>
    %cst_113 = arith.constant dense<0.000000e+00> : vector<256x36xf32>
    %179 = tpu.matmul %176, %178, %cst_113 {dimension_numbers = #tpu.dot_dimension_numbers<[1], [0], [0], [1], [0, 0, 1, 1], [], []>} : vector<256x16xf32>, vector<16x36xf32>, vector<256x36xf32> -> vector<256x36xf32>
    %c24_114 = arith.constant 24 : index
    %c0_115 = arith.constant 0 : index
    %180 = vector.load %arg8[%c24_114, %c0_115] : memref<304x36xf32, #tpu.memory_space<vmem>>, vector<256x36xf32>
    tpu.vector_store %arg8[%c24_114, %c0_115], %179 {strides = array<i32>} : memref<304x36xf32, #tpu.memory_space<vmem>>, vector<256x36xf32>,
    %cst_116 = arith.constant 0.000000e+00 : f32
    %181 = vector.broadcast %cst_116 : f32 to vector<256x4xf32>
    %c7_117 = arith.constant 7 : index
    %c0_118 = arith.constant 0 : index
    %182 = vector.load %arg8[%c7_117, %c0_118] : memref<304x36xf32, #tpu.memory_space<vmem>>, vector<256x4xf32>
    %183 = vector.broadcast %33 : vector<256x1xf32> to vector<256x4xf32>
    %184 = arith.mulf %182, %183 : vector<256x4xf32>
    %185 = arith.addf %181, %184 : vector<256x4xf32>
    %c8_119 = arith.constant 8 : index
    %c4_120 = arith.constant 4 : index
    %186 = vector.load %arg8[%c8_119, %c4_120] : memref<304x36xf32, #tpu.memory_space<vmem>>, vector<256x4xf32>
    %187 = arith.addf %185, %186 : vector<256x4xf32>
    %c9_121 = arith.constant 9 : index
    %c8_122 = arith.constant 8 : index
    %188 = vector.load %arg8[%c9_121, %c8_122] : memref<304x36xf32, #tpu.memory_space<vmem>>, vector<256x4xf32>
    %189 = vector.broadcast %37 : vector<256x1xf32> to vector<256x4xf32>
    %190 = arith.mulf %188, %189 : vector<256x4xf32>
    %191 = arith.addf %187, %190 : vector<256x4xf32>
    %c23_123 = arith.constant 23 : index
    %c12_124 = arith.constant 12 : index
    %192 = vector.load %arg8[%c23_123, %c12_124] : memref<304x36xf32, #tpu.memory_space<vmem>>, vector<256x4xf32>
    %193 = vector.broadcast %33 : vector<256x1xf32> to vector<256x4xf32>
    %194 = arith.mulf %192, %193 : vector<256x4xf32>
    %195 = arith.addf %191, %194 : vector<256x4xf32>
    %c24_125 = arith.constant 24 : index
    %c16_126 = arith.constant 16 : index
    %196 = vector.load %arg8[%c24_125, %c16_126] : memref<304x36xf32, #tpu.memory_space<vmem>>, vector<256x4xf32>
    %197 = arith.addf %195, %196 : vector<256x4xf32>
    %c25_127 = arith.constant 25 : index
    %c20_128 = arith.constant 20 : index
    %198 = vector.load %arg8[%c25_127, %c20_128] : memref<304x36xf32, #tpu.memory_space<vmem>>, vector<256x4xf32>
    %199 = vector.broadcast %37 : vector<256x1xf32> to vector<256x4xf32>
    %200 = arith.mulf %198, %199 : vector<256x4xf32>
    %201 = arith.addf %197, %200 : vector<256x4xf32>
    %c39_129 = arith.constant 39 : index
    %c24_130 = arith.constant 24 : index
    %202 = vector.load %arg8[%c39_129, %c24_130] : memref<304x36xf32, #tpu.memory_space<vmem>>, vector<256x4xf32>
    %203 = vector.broadcast %33 : vector<256x1xf32> to vector<256x4xf32>
    %204 = arith.mulf %202, %203 : vector<256x4xf32>
    %205 = arith.addf %201, %204 : vector<256x4xf32>
    %c40_131 = arith.constant 40 : index
    %c28_132 = arith.constant 28 : index
    %206 = vector.load %arg8[%c40_131, %c28_132] : memref<304x36xf32, #tpu.memory_space<vmem>>, vector<256x4xf32>
    %207 = arith.addf %205, %206 : vector<256x4xf32>
    %c41_133 = arith.constant 41 : index
    %c32_134 = arith.constant 32 : index
    %208 = vector.load %arg8[%c41_133, %c32_134] : memref<304x36xf32, #tpu.memory_space<vmem>>, vector<256x4xf32>
    %209 = vector.broadcast %37 : vector<256x1xf32> to vector<256x4xf32>
    %210 = arith.mulf %208, %209 : vector<256x4xf32>
    %211 = arith.addf %207, %210 : vector<256x4xf32>
    %c0_135 = arith.constant 0 : index
    %c0_136 = arith.constant 0 : index
    %c12_137 = arith.constant 12 : index
    %212 = vector.load %arg7[%c0_135, %c0_136, %c12_137] : memref<1x256x16xf32, #tpu.memory_space<vmem>>, vector<1x256x4xf32>
    %213 = vector.shape_cast %212 : vector<1x256x4xf32> to vector<256x4xf32>
    %214 = vector.shape_cast %211 : vector<256x4xf32> to vector<1x256x4xf32>
    tpu.vector_store %arg7[%c0_135, %c0_136, %c12_137], %214 {strides = array<i32>} : memref<1x256x16xf32, #tpu.memory_space<vmem>>, vector<1x256x4xf32>,
    return
  }
  func.func @transform_0(%arg0: i32) -> (i32, i32, i32) {
    %c0_i32 = arith.constant 0 : i32
    %c0_i32_0 = arith.constant 0 : i32
    %c0_i32_1 = arith.constant 0 : i32
    return %arg0, %c0_i32, %c0_i32_0 : i32, i32, i32
  }
  func.func @transform_1(%arg0: i32) -> (i32, i32, i32) {
    %c0_i32 = arith.constant 0 : i32
    %c0_i32_0 = arith.constant 0 : i32
    %c0_i32_1 = arith.constant 0 : i32
    %c0_i32_2 = arith.constant 0 : i32
    return %c0_i32, %c0_i32_0, %c0_i32_1 : i32, i32, i32
  }
  func.func @transform_2(%arg0: i32) -> (i32, i32, i32) {
    %c0_i32 = arith.constant 0 : i32
    %c0_i32_0 = arith.constant 0 : i32
    %c0_i32_1 = arith.constant 0 : i32
    %c0_i32_2 = arith.constant 0 : i32
    return %c0_i32, %c0_i32_0, %c0_i32_1 : i32, i32, i32
  }
  func.func @transform_3(%arg0: i32) -> (i32, i32, i32) {
    %c0_i32 = arith.constant 0 : i32
    %c0_i32_0 = arith.constant 0 : i32
    %c0_i32_1 = arith.constant 0 : i32
    %c0_i32_2 = arith.constant 0 : i32
    return %c0_i32, %c0_i32_0, %c0_i32_1 : i32, i32, i32
  }
  func.func @transform_4(%arg0: i32) -> (i32, i32, i32) {
    %c0_i32 = arith.constant 0 : i32
    %c0_i32_0 = arith.constant 0 : i32
    %c0_i32_1 = arith.constant 0 : i32
    %c0_i32_2 = arith.constant 0 : i32
    return %c0_i32, %c0_i32_0, %c0_i32_1 : i32, i32, i32
  }
  func.func @transform_5(%arg0: i32) -> (i32, i32, i32) {
    %c0_i32 = arith.constant 0 : i32
    %c0_i32_0 = arith.constant 0 : i32
    %c0_i32_1 = arith.constant 0 : i32
    %c0_i32_2 = arith.constant 0 : i32
    return %c0_i32, %c0_i32_0, %c0_i32_1 : i32, i32, i32
  }
  func.func @transform_6(%arg0: i32) -> (i32, i32, i32) {
    %c0_i32 = arith.constant 0 : i32
    %c0_i32_0 = arith.constant 0 : i32
    %c0_i32_1 = arith.constant 0 : i32
    return %arg0, %c0_i32, %c0_i32_0 : i32, i32, i32
  }
}

</mosaic_0001>

<bundles_post_ra>
// kernel: dense_block_forward.1
= control target key start
LH: loop header
LB: loop body
LE: loop exit
PB: predicated region body
PF: predicated region fallthrough
CT: control target
= control target key end

     0   :  { %s9666_s21 = smov 0   ;;  %s14351_s0 = inlined_call_operand.vmem [shape: f32[2,256,4], index: 0, kind: input, shape index: {}]   ;;  %s14352_s1 = inlined_call_operand.vmem [shape: f32[3,1,16], index: 1, kind: input, shape index: {}]   ;;  %s14353_s2 = inlined_call_operand.vmem [shape: f32[3,1,16], index: 2, kind: input, shape index: {}]   ;;  %s14354_s3 = inlined_call_operand.vmem [shape: f32[3,16,16], index: 3, kind: input, shape index: {}]   ;;  %s14355_s4 = inlined_call_operand.vmem [shape: f32[3,1,16], index: 4, kind: input, shape index: {}]   ;;  %s14356_s5 = inlined_call_operand.vmem [shape: f32[3,16,36], index: 5, kind: input, shape index: {}]   ;;  %s14357_s6 = inlined_call_operand.vmem [shape: f32[2,256,16], index: 6, kind: output, shape index: {}]  }
   0x1 LB: > { %s8747_s22 = sadd.s32 4294967295, %s9617_s21   ;;  %p8751_p0 = scmp.ge.s32.totalorder %s9617_s21, 1  ;;  %s9617_s21 = sphi %s9666_s21, %s16_s21  }
   0x2   : > { %p212_p1 = scmp.lt.s32.totalorder %s9617_s21, 3 }
   0x4   : > { %p213_p2 = pnand %p8751_p0, %p212_p1 }
   0x6   : > { %216 = sbr.rel (%p213_p2) target bundleno = 3373 (0xd2d), region = 44 }
   0xd   : > { %v1108_v0 = vld [vmem:[%s14354_s3] sm:$0xff]  ;;  %v1109_v1 = vld [vmem:[%s14354_s3 + $0x8] sm:$0xff]  ;;  %p242_p3 = scmp.lt.s32.totalorder %s8747_s22, 1  ;;  %vm252_vm0 = vcmask 130048   ;;  %vm317_vm1 = vcmask 31744   ;;  %v14358_v3 = vmov 0.0  }
   0xe   : > { %v9523_v2 = vpack.c.bf16 %v1109_v1, %v1108_v0  ;;  %v9837_v22 = vld [vmem:[%s14352_s1] ss:$0 sm:$0xff]  ;;  %vm350_vm2 = vcmask 293888   ;;  %s9620_s18 = smov 124   ;;  %s9621_s19 = smov 120  }
   0xf   : > { %s15540_s22 = smov (!%p242_p3, %s8747_s22), 1  ;;  %v9848_v23 = vld [vmem:[%s14353_s2] ss:$0 sm:$0xff]  ;;  %352 = vst.msk [vmem:[#allocation2 + $0x8] sm:$0xff] %vm350_vm2, %v14358_v3  ;;  %351 = vst.msk [vmem:[#allocation2] sm:$0xff] %vm350_vm2, %v14358_v3  ;;  %s9622_s23 = smov 104  }
  0x10   : > { %9524 = vmatprep.subr.bf16.mxu0 %v9523_v2  ;;  %s9005_s27 = sshll.u32 %s15540_s22, 8  ;;  %353 = vst.msk [vmem:[#allocation2 + $0x10] sm:$0xff] %vm350_vm2, %v14358_v3  ;;  %354 = vst.msk [vmem:[#allocation2 + $0x118] sm:$0xff] %vm350_vm2, %v14358_v3  ;;  %s9623_s24 = smov 100  }
  0x11   : > { %9526 = vmatpush3.bf16.msra.mxu0 %v9523_v2  ;;  %s9683_s30 = scalar_lea.vmem %s14351_s0, %s9005_s27  ;;  %s9688_s9 = scalar_lea.vmem %s14357_s6, %s9005_s27  ;;  %355 = vst.msk [vmem:[#allocation2 + $0x120] sm:$0xff] %vm350_vm2, %v14358_v3  ;;  %356 = vst.msk [vmem:[#allocation2 + $0x128] sm:$0xff] %vm350_vm2, %v14358_v3 }
  0x12   : > { %253 = vst.msk [vmem:[%s9688_s9] sm:$0xff] %vm252_vm0, %v14358_v3  ;;  %v285_v4 = vld [vmem:[%s9683_s30] sm:$0xff]  ;;  %254 = vst.msk [vmem:[%s9688_s9 + $0x8] sm:$0xff] %vm252_vm0, %v14358_v3  ;;  %v286_v5 = vld [vmem:[%s9683_s30 + $0x8] sm:$0xff]  ;;  %s9624_s25 = smov 112   ;;  %s9625_s26 = smov 108  }
  0x13   : > { %255 = vst.msk [vmem:[%s9688_s9 + $0x10] sm:$0xff] %vm252_vm0, %v14358_v3  ;;  %256 = vst.msk [vmem:[%s9688_s9 + $0x18] sm:$0xff] %vm252_vm0, %v14358_v3  ;;  %v287_v6 = vld [vmem:[%s9683_s30 + $0x10] sm:$0xff]  ;;  %v288_v7 = vld [vmem:[%s9683_s30 + $0x18] sm:$0xff]  ;;  %s9626_s27 = smov 116   ;;  %s9627_s28 = smov 96  }
  0x14   : > { %257 = vst.msk [vmem:[%s9688_s9 + $0x20] sm:$0xff] %vm252_vm0, %v14358_v3  ;;  %258 = vst.msk [vmem:[%s9688_s9 + $0x28] sm:$0xff] %vm252_vm0, %v14358_v3  ;;  %v289_v8 = vld [vmem:[%s9683_s30 + $0x20] sm:$0xff]  ;;  %v290_v9 = vld [vmem:[%s9683_s30 + $0x28] sm:$0xff]  ;;  %s9628_s10 = smov 4   ;;  %s9629_s11 = smov 8  }
  0x15   : > { %259 = vst.msk [vmem:[%s9688_s9 + $0x30] sm:$0xff] %vm252_vm0, %v14358_v3  ;;  %260 = vst.msk [vmem:[%s9688_s9 + $0x38] sm:$0xff] %vm252_vm0, %v14358_v3  ;;  %v291_v10 = vld [vmem:[%s9683_s30 + $0x30] sm:$0xff]  ;;  %v292_v11 = vld [vmem:[%s9683_s30 + $0x38] sm:$0xff] }
  0x16   : > { %261 = vst.msk [vmem:[%s9688_s9 + $0x40] sm:$0xff] %vm252_vm0, %v14358_v3  ;;  %262 = vst.msk [vmem:[%s9688_s9 + $0x48] sm:$0xff] %vm252_vm0, %v14358_v3  ;;  %v293_v12 = vld [vmem:[%s9683_s30 + $0x40] sm:$0xff]  ;;  %v294_v13 = vld [vmem:[%s9683_s30 + $0x48] sm:$0xff] }
  0x17   : > { %263 = vst.msk [vmem:[%s9688_s9 + $0x50] sm:$0xff] %vm252_vm0, %v14358_v3  ;;  %264 = vst.msk [vmem:[%s9688_s9 + $0x58] sm:$0xff] %vm252_vm0, %v14358_v3  ;;  %v295_v14 = vld [vmem:[%s9683_s30 + $0x50] sm:$0xff]  ;;  %v296_v15 = vld [vmem:[%s9683_s30 + $0x58] sm:$0xff] }
  0x18   : > { %265 = vst.msk [vmem:[%s9688_s9 + $0x60] sm:$0xff] %vm252_vm0, %v14358_v3  ;;  %266 = vst.msk [vmem:[%s9688_s9 + $0x68] sm:$0xff] %vm252_vm0, %v14358_v3  ;;  %v297_v16 = vld [vmem:[%s9683_s30 + $0x60] sm:$0xff]  ;;  %v298_v17 = vld [vmem:[%s9683_s30 + $0x68] sm:$0xff] }
  0x19   : > { %267 = vst.msk [vmem:[%s9688_s9 + $0x70] sm:$0xff] %vm252_vm0, %v14358_v3  ;;  %268 = vst.msk [vmem:[%s9688_s9 + $0x78] sm:$0xff] %vm252_vm0, %v14358_v3  ;;  %v299_v18 = vld [vmem:[%s9683_s30 + $0x70] sm:$0xff]  ;;  %v300_v19 = vld [vmem:[%s9683_s30 + $0x78] sm:$0xff] }
  0x1a   : > { %269 = vst.msk [vmem:[%s9688_s9 + $0x80] sm:$0xff] %vm252_vm0, %v14358_v3  ;;  %270 = vst.msk [vmem:[%s9688_s9 + $0x88] sm:$0xff] %vm252_vm0, %v14358_v3  ;;  %v301_v20 = vld [vmem:[%s9683_s30 + $0x80] sm:$0xff]  ;;  %v302_v21 = vld [vmem:[%s9683_s30 + $0x88] sm:$0xff] }
  0x1b   : > { %271 = vst.msk [vmem:[%s9688_s9 + $0x90] sm:$0xff] %vm252_vm0, %v14358_v3  ;;  %272 = vst.msk [vmem:[%s9688_s9 + $0x98] sm:$0xff] %vm252_vm0, %v14358_v3 }
  0x1c   : > { %273 = vst.msk [vmem:[%s9688_s9 + $0xa0] sm:$0xff] %vm252_vm0, %v14358_v3  ;;  %274 = vst.msk [vmem:[%s9688_s9 + $0xa8] sm:$0xff] %vm252_vm0, %v14358_v3 }
  0x1d   : > { %275 = vst.msk [vmem:[%s9688_s9 + $0xb0] sm:$0xff] %vm252_vm0, %v14358_v3  ;;  %276 = vst.msk [vmem:[%s9688_s9 + $0xb8] sm:$0xff] %vm252_vm0, %v14358_v3 }
  0x1e   : > { %277 = vst.msk [vmem:[%s9688_s9 + $0xc0] sm:$0xff] %vm252_vm0, %v14358_v3  ;;  %278 = vst.msk [vmem:[%s9688_s9 + $0xc8] sm:$0xff] %vm252_vm0, %v14358_v3 }
  0x1f   : > { %279 = vst.msk [vmem:[%s9688_s9 + $0xd0] sm:$0xff] %vm252_vm0, %v14358_v3  ;;  %280 = vst.msk [vmem:[%s9688_s9 + $0xd8] sm:$0xff] %vm252_vm0, %v14358_v3 }
  0x20   : > { %281 = vst.msk [vmem:[%s9688_s9 + $0xe0] sm:$0xff] %vm252_vm0, %v14358_v3  ;;  %282 = vst.msk [vmem:[%s9688_s9 + $0xe8] sm:$0xff] %vm252_vm0, %v14358_v3 }
  0x21   : > { %283 = vst.msk [vmem:[%s9688_s9 + $0xf0] sm:$0xff] %vm252_vm0, %v14358_v3  ;;  %284 = vst.msk [vmem:[%s9688_s9 + $0xf8] sm:$0xff] %vm252_vm0, %v14358_v3 }
  0x22   : > { %318 = vst.msk [vmem:[%s9688_s9] sm:$0xff] %vm317_vm1, %v285_v4  ;;  %319 = vst.msk [vmem:[%s9688_s9 + $0x8] sm:$0xff] %vm317_vm1, %v286_v5 }
  0x23   : > { %320 = vst.msk [vmem:[%s9688_s9 + $0x10] sm:$0xff] %vm317_vm1, %v287_v6  ;;  %321 = vst.msk [vmem:[%s9688_s9 + $0x18] sm:$0xff] %vm317_vm1, %v288_v7 }
  0x24   : > { %322 = vst.msk [vmem:[%s9688_s9 + $0x20] sm:$0xff] %vm317_vm1, %v289_v8  ;;  %323 = vst.msk [vmem:[%s9688_s9 + $0x28] sm:$0xff] %vm317_vm1, %v290_v9 }
  0x25   : > { %324 = vst.msk [vmem:[%s9688_s9 + $0x30] sm:$0xff] %vm317_vm1, %v291_v10  ;;  %325 = vst.msk [vmem:[%s9688_s9 + $0x38] sm:$0xff] %vm317_vm1, %v292_v11 }
  0x26   : > { %326 = vst.msk [vmem:[%s9688_s9 + $0x40] sm:$0xff] %vm317_vm1, %v293_v12  ;;  %327 = vst.msk [vmem:[%s9688_s9 + $0x48] sm:$0xff] %vm317_vm1, %v294_v13 }
  0x27   : > { %328 = vst.msk [vmem:[%s9688_s9 + $0x50] sm:$0xff] %vm317_vm1, %v295_v14  ;;  %329 = vst.msk [vmem:[%s9688_s9 + $0x58] sm:$0xff] %vm317_vm1, %v296_v15 }
  0x28   : > { %330 = vst.msk [vmem:[%s9688_s9 + $0x60] sm:$0xff] %vm317_vm1, %v297_v16  ;;  %331 = vst.msk [vmem:[%s9688_s9 + $0x68] sm:$0xff] %vm317_vm1, %v298_v17 }
  0x29   : > { %332 = vst.msk [vmem:[%s9688_s9 + $0x70] sm:$0xff] %vm317_vm1, %v299_v18  ;;  %333 = vst.msk [vmem:[%s9688_s9 + $0x78] sm:$0xff] %vm317_vm1, %v300_v19  ;;  %v966_v24 = vld [vmem:[%s9688_s9] sm:$0xff]  ;;  %v967_v25 = vld [vmem:[%s9688_s9 + $0x8] sm:$0xff] }
  0x2a   : > { %334 = vst.msk [vmem:[%s9688_s9 + $0x80] sm:$0xff] %vm317_vm1, %v301_v20  ;;  %335 = vst.msk [vmem:[%s9688_s9 + $0x88] sm:$0xff] %vm317_vm1, %v302_v21  ;;  %v968_v26 = vld [vmem:[%s9688_s9 + $0x10] sm:$0xff]  ;;  %v1005_v27 = vmul.f32 %v9837_v22, %v966_v24  ;;  %v1006_v28 = vmul.f32 %v9837_v22, %v967_v25  ;;  %v969_v30 = vld [vmem:[%s9688_s9 + $0x18] sm:$0xff] }
  0x2b   : > { %v1007_v29 = vmul.f32 %v9837_v22, %v968_v26  ;;  %v970_v31 = vld [vmem:[%s9688_s9 + $0x20] sm:$0xff]  ;;  %v971_v32 = vld [vmem:[%s9688_s9 + $0x28] sm:$0xff]  ;;  %v1008_v33 = vmul.f32 %v9837_v22, %v969_v30 }
  0x2c   : > { %v1009_v34 = vmul.f32 %v9837_v22, %v970_v31  ;;  %v972_v35 = vld [vmem:[%s9688_s9 + $0x30] sm:$0xff]  ;;  %v1044_v36 = vadd.f32 %v9848_v23, %v1005_v27  ;;  %v1045_v37 = vadd.f32 %v9848_v23, %v1006_v28  ;;  %v1010_v40 = vmul.f32 %v9837_v22, %v971_v32  ;;  %v973_v46 = vld [vmem:[%s9688_s9 + $0x38] sm:$0xff] }
  0x2d   : > { %v1046_v38 = vadd.f32 %v9848_v23, %v1007_v29  ;;  %v1047_v39 = vadd.f32 %v9848_v23, %v1008_v33  ;;  %v1011_v41 = vmul.f32 %v9837_v22, %v972_v35  ;;  %v974_v47 = vld [vmem:[%s9688_s9 + $0x40] sm:$0xff]  ;;  %v1012_v50 = vmul.f32 %v9837_v22, %v973_v46  ;;  %v975_v54 = vld [vmem:[%s9688_s9 + $0x48] sm:$0xff]  ;;  %v308_v46 = vld [vmem:[%s9683_s30 + $0xb8] sm:$0xff] }
  0x2e   : > { %v1076_v42 = vmax.f32 %v1044_v36, 0.0  ;;  %v1077_v43 = vmax.f32 %v1045_v37, 0.0  ;;  %v1048_v45 = vadd.f32 %v9848_v23, %v1009_v34  ;;  %v1049_v49 = vadd.f32 %v9848_v23, %v1010_v40  ;;  %v976_v55 = vld [vmem:[%s9688_s9 + $0x50] sm:$0xff]  ;;  %v977_v62 = vld [vmem:[%s9688_s9 + $0x58] sm:$0xff]  ;;  %v1470_v35 = vld [vmem:[%s14356_s5] sm:$0xff]  ;;  %341 = vst.msk [vmem:[%s9688_s9 + $0xb8] sm:$0xff] %vm317_vm1, %v308_v46 }
  0x2f   : > { %v1078_v44 = vmax.f32 %v1046_v38, 0.0  ;;  %v1079_v48 = vmax.f32 %v1047_v39, 0.0  ;;  %v1050_v52 = vadd.f32 %v9848_v23, %v1011_v41  ;;  %v1013_v53 = vmul.f32 %v9837_v22, %v974_v47  ;;  %v978_v63 = vld [vmem:[%s9688_s9 + $0x60] sm:$0xff]  ;;  %v979_v7 = vld [vmem:[%s9688_s9 + $0x68] sm:$0xff]  ;;  %v303_v38 = vld [vmem:[%s9683_s30 + $0x90] sm:$0xff] }
  0x30   : > { %9215 = vmatprep.mubr.msk.f32.mxu0 %vm252_vm0, %v1076_v42  ;;  %v1080_v51 = vmax.f32 %v1048_v45, 0.0  ;;  %v1081_v56 = vmax.f32 %v1049_v49, 0.0  ;;  %v1051_v57 = vadd.f32 %v9848_v23, %v1012_v50  ;;  %v1014_v58 = vmul.f32 %v9837_v22, %v975_v54  ;;  %v980_v8 = vld [vmem:[%s9688_s9 + $0x70] sm:$0xff]  ;;  %v981_v15 = vld [vmem:[%s9688_s9 + $0x78] sm:$0xff]  ;;  %v1471_v36 = vld [vmem:[%s14356_s5 + $0x8] sm:$0xff]  ;;  %336 = vst.msk [vmem:[%s9688_s9 + $0x90] sm:$0xff] %vm317_vm1, %v303_v38 }
  0x31   : > { %9216 = vmatmul.mubr.msk.f32.vlgmr.msra.gmra.mrb[0].mxu0 %vm252_vm0, %v1077_v43  ;;  %v1082_v59 = vmax.f32 %v1050_v52, 0.0  ;;  %v1052_v60 = vadd.f32 %v9848_v23, %v1013_v53  ;;  %v1015_v61 = vmul.f32 %v9837_v22, %v976_v55  ;;  %v1016_v2 = vmul.f32 %v9837_v22, %v977_v62  ;;  %v982_v16 = vld [vmem:[%s9688_s9 + $0x80] sm:$0xff]  ;;  %v983_v25 = vld [vmem:[%s9688_s9 + $0x88] sm:$0xff]  ;;  %v304_v39 = vld [vmem:[%s9683_s30 + $0x98] sm:$0xff] }
  0x32   : > { %9218 = vmatprep.mubr.msk.f32.mxu0 %vm252_vm0, %v1078_v44  ;;  %v1083_v0 = vmax.f32 %v1051_v57, 0.0  ;;  %v1053_v1 = vadd.f32 %v9848_v23, %v1014_v58  ;;  %v1017_v6 = vmul.f32 %v9837_v22, %v978_v63  ;;  %v1018_v11 = vmul.f32 %v9837_v22, %v979_v7  ;;  %337 = vst.msk [vmem:[%s9688_s9 + $0x98] sm:$0xff] %vm317_vm1, %v304_v39  ;;  %v305_v40 = vld [vmem:[%s9683_s30 + $0xa0] sm:$0xff]  ;;  %v306_v41 = vld [vmem:[%s9683_s30 + $0xa8] sm:$0xff]  ;;  %v307_v45 = vld [vmem:[%s9683_s30 + $0xb0] sm:$0xff] }
  0x33   : > { %v1084_v4 = vmax.f32 %v1052_v60, 0.0  ;;  %v1054_v5 = vadd.f32 %v9848_v23, %v1015_v61  ;;  %v1055_v10 = vadd.f32 %v9848_v23, %v1016_v2  ;;  %v1019_v14 = vmul.f32 %v9837_v22, %v980_v8  ;;  %338 = vst.msk [vmem:[%s9688_s9 + $0xa0] sm:$0xff] %vm317_vm1, %v305_v40  ;;  %339 = vst.msk [vmem:[%s9688_s9 + $0xa8] sm:$0xff] %vm317_vm1, %v306_v41  ;;  %v309_v53 = vld [vmem:[%s9683_s30 + $0xc0] sm:$0xff]  ;;  %v310_v57 = vld [vmem:[%s9683_s30 + $0xc8] sm:$0xff] }
  0x34   : > { %v1085_v9 = vmax.f32 %v1053_v1, 0.0  ;;  %v1056_v13 = vadd.f32 %v9848_v23, %v1017_v6  ;;  %v1057_v18 = vadd.f32 %v9848_v23, %v1018_v11  ;;  %v1020_v19 = vmul.f32 %v9837_v22, %v981_v15  ;;  %340 = vst.msk [vmem:[%s9688_s9 + $0xb0] sm:$0xff] %vm317_vm1, %v307_v45  ;;  %342 = vst.msk [vmem:[%s9688_s9 + $0xc0] sm:$0xff] %vm317_vm1, %v309_v53  ;;  %v311_v62 = vld [vmem:[%s9683_s30 + $0xd0] sm:$0xff]  ;;  %v313_v8 = vld [vmem:[%s9683_s30 + $0xe0] sm:$0xff] }
  0x35   : > { %9219 = vmatmul.mubr.msk.f32.gmra.mrb[2].mxu0 %vm252_vm0, %v1079_v48  ;;  %v1086_v12 = vmax.f32 %v1054_v5, 0.0  ;;  %v1087_v17 = vmax.f32 %v1055_v10, 0.0  ;;  %v1058_v21 = vadd.f32 %v9848_v23, %v1019_v14  ;;  %v1021_v24 = vmul.f32 %v9837_v22, %v982_v16  ;;  %343 = vst.msk [vmem:[%s9688_s9 + $0xc8] sm:$0xff] %vm317_vm1, %v310_v57  ;;  %v989_v61 = vld [vmem:[%s9688_s9 + $0xb8] sm:$0xff]  ;;  %344 = vst.msk [vmem:[%s9688_s9 + $0xd0] sm:$0xff] %vm317_vm1, %v311_v62  ;;  %v2113_v39 = vld [vmem:[#allocation2 + $0x9] sm:$0xff] }
  0x36   : > { %9221 = vmatprep.mubr.msk.f32.mxu0 %vm252_vm0, %v1080_v51  ;;  %v1088_v20 = vmax.f32 %v1056_v13, 0.0  ;;  %v1089_v26 = vmax.f32 %v1057_v18, 0.0  ;;  %v1059_v27 = vadd.f32 %v9848_v23, %v1020_v19  ;;  %v1022_v28 = vmul.f32 %v9837_v22, %v983_v25  ;;  %346 = vst.msk [vmem:[%s9688_s9 + $0xe0] sm:$0xff] %vm317_vm1, %v313_v8  ;;  %v10030_v40 = vld [vmem:[%s14355_s4] ss:$0 sm:$0xff] }
  0x37   : > { %v1090_v29 = vmax.f32 %v1058_v21, 0.0  ;;  %v1060_v30 = vadd.f32 %v9848_v23, %v1021_v24  ;;  %v9527_v37 = vpack.c.bf16 %v1471_v36, %v1470_v35  ;;  %v984_v42 = vld [vmem:[%s9688_s9 + $0x90] sm:$0xff]  ;;  %v1028_v2 = vmul.f32 %v9837_v22, %v989_v61 }
  0x38   : > { %v1091_v31 = vmax.f32 %v1059_v27, 0.0  ;;  %v1061_v32 = vadd.f32 %v9848_v23, %v1022_v28  ;;  %v1023_v43 = vmul.f32 %v9837_v22, %v984_v42 }
  0x39   : > { %9222 = vmatmul.mubr.msk.f32.gmra.mrb[4].mxu0 %vm252_vm0, %v1081_v56  ;;  %v1092_v33 = vmax.f32 %v1060_v30, 0.0  ;;  %9528 = vmatprep.subr.bf16.mxu1 %v9527_v37  ;;  %v985_v44 = vld [vmem:[%s9688_s9 + $0x98] sm:$0xff]  ;;  %v1067_v6 = vadd.f32 %v9848_v23, %v1028_v2 }
  0x3a   : > { %9224 = vmatprep.mubr.msk.f32.mxu0 %vm252_vm0, %v1082_v59  ;;  %v1093_v34 = vmax.f32 %v1061_v32, 0.0  ;;  %9530 = vmatpush3.bf16.msra.mxu1 %v9527_v37  ;;  %v1024_v47 = vmul.f32 %v9837_v22, %v985_v44  ;;  %v1062_v48 = vadd.f32 %v9848_v23, %v1023_v43  ;;  %v986_v51 = vld [vmem:[%s9688_s9 + $0xa0] sm:$0xff]  ;;  %v987_v52 = vld [vmem:[%s9688_s9 + $0xa8] sm:$0xff] }
  0x3b   : > { %v1025_v55 = vmul.f32 %v9837_v22, %v986_v51  ;;  %v1026_v56 = vmul.f32 %v9837_v22, %v987_v52  ;;  %v988_v60 = vld [vmem:[%s9688_s9 + $0xb0] sm:$0xff]  ;;  %v990_v7 = vld [vmem:[%s9688_s9 + $0xc0] sm:$0xff]  ;;  %v1099_v11 = vmax.f32 %v1067_v6, 0.0 }
  0x3c   : > { %v1063_v49 = vadd.f32 %v9848_v23, %v1024_v47  ;;  %v1094_v50 = vmax.f32 %v1062_v48, 0.0  ;;  %v1027_v1 = vmul.f32 %v9837_v22, %v988_v60  ;;  %v991_v13 = vld [vmem:[%s9688_s9 + $0xc8] sm:$0xff] }
  0x3d   : > { %9225 = vmatmul.mubr.msk.f32.gmra.mrb[6].mxu0 %vm252_vm0, %v1083_v0  ;;  %v1064_v58 = vadd.f32 %v9848_v23, %v1025_v55  ;;  %v1065_v59 = vadd.f32 %v9848_v23, %v1026_v56  ;;  %v1030_v14 = vmul.f32 %v9837_v22, %v991_v13  ;;  %v994_v27 = vld [vmem:[%s9688_s9 + $0xe0] sm:$0xff] }
  0x3e   : > { %9227 = vmatprep.mubr.msk.f32.mxu0 %vm252_vm0, %v1084_v4  ;;  %v1095_v54 = vmax.f32 %v1063_v49, 0.0  ;;  %v312_v4 = vld [vmem:[%s9683_s30 + $0xd8] sm:$0xff]  ;;  %v1066_v5 = vadd.f32 %v9848_v23, %v1027_v1 }
  0x3f   : > { %v1096_v63 = vmax.f32 %v1064_v58, 0.0  ;;  %v1097_v0 = vmax.f32 %v1065_v59, 0.0  ;;  %345 = vst.msk [vmem:[%s9688_s9 + $0xd8] sm:$0xff] %vm317_vm1, %v312_v4  ;;  %v1069_v16 = vadd.f32 %v9848_v23, %v1030_v14 }
  0x40   : > { %v1098_v10 = vmax.f32 %v1066_v5, 0.0 }
  0x41   : > { %9228 = vmatmul.mubr.msk.f32.gmra.mrb[8].mxu0 %vm252_vm0, %v1085_v9  ;;  %v314_v9 = vld [vmem:[%s9683_s30 + $0xe8] sm:$0xff]  ;;  %v1101_v21 = vmax.f32 %v1069_v16, 0.0 }
  0x42   : > { %9230 = vmatprep.mubr.msk.f32.mxu0 %vm252_vm0, %v1086_v12  ;;  %v1029_v12 = vmul.f32 %v9837_v22, %v990_v7  ;;  %347 = vst.msk [vmem:[%s9688_s9 + $0xe8] sm:$0xff] %vm317_vm1, %v314_v9 }
  0x44   : > { %v1068_v15 = vadd.f32 %v9848_v23, %v1029_v12 }
  0x45   : > { %9231 = vmatmul.mubr.msk.f32.gmra.mrb[10].mxu0 %vm252_vm0, %v1087_v17  ;;  %v992_v17 = vld [vmem:[%s9688_s9 + $0xd0] sm:$0xff] }
  0x46   : > { %9233 = vmatprep.mubr.msk.f32.mxu0 %vm252_vm0, %v1088_v20  ;;  %v1100_v18 = vmax.f32 %v1068_v15, 0.0  ;;  %v1031_v19 = vmul.f32 %v9837_v22, %v992_v17  ;;  %v993_v20 = vld [vmem:[%s9688_s9 + $0xd8] sm:$0xff] }
  0x47   : > { %v1032_v24 = vmul.f32 %v9837_v22, %v993_v20 }
  0x48   : > { %v1070_v25 = vadd.f32 %v9848_v23, %v1031_v19 }
  0x49   : > { %9234 = vmatmul.mubr.msk.f32.gmra.mrb[12].mxu0 %vm252_vm0, %v1089_v26  ;;  %v1071_v26 = vadd.f32 %v9848_v23, %v1032_v24  ;;  %v995_v28 = vld [vmem:[%s9688_s9 + $0xe8] sm:$0xff] }
  0x4a   : > { %9236 = vmatprep.mubr.msk.f32.mxu0 %vm252_vm0, %v1090_v29  ;;  %v1921_v29 = vld [vmem:[#allocation2 + $0x8] sm:$0xff]  ;;  %v1102_v30 = vmax.f32 %v1070_v25, 0.0  ;;  %v1034_v32 = vmul.f32 %v9837_v22, %v995_v28 }
  0x4b   : > { %1985 = vrot.lane.b32.xlu0 %v1921_v29, %s9620_s18 }
  0x4c   : > { %v1073_v36 = vadd.f32 %v9848_v23, %v1034_v32 }
  0x4d   : > { %9237 = vmatmul.mubr.msk.f32.gmra.mrb[14].mxu0 %vm252_vm0, %v1091_v31  ;;  %v1033_v31 = vmul.f32 %v9837_v22, %v994_v27 }
  0x4e   : > { %9239 = vmatprep.mubr.msk.f32.mxu0 %vm252_vm0, %v1092_v33  ;;  %v1103_v33 = vmax.f32 %v1071_v26, 0.0  ;;  %v1105_v38 = vmax.f32 %v1073_v36, 0.0 }
  0x4f   : > { %v1072_v35 = vadd.f32 %v9848_v23, %v1033_v31 }
  0x51   : > { %9240 = vmatmul.mubr.msk.f32.gmra.mrb[16].mxu0 %vm252_vm0, %v1093_v34  ;;  %v1922_v34 = vld [vmem:[#allocation2 + $0x10] sm:$0xff]  ;;  %v1104_v37 = vmax.f32 %v1072_v35, 0.0  ;;  %v316_v35 = vld [vmem:[%s9683_s30 + $0xf8] sm:$0xff] }
  0x52   : > { %9242 = vmatprep.mubr.msk.f32.mxu0 %vm252_vm0, %v1094_v50  ;;  %1987 = vrot.lane.b32.xlu0 %v1922_v34, %s9620_s18  ;;  %v315_v34 = vld [vmem:[%s9683_s30 + $0xf0] sm:$0xff]  ;;  %349 = vst.msk [vmem:[%s9688_s9 + $0xf8] sm:$0xff] %vm317_vm1, %v316_v35 }
  0x53   : > { %348 = vst.msk [vmem:[%s9688_s9 + $0xf0] sm:$0xff] %vm317_vm1, %v315_v34 }
  0x55   : > { %9243 = vmatmul.mubr.msk.f32.gmra.mrb[18].mxu0 %vm252_vm0, %v1095_v54 }
  0x56   : > { %9245 = vmatprep.mubr.msk.f32.mxu0 %vm252_vm0, %v1096_v63  ;;  %2209 = vrot.lane.b32.xlu0 %v2113_v39, %s9621_s19 }
  0x59   : > { %9246 = vmatmul.mubr.msk.f32.gmra.mrb[20].mxu0 %vm252_vm0, %v1097_v0 }
  0x5a   : > { %9248 = vmatprep.mubr.msk.f32.mxu0 %vm252_vm0, %v1098_v10  ;;  %v996_v36 = vld [vmem:[%s9688_s9 + $0xf0] sm:$0xff] }
  0x5d   : > { %9249 = vmatmul.mubr.msk.f32.gmra.mrb[22].mxu0 %vm252_vm0, %v1099_v11 }
  0x5e   : > { %9251 = vmatprep.mubr.msk.f32.mxu0 %vm252_vm0, %v1100_v18 }
  0x61   : > { %9252 = vmatmul.mubr.msk.f32.gmra.mrb[24].mxu0 %vm252_vm0, %v1101_v21 }
  0x62   : > { %9254 = vmatprep.mubr.msk.f32.mxu0 %vm252_vm0, %v1102_v30 }
  0x65   : > { %9255 = vmatmul.mubr.msk.f32.gmra.mrb[26].mxu0 %vm252_vm0, %v1103_v33 }
  0x66   : > { %9257 = vmatprep.mubr.msk.f32.mxu0 %vm252_vm0, %v1104_v37  ;;  %v1035_v37 = vmul.f32 %v9837_v22, %v996_v36 }
  0x69   : > { %9258 = vmatmul.mubr.msk.f32.gmra.mrb[28].mxu0 %vm252_vm0, %v1105_v38  ;;  %v997_v38 = vld [vmem:[%s9688_s9 + $0xf8] sm:$0xff] }
  0x6a   : > { %v1036_v39 = vmul.f32 %v9837_v22, %v997_v38 }
 0x104   : > { %v9217_v41 = vpop.f32.mrb[0].mxu0 }
 0x105   : > { %v1285_v42 = vadd.f32 %v9217_v41, %v10030_v40  ;;  %v1279_v43 = vpop.f32.mrb[1].mxu0  ;;  %v1074_v41 = vadd.f32 %v9848_v23, %v1035_v37 }
 0x106   : > { %v1280_v44 = vadd.f32 %v10030_v40, %v1279_v43  ;;  %v2858_v43 = vld [vmem:[#allocation2 + $0x11f] sm:$0xff] }
 0x107   : > { %v1439_v47 = vmax.f32 %v1285_v42, 0.0  ;;  %v1075_v42 = vadd.f32 %v9848_v23, %v1036_v39  ;;  %2985 = vrot.lane.b32.xlu0 %v2858_v43, %s9622_s23 }
 0x108   : > { %v1438_v45 = vmax.f32 %v1280_v44, 0.0  ;;  %v9220_v46 = vpop.f32.mrb[2].mxu0  ;;  %v1106_v44 = vmax.f32 %v1074_v41, 0.0 }
 0x109   : > { %v1295_v48 = vadd.f32 %v9220_v46, %v10030_v40  ;;  %v1289_v49 = vpop.f32.mrb[3].mxu0  ;;  %v3052_v46 = vld [vmem:[#allocation2 + $0x120] sm:$0xff] }
 0x10a   : > { %v1290_v50 = vadd.f32 %v10030_v40, %v1289_v49  ;;  %9267 = vmatprep.mubr.msk.f32.mxu1 %vm252_vm0, %v1438_v45  ;;  %v1107_v45 = vmax.f32 %v1075_v42, 0.0  ;;  %9260 = vmatprep.mubr.msk.f32.mxu0 %vm252_vm0, %v1106_v44 }
 0x10b   : > { %v1441_v51 = vmax.f32 %v1295_v48, 0.0  ;;  %9268 = vmatmul.mubr.msk.f32.vlgmr.msra.gmra.mrb[0].mxu1 %vm252_vm0, %v1439_v47  ;;  %3117 = vrot.lane.b32.xlu1 %v3052_v46, %s9623_s24  ;;  %v3051_v47 = vld [vmem:[#allocation2 + $0x118] sm:$0xff] }
 0x10c   : > { %v1440_v52 = vmax.f32 %v1290_v50, 0.0  ;;  %v9223_v53 = vpop.f32.mrb[4].mxu0  ;;  %9261 = vmatmul.mubr.msk.f32.gmra.mrb[30].mxu0 %vm252_vm0, %v1107_v45  ;;  %3115 = vrot.lane.b32.xlu0 %v3051_v47, %s9623_s24 }
 0x10d   : > { %v1305_v54 = vadd.f32 %v9223_v53, %v10030_v40  ;;  %v1299_v55 = vpop.f32.mrb[5].mxu0 }
 0x10e   : > { %9270 = vmatprep.mubr.msk.f32.mxu1 %vm252_vm0, %v1440_v52  ;;  %v1300_v56 = vadd.f32 %v10030_v40, %v1299_v55 }
 0x10f   : > { %9271 = vmatmul.mubr.msk.f32.gmra.mrb[2].mxu1 %vm252_vm0, %v1441_v51  ;;  %v1443_v57 = vmax.f32 %v1305_v54, 0.0 }
 0x110   : > { %v1442_v58 = vmax.f32 %v1300_v56, 0.0  ;;  %v9226_v59 = vpop.f32.mrb[6].mxu0 }
 0x111   : > { %v1315_v60 = vadd.f32 %v9226_v59, %v10030_v40  ;;  %v1309_v61 = vpop.f32.mrb[7].mxu0 }
 0x112   : > { %9273 = vmatprep.mubr.msk.f32.mxu1 %vm252_vm0, %v1442_v58  ;;  %v1310_v62 = vadd.f32 %v10030_v40, %v1309_v61 }
 0x113   : > { %9274 = vmatmul.mubr.msk.f32.gmra.mrb[4].mxu1 %vm252_vm0, %v1443_v57  ;;  %v1445_v63 = vmax.f32 %v1315_v60, 0.0 }
 0x114   : > { %v1444_v0 = vmax.f32 %v1310_v62, 0.0  ;;  %v9229_v1 = vpop.f32.mrb[8].mxu0 }
 0x115   : > { %v1325_v2 = vadd.f32 %v9229_v1, %v10030_v40  ;;  %v1319_v4 = vpop.f32.mrb[9].mxu0 }
 0x116   : > { %9276 = vmatprep.mubr.msk.f32.mxu1 %vm252_vm0, %v1444_v0  ;;  %v1320_v5 = vadd.f32 %v10030_v40, %v1319_v4 }
 0x117   : > { %9277 = vmatmul.mubr.msk.f32.gmra.mrb[6].mxu1 %vm252_vm0, %v1445_v63  ;;  %v1447_v6 = vmax.f32 %v1325_v2, 0.0 }
 0x118   : > { %v1446_v7 = vmax.f32 %v1320_v5, 0.0  ;;  %v9232_v8 = vpop.f32.mrb[10].mxu0 }
 0x119   : > { %v1335_v9 = vadd.f32 %v9232_v8, %v10030_v40  ;;  %v1329_v10 = vpop.f32.mrb[11].mxu0 }
 0x11a   : > { %9279 = vmatprep.mubr.msk.f32.mxu1 %vm252_vm0, %v1446_v7  ;;  %v1330_v11 = vadd.f32 %v10030_v40, %v1329_v10 }
 0x11b   : > { %9280 = vmatmul.mubr.msk.f32.gmra.mrb[8].mxu1 %vm252_vm0, %v1447_v6  ;;  %v1449_v12 = vmax.f32 %v1335_v9, 0.0  ;;  %v357_v9 = vlaneseq }
 0x11c   : > { %v1448_v13 = vmax.f32 %v1330_v11, 0.0  ;;  %v9235_v14 = vpop.f32.mrb[12].mxu0 }
 0x11d   : > { %v1345_v15 = vadd.f32 %v9235_v14, %v10030_v40  ;;  %v1339_v16 = vpop.f32.mrb[13].mxu0 }
 0x11e   : > { %9282 = vmatprep.mubr.msk.f32.mxu1 %vm252_vm0, %v1448_v13  ;;  %v1340_v17 = vadd.f32 %v10030_v40, %v1339_v16 }
 0x11f   : > { %9283 = vmatmul.mubr.msk.f32.gmra.mrb[10].mxu1 %vm252_vm0, %v1449_v12  ;;  %v1451_v18 = vmax.f32 %v1345_v15, 0.0  ;;  %v10104_v12 = vshrl.u32 %v357_v9, 7 }
 0x120   : > { %v1450_v19 = vmax.f32 %v1340_v17, 0.0  ;;  %v9238_v20 = vpop.f32.mrb[14].mxu0 }
 0x121   : > { %v1355_v21 = vadd.f32 %v9238_v20, %v10030_v40  ;;  %v1349_v24 = vpop.f32.mrb[15].mxu0  ;;  %v359_v17 = vadd.s32 8, %v10104_v12  ;;  %v360_v47 = vadd.s32 16, %v10104_v12 }
 0x122   : > { %9285 = vmatprep.mubr.msk.f32.mxu1 %vm252_vm0, %v1450_v19  ;;  %v1350_v25 = vadd.f32 %v10030_v40, %v1349_v24 }
 0x123   : > { %9286 = vmatmul.mubr.msk.f32.gmra.mrb[12].mxu1 %vm252_vm0, %v1451_v18  ;;  %v1453_v26 = vmax.f32 %v1355_v21, 0.0  ;;  %v394_v18 = vand.u32 15, %v10104_v12  ;;  %v401_v21 = vand.u32 15, %v359_v17 }
 0x124   : > { %v1452_v27 = vmax.f32 %v1350_v25, 0.0  ;;  %v9241_v28 = vpop.f32.mrb[16].mxu0 }
 0x125   : > { %v1365_v29 = vadd.f32 %v9241_v28, %v10030_v40  ;;  %v1359_v30 = vpop.f32.mrb[17].mxu0  ;;  %vm774_vm3 = vcmp.gt.s32.totalorder %v394_v18, 0  ;;  %vm871_vm4 = vcmp.lt.s32.totalorder %v401_v21, 15 }
 0x126   : > { %9288 = vmatprep.mubr.msk.f32.mxu1 %vm252_vm0, %v1452_v27  ;;  %v1360_v31 = vadd.f32 %v10030_v40, %v1359_v30 }
 0x127   : > { %9289 = vmatmul.mubr.msk.f32.gmra.mrb[14].mxu1 %vm252_vm0, %v1453_v26  ;;  %v1455_v32 = vmax.f32 %v1365_v29, 0.0  ;;  %v10119_v26 = vsel %vm774_vm3, 1.0, %v14358_v3 }
 0x128   : > { %v1454_v33 = vmax.f32 %v1360_v31, 0.0  ;;  %v9244_v22 = vpop.f32.mrb[18].mxu0  ;;  %14467 = vst [vmem:[#allocation3_spill] sm:$0xff] %v10119_v26  ;;  %v10126_v31 = vsel %vm871_vm4, 1.0, %v14358_v3 }
 0x129   : > { %v1375_v23 = vadd.f32 %v9244_v22, %v10030_v40  ;;  %v1369_v48 = vpop.f32.mrb[19].mxu0  ;;  %14468 = vst [vmem:[#allocation4_spill] sm:$0xff] %v10126_v31 }
 0x12a   : > { %9291 = vmatprep.mubr.msk.f32.mxu1 %vm252_vm0, %v1454_v33  ;;  %v1370_v49 = vadd.f32 %v10030_v40, %v1369_v48  ;;  %v408_v48 = vand.u32 15, %v360_v47 }
 0x12b   : > { %9292 = vmatmul.mubr.msk.f32.gmra.mrb[16].mxu1 %vm252_vm0, %v1455_v32  ;;  %v1457_v50 = vmax.f32 %v1375_v23, 0.0 }
 0x12c   : > { %v1456_v51 = vmax.f32 %v1370_v49, 0.0  ;;  %v9247_v52 = vpop.f32.mrb[20].mxu0  ;;  %v361_v49 = vadd.s32 24, %v10104_v12  ;;  %vm776_vm5 = vcmp.gt.s32.totalorder %v408_v48, 0 }
 0x12d   : > { %v1385_v53 = vadd.f32 %v9247_v52, %v10030_v40  ;;  %v1379_v54 = vpop.f32.mrb[21].mxu0  ;;  %v10152_v52 = vsel %vm776_vm5, 1.0, %v14358_v3 }
 0x12e   : > { %9294 = vmatprep.mubr.msk.f32.mxu1 %vm252_vm0, %v1456_v51  ;;  %v1380_v55 = vadd.f32 %v10030_v40, %v1379_v54  ;;  %v415_v51 = vand.u32 15, %v361_v49  ;;  %14469 = vst [vmem:[#allocation5_spill] sm:$0xff] %v10152_v52 }
 0x12f   : > { %9295 = vmatmul.mubr.msk.f32.gmra.mrb[18].mxu1 %vm252_vm0, %v1457_v50  ;;  %v1459_v56 = vmax.f32 %v1385_v53, 0.0 }
 0x130   : > { %v1458_v57 = vmax.f32 %v1380_v55, 0.0  ;;  %v9250_v58 = vpop.f32.mrb[22].mxu0  ;;  %vm873_vm6 = vcmp.lt.s32.totalorder %v415_v51, 15 }
 0x131   : > { %v1395_v59 = vadd.f32 %v9250_v58, %v10030_v40  ;;  %v1389_v60 = vpop.f32.mrb[23].mxu0  ;;  %v10159_v55 = vsel %vm873_vm6, 1.0, %v14358_v3 }
 0x132   : > { %9297 = vmatprep.mubr.msk.f32.mxu1 %vm252_vm0, %v1458_v57  ;;  %v1390_v61 = vadd.f32 %v10030_v40, %v1389_v60  ;;  %14470 = vst [vmem:[#allocation6_spill] sm:$0xff] %v10159_v55 }
 0x133   : > { %9298 = vmatmul.mubr.msk.f32.gmra.mrb[20].mxu1 %vm252_vm0, %v1459_v56  ;;  %v1461_v62 = vmax.f32 %v1395_v59, 0.0 }
 0x134   : > { %v1460_v63 = vmax.f32 %v1390_v61, 0.0  ;;  %v9253_v0 = vpop.f32.mrb[24].mxu0 }
 0x135   : > { %v1405_v1 = vadd.f32 %v9253_v0, %v10030_v40  ;;  %v1399_v2 = vpop.f32.mrb[25].mxu0 }
 0x136   : > { %9300 = vmatprep.mubr.msk.f32.mxu1 %vm252_vm0, %v1460_v63  ;;  %v1400_v4 = vadd.f32 %v10030_v40, %v1399_v2 }
 0x137   : > { %9301 = vmatmul.mubr.msk.f32.gmra.mrb[22].mxu1 %vm252_vm0, %v1461_v62  ;;  %v1463_v5 = vmax.f32 %v1405_v1, 0.0 }
 0x138   : > { %v1462_v6 = vmax.f32 %v1400_v4, 0.0  ;;  %v9256_v35 = vpop.f32.mrb[26].mxu0 }
 0x139   : > { %v1409_v38 = vpop.f32.mrb[27].mxu0  ;;  %v1415_v41 = vadd.f32 %v9256_v35, %v10030_v40 }
 0x13a   : > { %9303 = vmatprep.mubr.msk.f32.mxu1 %vm252_vm0, %v1462_v6  ;;  %v1410_v42 = vadd.f32 %v10030_v40, %v1409_v38  ;;  %v362_v6 = vadd.s32 32, %v10104_v12  ;;  %v10212_v38 = vpop.permute.xlu0 %1985 }
 0x13b   : > { %9304 = vmatmul.mubr.msk.f32.gmra.mrb[24].mxu1 %vm252_vm0, %v1463_v5  ;;  %v1465_v44 = vmax.f32 %v1415_v41, 0.0 }
 0x13c   : > { %v1464_v45 = vmax.f32 %v1410_v42, 0.0  ;;  %v9259_v61 = vpop.f32.mrb[28].mxu0 }
 0x13d   : > { %v1425_v0 = vadd.f32 %v9259_v61, %v10030_v40  ;;  %v1419_v1 = vpop.f32.mrb[29].mxu0 }
 0x13e   : > { %9306 = vmatprep.mubr.msk.f32.mxu1 %vm252_vm0, %v1464_v45  ;;  %v1420_v2 = vadd.f32 %v10030_v40, %v1419_v1  ;;  %v10217_v41 = vpop.permute.xlu0 %1987 }
 0x13f   : > { %9307 = vmatmul.mubr.msk.f32.gmra.mrb[26].mxu1 %vm252_vm0, %v1465_v44  ;;  %v1467_v4 = vmax.f32 %v1425_v0, 0.0 }
 0x140   : > { %v1466_v5 = vmax.f32 %v1420_v2, 0.0 }
 0x142   : > { %9309 = vmatprep.mubr.msk.f32.mxu1 %vm252_vm0, %v1466_v5  ;;  %v10228_v47 = vpop.permute.xlu0 %2209 }
 0x143   : > { %9310 = vmatmul.mubr.msk.f32.gmra.mrb[28].mxu1 %vm252_vm0, %v1467_v4 }
 0x179   : > { %v10234_v49 = vpop.permute.xlu0 %2985 }
 0x17a   : > { %14472 = vst [vmem:[#allocation8_spill] sm:$0xff] %v10234_v49 }
 0x1de   : > { %v9269_v7 = vpop.f32.mrb[0].mxu1 }
 0x1df   : > { %1794 = vst.msk [vmem:[#allocation2 + $0x20] sm:$0xff] %vm350_vm2, %v9269_v7  ;;  %v1634_v8 = vpop.f32.mrb[1].mxu1 }
 0x1e0   : > { %1793 = vst.msk [vmem:[#allocation2 + $0x18] sm:$0xff] %vm350_vm2, %v1634_v8  ;;  %v422_v8 = vand.u32 15, %v362_v6 }
 0x1e2   : > { %v9272_v10 = vpop.f32.mrb[2].mxu1  ;;  %vm778_vm7 = vcmp.gt.s32.totalorder %v422_v8, 0 }
 0x1e3   : > { %1796 = vst.msk [vmem:[#allocation2 + $0x30] sm:$0xff] %vm350_vm2, %v9272_v10  ;;  %v1644_v11 = vpop.f32.mrb[3].mxu1 }
 0x1e4   : > { %1795 = vst.msk [vmem:[#allocation2 + $0x28] sm:$0xff] %vm350_vm2, %v1644_v11  ;;  %v363_v11 = vadd.s32 40, %v10104_v12 }
 0x1e6   : > { %v1924_v13 = vld [vmem:[#allocation2 + $0x20] sm:$0xff]  ;;  %v9275_v14 = vpop.f32.mrb[4].mxu1 }
 0x1e7   : > { %1991 = vrot.lane.b32.xlu1 %v1924_v13, %s9620_s18  ;;  %v2115_v15 = vld [vmem:[#allocation2 + $0x19] sm:$0xff]  ;;  %1798 = vst.msk [vmem:[#allocation2 + $0x40] sm:$0xff] %vm350_vm2, %v9275_v14  ;;  %v1654_v16 = vpop.f32.mrb[5].mxu1  ;;  %v2114_v32 = vld [vmem:[#allocation2 + $0x11] sm:$0xff] }
 0x1e8   : > { %2213 = vrot.lane.b32.xlu0 %v2115_v15, %s9621_s19  ;;  %1797 = vst.msk [vmem:[#allocation2 + $0x38] sm:$0xff] %vm350_vm2, %v1654_v16  ;;  %v1923_v20 = vld [vmem:[#allocation2 + $0x18] sm:$0xff]  ;;  %v2146_v36 = vmul.f32 %v10126_v31, %v2114_v32 }
 0x1e9   : > { %v1827_v27 = vld [vmem:[#allocation2 + $0x17] sm:$0xff]  ;;  %v1828_v29 = vld [vmem:[#allocation2 + $0x1f] sm:$0xff] }
 0x1ea   : > { %v9278_v19 = vpop.f32.mrb[6].mxu1  ;;  %v2339_v30 = vmul.f32 %v10119_v26, %v1827_v27  ;;  %v1926_v37 = vld [vmem:[#allocation2 + $0x30] sm:$0xff] }
 0x1eb   : > { %2537 = vrot.lane.b32.xlu1 %v1924_v13, %s9624_s25  ;;  %1800 = vst.msk [vmem:[#allocation2 + $0x50] sm:$0xff] %vm350_vm2, %v9278_v19  ;;  %v1664_v24 = vpop.f32.mrb[7].mxu1  ;;  %v1925_v46 = vld [vmem:[#allocation2 + $0x28] sm:$0xff]  ;;  %v10184_v13 = vsel %vm778_vm7, 1.0, %v14358_v3 }
 0x1ec   : > { %2535 = vrot.lane.b32.xlu0 %v1923_v20, %s9624_s25  ;;  %1799 = vst.msk [vmem:[#allocation2 + $0x48] sm:$0xff] %vm350_vm2, %v1664_v24  ;;  %v2117_v22 = vld [vmem:[#allocation2 + $0x29] sm:$0xff]  ;;  %v2116_v56 = vld [vmem:[#allocation2 + $0x21] sm:$0xff] }
 0x1ed   : > { %v1830_v23 = vld [vmem:[#allocation2 + $0x2f] sm:$0xff]  ;;  %v1829_v50 = vld [vmem:[#allocation2 + $0x27] sm:$0xff]  ;;  %v2148_v59 = vmul.f32 %v10159_v55, %v2116_v56  ;;  %v2666_v62 = vmul.f32 %v10126_v31, %v2116_v56 }
 0x1ee   : > { %v9281_v25 = vpop.f32.mrb[8].mxu1  ;;  %v2341_v53 = vmul.f32 %v10152_v52, %v1829_v50  ;;  %v2859_v54 = vmul.f32 %v10119_v26, %v1829_v50  ;;  %v1928_v60 = vld [vmem:[#allocation2 + $0x40] sm:$0xff] }
 0x1ef   : > { %1989 = vrot.lane.b32.xlu1 %v1923_v20, %s9620_s18  ;;  %1802 = vst.msk [vmem:[#allocation2 + $0x60] sm:$0xff] %vm350_vm2, %v9281_v25  ;;  %v1674_v28 = vpop.f32.mrb[9].mxu1  ;;  %v1927_v63 = vld [vmem:[#allocation2 + $0x38] sm:$0xff] }
 0x1f0   : > { %2729 = vrot.lane.b32.xlu0 %v2115_v15, %s9625_s26  ;;  %1801 = vst.msk [vmem:[#allocation2 + $0x58] sm:$0xff] %vm350_vm2, %v1674_v28  ;;  %v2119_v7 = vld [vmem:[#allocation2 + $0x39] sm:$0xff]  ;;  %v429_v15 = vand.u32 15, %v363_v11  ;;  %v2118_v17 = vld [vmem:[#allocation2 + $0x31] sm:$0xff] }
 0x1f1   : > { %v1832_v9 = vld [vmem:[#allocation2 + $0x3f] sm:$0xff]  ;;  %v1831_v10 = vld [vmem:[#allocation2 + $0x37] sm:$0xff]  ;;  %v3186_v18 = vmul.f32 %v10126_v31, %v2118_v17  ;;  %v2668_v27 = vmul.f32 %v10159_v55, %v2118_v17 }
 0x1f2   : > { %v9284_v33 = vpop.f32.mrb[10].mxu1  ;;  %v2343_v14 = vmul.f32 %v10184_v13, %v1831_v10  ;;  %v2861_v16 = vmul.f32 %v10152_v52, %v1831_v10  ;;  %vm875_vm8 = vcmp.lt.s32.totalorder %v429_v15, 15  ;;  %v1930_v25 = vld [vmem:[#allocation2 + $0x50] sm:$0xff] }
 0x1f3   : > { %2405 = vrot.lane.b32.xlu1 %v1828_v29, %s9626_s27  ;;  %1804 = vst.msk [vmem:[#allocation2 + $0x70] sm:$0xff] %vm350_vm2, %v9284_v33  ;;  %v1684_v34 = vpop.f32.mrb[11].mxu1  ;;  %v10194_v19 = vsel %vm875_vm8, 1.0, %v14358_v3  ;;  %v1929_v28 = vld [vmem:[#allocation2 + $0x48] sm:$0xff]  ;;  %v9262_v29 = vpop.f32.mrb[30].mxu0 }
 0x1f4   : > { %2403 = vrot.lane.b32.xlu0 %v2339_v30, %s9626_s27  ;;  %1803 = vst.msk [vmem:[#allocation2 + $0x68] sm:$0xff] %vm350_vm2, %v1684_v34  ;;  %14471 = vst [vmem:[#allocation7_spill] sm:$0xff] %v10194_v19  ;;  %v2150_v24 = vmul.f32 %v10194_v19, %v2118_v17  ;;  %v1435_v30 = vadd.f32 %v9262_v29, %v10030_v40  ;;  %v1429_v32 = vpop.f32.mrb[31].mxu0  ;;  %v1833_v42 = vld [vmem:[#allocation2 + $0x47] sm:$0xff] }
 0x1f5   : > { %v1430_v33 = vadd.f32 %v10030_v40, %v1429_v32  ;;  %v1834_v40 = vld [vmem:[#allocation2 + $0x4f] sm:$0xff] }
 0x1f6   : > { %v9287_v39 = vpop.f32.mrb[12].mxu1  ;;  %v1469_v34 = vmax.f32 %v1435_v30, 0.0  ;;  %v1932_v56 = vld [vmem:[#allocation2 + $0x60] sm:$0xff] }
 0x1f7   : > { %2211 = vrot.lane.b32.xlu1 %v2146_v36, %s9621_s19  ;;  %1806 = vst.msk [vmem:[#allocation2 + $0x80] sm:$0xff] %vm350_vm2, %v9287_v39  ;;  %v1694_v43 = vpop.f32.mrb[13].mxu1  ;;  %v1468_v35 = vmax.f32 %v1430_v33, 0.0  ;;  %v364_v36 = vadd.s32 48, %v10104_v12  ;;  %v2123_v0 = vld [vmem:[#allocation2 + $0x59] sm:$0xff] }
 0x1f8   : > { %3057 = vrot.lane.b32.xlu0 %v1926_v37, %s9623_s24  ;;  %1805 = vst.msk [vmem:[#allocation2 + $0x78] sm:$0xff] %vm350_vm2, %v1694_v43  ;;  %v365_v43 = vadd.s32 56, %v10104_v12  ;;  %v1835_v8 = vld [vmem:[#allocation2 + $0x57] sm:$0xff] }
 0x1f9   : > { %9312 = vmatprep.mubr.msk.f32.mxu1 %vm252_vm0, %v1468_v35  ;;  %v436_v39 = vand.u32 15, %v364_v36 }
 0x1fa   : > { %v9290_v57 = vpop.f32.mrb[14].mxu1  ;;  %9313 = vmatmul.mubr.msk.f32.gmra.mrb[30].mxu1 %vm252_vm0, %v1469_v34  ;;  %v1934_v34 = vld [vmem:[#allocation2 + $0x70] sm:$0xff] }
 0x1fb   : > { %1995 = vrot.lane.b32.xlu1 %v1926_v37, %s9620_s18  ;;  %1808 = vst.msk [vmem:[#allocation2 + $0x90] sm:$0xff] %vm350_vm2, %v9290_v57  ;;  %v1704_v58 = vpop.f32.mrb[15].mxu1  ;;  %vm780_vm9 = vcmp.gt.s32.totalorder %v436_v39, 0  ;;  %v10245_v57 = vpop.permute.xlu1 %3117  ;;  %v1933_v39 = vld [vmem:[#allocation2 + $0x68] sm:$0xff] }
 0x1fc   : > { %1993 = vrot.lane.b32.xlu0 %v1925_v46, %s9620_s18  ;;  %1807 = vst.msk [vmem:[#allocation2 + $0x88] sm:$0xff] %vm350_vm2, %v1704_v58  ;;  %v10223_v44 = vsel %vm780_vm9, 1.0, %v14358_v3  ;;  %14474 = vst [vmem:[#allocation10_spill] sm:$0xff] %v10245_v57  ;;  %v10248_v58 = vpop.permute.xlu0 %3115 }
 0x1fd   : > { %v2345_v45 = vmul.f32 %v10223_v44, %v1833_v42  ;;  %14475 = vst [vmem:[#allocation11_spill] sm:$0xff] %v10248_v58 }
 0x1fe   : > { %v9293_v20 = vpop.f32.mrb[16].mxu1 }
 0x1ff   : > { %2541 = vrot.lane.b32.xlu1 %v1926_v37, %s9624_s25  ;;  %1810 = vst.msk [vmem:[#allocation2 + $0xa0] sm:$0xff] %vm350_vm2, %v9293_v20  ;;  %v1714_v21 = vpop.f32.mrb[17].mxu1  ;;  %v2121_v37 = vld [vmem:[#allocation2 + $0x49] sm:$0xff]  ;;  %v2865_v20 = vmul.f32 %v10223_v44, %v1835_v8 }
 0x200   : > { %2217 = vrot.lane.b32.xlu0 %v2117_v22, %s9621_s19  ;;  %1809 = vst.msk [vmem:[#allocation2 + $0x98] sm:$0xff] %vm350_vm2, %v1714_v21  ;;  %v2122_v21 = vld [vmem:[#allocation2 + $0x51] sm:$0xff] }
 0x202   : > { %v9296_v51 = vpop.f32.mrb[18].mxu1 }
 0x203   : > { %2409 = vrot.lane.b32.xlu1 %v1830_v23, %s9626_s27  ;;  %1812 = vst.msk [vmem:[#allocation2 + $0xb0] sm:$0xff] %vm350_vm2, %v9296_v51 }
 0x204   : > { %2539 = vrot.lane.b32.xlu0 %v1925_v46, %s9624_s25 }
 0x207   : > { %2925 = vrot.lane.b32.xlu1 %v1830_v23, %s9622_s23  ;;  %v2120_v23 = vld [vmem:[#allocation2 + $0x41] sm:$0xff] }
 0x208   : > { %2733 = vrot.lane.b32.xlu0 %v2117_v22, %s9625_s26  ;;  %v3188_v48 = vmul.f32 %v10159_v55, %v2120_v23 }
 0x20b   : > { %3055 = vrot.lane.b32.xlu1 %v1925_v46, %s9623_s24  ;;  %v443_v46 = vand.u32 15, %v365_v43 }
 0x20c   : > { %2407 = vrot.lane.b32.xlu0 %v2341_v53, %s9626_s27  ;;  %v1724_v53 = vpop.f32.mrb[19].mxu1 }
 0x20d   : > { %vm877_vm10 = vcmp.lt.s32.totalorder %v443_v46, 15  ;;  %1811 = vst.msk [vmem:[#allocation2 + $0xa8] sm:$0xff] %vm350_vm2, %v1724_v53  ;;  %v9299_v29 = vpop.f32.mrb[20].mxu1  ;;  %v2125_v46 = vld [vmem:[#allocation2 + $0x69] sm:$0xff] }
 0x20e   : > { %v10237_v50 = vsel %vm877_vm10, 1.0, %v14358_v3  ;;  %1814 = vst.msk [vmem:[#allocation2 + $0xc0] sm:$0xff] %vm350_vm2, %v9299_v29  ;;  %v1734_v30 = vpop.f32.mrb[21].mxu1 }
 0x20f   : > { %3249 = vrot.lane.b32.xlu1 %v2117_v22, %s9627_s28  ;;  %v2863_v22 = vmul.f32 %v10184_v13, %v1833_v42  ;;  %14473 = vst [vmem:[#allocation9_spill] sm:$0xff] %v10237_v50  ;;  %1813 = vst.msk [vmem:[#allocation2 + $0xb8] sm:$0xff] %vm350_vm2, %v1734_v30  ;;  %v9302_v30 = vpop.f32.mrb[22].mxu1 }
 0x210   : > { %2923 = vrot.lane.b32.xlu0 %v2859_v54, %s9622_s23  ;;  %v2152_v54 = vmul.f32 %v10237_v50, %v2120_v23  ;;  %1816 = vst.msk [vmem:[#allocation2 + $0xd0] sm:$0xff] %vm350_vm2, %v9302_v30 }
 0x213   : > { %2215 = vrot.lane.b32.xlu1 %v2148_v59, %s9621_s19  ;;  %v2670_v59 = vmul.f32 %v10194_v19, %v2120_v23 }
 0x214   : > { %3061 = vrot.lane.b32.xlu0 %v1928_v60, %s9623_s24 }
 0x217   : > { %2731 = vrot.lane.b32.xlu1 %v2666_v62, %s9625_s26 }
 0x218   : > { %1997 = vrot.lane.b32.xlu0 %v1927_v63, %s9620_s18 }
 0x21b   : > { %1999 = vrot.lane.b32.xlu1 %v1928_v60, %s9620_s18 }
 0x21c   : > { %2221 = vrot.lane.b32.xlu0 %v2119_v7, %s9621_s19 }
 0x21f   : > { %2545 = vrot.lane.b32.xlu1 %v1928_v60, %s9624_s25  ;;  %v1931_v60 = vld [vmem:[#allocation2 + $0x58] sm:$0xff] }
 0x220   : > { %2543 = vrot.lane.b32.xlu0 %v1927_v63, %s9624_s25 }
 0x223   : > { %2413 = vrot.lane.b32.xlu1 %v1832_v9, %s9626_s27 }
 0x224   : > { %2737 = vrot.lane.b32.xlu0 %v2119_v7, %s9625_s26 }
 0x227   : > { %2929 = vrot.lane.b32.xlu1 %v1832_v9, %s9622_s23  ;;  %v367_v9 = vadd.s32 72, %v10104_v12 }
 0x228   : > { %2411 = vrot.lane.b32.xlu0 %v2343_v14, %s9626_s27 }
 0x22b   : > { %3059 = vrot.lane.b32.xlu1 %v1927_v63, %s9623_s24  ;;  %v366_v63 = vadd.s32 64, %v10104_v12 }
 0x22c   : > { %2927 = vrot.lane.b32.xlu0 %v2861_v16, %s9622_s23  ;;  %v457_v16 = vand.u32 15, %v367_v9 }
 0x22d   : > { %v450_v4 = vand.u32 15, %v366_v63 }
 0x22e   : > { %vm879_vm12 = vcmp.lt.s32.totalorder %v457_v16, 15  ;;  %v2124_v16 = vld [vmem:[#allocation2 + $0x61] sm:$0xff] }
 0x22f   : > { %3253 = vrot.lane.b32.xlu1 %v2119_v7, %s9627_s28  ;;  %v1836_v7 = vld [vmem:[#allocation2 + $0x5f] sm:$0xff]  ;;  %vm782_vm11 = vcmp.gt.s32.totalorder %v450_v4, 0 }
 0x230   : > { %3251 = vrot.lane.b32.xlu0 %v3186_v18, %s9627_s28  ;;  %v10276_v11 = vsel %vm782_vm11, 1.0, %v14358_v3 }
 0x231   : > { %v2347_v15 = vmul.f32 %v10276_v11, %v1835_v8 }
 0x233   : > { %2219 = vrot.lane.b32.xlu1 %v2150_v24, %s9621_s19 }
 0x234   : > { %3065 = vrot.lane.b32.xlu0 %v1930_v25, %s9623_s24 }
 0x237   : > { %2735 = vrot.lane.b32.xlu1 %v2668_v27, %s9625_s26  ;;  %v3190_v27 = vmul.f32 %v10194_v19, %v2122_v21 }
 0x238   : > { %2001 = vrot.lane.b32.xlu0 %v1929_v28, %s9620_s18 }
 0x23b   : > { %2003 = vrot.lane.b32.xlu1 %v1930_v25, %s9620_s18 }
 0x23c   : > { %2225 = vrot.lane.b32.xlu0 %v2121_v37, %s9621_s19 }
 0x23f   : > { %2549 = vrot.lane.b32.xlu1 %v1930_v25, %s9624_s25 }
 0x240   : > { %2547 = vrot.lane.b32.xlu0 %v1929_v28, %s9624_s25 }
 0x243   : > { %2417 = vrot.lane.b32.xlu1 %v1834_v40, %s9626_s27 }
 0x244   : > { %2741 = vrot.lane.b32.xlu0 %v2121_v37, %s9625_s26 }
 0x247   : > { %2933 = vrot.lane.b32.xlu1 %v1834_v40, %s9622_s23 }
 0x248   : > { %2415 = vrot.lane.b32.xlu0 %v2345_v45, %s9626_s27  ;;  %v368_v45 = vadd.s32 80, %v10104_v12 }
 0x24b   : > { %3063 = vrot.lane.b32.xlu1 %v1929_v28, %s9623_s24  ;;  %v10296_v28 = vsel %vm879_vm12, 1.0, %v14358_v3 }
 0x24c   : > { %2931 = vrot.lane.b32.xlu0 %v2863_v22, %s9622_s23  ;;  %14478 = vst [vmem:[#allocation14_spill] sm:$0xff] %v10296_v28  ;;  %v2154_v33 = vmul.f32 %v10296_v28, %v2122_v21 }
 0x24f   : > { %3257 = vrot.lane.b32.xlu1 %v2121_v37, %s9627_s28  ;;  %v2672_v37 = vmul.f32 %v10237_v50, %v2122_v21 }
 0x250   : > { %3255 = vrot.lane.b32.xlu0 %v3188_v48, %s9627_s28  ;;  %v464_v48 = vand.u32 15, %v368_v45 }
 0x252   : > { %vm784_vm13 = vcmp.gt.s32.totalorder %v464_v48, 0  ;;  %v2674_v48 = vmul.f32 %v10296_v28, %v2124_v16 }
 0x253   : > { %2223 = vrot.lane.b32.xlu1 %v2152_v54, %s9621_s19  ;;  %v1838_v54 = vld [vmem:[#allocation2 + $0x6f] sm:$0xff]  ;;  %v10339_v63 = vsel %vm784_vm13, 1.0, %v14358_v3 }
 0x254   : > { %3069 = vrot.lane.b32.xlu0 %v1932_v56, %s9623_s24 }
 0x257   : > { %2739 = vrot.lane.b32.xlu1 %v2670_v59, %s9625_s26  ;;  %v369_v59 = vadd.s32 88, %v10104_v12 }
 0x258   : > { %2005 = vrot.lane.b32.xlu0 %v1931_v60, %s9620_s18 }
 0x259   : > { %v10253_v61 = vpop.permute.xlu1 %1991 }
 0x25a   : > { %v10255_v62 = vpop.permute.xlu0 %2213 }
 0x25b   : > { %2007 = vrot.lane.b32.xlu1 %v1932_v56, %s9620_s18 }
 0x25c   : > { %2229 = vrot.lane.b32.xlu0 %v2123_v0, %s9621_s19 }
 0x25d   : > { %v10260_v1 = vpop.permute.xlu1 %2537 }
 0x25e   : > { %14476 = vst [vmem:[#allocation12_spill] sm:$0xff] %v10260_v1  ;;  %v10262_v2 = vpop.permute.xlu0 %2535 }
 0x25f   : > { %2553 = vrot.lane.b32.xlu1 %v1932_v56, %s9624_s25  ;;  %v1837_v56 = vld [vmem:[#allocation2 + $0x67] sm:$0xff] }
 0x260   : > { %2551 = vrot.lane.b32.xlu0 %v1931_v60, %s9624_s25  ;;  %v2349_v4 = vmul.f32 %v10339_v63, %v1837_v56 }
 0x261   : > { %v10266_v5 = vpop.permute.xlu1 %1989 }
 0x262   : > { %v10268_v6 = vpop.permute.xlu0 %2729 }
 0x263   : > { %2421 = vrot.lane.b32.xlu1 %v1836_v7, %s9626_s27 }
 0x264   : > { %2745 = vrot.lane.b32.xlu0 %v2123_v0, %s9625_s26 }
 0x265   : > { %v10273_v10 = vpop.permute.xlu1 %2405 }
 0x266   : > { %v10278_v14 = vpop.permute.xlu0 %2403 }
 0x267   : > { %2937 = vrot.lane.b32.xlu1 %v1836_v7, %s9622_s23  ;;  %v471_v7 = vand.u32 15, %v369_v59 }
 0x268   : > { %2419 = vrot.lane.b32.xlu0 %v2347_v15, %s9626_s27  ;;  %v2867_v15 = vmul.f32 %v10276_v11, %v1837_v56 }
 0x269   : > { %v10283_v17 = vpop.permute.xlu1 %2211  ;;  %vm881_vm14 = vcmp.lt.s32.totalorder %v471_v7, 15  ;;  %v370_v7 = vadd.s32 96, %v10104_v12 }
 0x26a   : > { %v10285_v18 = vpop.permute.xlu0 %3057  ;;  %v10359_v29 = vsel %vm881_vm14, 1.0, %v14358_v3  ;;  %v1839_v3 = vld [vmem:[#allocation2 + $0x77] sm:$0xff] }
 0x26b   : > { %14477 = vst [vmem:[#allocation13_spill] sm:$0xff] %v10285_v18  ;;  %3067 = vrot.lane.b32.xlu1 %v1931_v60, %s9623_s24  ;;  %14486 = vst [vmem:[#allocation22_spill] sm:$0xff] %v10359_v29  ;;  %v478_v30 = vand.u32 15, %v370_v7  ;;  %v14493_v7 = vmov 0.0   ;;  %v2869_v58 = vmul.f32 %v10339_v63, %v1839_v3  ;;  %v372_v18 = vadd.s32 112, %v10104_v12 }
 0x26c   : > { %2935 = vrot.lane.b32.xlu0 %v2865_v20, %s9622_s23 }
 0x26d   : > { %v10290_v24 = vpop.permute.xlu1 %1995  ;;  %vm786_vm15 = vcmp.gt.s32.totalorder %v478_v30, 0 }
 0x26e   : > { %v10292_v25 = vpop.permute.xlu0 %1993  ;;  %v10402_v55 = vsel %vm786_vm15, 1.0, %v14493_v7 }
 0x26f   : > { %3261 = vrot.lane.b32.xlu1 %v2123_v0, %s9627_s28  ;;  %v2351_v31 = vmul.f32 %v10402_v55, %v1839_v3 }
 0x270   : > { %3259 = vrot.lane.b32.xlu0 %v3190_v27, %s9627_s28  ;;  %v3192_v27 = vmul.f32 %v10237_v50, %v2124_v16  ;;  %v371_v50 = vadd.s32 104, %v10104_v12 }
 0x271   : > { %v10301_v32 = vpop.permute.xlu1 %2541 }
 0x272   : > { %14479 = vst [vmem:[#allocation15_spill] sm:$0xff] %v10301_v32  ;;  %v10305_v35 = vpop.permute.xlu0 %2217  ;;  %v485_v57 = vand.u32 15, %v371_v50 }
 0x273   : > { %2227 = vrot.lane.b32.xlu1 %v2154_v33, %s9621_s19  ;;  %v1744_v33 = vpop.f32.mrb[23].mxu1 }
 0x274   : > { %3073 = vrot.lane.b32.xlu0 %v1934_v34, %s9623_s24  ;;  %1815 = vst.msk [vmem:[#allocation2 + $0xc8] sm:$0xff] %vm350_vm2, %v1744_v33  ;;  %vm883_vm1 = vcmp.lt.s32.totalorder %v485_v57, 15 }
 0x275   : > { %v10309_v36 = vpop.permute.xlu1 %2409 }
 0x276   : > { %14480 = vst [vmem:[#allocation16_spill] sm:$0xff] %v10309_v36  ;;  %v10312_v40 = vpop.permute.xlu0 %2539 }
 0x277   : > { %2743 = vrot.lane.b32.xlu1 %v2672_v37, %s9625_s26  ;;  %v2156_v37 = vmul.f32 %v10359_v29, %v2124_v16 }
 0x278   : > { %2009 = vrot.lane.b32.xlu0 %v1933_v39, %s9620_s18 }
 0x279   : > { %v10316_v42 = vpop.permute.xlu1 %2925 }
 0x27a   : > { %14481 = vst [vmem:[#allocation17_spill] sm:$0xff] %v10316_v42  ;;  %v10318_v43 = vpop.permute.xlu0 %2733  ;;  %v373_v42 = vadd.s32 120, %v10104_v12 }
 0x27b   : > { %2011 = vrot.lane.b32.xlu1 %v1934_v34, %s9620_s18 }
 0x27c   : > { %2233 = vrot.lane.b32.xlu0 %v2125_v46, %s9621_s19 }
 0x27d   : > { %v10323_v22 = vpop.permute.xlu1 %3055 }
 0x27e   : > { %v10325_v23 = vpop.permute.xlu0 %2407 }
 0x27f   : > { %2557 = vrot.lane.b32.xlu1 %v1934_v34, %s9624_s25 }
 0x280   : > { %2555 = vrot.lane.b32.xlu0 %v1933_v39, %s9624_s25 }
 0x281   : > { %v10329_v51 = vpop.permute.xlu1 %3249 }
 0x282   : > { %14482 = vst [vmem:[#allocation18_spill] sm:$0xff] %v10329_v51  ;;  %v10331_v53 = vpop.permute.xlu0 %2923 }
 0x283   : > { %2425 = vrot.lane.b32.xlu1 %v1838_v54, %s9626_s27 }
 0x284   : > { %2749 = vrot.lane.b32.xlu0 %v2125_v46, %s9625_s26 }
 0x285   : > { %v10336_v60 = vpop.permute.xlu1 %2215 }
 0x286   : > { %v10341_v0 = vpop.permute.xlu0 %3061 }
 0x287   : > { %14483 = vst [vmem:[#allocation19_spill] sm:$0xff] %v10341_v0  ;;  %2941 = vrot.lane.b32.xlu1 %v1838_v54, %s9622_s23  ;;  %v1935_v54 = vld [vmem:[#allocation2 + $0x78] sm:$0xff] }
 0x288   : > { %2423 = vrot.lane.b32.xlu0 %v2349_v4, %s9626_s27  ;;  %v2126_v0 = vld [vmem:[#allocation2 + $0x71] sm:$0xff] }
 0x289   : > { %v10346_v8 = vpop.permute.xlu1 %2731  ;;  %v3194_v50 = vmul.f32 %v10296_v28, %v2126_v0  ;;  %v1937_v28 = vld [vmem:[#allocation2 + $0x88] sm:$0xff] }
 0x28a   : > { %14484 = vst [vmem:[#allocation20_spill] sm:$0xff] %v10346_v8  ;;  %v10348_v9 = vpop.permute.xlu0 %1997  ;;  %v10527_v8 = vld [vmem:[#allocation2 + $0x97] sm:$0xff] }
 0x28b   : > { %3071 = vrot.lane.b32.xlu1 %v1933_v39, %s9623_s24  ;;  %v1936_v39 = vld [vmem:[#allocation2 + $0x80] sm:$0xff]  ;;  %14519 = vst [vmem:[#allocation54_spill] sm:$0xff] %v10527_v8 }
 0x28c   : > { %2939 = vrot.lane.b32.xlu0 %v2867_v15, %s9622_s23  ;;  %v2127_v15 = vld [vmem:[#allocation2 + $0x79] sm:$0xff] }
 0x28d   : > { %v10353_v20 = vpop.permute.xlu1 %1999 }
 0x28e   : > { %14485 = vst [vmem:[#allocation21_spill] sm:$0xff] %v10353_v20  ;;  %v10355_v21 = vpop.permute.xlu0 %2221  ;;  %v2128_v20 = vld [vmem:[#allocation2 + $0x81] sm:$0xff] }
 0x28f   : > { %3265 = vrot.lane.b32.xlu1 %v2125_v46, %s9627_s28 }
 0x290   : > { %3263 = vrot.lane.b32.xlu0 %v3192_v27, %s9627_s28 }
 0x291   : > { %v10364_v34 = vpop.permute.xlu1 %2545 }
 0x292   : > { %14487 = vst [vmem:[#allocation23_spill] sm:$0xff] %v10364_v34  ;;  %v10368_v45 = vpop.permute.xlu0 %2543  ;;  %v492_v34 = vand.u32 15, %v372_v18 }
 0x293   : > { %2231 = vrot.lane.b32.xlu1 %v2156_v37, %s9621_s19 }
 0x294   : > { %3077 = vrot.lane.b32.xlu0 %v1936_v39, %s9623_s24  ;;  %vm788_vm3 = vcmp.gt.s32.totalorder %v492_v34, 0  ;;  %v499_v34 = vand.u32 15, %v373_v42  ;;  %v3196_v42 = vmul.f32 %v10359_v29, %v2128_v20 }
 0x295   : > { %v10372_v46 = vpop.permute.xlu1 %2413  ;;  %v10467_v18 = vsel %vm788_vm3, 1.0, %v14493_v7 }
 0x296   : > { %14488 = vst [vmem:[#allocation24_spill] sm:$0xff] %v10372_v46  ;;  %v10375_v56 = vpop.permute.xlu0 %2737  ;;  %vm885_vm4 = vcmp.lt.s32.totalorder %v499_v34, 15 }
 0x297   : > { %2747 = vrot.lane.b32.xlu1 %v2674_v48, %s9625_s26  ;;  %v1840_v48 = vld [vmem:[#allocation2 + $0x7f] sm:$0xff] }
 0x298   : > { %2013 = vrot.lane.b32.xlu0 %v1935_v54, %s9620_s18 }
 0x299   : > { %v10379_v59 = vpop.permute.xlu1 %2929 }
 0x29a   : > { %14489 = vst [vmem:[#allocation25_spill] sm:$0xff] %v10379_v59  ;;  %v10381_v4 = vpop.permute.xlu0 %2411 }
 0x29b   : > { %2015 = vrot.lane.b32.xlu1 %v1936_v39, %s9620_s18 }
 0x29c   : > { %2237 = vrot.lane.b32.xlu0 %v2127_v15, %s9621_s19 }
 0x29d   : > { %v10386_v27 = vpop.permute.xlu1 %3059 }
 0x29e   : > { %v10388_v16 = vpop.permute.xlu0 %2927 }
 0x29f   : > { %2561 = vrot.lane.b32.xlu1 %v1936_v39, %s9624_s25 }
 0x2a0   : > { %2559 = vrot.lane.b32.xlu0 %v1935_v54, %s9624_s25 }
 0x2a1   : > { %v10392_v33 = vpop.permute.xlu1 %3253 }
 0x2a2   : > { %14490 = vst [vmem:[#allocation26_spill] sm:$0xff] %v10392_v33  ;;  %v10394_v37 = vpop.permute.xlu0 %3251  ;;  %v1844_v33 = vld [vmem:[#allocation2 + $0x9f] sm:$0xff] }
 0x2a3   : > { %14491 = vst [vmem:[#allocation27_spill] sm:$0xff] %v10394_v37  ;;  %2429 = vrot.lane.b32.xlu1 %v1840_v48, %s9626_s27 }
 0x2a4   : > { %2753 = vrot.lane.b32.xlu0 %v2127_v15, %s9625_s26 }
 0x2a5   : > { %v10399_v19 = vpop.permute.xlu1 %2219 }
 0x2a6   : > { %14492 = vst [vmem:[#allocation28_spill] sm:$0xff] %v10399_v19  ;;  %v10404_v39 = vpop.permute.xlu0 %3065 }
 0x2a7   : > { %14494 = vst [vmem:[#allocation29_spill] sm:$0xff] %v10404_v39  ;;  %2945 = vrot.lane.b32.xlu1 %v1840_v48, %s9622_s23  ;;  %v9305_v48 = vpop.f32.mrb[24].mxu1 }
 0x2a8   : > { %2427 = vrot.lane.b32.xlu0 %v2351_v31, %s9626_s27  ;;  %v10422_v31 = vsel %vm883_vm1, 1.0, %v14493_v7  ;;  %1818 = vst.msk [vmem:[#allocation2 + $0xe0] sm:$0xff] %vm350_vm2, %v9305_v48  ;;  %v1754_v3 = vpop.f32.mrb[25].mxu1 }
 0x2a9   : > { %v10409_v30 = vpop.permute.xlu1 %2735  ;;  %14497 = vst [vmem:[#allocation32_spill] sm:$0xff] %v10422_v31  ;;  %1817 = vst.msk [vmem:[#allocation2 + $0xd8] sm:$0xff] %vm350_vm2, %v1754_v3 }
 0x2aa   : > { %14495 = vst [vmem:[#allocation30_spill] sm:$0xff] %v10409_v30  ;;  %v10411_v49 = vpop.permute.xlu0 %2001  ;;  %v1842_v30 = vld [vmem:[#allocation2 + $0x8f] sm:$0xff] }
 0x2ab   : > { %3075 = vrot.lane.b32.xlu1 %v1935_v54, %s9623_s24  ;;  %v1938_v54 = vld [vmem:[#allocation2 + $0x90] sm:$0xff] }
 0x2ac   : > { %2943 = vrot.lane.b32.xlu0 %v2869_v58, %s9622_s23  ;;  %v2158_v58 = vmul.f32 %v10422_v31, %v2126_v0 }
 0x2ad   : > { %v10416_v39 = vpop.permute.xlu1 %2003 }
 0x2ae   : > { %14496 = vst [vmem:[#allocation31_spill] sm:$0xff] %v10416_v39  ;;  %v10418_v59 = vpop.permute.xlu0 %2225  ;;  %v10460_v39 = vld [vmem:[#allocation2 + $0x87] sm:$0xff] }
 0x2af   : > { %3269 = vrot.lane.b32.xlu1 %v2127_v15, %s9627_s28 }
 0x2b0   : > { %3267 = vrot.lane.b32.xlu0 %v3194_v50, %s9627_s28  ;;  %v2676_v50 = vmul.f32 %v10359_v29, %v2126_v0  ;;  %v1939_v29 = vld [vmem:[#allocation2 + $0x98] sm:$0xff] }
 0x2b1   : > { %v10427_v57 = vpop.permute.xlu1 %2549 }
 0x2b2   : > { %14498 = vst [vmem:[#allocation33_spill] sm:$0xff] %v10427_v57  ;;  %v10431_v37 = vpop.permute.xlu0 %2547 }
 0x2b3   : > { %2235 = vrot.lane.b32.xlu1 %v2158_v58, %s9621_s19  ;;  %v2129_v58 = vld [vmem:[#allocation2 + $0x89] sm:$0xff] }
 0x2b4   : > { %3081 = vrot.lane.b32.xlu0 %v1938_v54, %s9623_s24 }
 0x2b5   : > { %v10435_v15 = vpop.permute.xlu1 %2417 }
 0x2b6   : > { %14499 = vst [vmem:[#allocation34_spill] sm:$0xff] %v10435_v15  ;;  %v10438_v48 = vpop.permute.xlu0 %2741 }
 0x2b7   : > { %14500 = vst [vmem:[#allocation35_spill] sm:$0xff] %v10438_v48  ;;  %2751 = vrot.lane.b32.xlu1 %v2676_v50, %s9625_s26  ;;  %v375_v48 = vadd.s32 136, %v10104_v12 }
 0x2b8   : > { %2017 = vrot.lane.b32.xlu0 %v1937_v28, %s9620_s18 }
 0x2b9   : > { %v10442_v57 = vpop.permute.xlu1 %2933 }
 0x2ba   : > { %14501 = vst [vmem:[#allocation36_spill] sm:$0xff] %v10442_v57  ;;  %v10444_v3 = vpop.permute.xlu0 %2415 }
 0x2bb   : > { %2019 = vrot.lane.b32.xlu1 %v1938_v54, %s9620_s18 }
 0x2bc   : > { %2241 = vrot.lane.b32.xlu0 %v2129_v58, %s9621_s19 }
 0x2bd   : > { %v10449_v15 = vpop.permute.xlu1 %3063 }
 0x2be   : > { %14502 = vst [vmem:[#allocation37_spill] sm:$0xff] %v10449_v15  ;;  %v10451_v0 = vpop.permute.xlu0 %2931  ;;  %v374_v15 = vadd.s32 128, %v10104_v12 }
 0x2bf   : > { %2565 = vrot.lane.b32.xlu1 %v1938_v54, %s9624_s25 }
 0x2c0   : > { %2563 = vrot.lane.b32.xlu0 %v1937_v28, %s9624_s25 }
 0x2c1   : > { %v10455_v50 = vpop.permute.xlu1 %3257 }
 0x2c2   : > { %14503 = vst [vmem:[#allocation38_spill] sm:$0xff] %v10455_v50  ;;  %v10457_v57 = vpop.permute.xlu0 %3255 }
 0x2c3   : > { %14504 = vst [vmem:[#allocation39_spill] sm:$0xff] %v10457_v57  ;;  %2433 = vrot.lane.b32.xlu1 %v1842_v30, %s9626_s27  ;;  %v2353_v57 = vmul.f32 %v10467_v18, %v10460_v39 }
 0x2c4   : > { %2757 = vrot.lane.b32.xlu0 %v2129_v58, %s9625_s26 }
 0x2c5   : > { %v10464_v32 = vpop.permute.xlu1 %2223 }
 0x2c6   : > { %14505 = vst [vmem:[#allocation40_spill] sm:$0xff] %v10464_v32  ;;  %v10469_v54 = vpop.permute.xlu0 %3069  ;;  %v2871_v32 = vmul.f32 %v10402_v55, %v10460_v39 }
 0x2c7   : > { %14506 = vst [vmem:[#allocation41_spill] sm:$0xff] %v10469_v54  ;;  %2949 = vrot.lane.b32.xlu1 %v1842_v30, %s9622_s23  ;;  %v10489_v30 = vsel %vm885_vm4, 1.0, %v14493_v7 }
 0x2c8   : > { %2431 = vrot.lane.b32.xlu0 %v2353_v57, %s9626_s27  ;;  %14509 = vst [vmem:[#allocation44_spill] sm:$0xff] %v10489_v30  ;;  %v9308_v57 = vpop.f32.mrb[26].mxu1 }
 0x2c9   : > { %v10475_v50 = vpop.permute.xlu1 %2739  ;;  %1820 = vst.msk [vmem:[#allocation2 + $0xf0] sm:$0xff] %vm350_vm2, %v9308_v57 }
 0x2ca   : > { %14507 = vst [vmem:[#allocation42_spill] sm:$0xff] %v10475_v50  ;;  %v10477_v46 = vpop.permute.xlu0 %2005  ;;  %v1940_v50 = vld [vmem:[#allocation2 + $0xa0] sm:$0xff] }
 0x2cb   : > { %3079 = vrot.lane.b32.xlu1 %v1937_v28, %s9623_s24  ;;  %v1764_v28 = vpop.f32.mrb[27].mxu1 }
 0x2cc   : > { %2947 = vrot.lane.b32.xlu0 %v2871_v32, %s9622_s23  ;;  %v2160_v32 = vmul.f32 %v10489_v30, %v2128_v20  ;;  %1819 = vst.msk [vmem:[#allocation2 + $0xe8] sm:$0xff] %vm350_vm2, %v1764_v28 }
 0x2cd   : > { %v10483_v54 = vpop.permute.xlu1 %2007 }
 0x2ce   : > { %14508 = vst [vmem:[#allocation43_spill] sm:$0xff] %v10483_v54  ;;  %v10485_v51 = vpop.permute.xlu0 %2229 }
 0x2cf   : > { %3273 = vrot.lane.b32.xlu1 %v2129_v58, %s9627_s28 }
 0x2d0   : > { %3271 = vrot.lane.b32.xlu0 %v3196_v42, %s9627_s28  ;;  %v2678_v42 = vmul.f32 %v10422_v31, %v2128_v20 }
 0x2d1   : > { %v10494_v34 = vpop.permute.xlu1 %2553 }
 0x2d2   : > { %14510 = vst [vmem:[#allocation45_spill] sm:$0xff] %v10494_v34  ;;  %v10498_v54 = vpop.permute.xlu0 %2551 }
 0x2d3   : > { %14511 = vst [vmem:[#allocation46_spill] sm:$0xff] %v10498_v54  ;;  %2239 = vrot.lane.b32.xlu1 %v2160_v32, %s9621_s19  ;;  %v2131_v32 = vld [vmem:[#allocation2 + $0x99] sm:$0xff]  ;;  %v2130_v54 = vld [vmem:[#allocation2 + $0x91] sm:$0xff] }
 0x2d4   : > { %3085 = vrot.lane.b32.xlu0 %v1940_v50, %s9623_s24 }
 0x2d5   : > { %v10502_v58 = vpop.permute.xlu1 %2421 }
 0x2d6   : > { %14512 = vst [vmem:[#allocation47_spill] sm:$0xff] %v10502_v58  ;;  %v10505_v57 = vpop.permute.xlu0 %2745 }
 0x2d7   : > { %14513 = vst [vmem:[#allocation48_spill] sm:$0xff] %v10505_v57  ;;  %2755 = vrot.lane.b32.xlu1 %v2678_v42, %s9625_s26  ;;  %v506_v57 = vand.u32 15, %v374_v15 }
 0x2d8   : > { %2021 = vrot.lane.b32.xlu0 %v1939_v29, %s9620_s18 }
 0x2d9   : > { %v10509_v34 = vpop.permute.xlu1 %2937  ;;  %vm790_vm5 = vcmp.gt.s32.totalorder %v506_v57, 0  ;;  %v513_v57 = vand.u32 15, %v375_v48 }
 0x2da   : > { %14514 = vst [vmem:[#allocation49_spill] sm:$0xff] %v10509_v34  ;;  %v10511_v28 = vpop.permute.xlu0 %2419  ;;  %v10534_v15 = vsel %vm790_vm5, 1.0, %v14493_v7 }
 0x2db   : > { %2023 = vrot.lane.b32.xlu1 %v1940_v50, %s9620_s18  ;;  %vm887_vm6 = vcmp.lt.s32.totalorder %v513_v57, 15 }
 0x2dc   : > { %2245 = vrot.lane.b32.xlu0 %v2131_v32, %s9621_s19  ;;  %v10556_v48 = vsel %vm887_vm6, 1.0, %v14493_v7 }
 0x2dd   : > { %v10516_v58 = vpop.permute.xlu1 %3067  ;;  %14526 = vst [vmem:[#allocation61_spill] sm:$0xff] %v10556_v48 }
 0x2de   : > { %14515 = vst [vmem:[#allocation50_spill] sm:$0xff] %v10516_v58  ;;  %v10518_v20 = vpop.permute.xlu0 %2935 }
 0x2df   : > { %14516 = vst [vmem:[#allocation51_spill] sm:$0xff] %v10518_v20  ;;  %2569 = vrot.lane.b32.xlu1 %v1940_v50, %s9624_s25 }
 0x2e0   : > { %2567 = vrot.lane.b32.xlu0 %v1939_v29, %s9624_s25 }
 0x2e1   : > { %v10522_v42 = vpop.permute.xlu1 %3261 }
 0x2e2   : > { %14517 = vst [vmem:[#allocation52_spill] sm:$0xff] %v10522_v42  ;;  %v10524_v34 = vpop.permute.xlu0 %3259 }
 0x2e3   : > { %14518 = vst [vmem:[#allocation53_spill] sm:$0xff] %v10524_v34  ;;  %2437 = vrot.lane.b32.xlu1 %v1844_v33, %s9626_s27  ;;  %v2355_v34 = vmul.f32 %v10534_v15, %v10527_v8 }
 0x2e4   : > { %2761 = vrot.lane.b32.xlu0 %v2131_v32, %s9625_s26 }
 0x2e5   : > { %v10531_v58 = vpop.permute.xlu1 %2227 }
 0x2e6   : > { %14520 = vst [vmem:[#allocation55_spill] sm:$0xff] %v10531_v58  ;;  %v10536_v50 = vpop.permute.xlu0 %3073  ;;  %v2873_v58 = vmul.f32 %v10467_v18, %v10527_v8  ;;  %v10594_v8 = vld [vmem:[#allocation2 + $0xa7] sm:$0xff] }
 0x2e7   : > { %14521 = vst [vmem:[#allocation56_spill] sm:$0xff] %v10536_v50  ;;  %2953 = vrot.lane.b32.xlu1 %v1844_v33, %s9622_s23  ;;  %v3198_v33 = vmul.f32 %v10422_v31, %v2130_v54  ;;  %v1941_v31 = vld [vmem:[#allocation2 + $0xa8] sm:$0xff]  ;;  %14537 = vst [vmem:[#allocation72_spill] sm:$0xff] %v10594_v8 }
 0x2e8   : > { %2435 = vrot.lane.b32.xlu0 %v2355_v34, %s9626_s27  ;;  %v9311_v34 = vpop.f32.mrb[28].mxu1 }
 0x2e9   : > { %v10542_v42 = vpop.permute.xlu1 %2743  ;;  %1822 = vst.msk [vmem:[#allocation2 + $0x100] sm:$0xff] %vm350_vm2, %v9311_v34 }
 0x2ea   : > { %14522 = vst [vmem:[#allocation57_spill] sm:$0xff] %v10542_v42  ;;  %v10544_v20 = vpop.permute.xlu0 %2009  ;;  %v1942_v42 = vld [vmem:[#allocation2 + $0xb0] sm:$0xff] }
 0x2eb   : > { %14523 = vst [vmem:[#allocation58_spill] sm:$0xff] %v10544_v20  ;;  %3083 = vrot.lane.b32.xlu1 %v1939_v29, %s9623_s24  ;;  %v1774_v29 = vpop.f32.mrb[29].mxu1  ;;  %v2132_v20 = vld [vmem:[#allocation2 + $0xa1] sm:$0xff] }
 0x2ec   : > { %2951 = vrot.lane.b32.xlu0 %v2873_v58, %s9622_s23  ;;  %v2162_v58 = vmul.f32 %v10556_v48, %v2130_v54  ;;  %1821 = vst.msk [vmem:[#allocation2 + $0xf8] sm:$0xff] %vm350_vm2, %v1774_v29 }
 0x2ed   : > { %v10550_v50 = vpop.permute.xlu1 %2011 }
 0x2ee   : > { %14524 = vst [vmem:[#allocation59_spill] sm:$0xff] %v10550_v50  ;;  %v10552_v19 = vpop.permute.xlu0 %2233 }
 0x2ef   : > { %14525 = vst [vmem:[#allocation60_spill] sm:$0xff] %v10552_v19  ;;  %3277 = vrot.lane.b32.xlu1 %v2131_v32, %s9627_s28  ;;  %v1846_v19 = vld [vmem:[#allocation2 + $0xaf] sm:$0xff] }
 0x2f0   : > { %3275 = vrot.lane.b32.xlu0 %v3198_v33, %s9627_s28  ;;  %v2680_v33 = vmul.f32 %v10489_v30, %v2130_v54 }
 0x2f1   : > { %v10561_v57 = vpop.permute.xlu1 %2557 }
 0x2f2   : > { %14527 = vst [vmem:[#allocation62_spill] sm:$0xff] %v10561_v57  ;;  %v10565_v50 = vpop.permute.xlu0 %2555 }
 0x2f3   : > { %14528 = vst [vmem:[#allocation63_spill] sm:$0xff] %v10565_v50  ;;  %2243 = vrot.lane.b32.xlu1 %v2162_v58, %s9621_s19  ;;  %v376_v50 = vadd.s32 144, %v10104_v12  ;;  %v2133_v58 = vld [vmem:[#allocation2 + $0xa9] sm:$0xff] }
 0x2f4   : > { %3089 = vrot.lane.b32.xlu0 %v1942_v42, %s9623_s24 }
 0x2f5   : > { %v10569_v32 = vpop.permute.xlu1 %2425 }
 0x2f6   : > { %14529 = vst [vmem:[#allocation64_spill] sm:$0xff] %v10569_v32  ;;  %v10572_v34 = vpop.permute.xlu0 %2749 }
 0x2f7   : > { %14530 = vst [vmem:[#allocation65_spill] sm:$0xff] %v10572_v34  ;;  %2759 = vrot.lane.b32.xlu1 %v2680_v33, %s9625_s26  ;;  %v520_v34 = vand.u32 15, %v376_v50 }
 0x2f8   : > { %2025 = vrot.lane.b32.xlu0 %v1941_v31, %s9620_s18 }
 0x2f9   : > { %v10576_v57 = vpop.permute.xlu1 %2941  ;;  %vm792_vm7 = vcmp.gt.s32.totalorder %v520_v34, 0 }
 0x2fa   : > { %14531 = vst [vmem:[#allocation66_spill] sm:$0xff] %v10576_v57  ;;  %v10578_v29 = vpop.permute.xlu0 %2423 }
 0x2fb   : > { %14532 = vst [vmem:[#allocation67_spill] sm:$0xff] %v10578_v29  ;;  %2027 = vrot.lane.b32.xlu1 %v1942_v42, %s9620_s18  ;;  %v377_v29 = vadd.s32 152, %v10104_v12 }
 0x2fc   : > { %2249 = vrot.lane.b32.xlu0 %v2133_v58, %s9621_s19 }
 0x2fd   : > { %v10583_v32 = vpop.permute.xlu1 %3071  ;;  %v527_v34 = vand.u32 15, %v377_v29  ;;  %v9314_v29 = vpop.f32.mrb[30].mxu1 }
 0x2fe   : > { %14533 = vst [vmem:[#allocation68_spill] sm:$0xff] %v10583_v32  ;;  %v10585_v54 = vpop.permute.xlu0 %2939  ;;  %1824 = vst.msk [vmem:[#allocation2 + $0x110] sm:$0xff] %vm350_vm2, %v9314_v29 }
 0x2ff   : > { %14534 = vst [vmem:[#allocation69_spill] sm:$0xff] %v10585_v54  ;;  %2573 = vrot.lane.b32.xlu1 %v1942_v42, %s9624_s25  ;;  %v10601_v42 = vsel %vm792_vm7, 1.0, %v14493_v7  ;;  %vm889_vm8 = vcmp.lt.s32.totalorder %v527_v34, 15  ;;  %vm3505_vm7 = vcmask 64544  }
 0x300   : > { %2571 = vrot.lane.b32.xlu0 %v1941_v31, %s9624_s25  ;;  %14539 = vst [vmem:[#allocation74_spill] sm:$0xff] %v10601_v42 }
 0x301   : > { %v10589_v33 = vpop.permute.xlu1 %3265 }
 0x302   : > { %14535 = vst [vmem:[#allocation70_spill] sm:$0xff] %v10589_v33  ;;  %v10591_v57 = vpop.permute.xlu0 %3263 }
 0x303   : > { %14536 = vst [vmem:[#allocation71_spill] sm:$0xff] %v10591_v57  ;;  %2441 = vrot.lane.b32.xlu1 %v1846_v19, %s9626_s27  ;;  %v2357_v57 = vmul.f32 %v10601_v42, %v10594_v8 }
 0x304   : > { %2765 = vrot.lane.b32.xlu0 %v2133_v58, %s9625_s26 }
 0x305   : > { %v10598_v32 = vpop.permute.xlu1 %2231 }
 0x306   : > { %14538 = vst [vmem:[#allocation73_spill] sm:$0xff] %v10598_v32  ;;  %v10603_v50 = vpop.permute.xlu0 %3077  ;;  %v2875_v32 = vmul.f32 %v10534_v15, %v10594_v8  ;;  %v2134_v8 = vld [vmem:[#allocation2 + $0xb1] sm:$0xff] }
 0x307   : > { %14540 = vst [vmem:[#allocation75_spill] sm:$0xff] %v10603_v50  ;;  %2957 = vrot.lane.b32.xlu1 %v1846_v19, %s9622_s23  ;;  %v3200_v19 = vmul.f32 %v10489_v30, %v2132_v20  ;;  %v1943_v30 = vld [vmem:[#allocation2 + $0xb8] sm:$0xff] }
 0x308   : > { %2439 = vrot.lane.b32.xlu0 %v2357_v57, %s9626_s27  ;;  %v10623_v57 = vsel %vm889_vm8, 1.0, %v14493_v7  ;;  %vm6082_vm8 = vcmask 97344  }
 0x309   : > { %v10609_v33 = vpop.permute.xlu1 %2747  ;;  %14545 = vst [vmem:[#allocation80_spill] sm:$0xff] %v10623_v57 }
 0x30a   : > { %14541 = vst [vmem:[#allocation76_spill] sm:$0xff] %v10609_v33  ;;  %v10611_v54 = vpop.permute.xlu0 %2013 }
 0x30b   : > { %14542 = vst [vmem:[#allocation77_spill] sm:$0xff] %v10611_v54  ;;  %3087 = vrot.lane.b32.xlu1 %v1941_v31, %s9623_s24  ;;  %v1784_v31 = vpop.f32.mrb[31].mxu1  ;;  %v379_v54 = vadd.s32 168, %v10104_v12 }
 0x30c   : > { %2955 = vrot.lane.b32.xlu0 %v2875_v32, %s9622_s23  ;;  %v2164_v32 = vmul.f32 %v10623_v57, %v2132_v20  ;;  %1823 = vst.msk [vmem:[#allocation2 + $0x108] sm:$0xff] %vm350_vm2, %v1784_v31 }
 0x30d   : > { %v10617_v50 = vpop.permute.xlu1 %2015 }
 0x30e   : > { %14543 = vst [vmem:[#allocation78_spill] sm:$0xff] %v10617_v50  ;;  %v10619_v1 = vpop.permute.xlu0 %2237  ;;  %v1944_v50 = vld [vmem:[#allocation2 + $0xc0] sm:$0xff] }
 0x30f   : > { %14544 = vst [vmem:[#allocation79_spill] sm:$0xff] %v10619_v1  ;;  %3281 = vrot.lane.b32.xlu1 %v2133_v58, %s9627_s28  ;;  %v1848_v1 = vld [vmem:[#allocation2 + $0xbf] sm:$0xff] }
 0x310   : > { %3279 = vrot.lane.b32.xlu0 %v3200_v19, %s9627_s28  ;;  %v2682_v19 = vmul.f32 %v10556_v48, %v2132_v20 }
 0x311   : > { %v10628_v34 = vpop.permute.xlu1 %2561 }
 0x312   : > { %14546 = vst [vmem:[#allocation81_spill] sm:$0xff] %v10628_v34  ;;  %v10632_v33 = vpop.permute.xlu0 %2559 }
 0x313   : > { %14547 = vst [vmem:[#allocation82_spill] sm:$0xff] %v10632_v33  ;;  %2247 = vrot.lane.b32.xlu1 %v2164_v32, %s9621_s19  ;;  %v378_v33 = vadd.s32 160, %v10104_v12  ;;  %v2135_v32 = vld [vmem:[#allocation2 + $0xb9] sm:$0xff] }
 0x314   : > { %3093 = vrot.lane.b32.xlu0 %v1944_v50, %s9623_s24 }
 0x315   : > { %v10636_v58 = vpop.permute.xlu1 %2429 }
 0x316   : > { %14548 = vst [vmem:[#allocation83_spill] sm:$0xff] %v10636_v58  ;;  %v10639_v29 = vpop.permute.xlu0 %2753 }
 0x317   : > { %14549 = vst [vmem:[#allocation84_spill] sm:$0xff] %v10639_v29  ;;  %2763 = vrot.lane.b32.xlu1 %v2682_v19, %s9625_s26  ;;  %v534_v29 = vand.u32 15, %v378_v33 }
 0x318   : > { %2029 = vrot.lane.b32.xlu0 %v1943_v30, %s9620_s18 }
 0x319   : > { %v10643_v34 = vpop.permute.xlu1 %2945  ;;  %vm794_vm9 = vcmp.gt.s32.totalorder %v534_v29, 0  ;;  %v541_v29 = vand.u32 15, %v379_v54 }
 0x31a   : > { %14550 = vst [vmem:[#allocation85_spill] sm:$0xff] %v10643_v34  ;;  %v10645_v31 = vpop.permute.xlu0 %2427  ;;  %v10668_v33 = vsel %vm794_vm9, 1.0, %v14493_v7 }
 0x31b   : > { %14551 = vst [vmem:[#allocation86_spill] sm:$0xff] %v10645_v31  ;;  %2031 = vrot.lane.b32.xlu1 %v1944_v50, %s9620_s18  ;;  %v10661_v31 = vld [vmem:[#allocation2 + $0xb7] sm:$0xff]  ;;  %14558 = vst [vmem:[#allocation93_spill] sm:$0xff] %v10668_v33  ;;  %vm891_vm10 = vcmp.lt.s32.totalorder %v541_v29, 15 }
 0x31c   : > { %2253 = vrot.lane.b32.xlu0 %v2135_v32, %s9621_s19  ;;  %14556 = vst [vmem:[#allocation91_spill] sm:$0xff] %v10661_v31  ;;  %v10690_v54 = vsel %vm891_vm10, 1.0, %v14493_v7  ;;  %v1946_v29 = vld [vmem:[#allocation2 + $0xd0] sm:$0xff] }
 0x31d   : > { %v10650_v58 = vpop.permute.xlu1 %3075  ;;  %14564 = vst [vmem:[#allocation99_spill] sm:$0xff] %v10690_v54 }
 0x31e   : > { %14552 = vst [vmem:[#allocation87_spill] sm:$0xff] %v10650_v58  ;;  %v10652_v20 = vpop.permute.xlu0 %2943 }
 0x31f   : > { %14553 = vst [vmem:[#allocation88_spill] sm:$0xff] %v10652_v20  ;;  %2577 = vrot.lane.b32.xlu1 %v1944_v50, %s9624_s25 }
 0x320   : > { %2575 = vrot.lane.b32.xlu0 %v1943_v30, %s9624_s25 }
 0x321   : > { %v10656_v19 = vpop.permute.xlu1 %3269 }
 0x322   : > { %14554 = vst [vmem:[#allocation89_spill] sm:$0xff] %v10656_v19  ;;  %v10658_v34 = vpop.permute.xlu0 %3267 }
 0x323   : > { %14555 = vst [vmem:[#allocation90_spill] sm:$0xff] %v10658_v34  ;;  %2445 = vrot.lane.b32.xlu1 %v1848_v1, %s9626_s27  ;;  %v2359_v34 = vmul.f32 %v10668_v33, %v10661_v31 }
 0x324   : > { %2769 = vrot.lane.b32.xlu0 %v2135_v32, %s9625_s26 }
 0x325   : > { %v10665_v58 = vpop.permute.xlu1 %2235 }
 0x326   : > { %14557 = vst [vmem:[#allocation92_spill] sm:$0xff] %v10665_v58  ;;  %v10670_v50 = vpop.permute.xlu0 %3081  ;;  %v2877_v58 = vmul.f32 %v10601_v42, %v10661_v31 }
 0x327   : > { %14559 = vst [vmem:[#allocation94_spill] sm:$0xff] %v10670_v50  ;;  %2961 = vrot.lane.b32.xlu1 %v1848_v1, %s9622_s23  ;;  %v3202_v1 = vmul.f32 %v10556_v48, %v2134_v8  ;;  %v2684_v48 = vmul.f32 %v10623_v57, %v2134_v8 }
 0x328   : > { %2443 = vrot.lane.b32.xlu0 %v2359_v34, %s9626_s27 }
 0x329   : > { %v10676_v19 = vpop.permute.xlu1 %2751 }
 0x32a   : > { %14560 = vst [vmem:[#allocation95_spill] sm:$0xff] %v10676_v19  ;;  %v10678_v20 = vpop.permute.xlu0 %2017 }
 0x32b   : > { %14561 = vst [vmem:[#allocation96_spill] sm:$0xff] %v10678_v20  ;;  %3091 = vrot.lane.b32.xlu1 %v1943_v30, %s9623_s24  ;;  %v2166_v30 = vmul.f32 %v10690_v54, %v2134_v8  ;;  %v2136_v20 = vld [vmem:[#allocation2 + $0xc1] sm:$0xff] }
 0x32c   : > { %2959 = vrot.lane.b32.xlu0 %v2877_v58, %s9622_s23 }
 0x32d   : > { %v10684_v50 = vpop.permute.xlu1 %2019 }
 0x32e   : > { %14562 = vst [vmem:[#allocation97_spill] sm:$0xff] %v10684_v50  ;;  %v10686_v36 = vpop.permute.xlu0 %2241  ;;  %v1945_v50 = vld [vmem:[#allocation2 + $0xc8] sm:$0xff] }
 0x32f   : > { %14563 = vst [vmem:[#allocation98_spill] sm:$0xff] %v10686_v36  ;;  %3285 = vrot.lane.b32.xlu1 %v2135_v32, %s9627_s28  ;;  %v10726_v36 = vld [vmem:[#allocation2 + $0xc7] sm:$0xff] }
 0x330   : > { %3283 = vrot.lane.b32.xlu0 %v3202_v1, %s9627_s28  ;;  %14575 = vst [vmem:[#allocation110_spill] sm:$0xff] %v10726_v36 }
 0x331   : > { %v10694_v34 = vpop.permute.xlu1 %2565 }
 0x332   : > { %14565 = vst [vmem:[#allocation100_spill] sm:$0xff] %v10694_v34  ;;  %v10697_v19 = vpop.permute.xlu0 %2563  ;;  %v380_v34 = vadd.s32 176, %v10104_v12 }
 0x333   : > { %14566 = vst [vmem:[#allocation101_spill] sm:$0xff] %v10697_v19  ;;  %2251 = vrot.lane.b32.xlu1 %v2166_v30, %s9621_s19  ;;  %v2137_v30 = vld [vmem:[#allocation2 + $0xc9] sm:$0xff] }
 0x334   : > { %3097 = vrot.lane.b32.xlu0 %v1946_v29, %s9623_s24  ;;  %v1850_v19 = vld [vmem:[#allocation2 + $0xcf] sm:$0xff] }
 0x335   : > { %v10701_v58 = vpop.permute.xlu1 %2433 }
 0x336   : > { %14567 = vst [vmem:[#allocation102_spill] sm:$0xff] %v10701_v58  ;;  %v10704_v31 = vpop.permute.xlu0 %2757 }
 0x337   : > { %14568 = vst [vmem:[#allocation103_spill] sm:$0xff] %v10704_v31  ;;  %2767 = vrot.lane.b32.xlu1 %v2684_v48, %s9625_s26  ;;  %v548_v31 = vand.u32 15, %v380_v34 }
 0x338   : > { %2033 = vrot.lane.b32.xlu0 %v1945_v50, %s9620_s18 }
 0x339   : > { %v10708_v32 = vpop.permute.xlu1 %2949  ;;  %vm796_vm11 = vcmp.gt.s32.totalorder %v548_v31, 0 }
 0x33a   : > { %14569 = vst [vmem:[#allocation104_spill] sm:$0xff] %v10708_v32  ;;  %v10710_v1 = vpop.permute.xlu0 %2431  ;;  %v10733_v34 = vsel %vm796_vm11, 1.0, %v14493_v7 }
 0x33b   : > { %14570 = vst [vmem:[#allocation105_spill] sm:$0xff] %v10710_v1  ;;  %2035 = vrot.lane.b32.xlu1 %v1946_v29, %s9620_s18  ;;  %v381_v1 = vadd.s32 184, %v10104_v12  ;;  %14577 = vst [vmem:[#allocation112_spill] sm:$0xff] %v10733_v34 }
 0x33c   : > { %2257 = vrot.lane.b32.xlu0 %v2137_v30, %s9621_s19 }
 0x33d   : > { %v10715_v58 = vpop.permute.xlu1 %3079  ;;  %v555_v31 = vand.u32 15, %v381_v1 }
 0x33e   : > { %14571 = vst [vmem:[#allocation106_spill] sm:$0xff] %v10715_v58  ;;  %v10717_v8 = vpop.permute.xlu0 %2947 }
 0x33f   : > { %14572 = vst [vmem:[#allocation107_spill] sm:$0xff] %v10717_v8  ;;  %2581 = vrot.lane.b32.xlu1 %v1946_v29, %s9624_s25  ;;  %vm893_vm12 = vcmp.lt.s32.totalorder %v555_v31, 15  ;;  %v1948_v31 = vld [vmem:[#allocation2 + $0xe0] sm:$0xff] }
 0x340   : > { %2579 = vrot.lane.b32.xlu0 %v1945_v50, %s9624_s25 }
 0x341   : > { %v10721_v48 = vpop.permute.xlu1 %3273 }
 0x342   : > { %14573 = vst [vmem:[#allocation108_spill] sm:$0xff] %v10721_v48  ;;  %v10723_v32 = vpop.permute.xlu0 %3271 }
 0x343   : > { %14574 = vst [vmem:[#allocation109_spill] sm:$0xff] %v10723_v32  ;;  %2449 = vrot.lane.b32.xlu1 %v1850_v19, %s9626_s27  ;;  %v2361_v32 = vmul.f32 %v10733_v34, %v10726_v36 }
 0x344   : > { %2773 = vrot.lane.b32.xlu0 %v2137_v30, %s9625_s26 }
 0x345   : > { %v10730_v58 = vpop.permute.xlu1 %2239 }
 0x346   : > { %14576 = vst [vmem:[#allocation111_spill] sm:$0xff] %v10730_v58  ;;  %v10735_v29 = vpop.permute.xlu0 %3085  ;;  %v2879_v58 = vmul.f32 %v10668_v33, %v10726_v36 }
 0x347   : > { %14578 = vst [vmem:[#allocation113_spill] sm:$0xff] %v10735_v29  ;;  %2965 = vrot.lane.b32.xlu1 %v1850_v19, %s9622_s23  ;;  %v3204_v19 = vmul.f32 %v10623_v57, %v2136_v20  ;;  %v2686_v57 = vmul.f32 %v10690_v54, %v2136_v20 }
 0x348   : > { %2447 = vrot.lane.b32.xlu0 %v2361_v32, %s9626_s27  ;;  %v10755_v32 = vsel %vm893_vm12, 1.0, %v14493_v7 }
 0x349   : > { %v10741_v48 = vpop.permute.xlu1 %2755  ;;  %14583 = vst [vmem:[#allocation118_spill] sm:$0xff] %v10755_v32 }
 0x34a   : > { %14579 = vst [vmem:[#allocation114_spill] sm:$0xff] %v10741_v48  ;;  %v10743_v8 = vpop.permute.xlu0 %2021 }
 0x34b   : > { %14580 = vst [vmem:[#allocation115_spill] sm:$0xff] %v10743_v8  ;;  %3095 = vrot.lane.b32.xlu1 %v1945_v50, %s9623_s24  ;;  %v2168_v50 = vmul.f32 %v10755_v32, %v2136_v20  ;;  %v2138_v8 = vld [vmem:[#allocation2 + $0xd1] sm:$0xff] }
 0x34c   : > { %2963 = vrot.lane.b32.xlu0 %v2879_v58, %s9622_s23 }
 0x34d   : > { %v10749_v29 = vpop.permute.xlu1 %2023 }
 0x34e   : > { %14581 = vst [vmem:[#allocation116_spill] sm:$0xff] %v10749_v29  ;;  %v10751_v42 = vpop.permute.xlu0 %2245  ;;  %v1947_v29 = vld [vmem:[#allocation2 + $0xd8] sm:$0xff] }
 0x34f   : > { %14582 = vst [vmem:[#allocation117_spill] sm:$0xff] %v10751_v42  ;;  %3289 = vrot.lane.b32.xlu1 %v2137_v30, %s9627_s28  ;;  %v10791_v42 = vld [vmem:[#allocation2 + $0xd7] sm:$0xff] }
 0x350   : > { %3287 = vrot.lane.b32.xlu0 %v3204_v19, %s9627_s28  ;;  %14594 = vst [vmem:[#allocation129_spill] sm:$0xff] %v10791_v42 }
 0x351   : > { %v10759_v1 = vpop.permute.xlu1 %2569 }
 0x352   : > { %14584 = vst [vmem:[#allocation119_spill] sm:$0xff] %v10759_v1  ;;  %v10762_v36 = vpop.permute.xlu0 %2567  ;;  %v382_v1 = vadd.s32 192, %v10104_v12 }
 0x353   : > { %14585 = vst [vmem:[#allocation120_spill] sm:$0xff] %v10762_v36  ;;  %2255 = vrot.lane.b32.xlu1 %v2168_v50, %s9621_s19  ;;  %v2139_v50 = vld [vmem:[#allocation2 + $0xd9] sm:$0xff] }
 0x354   : > { %3101 = vrot.lane.b32.xlu0 %v1948_v31, %s9623_s24  ;;  %v1852_v36 = vld [vmem:[#allocation2 + $0xdf] sm:$0xff] }
 0x355   : > { %v10766_v58 = vpop.permute.xlu1 %2437 }
 0x356   : > { %14586 = vst [vmem:[#allocation121_spill] sm:$0xff] %v10766_v58  ;;  %v10769_v48 = vpop.permute.xlu0 %2761 }
 0x357   : > { %14587 = vst [vmem:[#allocation122_spill] sm:$0xff] %v10769_v48  ;;  %2771 = vrot.lane.b32.xlu1 %v2686_v57, %s9625_s26  ;;  %v562_v48 = vand.u32 15, %v382_v1 }
 0x358   : > { %2037 = vrot.lane.b32.xlu0 %v1947_v29, %s9620_s18 }
 0x359   : > { %v10773_v30 = vpop.permute.xlu1 %2953  ;;  %vm798_vm13 = vcmp.gt.s32.totalorder %v562_v48, 0 }
 0x35a   : > { %14588 = vst [vmem:[#allocation123_spill] sm:$0xff] %v10773_v30  ;;  %v10775_v19 = vpop.permute.xlu0 %2435  ;;  %v10798_v1 = vsel %vm798_vm13, 1.0, %v14493_v7 }
 0x35b   : > { %14589 = vst [vmem:[#allocation124_spill] sm:$0xff] %v10775_v19  ;;  %2039 = vrot.lane.b32.xlu1 %v1948_v31, %s9620_s18  ;;  %v383_v19 = vadd.s32 200, %v10104_v12  ;;  %14596 = vst [vmem:[#allocation131_spill] sm:$0xff] %v10798_v1 }
 0x35c   : > { %2261 = vrot.lane.b32.xlu0 %v2139_v50, %s9621_s19 }
 0x35d   : > { %v10780_v58 = vpop.permute.xlu1 %3083  ;;  %v569_v48 = vand.u32 15, %v383_v19 }
 0x35e   : > { %14590 = vst [vmem:[#allocation125_spill] sm:$0xff] %v10780_v58  ;;  %v10782_v20 = vpop.permute.xlu0 %2951 }
 0x35f   : > { %14591 = vst [vmem:[#allocation126_spill] sm:$0xff] %v10782_v20  ;;  %2585 = vrot.lane.b32.xlu1 %v1948_v31, %s9624_s25  ;;  %vm895_vm14 = vcmp.lt.s32.totalorder %v569_v48, 15  ;;  %v1950_v48 = vld [vmem:[#allocation2 + $0xf0] sm:$0xff] }
 0x360   : > { %2583 = vrot.lane.b32.xlu0 %v1947_v29, %s9624_s25 }
 0x361   : > { %v10786_v57 = vpop.permute.xlu1 %3277 }
 0x362   : > { %14592 = vst [vmem:[#allocation127_spill] sm:$0xff] %v10786_v57  ;;  %v10788_v30 = vpop.permute.xlu0 %3275 }
 0x363   : > { %14593 = vst [vmem:[#allocation128_spill] sm:$0xff] %v10788_v30  ;;  %2453 = vrot.lane.b32.xlu1 %v1852_v36, %s9626_s27  ;;  %v2363_v30 = vmul.f32 %v10798_v1, %v10791_v42 }
 0x364   : > { %2777 = vrot.lane.b32.xlu0 %v2139_v50, %s9625_s26 }
 0x365   : > { %v10795_v58 = vpop.permute.xlu1 %2243 }
 0x366   : > { %14595 = vst [vmem:[#allocation130_spill] sm:$0xff] %v10795_v58  ;;  %v10800_v31 = vpop.permute.xlu0 %3089  ;;  %v2881_v58 = vmul.f32 %v10733_v34, %v10791_v42 }
 0x367   : > { %14597 = vst [vmem:[#allocation132_spill] sm:$0xff] %v10800_v31  ;;  %2969 = vrot.lane.b32.xlu1 %v1852_v36, %s9622_s23  ;;  %v3206_v36 = vmul.f32 %v10690_v54, %v2138_v8  ;;  %v2688_v54 = vmul.f32 %v10755_v32, %v2138_v8 }
 0x368   : > { %2451 = vrot.lane.b32.xlu0 %v2363_v30, %s9626_s27  ;;  %v10820_v30 = vsel %vm895_vm14, 1.0, %v14493_v7 }
 0x369   : > { %v10806_v57 = vpop.permute.xlu1 %2759  ;;  %14602 = vst [vmem:[#allocation137_spill] sm:$0xff] %v10820_v30 }
 0x36a   : > { %14598 = vst [vmem:[#allocation133_spill] sm:$0xff] %v10806_v57  ;;  %v10808_v20 = vpop.permute.xlu0 %2025 }
 0x36b   : > { %14599 = vst [vmem:[#allocation134_spill] sm:$0xff] %v10808_v20  ;;  %3099 = vrot.lane.b32.xlu1 %v1947_v29, %s9623_s24  ;;  %v2170_v29 = vmul.f32 %v10820_v30, %v2138_v8  ;;  %v2140_v20 = vld [vmem:[#allocation2 + $0xe1] sm:$0xff] }
 0x36c   : > { %2967 = vrot.lane.b32.xlu0 %v2881_v58, %s9622_s23 }
 0x36d   : > { %v10814_v31 = vpop.permute.xlu1 %2027 }
 0x36e   : > { %14600 = vst [vmem:[#allocation135_spill] sm:$0xff] %v10814_v31  ;;  %v10816_v33 = vpop.permute.xlu0 %2249  ;;  %v1949_v31 = vld [vmem:[#allocation2 + $0xe8] sm:$0xff] }
 0x36f   : > { %14601 = vst [vmem:[#allocation136_spill] sm:$0xff] %v10816_v33  ;;  %3293 = vrot.lane.b32.xlu1 %v2139_v50, %s9627_s28  ;;  %v10859_v33 = vld [vmem:[#allocation2 + $0xe7] sm:$0xff] }
 0x370   : > { %3291 = vrot.lane.b32.xlu0 %v3206_v36, %s9627_s28  ;;  %14614 = vst [vmem:[#allocation149_spill] sm:$0xff] %v10859_v33 }
 0x371   : > { %v10824_v19 = vpop.permute.xlu1 %2573 }
 0x372   : > { %14603 = vst [vmem:[#allocation138_spill] sm:$0xff] %v10824_v19  ;;  %v10827_v42 = vpop.permute.xlu0 %2571  ;;  %v384_v19 = vadd.s32 208, %v10104_v12 }
 0x373   : > { %14604 = vst [vmem:[#allocation139_spill] sm:$0xff] %v10827_v42  ;;  %2259 = vrot.lane.b32.xlu1 %v2170_v29, %s9621_s19  ;;  %v2141_v29 = vld [vmem:[#allocation2 + $0xe9] sm:$0xff] }
 0x374   : > { %3105 = vrot.lane.b32.xlu0 %v1950_v48, %s9623_s24  ;;  %v10855_v42 = vld [vmem:[#allocation2 + $0xef] sm:$0xff] }
 0x375   : > { %v10831_v58 = vpop.permute.xlu1 %2441  ;;  %14613 = vst [vmem:[#allocation148_spill] sm:$0xff] %v10855_v42 }
 0x376   : > { %14605 = vst [vmem:[#allocation140_spill] sm:$0xff] %v10831_v58  ;;  %v10834_v57 = vpop.permute.xlu0 %2765 }
 0x377   : > { %14606 = vst [vmem:[#allocation141_spill] sm:$0xff] %v10834_v57  ;;  %2775 = vrot.lane.b32.xlu1 %v2688_v54, %s9625_s26  ;;  %v576_v57 = vand.u32 15, %v384_v19 }
 0x378   : > { %2041 = vrot.lane.b32.xlu0 %v1949_v31, %s9620_s18 }
 0x379   : > { %v10838_v50 = vpop.permute.xlu1 %2957  ;;  %vm800_vm15 = vcmp.gt.s32.totalorder %v576_v57, 0 }
 0x37a   : > { %14607 = vst [vmem:[#allocation142_spill] sm:$0xff] %v10838_v50  ;;  %v10840_v36 = vpop.permute.xlu0 %2439 }
 0x37b   : > { %14608 = vst [vmem:[#allocation143_spill] sm:$0xff] %v10840_v36  ;;  %2043 = vrot.lane.b32.xlu1 %v1950_v48, %s9620_s18 }
 0x37c   : > { %2265 = vrot.lane.b32.xlu0 %v2141_v29, %s9621_s19 }
 0x37d   : > { %v10845_v58 = vpop.permute.xlu1 %3087 }
 0x37e   : > { %14609 = vst [vmem:[#allocation144_spill] sm:$0xff] %v10845_v58  ;;  %v10847_v8 = vpop.permute.xlu0 %2955  ;;  %v385_v58 = vadd.s32 216, %v10104_v12 }
 0x37f   : > { %14610 = vst [vmem:[#allocation145_spill] sm:$0xff] %v10847_v8  ;;  %2589 = vrot.lane.b32.xlu1 %v1950_v48, %s9624_s25  ;;  %v10866_v48 = vsel %vm800_vm15, 1.0, %v14493_v7 }
 0x380   : > { %2587 = vrot.lane.b32.xlu0 %v1949_v31, %s9624_s25  ;;  %14616 = vst [vmem:[#allocation151_spill] sm:$0xff] %v10866_v48  ;;  %v583_v57 = vand.u32 15, %v385_v58  ;;  %v3208_v58 = vmul.f32 %v10755_v32, %v2140_v20  ;;  %v2690_v32 = vmul.f32 %v10820_v30, %v2140_v20 }
 0x381   : > { %v10851_v54 = vpop.permute.xlu1 %3281 }
 0x382   : > { %14611 = vst [vmem:[#allocation146_spill] sm:$0xff] %v10851_v54  ;;  %v10853_v50 = vpop.permute.xlu0 %3279  ;;  %vm897_vm1 = vcmp.lt.s32.totalorder %v583_v57, 15  ;;  %v1952_v57 = vld [vmem:[#allocation2 + $0x100] sm:$0xff] }
 0x383   : > { %14612 = vst [vmem:[#allocation147_spill] sm:$0xff] %v10853_v50  ;;  %2457 = vrot.lane.b32.xlu1 %v10855_v42, %s9626_s27  ;;  %v2365_v50 = vmul.f32 %v10866_v48, %v10859_v33 }
 0x384   : > { %2781 = vrot.lane.b32.xlu0 %v2141_v29, %s9625_s26 }
 0x385   : > { %v10863_v19 = vpop.permute.xlu1 %2247 }
 0x386   : > { %14615 = vst [vmem:[#allocation150_spill] sm:$0xff] %v10863_v19  ;;  %v10868_v54 = vpop.permute.xlu0 %3093  ;;  %v2883_v19 = vmul.f32 %v10798_v1, %v10859_v33  ;;  %v10924_v1 = vld [vmem:[#allocation2 + $0xff] sm:$0xff] }
 0x387   : > { %14617 = vst [vmem:[#allocation152_spill] sm:$0xff] %v10868_v54  ;;  %2973 = vrot.lane.b32.xlu1 %v10855_v42, %s9622_s23  ;;  %14633 = vst [vmem:[#allocation168_spill] sm:$0xff] %v10924_v1 }
 0x388   : > { %2455 = vrot.lane.b32.xlu0 %v2365_v50, %s9626_s27  ;;  %v10889_v50 = vsel %vm897_vm1, 1.0, %v14493_v7 }
 0x389   : > { %v10875_v8 = vpop.permute.xlu1 %2763  ;;  %14622 = vst [vmem:[#allocation157_spill] sm:$0xff] %v10889_v50 }
 0x38a   : > { %14618 = vst [vmem:[#allocation153_spill] sm:$0xff] %v10875_v8  ;;  %v10877_v36 = vpop.permute.xlu0 %2029 }
 0x38b   : > { %14619 = vst [vmem:[#allocation154_spill] sm:$0xff] %v10877_v36  ;;  %3103 = vrot.lane.b32.xlu1 %v1949_v31, %s9623_s24  ;;  %v2172_v31 = vmul.f32 %v10889_v50, %v2140_v20 }
 0x38c   : > { %2971 = vrot.lane.b32.xlu0 %v2883_v19, %s9622_s23 }
 0x38d   : > { %v10883_v54 = vpop.permute.xlu1 %2031 }
 0x38e   : > { %14620 = vst [vmem:[#allocation155_spill] sm:$0xff] %v10883_v54  ;;  %v10885_v34 = vpop.permute.xlu0 %2253  ;;  %v1951_v54 = vld [vmem:[#allocation2 + $0xf8] sm:$0xff] }
 0x38f   : > { %14621 = vst [vmem:[#allocation156_spill] sm:$0xff] %v10885_v34  ;;  %3297 = vrot.lane.b32.xlu1 %v2141_v29, %s9627_s28 }
 0x390   : > { %3295 = vrot.lane.b32.xlu0 %v3208_v58, %s9627_s28 }
 0x391   : > { %v10893_v42 = vpop.permute.xlu1 %2577 }
 0x392   : > { %14623 = vst [vmem:[#allocation158_spill] sm:$0xff] %v10893_v42  ;;  %v10896_v33 = vpop.permute.xlu0 %2575  ;;  %v386_v42 = vadd.s32 224, %v10104_v12 }
 0x393   : > { %14624 = vst [vmem:[#allocation159_spill] sm:$0xff] %v10896_v33  ;;  %2263 = vrot.lane.b32.xlu1 %v2172_v31, %s9621_s19  ;;  %v2143_v31 = vld [vmem:[#allocation2 + $0xf9] sm:$0xff] }
 0x394   : > { %3109 = vrot.lane.b32.xlu0 %v1952_v57, %s9623_s24  ;;  %v10928_v33 = vld [vmem:[#allocation2 + $0xf7] sm:$0xff] }
 0x395   : > { %v10900_v19 = vpop.permute.xlu1 %2445  ;;  %14634 = vst [vmem:[#allocation169_spill] sm:$0xff] %v10928_v33 }
 0x396   : > { %14625 = vst [vmem:[#allocation160_spill] sm:$0xff] %v10900_v19  ;;  %v10903_v8 = vpop.permute.xlu0 %2769 }
 0x397   : > { %14626 = vst [vmem:[#allocation161_spill] sm:$0xff] %v10903_v8  ;;  %2779 = vrot.lane.b32.xlu1 %v2690_v32, %s9625_s26  ;;  %v590_v8 = vand.u32 15, %v386_v42  ;;  %v8859_v42 = vld [vmem:[%s14354_s3 + $0x10] sm:$0xff] }
 0x398   : > { %2045 = vrot.lane.b32.xlu0 %v1951_v54, %s9620_s18 }
 0x399   : > { %v10907_v29 = vpop.permute.xlu1 %2961  ;;  %vm802_vm3 = vcmp.gt.s32.totalorder %v590_v8, 0 }
 0x39a   : > { %14627 = vst [vmem:[#allocation162_spill] sm:$0xff] %v10907_v29  ;;  %v10909_v58 = vpop.permute.xlu0 %2443  ;;  %v10941_v8 = vsel %vm802_vm3, 1.0, %v14493_v7 }
 0x39b   : > { %14628 = vst [vmem:[#allocation163_spill] sm:$0xff] %v10909_v58  ;;  %2047 = vrot.lane.b32.xlu1 %v1952_v57, %s9620_s18  ;;  %14636 = vst [vmem:[#allocation171_spill] sm:$0xff] %v10941_v8  ;;  %v2367_v34 = vmul.f32 %v10941_v8, %v10928_v33 }
 0x39c   : > { %2269 = vrot.lane.b32.xlu0 %v2143_v31, %s9621_s19 }
 0x39d   : > { %v10914_v19 = vpop.permute.xlu1 %3091 }
 0x39e   : > { %14629 = vst [vmem:[#allocation164_spill] sm:$0xff] %v10914_v19  ;;  %v10916_v20 = vpop.permute.xlu0 %2959  ;;  %v387_v19 = vadd.s32 232, %v10104_v12 }
 0x39f   : > { %14630 = vst [vmem:[#allocation165_spill] sm:$0xff] %v10916_v20  ;;  %2593 = vrot.lane.b32.xlu1 %v1952_v57, %s9624_s25  ;;  %v8860_v57 = vld [vmem:[%s14354_s3 + $0x18] sm:$0xff] }
 0x3a0   : > { %2591 = vrot.lane.b32.xlu0 %v1951_v54, %s9624_s25  ;;  %v597_v58 = vand.u32 15, %v387_v19 }
 0x3a1   : > { %v10920_v32 = vpop.permute.xlu1 %3285 }
 0x3a2   : > { %14631 = vst [vmem:[#allocation166_spill] sm:$0xff] %v10920_v32  ;;  %v10922_v29 = vpop.permute.xlu0 %3283  ;;  %vm899_vm4 = vcmp.lt.s32.totalorder %v597_v58, 15  ;;  %v2531_v58 = vld [vmem:[#allocation2 + $0x108] sm:$0xff] }
 0x3a3   : > { %14632 = vst [vmem:[#allocation167_spill] sm:$0xff] %v10922_v29  ;;  %2461 = vrot.lane.b32.xlu1 %v10924_v1, %s9626_s27  ;;  %v9531_v29 = vpack.c.bf16 %v8860_v57, %v8859_v42  ;;  %v2885_v57 = vmul.f32 %v10866_v48, %v10928_v33  ;;  %v2663_v48 = vld [vmem:[#allocation2 + $0x109] sm:$0xff] }
 0x3a4   : > { %2785 = vrot.lane.b32.xlu0 %v2143_v31, %s9625_s26 }
 0x3a5   : > { %v10938_v32 = vpop.permute.xlu1 %2251  ;;  %9532 = vmatprep.subr.bf16.mxu0 %v9531_v29 }
 0x3a6   : > { %14635 = vst [vmem:[#allocation170_spill] sm:$0xff] %v10938_v32  ;;  %v10943_v20 = vpop.permute.xlu0 %3097  ;;  %9534 = vmatpush3.bf16.msra.mxu0 %v9531_v29 }
 0x3a7   : > { %14637 = vst [vmem:[#allocation172_spill] sm:$0xff] %v10943_v20  ;;  %2977 = vrot.lane.b32.xlu1 %v10924_v1, %s9622_s23  ;;  %v2142_v20 = vld [vmem:[#allocation2 + $0xf1] sm:$0xff] }
 0x3a8   : > { %2459 = vrot.lane.b32.xlu0 %v2367_v34, %s9626_s27  ;;  %v3210_v19 = vmul.f32 %v10820_v30, %v2142_v20  ;;  %v10964_v34 = vsel %vm899_vm4, 1.0, %v14493_v7  ;;  %v2692_v30 = vmul.f32 %v10889_v50, %v2142_v20 }
 0x3a9   : > { %v10950_v36 = vpop.permute.xlu1 %2767  ;;  %14642 = vst [vmem:[#allocation177_spill] sm:$0xff] %v10964_v34 }
 0x3aa   : > { %14638 = vst [vmem:[#allocation173_spill] sm:$0xff] %v10950_v36  ;;  %v10952_v42 = vpop.permute.xlu0 %2033 }
 0x3ab   : > { %14639 = vst [vmem:[#allocation174_spill] sm:$0xff] %v10952_v42  ;;  %3107 = vrot.lane.b32.xlu1 %v1951_v54, %s9623_s24  ;;  %v2174_v54 = vmul.f32 %v10964_v34, %v2142_v20  ;;  %v2338_v20 = vld [vmem:[#allocation2 + $0x10f] sm:$0xff]  ;;  %v9567_v42 = vld [vmem:[#allocation2 + $0x17] sm:$0xff] }
 0x3ac   : > { %2975 = vrot.lane.b32.xlu0 %v2885_v57, %s9622_s23 }
 0x3ad   : > { %v10958_v32 = vpop.permute.xlu1 %2035 }
 0x3ae   : > { %14640 = vst [vmem:[#allocation175_spill] sm:$0xff] %v10958_v32  ;;  %v10960_v1 = vpop.permute.xlu0 %2257 }
 0x3af   : > { %14641 = vst [vmem:[#allocation176_spill] sm:$0xff] %v10960_v1  ;;  %3301 = vrot.lane.b32.xlu1 %v2143_v31, %s9627_s28  ;;  %v388_v31 = vadd.s32 240, %v10104_v12 }
 0x3b0   : > { %3299 = vrot.lane.b32.xlu0 %v3210_v19, %s9627_s28  ;;  %v1825_v19 = vld [vmem:[#allocation2 + $0x7] sm:$0xff] }
 0x3b1   : > { %v10968_v29 = vpop.permute.xlu1 %2581  ;;  %v604_v1 = vand.u32 15, %v388_v31 }
 0x3b2   : > { %14643 = vst [vmem:[#allocation178_spill] sm:$0xff] %v10968_v29  ;;  %v10971_v33 = vpop.permute.xlu0 %2579 }
 0x3b3   : > { %14644 = vst [vmem:[#allocation179_spill] sm:$0xff] %v10971_v33  ;;  %2267 = vrot.lane.b32.xlu1 %v2174_v54, %s9621_s19  ;;  %v2532_v54 = vld [vmem:[#allocation2 + $0x110] sm:$0xff]  ;;  %v389_v33 = vadd.s32 248, %v10104_v12  ;;  %vm804_vm5 = vcmp.gt.s32.totalorder %v604_v1, 0 }
 0x3b4   : > { %2595 = vrot.lane.b32.xlu0 %v2531_v58, %s9624_s25 }
 0x3b5   : > { %v10975_v57 = vpop.permute.xlu1 %2449  ;;  %v611_v12 = vand.u32 15, %v389_v33 }
 0x3b6   : > { %14645 = vst [vmem:[#allocation180_spill] sm:$0xff] %v10975_v57  ;;  %v10978_v32 = vpop.permute.xlu0 %2773  ;;  %v1857_v57 = vmul.f32 %v10119_v26, %v1825_v19  ;;  %v2857_v19 = vld [vmem:[#allocation2 + $0x117] sm:$0xff]  ;;  %v9568_v26 = vld [vmem:[#allocation2 + $0x27] sm:$0xff] }
 0x3b7   : > { %14646 = vst [vmem:[#allocation181_spill] sm:$0xff] %v10978_v32  ;;  %2783 = vrot.lane.b32.xlu1 %v2692_v30, %s9625_s26  ;;  %v1859_v32 = vmul.f32 %v9567_v42, %v10152_v52  ;;  %v1861_v42 = vmul.f32 %v9568_v26, %v10184_v13  ;;  %vm901_vm6 = vcmp.lt.s32.totalorder %v611_v12, 15 }
 0x3b8   : > { %2789 = vrot.lane.b32.xlu0 %v2663_v48, %s9625_s26  ;;  %v2081_v31 = vadd.f32 %v10212_v38, %v1857_v57 }
 0x3b9   : > { %v10983_v29 = vpop.permute.xlu1 %2965  ;;  %v2085_v57 = vadd.f32 %v10292_v25, %v1861_v42  ;;  %v11029_v42 = vsel %vm901_vm6, 1.0, %v14493_v7 }
 0x3ba   : > { %14647 = vst [vmem:[#allocation182_spill] sm:$0xff] %v10983_v29  ;;  %v10985_v36 = vpop.permute.xlu0 %2447  ;;  %v2083_v29 = vadd.f32 %v10266_v5, %v1859_v32  ;;  %v2305_v1 = vadd.f32 %v10228_v47, %v2081_v31  ;;  %14649 = vst [vmem:[#allocation184_spill] sm:$0xff] %v11029_v42 }
 0x3bb   : > { %2597 = vrot.lane.b32.xlu1 %v2532_v54, %s9624_s25  ;;  %v2309_v33 = vadd.f32 %v10305_v35, %v2085_v57 }
 0x3bc   : > { %2981 = vrot.lane.b32.xlu0 %v2338_v20, %s9622_s23  ;;  %v2307_v5 = vadd.f32 %v10255_v62, %v2083_v29  ;;  %v1826_v29 = vld [vmem:[#allocation2 + $0xf] sm:$0xff] }
 0x3bd   : > { %v10991_v30 = vpop.permute.xlu1 %3095  ;;  %v2082_v12 = vadd.f32 %v10217_v41, %v1826_v29 }
 0x3be   : > { %14648 = vst [vmem:[#allocation183_spill] sm:$0xff] %v10991_v30  ;;  %v10995_v50 = vpop.permute.xlu0 %2963  ;;  %v11004_v30 = vsel %vm804_vm5, 1.0, %v14493_v7  ;;  %v2501_v26 = vadd.f32 %v10325_v23, %v2307_v5  ;;  %v2503_v23 = vadd.f32 %v10381_v4, %v2309_v33 }
 0x3bf   : > { %3113 = vrot.lane.b32.xlu1 %v2532_v54, %s9623_s24  ;;  %v2889_v38 = vmul.f32 %v11004_v30, %v2857_v19  ;;  %v2499_v54 = vadd.f32 %v10278_v14, %v2305_v1  ;;  %v9569_v19 = vld [vmem:[#allocation2 + $0x37] sm:$0xff]  ;;  %v2306_v7 = vadd.f32 %v10283_v17, %v2082_v12 }
 0x3c0   : > { %3111 = vrot.lane.b32.xlu0 %v2531_v58, %s9623_s24  ;;  %v2337_v58 = vld [vmem:[#allocation2 + $0x107] sm:$0xff]  ;;  %v1863_v47 = vmul.f32 %v9569_v19, %v10223_v44  ;;  %v2633_v14 = vadd.f32 %v10312_v40, %v2501_v26  ;;  %v2635_v26 = vadd.f32 %v10368_v45, %v2503_v23  ;;  %v3183_v45 = vld [vmem:[#allocation2 + $0x119] sm:$0xff] }
 0x3c1   : > { %v11001_v52 = vpop.permute.xlu1 %3289  ;;  %v2369_v25 = vmul.f32 %v11004_v30, %v2337_v58  ;;  %v2631_v5 = vadd.f32 %v10262_v2, %v2499_v54  ;;  %v3184_v19 = vld [vmem:[#allocation2 + $0x121] sm:$0xff] }
 0x3c2   : > { %v11007_v32 = vpop.permute.xlu0 %3287  ;;  %v2087_v35 = vadd.f32 %v10348_v9, %v1863_v47  ;;  %v2887_v9 = vmul.f32 %v10941_v8, %v2337_v58  ;;  %v2827_v41 = vadd.f32 %v10318_v43, %v2633_v14  ;;  %v2144_v23 = vld [vmem:[#allocation2 + $0x101] sm:$0xff]  ;;  %v3216_v12 = vmul.f32 %v11029_v42, %v3184_v19  ;;  %v14657_v19 = vld [vmem:[#allocation20_spill] sm:$0xff] }
 0x3c3   : > { %2465 = vrot.lane.b32.xlu1 %v2338_v20, %s9626_s27  ;;  %v2664_v20 = vld [vmem:[#allocation2 + $0x111] sm:$0xff]  ;;  %v2825_v29 = vadd.f32 %v10268_v6, %v2631_v5 }
 0x3c4   : > { %2983 = vrot.lane.b32.xlu0 %v2889_v38, %s9622_s23  ;;  %v2696_v1 = vmul.f32 %v11029_v42, %v2664_v20  ;;  %v2311_v4 = vadd.f32 %v10355_v21, %v2087_v35  ;;  %v9571_v21 = vld [vmem:[#allocation2 + $0x1f] sm:$0xff]  ;;  %v3214_v17 = vmul.f32 %v10964_v34, %v2664_v20  ;;  %v3021_v47 = vadd.f32 %v10388_v16, %v2827_v41  ;;  %v9573_v5 = vld [vmem:[#allocation2 + $0x2f] sm:$0xff] }
 0x3c5   : > { %v11017_v62 = vpop.permute.xlu1 %2255  ;;  %v2084_v33 = vadd.f32 %v9571_v21, %v10253_v61  ;;  %v2500_v61 = vadd.f32 %v10273_v10, %v2306_v7  ;;  %v3019_v6 = vadd.f32 %v10331_v53, %v2825_v29  ;;  %v2829_v20 = vadd.f32 %v10375_v56, %v2635_v26  ;;  %v9574_v53 = vld [vmem:[#allocation2 + $0x67] sm:$0xff]  ;;  %v14650_v7 = vld [vmem:[#allocation16_spill] sm:$0xff] }
 0x3c6   : > { %v11020_v31 = vpop.permute.xlu0 %3101  ;;  %v2505_v54 = vadd.f32 %v10444_v3, %v2311_v4  ;;  %v2086_v10 = vadd.f32 %v9573_v5, %v10290_v24  ;;  %v14651_v41 = vld [vmem:[#allocation12_spill] sm:$0xff] }
 0x3c7   : > { %3305 = vrot.lane.b32.xlu1 %v2663_v48, %s9627_s28  ;;  %v9570_v48 = vld [vmem:[#allocation2 + $0x47] sm:$0xff]  ;;  %v2308_v14 = vadd.f32 %v10336_v60, %v2084_v33  ;;  %v1869_v60 = vmul.f32 %v9574_v53, %v10402_v55 }
 0x3c8   : > { %2463 = vrot.lane.b32.xlu0 %v2369_v25, %s9626_s27  ;;  %v1865_v40 = vmul.f32 %v9570_v48, %v10276_v11  ;;  %v2637_v16 = vadd.f32 %v10431_v37, %v2505_v54  ;;  %v2176_v37 = vmul.f32 %v11029_v42, %v2144_v23  ;;  %v14652_v54 = vld [vmem:[#allocation28_spill] sm:$0xff] }
 0x3c9   : > { %v11033_v38 = vpop.permute.xlu1 %2771  ;;  %v2502_v26 = vadd.f32 %v14650_v7, %v2308_v14  ;;  %v2310_v21 = vadd.f32 %v14652_v54, %v2086_v10  ;;  %v14664_v10 = vld [vmem:[#allocation51_spill] sm:$0xff]  ;;  %v9576_v7 = vld [vmem:[#allocation2 + $0x3f] sm:$0xff] }
 0x3ca   : > { %v11038_v57 = vpop.permute.xlu0 %2037  ;;  %v2089_v2 = vadd.f32 %v10411_v49, %v1865_v40  ;;  %v9572_v49 = vld [vmem:[#allocation2 + $0x57] sm:$0xff]  ;;  %v1873_v40 = vmul.f32 %v10534_v15, %v10460_v39 }
 0x3cb   : > { %2791 = vrot.lane.b32.xlu1 %v2696_v1, %s9625_s26  ;;  %v1867_v3 = vmul.f32 %v9572_v49, %v10339_v63  ;;  %v9575_v1 = vld [vmem:[#allocation2 + $0x77] sm:$0xff] }
 0x3cc   : > { %2979 = vrot.lane.b32.xlu0 %v2887_v9, %s9622_s23  ;;  %v2313_v43 = vadd.f32 %v10418_v59, %v2089_v2  ;;  %v1871_v56 = vmul.f32 %v9575_v1, %v10467_v18  ;;  %v3151_v9 = vadd.f32 %v10323_v22, %v3019_v6  ;;  %v2632_v2 = vadd.f32 %v14651_v41, %v2500_v61  ;;  %v14661_v61 = vld [vmem:[#allocation93_spill] sm:$0xff]  ;;  %v14668_v54 = vld [vmem:[#allocation24_spill] sm:$0xff] }
 0x3cd   : > { %v11050_v58 = vpop.permute.xlu1 %2039  ;;  %v2091_v59 = vadd.f32 %v10477_v46, %v1867_v3  ;;  %v3153_v46 = vadd.f32 %v10386_v27, %v3021_v47  ;;  %v14653_v27 = vld [vmem:[#allocation46_spill] sm:$0xff]  ;;  %v14660_v3 = vld [vmem:[#allocation72_spill] sm:$0xff]  ;;  %v14667_v41 = vld [vmem:[#allocation21_spill] sm:$0xff] }
 0x3ce   : > { %v11056_v25 = vpop.permute.xlu0 %2261  ;;  %v2507_v35 = vadd.f32 %v10511_v28, %v2313_v43  ;;  %v3023_v28 = vadd.f32 %v10451_v0, %v2829_v20  ;;  %v14654_v0 = vld [vmem:[#allocation35_spill] sm:$0xff]  ;;  %v2826_v22 = vadd.f32 %v14657_v19, %v2632_v2  ;;  %v14658_v47 = vld [vmem:[#allocation54_spill] sm:$0xff]  ;;  %v11096_v6 = vmul.f32 %v14661_v61, %v14660_v3 }
 0x3cf   : > { %3307 = vrot.lane.b32.xlu1 %v3214_v17, %s9627_s28  ;;  %v2315_v48 = vadd.f32 %v10485_v51, %v2091_v59  ;;  %v2831_v29 = vadd.f32 %v14654_v0, %v2637_v16  ;;  %v14655_v51 = vld [vmem:[#allocation58_spill] sm:$0xff]  ;;  %v2694_v20 = vmul.f32 %v10964_v34, %v2144_v23  ;;  %v2088_v2 = vadd.f32 %v9576_v7, %v14667_v41  ;;  %v14669_v0 = vld [vmem:[#allocation15_spill] sm:$0xff] }
 0x3d0   : > { %3309 = vrot.lane.b32.xlu0 %v3183_v45, %s9627_s28  ;;  %v2639_v33 = vadd.f32 %v14653_v27, %v2507_v35  ;;  %v2093_v17 = vadd.f32 %v14655_v51, %v1869_v60  ;;  %v14656_v45 = vld [vmem:[#allocation67_spill] sm:$0xff]  ;;  %v14659_v43 = vld [vmem:[#allocation74_spill] sm:$0xff]  ;;  %v14663_v35 = vld [vmem:[#allocation37_spill] sm:$0xff]  ;;  %v2504_v27 = vadd.f32 %v14668_v54, %v2310_v21  ;;  %v2634_v51 = vadd.f32 %v14669_v0, %v2502_v26 }
 0x3d1   : > { %v11071_v4 = vpop.permute.xlu1 %2585  ;;  %v2509_v39 = vadd.f32 %v14656_v45, %v2315_v48  ;;  %v1875_v49 = vmul.f32 %v14659_v43, %v14658_v47  ;;  %v14662_v16 = vld [vmem:[#allocation26_spill] sm:$0xff]  ;;  %v3155_v5 = vadd.f32 %v14663_v35, %v3023_v28  ;;  %v3025_v53 = vadd.f32 %v14664_v10, %v2831_v29  ;;  %v14671_v28 = vld [vmem:[#allocation48_spill] sm:$0xff]  ;;  %v14672_v29 = vld [vmem:[#allocation77_spill] sm:$0xff] }
 0x3d2   : > { %v11079_v24 = vpop.permute.xlu0 %2583  ;;  %v3347_v59 = vadd.f32 %v14662_v16, %v3153_v46  ;;  %v14670_v46 = vld [vmem:[#allocation63_spill] sm:$0xff]  ;;  %v2833_v19 = vadd.f32 %v14671_v28, %v2639_v33  ;;  %v2095_v47 = vadd.f32 %v14672_v29, %v1871_v56  ;;  %v14678_v7 = vld [vmem:[#allocation38_spill] sm:$0xff]  ;;  %v14680_v54 = vld [vmem:[#allocation69_spill] sm:$0xff] }
 0x3d3   : > { %2271 = vrot.lane.b32.xlu1 %v2176_v37, %s9621_s19  ;;  %v14666_v37 = vld [vmem:[#allocation18_spill] sm:$0xff]  ;;  %v2641_v45 = vadd.f32 %v14670_v46, %v2509_v39  ;;  %v14675_v10 = vld [vmem:[#allocation31_spill] sm:$0xff]  ;;  %v3349_v33 = vadd.f32 %v14678_v7, %v3155_v5 }
 0x3d4   : > { %3311 = vrot.lane.b32.xlu0 %v3216_v12, %s9627_s28  ;;  %v14665_v12 = vld [vmem:[#allocation60_spill] sm:$0xff]  ;;  %v3345_v48 = vadd.f32 %v14666_v37, %v3151_v9  ;;  %v14674_v9 = vld [vmem:[#allocation17_spill] sm:$0xff]  ;;  %v9577_v35 = vld [vmem:[#allocation2 + $0x4f] sm:$0xff] }
 0x3d5   : > { %v11098_v14 = vpop.permute.xlu1 %2453  ;;  %v2317_v60 = vadd.f32 %v14665_v12, %v2093_v17  ;;  %v14673_v17 = vld [vmem:[#allocation86_spill] sm:$0xff]  ;;  %v3020_v16 = vadd.f32 %v14674_v9, %v2826_v22  ;;  %v2090_v21 = vadd.f32 %v9577_v35, %v14675_v10  ;;  %v14676_v12 = vld [vmem:[#allocation40_spill] sm:$0xff]  ;;  %v14681_v0 = vld [vmem:[#allocation79_spill] sm:$0xff] }
 0x3d6   : > { %v11105_v1 = vpop.permute.xlu0 %2777  ;;  %v2312_v26 = vadd.f32 %v14676_v12, %v2088_v2  ;;  %v14679_v41 = vld [vmem:[#allocation50_spill] sm:$0xff]  ;;  %v2319_v46 = vadd.f32 %v14681_v0, %v2095_v47  ;;  %v14683_v29 = vld [vmem:[#allocation23_spill] sm:$0xff]  ;;  %v9578_v9 = vld [vmem:[#allocation2 + $0x5f] sm:$0xff] }
 0x3d7   : > { %2787 = vrot.lane.b32.xlu1 %v2694_v20, %s9625_s26  ;;  %v2511_v3 = vadd.f32 %v14673_v17, %v2317_v60  ;;  %v14677_v20 = vld [vmem:[#allocation157_spill] sm:$0xff]  ;;  %v3157_v56 = vadd.f32 %v14679_v41, %v3025_v53  ;;  %v3027_v60 = vadd.f32 %v14680_v54, %v2833_v19  ;;  %v14682_v22 = vld [vmem:[#allocation30_spill] sm:$0xff]  ;;  %v2636_v17 = vadd.f32 %v14683_v29, %v2504_v27  ;;  %v14684_v2 = vld [vmem:[#allocation43_spill] sm:$0xff] }
 0x3d8   : > { %3413 = vrot.lane.b32.xlu0 %v3347_v59, %s9628_s10  ;;  %v3212_v39 = vmul.f32 %v14677_v20, %v2144_v23  ;;  %v2828_v28 = vadd.f32 %v14682_v22, %v2634_v51  ;;  %v2092_v35 = vadd.f32 %v9578_v9, %v14684_v2  ;;  %v14685_v10 = vld [vmem:[#allocation55_spill] sm:$0xff]  ;;  %v14686_v23 = vld [vmem:[#allocation82_spill] sm:$0xff]  ;;  %v14687_v53 = vld [vmem:[#allocation65_spill] sm:$0xff] }
 0x3d9   : > { %v11120_v37 = vpop.permute.xlu1 %2969  ;;  %v2314_v12 = vadd.f32 %v14685_v10, %v2090_v21  ;;  %v2643_v5 = vadd.f32 %v14686_v23, %v2511_v3  ;;  %v2835_v7 = vadd.f32 %v14687_v53, %v2641_v45  ;;  %v14688_v19 = vld [vmem:[#allocation96_spill] sm:$0xff]  ;;  %v14689_v47 = vld [vmem:[#allocation105_spill] sm:$0xff]  ;;  %v14691_v27 = vld [vmem:[#allocation34_spill] sm:$0xff] }
 0x3da   : > { %v11127_v59 = vpop.permute.xlu0 %2451  ;;  %v2097_v41 = vadd.f32 %v14688_v19, %v1873_v40  ;;  %v2513_v54 = vadd.f32 %v14689_v47, %v2319_v46  ;;  %v14690_v51 = vld [vmem:[#allocation13_spill] sm:$0xff]  ;;  %v2506_v22 = vadd.f32 %v14691_v27, %v2312_v26  ;;  %v14692_v29 = vld [vmem:[#allocation42_spill] sm:$0xff]  ;;  %v14695_v23 = vld [vmem:[#allocation68_spill] sm:$0xff] }
 0x3db   : > { %3303 = vrot.lane.b32.xlu1 %v3212_v39, %s9627_s28  ;;  %v3152_v0 = vadd.f32 %v14690_v51, %v3020_v16  ;;  %v2830_v9 = vadd.f32 %v14692_v29, %v2636_v17  ;;  %v14693_v2 = vld [vmem:[#allocation73_spill] sm:$0xff]  ;;  %v14694_v39 = vld [vmem:[#allocation52_spill] sm:$0xff]  ;;  %v3159_v45 = vadd.f32 %v14695_v23, %v3027_v60  ;;  %v14697_v19 = vld [vmem:[#allocation98_spill] sm:$0xff] }
 0x3dc   : > { %3417 = vrot.lane.b32.xlu0 %v3349_v33, %s9628_s10  ;;  %v2316_v21 = vadd.f32 %v14693_v2, %v2092_v35  ;;  %v3351_v3 = vadd.f32 %v14694_v39, %v3157_v56  ;;  %v14696_v53 = vld [vmem:[#allocation88_spill] sm:$0xff]  ;;  %v2321_v46 = vadd.f32 %v14697_v19, %v2097_v41  ;;  %v14698_v33 = vld [vmem:[#allocation27_spill] sm:$0xff]  ;;  %v14699_v51 = vld [vmem:[#allocation25_spill] sm:$0xff] }
 0x3dd   : > { %v11143_v10 = vpop.permute.xlu1 %3099  ;;  %v3029_v40 = vadd.f32 %v14696_v53, %v2835_v7  ;;  %v3346_v16 = vadd.f32 %v14698_v33, %v3152_v0  ;;  %v3022_v26 = vadd.f32 %v14699_v51, %v2828_v28  ;;  %v14700_v27 = vld [vmem:[#allocation47_spill] sm:$0xff]  ;;  %v14702_v35 = vld [vmem:[#allocation112_spill] sm:$0xff]  ;;  %v14703_v56 = vld [vmem:[#allocation101_spill] sm:$0xff] }
 0x3de   : > { %v11149_v47 = vpop.permute.xlu0 %2967  ;;  %v2508_v17 = vadd.f32 %v14700_v27, %v2314_v12  ;;  %v14701_v29 = vld [vmem:[#allocation91_spill] sm:$0xff]  ;;  %v2645_v39 = vadd.f32 %v14703_v56, %v2513_v54  ;;  %v14704_v60 = vld [vmem:[#allocation84_spill] sm:$0xff]  ;;  %v14708_v28 = vld [vmem:[#allocation33_spill] sm:$0xff] }
 0x3df   : > { %v1879_v2 = vmul.f32 %v14702_v35, %v14701_v29  ;;  %3409 = vrot.lane.b32.xlu1 %v3345_v48, %s9628_s10  ;;  %v2837_v23 = vadd.f32 %v14704_v60, %v2643_v5  ;;  %v14705_v7 = vld [vmem:[#allocation115_spill] sm:$0xff]  ;;  %v14706_v41 = vld [vmem:[#allocation124_spill] sm:$0xff]  ;;  %v2638_v51 = vadd.f32 %v14708_v28, %v2506_v22  ;;  %v14711_v54 = vld [vmem:[#allocation70_spill] sm:$0xff] }
 0x3e0   : > { %v2099_v53 = vadd.f32 %v14705_v7, %v1875_v49  ;;  %v2515_v19 = vadd.f32 %v14706_v41, %v2321_v46  ;;  %3421 = vrot.lane.b32.xlu0 %v3351_v3, %s9628_s10  ;;  %v14707_v0 = vld [vmem:[#allocation36_spill] sm:$0xff]  ;;  %v9579_v12 = vld [vmem:[#allocation2 + $0x6f] sm:$0xff]  ;;  %v3353_v56 = vadd.f32 %v14711_v54, %v3159_v45  ;;  %v14714_v46 = vld [vmem:[#allocation117_spill] sm:$0xff] }
 0x3e1   : > { %v3024_v33 = vadd.f32 %v14707_v0, %v2830_v9  ;;  %v14709_v27 = vld [vmem:[#allocation59_spill] sm:$0xff]  ;;  %v14710_v29 = vld [vmem:[#allocation64_spill] sm:$0xff]  ;;  %v11166_v48 = vpop.permute.xlu1 %3293  ;;  %v14716_v22 = vld [vmem:[#allocation57_spill] sm:$0xff] }
 0x3e2   : > { %v2094_v42 = vadd.f32 %v9579_v12, %v14709_v27  ;;  %v2510_v34 = vadd.f32 %v14710_v29, %v2316_v21  ;;  %v14712_v5 = vld [vmem:[#allocation87_spill] sm:$0xff]  ;;  %v2323_v41 = vadd.f32 %v14714_v46, %v2099_v53  ;;  %v11172_v3 = vpop.permute.xlu0 %3291  ;;  %v2832_v28 = vadd.f32 %v14716_v22, %v2638_v51  ;;  %v14717_v20 = vld [vmem:[#allocation45_spill] sm:$0xff]  ;;  %v14718_v27 = vld [vmem:[#allocation92_spill] sm:$0xff] }
 0x3e3   : > { %v3161_v60 = vadd.f32 %v14712_v5, %v3029_v40  ;;  %v14713_v49 = vld [vmem:[#allocation107_spill] sm:$0xff]  ;;  %v2640_v12 = vadd.f32 %v14717_v20, %v2508_v17  ;;  %3411 = vrot.lane.b32.xlu1 %v3346_v16, %s9628_s10  ;;  %v14719_v29 = vld [vmem:[#allocation120_spill] sm:$0xff]  ;;  %v14724_v51 = vld [vmem:[#allocation29_spill] sm:$0xff] }
 0x3e4   : > { %v3031_v7 = vadd.f32 %v14713_v49, %v2837_v23  ;;  %v14715_v9 = vld [vmem:[#allocation19_spill] sm:$0xff]  ;;  %v2318_v21 = vadd.f32 %v14718_v27, %v2094_v42  ;;  %v2647_v45 = vadd.f32 %v14719_v29, %v2515_v19  ;;  %v14721_v23 = vld [vmem:[#allocation134_spill] sm:$0xff]  ;;  %3425 = vrot.lane.b32.xlu0 %v3353_v56, %s9628_s10  ;;  %v14725_v20 = vld [vmem:[#allocation76_spill] sm:$0xff] }
 0x3e5   : > { %v3154_v0 = vadd.f32 %v14715_v9, %v3022_v26  ;;  %v14720_v54 = vld [vmem:[#allocation103_spill] sm:$0xff]  ;;  %v2101_v5 = vadd.f32 %v14721_v23, %v11096_v6  ;;  %v3156_v9 = vadd.f32 %v14724_v51, %v3024_v33  ;;  %v2834_v17 = vadd.f32 %v14725_v20, %v2640_v12  ;;  %v14726_v42 = vld [vmem:[#allocation62_spill] sm:$0xff]  ;;  %v11189_v16 = vpop.permute.xlu1 %2259  ;;  %v14727_v19 = vld [vmem:[#allocation89_spill] sm:$0xff] }
 0x3e6   : > { %v2839_v40 = vadd.f32 %v14720_v54, %v2645_v39  ;;  %v14722_v53 = vld [vmem:[#allocation143_spill] sm:$0xff]  ;;  %v2642_v22 = vadd.f32 %v14726_v42, %v2510_v34  ;;  %v3355_v27 = vadd.f32 %v14727_v19, %v3161_v60  ;;  %v14728_v39 = vld [vmem:[#allocation106_spill] sm:$0xff]  ;;  %v14730_v23 = vld [vmem:[#allocation136_spill] sm:$0xff] }
 0x3e7   : > { %v2517_v49 = vadd.f32 %v14722_v53, %v2323_v41  ;;  %v14723_v26 = vld [vmem:[#allocation39_spill] sm:$0xff]  ;;  %v3163_v29 = vadd.f32 %v14728_v39, %v3031_v7  ;;  %v14729_v54 = vld [vmem:[#allocation126_spill] sm:$0xff]  ;;  %v2325_v41 = vadd.f32 %v14730_v23, %v2101_v5  ;;  %v11195_v53 = vpop.permute.xlu0 %3105  ;;  %v14731_v56 = vld [vmem:[#allocation49_spill] sm:$0xff] }
 0x3e8   : > { %v3348_v46 = vadd.f32 %v14723_v26, %v3154_v0  ;;  %v3033_v6 = vadd.f32 %v14729_v54, %v2839_v40  ;;  %v3026_v0 = vadd.f32 %v14731_v56, %v2832_v28  ;;  %v9580_v26 = vld [vmem:[#allocation2 + $0x7f] sm:$0xff]  ;;  %v14732_v33 = vld [vmem:[#allocation78_spill] sm:$0xff]  ;;  %v14733_v12 = vld [vmem:[#allocation83_spill] sm:$0xff]  ;;  %3429 = vrot.lane.b32.xlu0 %v3355_v27, %s9628_s10 }
 0x3e9   : > { %v2096_v51 = vadd.f32 %v9580_v26, %v14732_v33  ;;  %v2512_v20 = vadd.f32 %v14733_v12, %v2318_v21  ;;  %v14734_v34 = vld [vmem:[#allocation95_spill] sm:$0xff]  ;;  %v14736_v7 = vld [vmem:[#allocation122_spill] sm:$0xff]  ;;  %v14739_v28 = vld [vmem:[#allocation53_spill] sm:$0xff]  ;;  %v11210_v12 = vpop.permute.xlu1 %2775 }
 0x3ea   : > { %v2836_v42 = vadd.f32 %v14734_v34, %v2642_v22  ;;  %3415 = vrot.lane.b32.xlu1 %v3348_v46, %s9628_s10  ;;  %v14735_v60 = vld [vmem:[#allocation139_spill] sm:$0xff]  ;;  %v2841_v39 = vadd.f32 %v14736_v7, %v2647_v45  ;;  %v14737_v40 = vld [vmem:[#allocation154_spill] sm:$0xff]  ;;  %v3350_v56 = vadd.f32 %v14739_v28, %v3156_v9  ;;  %v14742_v22 = vld [vmem:[#allocation108_spill] sm:$0xff] }
 0x3eb   : > { %v2649_v19 = vadd.f32 %v14735_v60, %v2517_v49  ;;  %v2103_v54 = vadd.f32 %v14737_v40, %v1879_v2  ;;  %v14738_v5 = vld [vmem:[#allocation163_spill] sm:$0xff]  ;;  %v14740_v35 = vld [vmem:[#allocation66_spill] sm:$0xff]  ;;  %v3357_v46 = vadd.f32 %v14742_v22, %v3163_v29  ;;  %v14743_v34 = vld [vmem:[#allocation125_spill] sm:$0xff]  ;;  %v11216_v40 = vpop.permute.xlu0 %2041 }
 0x3ec   : > { %v2519_v23 = vadd.f32 %v14738_v5, %v2325_v41  ;;  %v3028_v26 = vadd.f32 %v14740_v35, %v2834_v17  ;;  %v14741_v33 = vld [vmem:[#allocation111_spill] sm:$0xff]  ;;  %v3165_v49 = vadd.f32 %v14743_v34, %v3033_v6  ;;  %v14744_v60 = vld [vmem:[#allocation145_spill] sm:$0xff]  ;;  %v14745_v7 = vld [vmem:[#allocation156_spill] sm:$0xff] }
 0x3ed   : > { %v2320_v21 = vadd.f32 %v14741_v33, %v2096_v51  ;;  %v3035_v45 = vadd.f32 %v14744_v60, %v2841_v39  ;;  %v2327_v2 = vadd.f32 %v14745_v7, %v2103_v54  ;;  %v14746_v41 = vld [vmem:[#allocation41_spill] sm:$0xff]  ;;  %v9581_v5 = vld [vmem:[#allocation2 + $0x8f] sm:$0xff]  ;;  %3433 = vrot.lane.b32.xlu0 %v3357_v46, %s9628_s10 }
 0x3ee   : > { %v3158_v27 = vadd.f32 %v14746_v41, %v3026_v0  ;;  %v14747_v9 = vld [vmem:[#allocation97_spill] sm:$0xff]  ;;  %3419 = vrot.lane.b32.xlu1 %v3350_v56, %s9628_s10  ;;  %v14750_v29 = vld [vmem:[#allocation159_spill] sm:$0xff]  ;;  %v14753_v0 = vld [vmem:[#allocation56_spill] sm:$0xff] }
 0x3ef   : > { %v2098_v28 = vadd.f32 %v9581_v5, %v14747_v9  ;;  %v14748_v35 = vld [vmem:[#allocation81_spill] sm:$0xff]  ;;  %v2651_v22 = vadd.f32 %v14750_v29, %v2519_v23  ;;  %v2521_v39 = vadd.f32 %v10985_v36, %v2327_v2  ;;  %v14752_v54 = vld [vmem:[#allocation71_spill] sm:$0xff]  ;;  %v3160_v7 = vadd.f32 %v14753_v0, %v3028_v26  ;;  %v14754_v41 = vld [vmem:[#allocation102_spill] sm:$0xff]  ;;  %v11237_v2 = vpop.permute.xlu0 %2265 }
 0x3f0   : > { %v2644_v17 = vadd.f32 %v14748_v35, %v2512_v20  ;;  %v14749_v51 = vld [vmem:[#allocation85_spill] sm:$0xff]  ;;  %v3352_v60 = vadd.f32 %v14752_v54, %v3158_v27  ;;  %v2514_v5 = vadd.f32 %v14754_v41, %v2320_v21  ;;  %v14755_v9 = vld [vmem:[#allocation130_spill] sm:$0xff]  ;;  %v11231_v35 = vpop.permute.xlu1 %2043  ;;  %v14758_v29 = vld [vmem:[#allocation144_spill] sm:$0xff] }
 0x3f1   : > { %v3030_v33 = vadd.f32 %v14749_v51, %v2836_v42  ;;  %v14751_v6 = vld [vmem:[#allocation141_spill] sm:$0xff]  ;;  %v2322_v20 = vadd.f32 %v14755_v9, %v2098_v28  ;;  %v14756_v56 = vld [vmem:[#allocation114_spill] sm:$0xff]  ;;  %v14757_v51 = vld [vmem:[#allocation127_spill] sm:$0xff] }
 0x3f2   : > { %v2843_v34 = vadd.f32 %v14751_v6, %v2649_v19  ;;  %v2838_v42 = vadd.f32 %v14756_v56, %v2644_v17  ;;  %v3359_v23 = vadd.f32 %v14757_v51, %v3165_v49  ;;  %v3167_v19 = vadd.f32 %v14758_v29, %v3035_v45  ;;  %v14759_v6 = vld [vmem:[#allocation165_spill] sm:$0xff]  ;;  %v14760_v27 = vld [vmem:[#allocation116_spill] sm:$0xff]  ;;  %v14761_v26 = vld [vmem:[#allocation110_spill] sm:$0xff]  ;;  %3423 = vrot.lane.b32.xlu1 %v3352_v60, %s9628_s10 }
 0x3f3   : > { %v9582_v46 = vld [vmem:[#allocation2 + $0x9f] sm:$0xff]  ;;  %v14762_v0 = vld [vmem:[#allocation131_spill] sm:$0xff]  ;;  %v14763_v28 = vld [vmem:[#allocation90_spill] sm:$0xff] }
 0x3f4   : > { %v3037_v36 = vadd.f32 %v14759_v6, %v2843_v34  ;;  %v2100_v54 = vadd.f32 %v9582_v46, %v14760_v27  ;;  %v1881_v21 = vmul.f32 %v14762_v0, %v14761_v26  ;;  %v3354_v41 = vadd.f32 %v14763_v28, %v3160_v7  ;;  %v14764_v9 = vld [vmem:[#allocation75_spill] sm:$0xff]  ;;  %v14766_v51 = vld [vmem:[#allocation161_spill] sm:$0xff]  ;;  %3437 = vrot.lane.b32.xlu0 %v3359_v23, %s9628_s10  ;;  %v14768_v6 = vld [vmem:[#allocation100_spill] sm:$0xff]  ;;  %v11252_v0 = vpop.permute.xlu1 %2589 }
 0x3f5   : > { %v3162_v17 = vadd.f32 %v14764_v9, %v3030_v33  ;;  %v14765_v56 = vld [vmem:[#allocation179_spill] sm:$0xff]  ;;  %v2845_v45 = vadd.f32 %v14766_v51, %v2651_v22  ;;  %v14767_v34 = vld [vmem:[#allocation121_spill] sm:$0xff]  ;;  %v2646_v61 = vadd.f32 %v14768_v6, %v2514_v5  ;;  %v14769_v46 = vld [vmem:[#allocation150_spill] sm:$0xff] }
 0x3f6   : > { %v2653_v49 = vadd.f32 %v14765_v56, %v2521_v39  ;;  %v2516_v29 = vadd.f32 %v14767_v34, %v2322_v20  ;;  %v2324_v27 = vadd.f32 %v14769_v46, %v2100_v54  ;;  %v14770_v43 = vld [vmem:[#allocation174_spill] sm:$0xff]  ;;  %v14771_v60 = vld [vmem:[#allocation104_spill] sm:$0xff]  ;;  %v11258_v56 = vpop.permute.xlu0 %2587  ;;  %v14774_v23 = vld [vmem:[#allocation133_spill] sm:$0xff]  ;;  %3427 = vrot.lane.b32.xlu1 %v3354_v41, %s9628_s10 }
 0x3f7   : > { %v2105_v26 = vadd.f32 %v14770_v43, %v1881_v21  ;;  %v3032_v7 = vadd.f32 %v14771_v60, %v2838_v42  ;;  %v14772_v28 = vld [vmem:[#allocation146_spill] sm:$0xff]  ;;  %v14773_v9 = vld [vmem:[#allocation164_spill] sm:$0xff]  ;;  %v3039_v22 = vadd.f32 %v10995_v50, %v2845_v45  ;;  %v2840_v20 = vadd.f32 %v14774_v23, %v2646_v61  ;;  %v14775_v5 = vld [vmem:[#allocation135_spill] sm:$0xff] }
 0x3f8   : > { %v3361_v33 = vadd.f32 %v14772_v28, %v3167_v19  ;;  %v3169_v39 = vadd.f32 %v14773_v9, %v3037_v36  ;;  %v9583_v51 = vld [vmem:[#allocation2 + $0xaf] sm:$0xff]  ;;  %v14776_v54 = vld [vmem:[#allocation176_spill] sm:$0xff]  ;;  %v14777_v43 = vld [vmem:[#allocation109_spill] sm:$0xff]  ;;  %v11271_v9 = vpop.permute.xlu1 %2457 }
 0x3f9   : > { %v2102_v34 = vadd.f32 %v9583_v51, %v14775_v5  ;;  %v2329_v6 = vadd.f32 %v14776_v54, %v2105_v26  ;;  %v3356_v21 = vadd.f32 %v14777_v43, %v3162_v17  ;;  %v14778_v42 = vld [vmem:[#allocation181_spill] sm:$0xff]  ;;  %v14779_v19 = vld [vmem:[#allocation140_spill] sm:$0xff]  ;;  %v14780_v50 = vld [vmem:[#allocation119_spill] sm:$0xff] }
 0x3fa   : > { %v2847_v46 = vadd.f32 %v14778_v42, %v2653_v49  ;;  %3441 = vrot.lane.b32.xlu0 %v3361_v33, %s9628_s10  ;;  %v2518_v36 = vadd.f32 %v14779_v19, %v2324_v27  ;;  %v2648_v45 = vadd.f32 %v14780_v50, %v2516_v29  ;;  %v14781_v60 = vld [vmem:[#allocation170_spill] sm:$0xff]  ;;  %v14784_v5 = vld [vmem:[#allocation183_spill] sm:$0xff]  ;;  %v11277_v54 = vpop.permute.xlu0 %2781  ;;  %v14786_v43 = vld [vmem:[#allocation153_spill] sm:$0xff] }
 0x3fb   : > { %v2326_v28 = vadd.f32 %v14781_v60, %v2102_v34  ;;  %v2523_v61 = vadd.f32 %v11127_v59, %v2329_v6  ;;  %v14782_v23 = vld [vmem:[#allocation94_spill] sm:$0xff]  ;;  %v3171_v17 = vadd.f32 %v14784_v5, %v3039_v22  ;;  %v14785_v33 = vld [vmem:[#allocation123_spill] sm:$0xff]  ;;  %v9584_v42 = vld [vmem:[#allocation2 + $0xbf] sm:$0xff]  ;;  %3431 = vrot.lane.b32.xlu1 %v3356_v21, %s9628_s10 }
 0x3fc   : > { %v3164_v26 = vadd.f32 %v14782_v23, %v3032_v7  ;;  %v14783_v51 = vld [vmem:[#allocation166_spill] sm:$0xff]  ;;  %v3041_v49 = vadd.f32 %v11149_v47, %v2847_v46  ;;  %v3034_v27 = vadd.f32 %v14785_v33, %v2840_v20  ;;  %v2842_v29 = vadd.f32 %v14786_v43, %v2648_v45  ;;  %v14787_v34 = vld [vmem:[#allocation155_spill] sm:$0xff]  ;;  %v14788_v59 = vld [vmem:[#allocation128_spill] sm:$0xff]  ;;  %v11289_v20 = vpop.permute.xlu1 %2973 }
 0x3fd   : > { %v3363_v41 = vadd.f32 %v14783_v51, %v3169_v39  ;;  %v2104_v19 = vadd.f32 %v9584_v42, %v14787_v34  ;;  %v14789_v7 = vld [vmem:[#allocation160_spill] sm:$0xff]  ;;  %v14790_v22 = vld [vmem:[#allocation138_spill] sm:$0xff]  ;;  %v2655_v46 = vadd.f32 %v11079_v24, %v2523_v61  ;;  %v3365_v45 = vadd.f32 %v11001_v52, %v3171_v17  ;;  %v14791_v21 = vld [vmem:[#allocation113_spill] sm:$0xff] }
 0x3fe   : > { %v3358_v6 = vadd.f32 %v14788_v59, %v3164_v26  ;;  %v2520_v39 = vadd.f32 %v14789_v7, %v2326_v28  ;;  %v2650_v50 = vadd.f32 %v14790_v22, %v2518_v36  ;;  %v3173_v60 = vadd.f32 %v11143_v10, %v3041_v49  ;;  %v2456_v23 = vpop.permute.xlu0 %2455  ;;  %v14792_v26 = vld [vmem:[#allocation142_spill] sm:$0xff]  ;;  %v14795_v24 = vld [vmem:[#allocation180_spill] sm:$0xff] }
 0x3ff   : > { %3445 = vrot.lane.b32.xlu0 %v3363_v41, %s9628_s10  ;;  %v2328_v47 = vadd.f32 %v11017_v62, %v2104_v19  ;;  %v3166_v51 = vadd.f32 %v14791_v21, %v3034_v27  ;;  %v3036_v5 = vadd.f32 %v14792_v26, %v2842_v29  ;;  %v14793_v41 = vld [vmem:[#allocation173_spill] sm:$0xff]  ;;  %v14794_v62 = vld [vmem:[#allocation147_spill] sm:$0xff]  ;;  %v14796_v61 = vld [vmem:[#allocation158_spill] sm:$0xff]  ;;  %v2849_v10 = vadd.f32 %v11105_v1, %v2655_v46 }
 0x400   : > { %v2844_v33 = vadd.f32 %v14793_v41, %v2650_v50  ;;  %3435 = vrot.lane.b32.xlu1 %v3358_v6, %s9628_s10  ;;  %v2652_v43 = vadd.f32 %v14796_v61, %v2520_v39  ;;  %v3104_v52 = vpop.permute.xlu1 %3103  ;;  %v3367_v17 = vadd.f32 %v11166_v48, %v3173_v60  ;;  %v14797_v27 = vld [vmem:[#allocation132_spill] sm:$0xff]  ;;  %v14798_v42 = vld [vmem:[#allocation162_spill] sm:$0xff]  ;;  %v14799_v6 = vld [vmem:[#allocation167_spill] sm:$0xff] }
 0x401   : > { %v3360_v36 = vadd.f32 %v14794_v62, %v3166_v51  ;;  %v2522_v28 = vadd.f32 %v14795_v24, %v2328_v47  ;;  %v3168_v29 = vadd.f32 %v14797_v27, %v3036_v5  ;;  %v14800_v39 = vld [vmem:[#allocation178_spill] sm:$0xff]  ;;  %v14801_v48 = vld [vmem:[#allocation152_spill] sm:$0xff]  ;;  %v14804_v61 = vld [vmem:[#allocation175_spill] sm:$0xff] }
 0x402   : > { %v2972_v49 = vpop.permute.xlu0 %2971  ;;  %v3038_v34 = vadd.f32 %v14798_v42, %v2844_v33  ;;  %v2846_v19 = vadd.f32 %v11033_v38, %v2652_v43  ;;  %v14803_v41 = vld [vmem:[#allocation172_spill] sm:$0xff]  ;;  %v14806_v27 = vld [vmem:[#allocation151_spill] sm:$0xff] }
 0x403   : > { %3449 = vrot.lane.b32.xlu0 %v3365_v45, %s9628_s10  ;;  %v3043_v59 = vadd.f32 %v2972_v49, %v2849_v10  ;;  %v3362_v7 = vadd.f32 %v14799_v6, %v3168_v29  ;;  %v2654_v22 = vadd.f32 %v14800_v39, %v2522_v28  ;;  %v14802_v45 = vld [vmem:[#allocation182_spill] sm:$0xff]  ;;  %v14805_v49 = vld [vmem:[#allocation129_spill] sm:$0xff] }
 0x404   : > { %3439 = vrot.lane.b32.xlu1 %v3360_v36, %s9628_s10  ;;  %v3298_v50 = vpop.permute.xlu1 %3297  ;;  %v3170_v46 = vadd.f32 %v14801_v48, %v3038_v34  ;;  %v3040_v60 = vadd.f32 %v14802_v45, %v2846_v19 }
 0x405   : > { %v3175_v1 = vadd.f32 %v3104_v52, %v3043_v59  ;;  %v2848_v21 = vadd.f32 %v11210_v12, %v2654_v22 }
 0x406   : > { %v3296_v47 = vpop.permute.xlu0 %3295  ;;  %v3364_v38 = vadd.f32 %v11007_v32, %v3170_v46  ;;  %v3172_v33 = vadd.f32 %v14803_v41, %v3040_v60  ;;  %v9585_v32 = vld [vmem:[#allocation2 + $0xcf] sm:$0xff] }
 0x407   : > { %3453 = vrot.lane.b32.xlu0 %v3367_v17, %s9628_s10  ;;  %v3369_v51 = vadd.f32 %v3298_v50, %v3175_v1  ;;  %v3042_v62 = vadd.f32 %v11120_v37, %v2848_v21  ;;  %v2106_v43 = vadd.f32 %v9585_v32, %v14804_v61  ;;  %v1883_v37 = vmul.f32 %v14806_v27, %v14805_v49  ;;  %v14808_v32 = vld [vmem:[#allocation169_spill] sm:$0xff] }
 0x408   : > { %3443 = vrot.lane.b32.xlu1 %v3362_v7, %s9628_s10  ;;  %v11315_v26 = vpop.permute.xlu1 %2263  ;;  %v3366_v36 = vadd.f32 %v11172_v3, %v3172_v33  ;;  %v1887_v61 = vmul.f32 %v11004_v30, %v14808_v32 }
 0x409   : > { %v3174_v28 = vadd.f32 %v11020_v31, %v3042_v62  ;;  %v2330_v29 = vadd.f32 %v11189_v16, %v2106_v43  ;;  %v2107_v3 = vadd.f32 %v11038_v57, %v1883_v37 }
 0x40a   : > { %v11318_v5 = vpop.permute.xlu0 %3109 }
 0x40b   : > { %3457 = vrot.lane.b32.xlu0 %v3369_v51, %s9628_s10  ;;  %v3368_v52 = vadd.f32 %v3296_v47, %v3174_v28  ;;  %v2331_v34 = vadd.f32 %v11056_v25, %v2107_v3  ;;  %v2524_v19 = vadd.f32 %v11098_v14, %v2330_v29  ;;  %v9586_v29 = vld [vmem:[#allocation2 + $0xdf] sm:$0xff] }
 0x40c   : > { %3447 = vrot.lane.b32.xlu1 %v3364_v38, %s9628_s10  ;;  %v2780_v12 = vpop.permute.xlu1 %2779  ;;  %v2108_v3 = vadd.f32 %v9586_v29, %v11050_v58  ;;  %v14813_v29 = vld [vmem:[#allocation10_spill] sm:$0xff] }
 0x40d   : > { %v2525_v59 = vadd.f32 %v2456_v23, %v2331_v34  ;;  %v2656_v39 = vadd.f32 %v11071_v4, %v2524_v19 }
 0x40e   : > { %v2046_v24 = vpop.permute.xlu0 %2045 }
 0x40f   : > { %v2657_v22 = vadd.f32 %v11258_v56, %v2525_v59  ;;  %v2850_v50 = vadd.f32 %v2780_v12, %v2656_v39  ;;  %v2111_v37 = vadd.f32 %v2046_v24, %v1887_v61  ;;  %v2332_v39 = vadd.f32 %v11315_v26, %v2108_v3 }
 0x410   : > { %3451 = vrot.lane.b32.xlu1 %v3366_v36, %s9628_s10  ;;  %v11327_v10 = vpop.permute.xlu1 %2047 }
 0x411   : > { %v3044_v57 = vadd.f32 %v11289_v20, %v2850_v50  ;;  %v2851_v48 = vadd.f32 %v11277_v54, %v2657_v22  ;;  %v14807_v54 = vld [vmem:[#allocation149_spill] sm:$0xff] }
 0x412   : > { %v2270_v17 = vpop.permute.xlu0 %2269  ;;  %v1885_v62 = vmul.f32 %v10941_v8, %v14807_v54 }
 0x413   : > { %v3176_v23 = vadd.f32 %v11195_v53, %v3044_v57  ;;  %v2335_v34 = vadd.f32 %v2270_v17, %v2111_v37 }
 0x414   : > { %3455 = vrot.lane.b32.xlu1 %v3368_v52, %s9628_s10  ;;  %v11334_v42 = vpop.permute.xlu1 %2593  ;;  %v2109_v36 = vadd.f32 %v11216_v40, %v1885_v62 }
 0x416   : > { %v2592_v31 = vpop.permute.xlu0 %2591  ;;  %v2333_v28 = vadd.f32 %v11237_v2, %v2109_v36 }
 0x418   : > { %v2462_v6 = vpop.permute.xlu1 %2461 }
 0x41a   : > { %v2786_v7 = vpop.permute.xlu0 %2785 }
 0x41c   : > { %v11340_v16 = vpop.permute.xlu1 %2977 }
 0x41e   : > { %v2460_v1 = vpop.permute.xlu0 %2459 }
 0x41f   : > { %v2527_v43 = vadd.f32 %v2460_v1, %v2333_v28  ;;  %v2526_v1 = vadd.f32 %v11271_v9, %v2332_v39 }
 0x420   : > { %v3108_v47 = vpop.permute.xlu1 %3107 }
 0x421   : > { %v2659_v19 = vadd.f32 %v2592_v31, %v2527_v43  ;;  %v14812_v43 = vld [vmem:[#allocation8_spill] sm:$0xff] }
 0x422   : > { %v2976_v46 = vpop.permute.xlu0 %2975 }
 0x423   : > { %v3045_v25 = vadd.f32 %v2976_v46, %v2851_v48  ;;  %v2853_v2 = vadd.f32 %v2786_v7, %v2659_v19 }
 0x424   : > { %v3302_v45 = vpop.permute.xlu1 %3301 }
 0x425   : > { %v3177_v14 = vadd.f32 %v3108_v47, %v3045_v25  ;;  %v14809_v47 = vld [vmem:[#allocation148_spill] sm:$0xff] }
 0x426   : > { %v3300_v60 = vpop.permute.xlu0 %3299  ;;  %v2110_v48 = vadd.f32 %v11231_v35, %v14809_v47 }
 0x427   : > { %v3371_v21 = vadd.f32 %v3302_v45, %v3177_v14  ;;  %v3370_v4 = vadd.f32 %v3300_v60, %v3176_v23  ;;  %v2658_v14 = vadd.f32 %v11252_v0, %v2526_v1  ;;  %v14810_v60 = vld [vmem:[#allocation11_spill] sm:$0xff]  ;;  %v11405_v1 = vld [vmem:[%s14353_s2 + $0x1] ss:$0 sm:$0xff] }
 0x428   : > { %v2268_v51 = vpop.permute.xlu1 %2267 }
 0x429   : > { %3461 = vrot.lane.b32.xlu0 %v3371_v21, %s9628_s10  ;;  %3459 = vrot.lane.b32.xlu1 %v3370_v4, %s9628_s10  ;;  %v2334_v45 = vadd.f32 %v2268_v51, %v2110_v48  ;;  %v14811_v4 = vld [vmem:[#allocation168_spill] sm:$0xff] }
 0x42a   : > { %v2596_v56 = vpop.permute.xlu0 %2595  ;;  %v2112_v7 = vadd.f32 %v11327_v10, %v14811_v4 }
 0x42c   : > { %v2784_v38 = vpop.permute.xlu1 %2783 }
 0x42d   : > { %v2852_v35 = vadd.f32 %v2784_v38, %v2658_v14 }
 0x42e   : > { %v2790_v20 = vpop.permute.xlu0 %2789 }
 0x42f   : > { %v3046_v62 = vadd.f32 %v11340_v16, %v2852_v35 }
 0x430   : > { %v2598_v41 = vpop.permute.xlu1 %2597 }
 0x431   : > { %v3178_v61 = vadd.f32 %v11318_v5, %v3046_v62 }
 0x432   : > { %v2982_v33 = vpop.permute.xlu0 %2981 }
 0x434   : > { %v3114_v12 = vpop.permute.xlu1 %3113 }
 0x436   : > { %v3112_v53 = vpop.permute.xlu0 %3111 }
 0x438   : > { %v2466_v52 = vpop.permute.xlu1 %2465 }
 0x43a   : > { %v2984_v49 = vpop.permute.xlu0 %2983 }
 0x43c   : > { %v3306_v59 = vpop.permute.xlu1 %3305 }
 0x43e   : > { %v2464_v40 = vpop.permute.xlu0 %2463 }
 0x43f   : > { %v2529_v22 = vadd.f32 %v2464_v40, %v2335_v34 }
 0x440   : > { %v2792_v57 = vpop.permute.xlu1 %2791 }
 0x441   : > { %v2661_v50 = vadd.f32 %v2596_v56, %v2529_v22  ;;  %v2528_v56 = vadd.f32 %v2462_v6, %v2334_v45 }
 0x442   : > { %v2980_v46 = vpop.permute.xlu0 %2979 }
 0x443   : > { %v2855_v24 = vadd.f32 %v2790_v20, %v2661_v50  ;;  %v3047_v25 = vadd.f32 %v2980_v46, %v2853_v2  ;;  %v2660_v0 = vadd.f32 %v11334_v42, %v2528_v56  ;;  %v8895_v50 = vld [vmem:[%s14356_s5 + $0x10] sm:$0xff] }
 0x444   : > { %v3308_v17 = vpop.permute.xlu1 %3307 }
 0x445   : > { %v3179_v58 = vadd.f32 %v3112_v53, %v3047_v25  ;;  %v3049_v31 = vadd.f32 %v2984_v49, %v2855_v24 }
 0x446   : > { %v3310_v26 = vpop.permute.xlu0 %3309 }
 0x447   : > { %v3373_v23 = vadd.f32 %v3306_v59, %v3179_v58  ;;  %v3181_v21 = vadd.f32 %v14810_v60, %v3049_v31  ;;  %v11387_v59 = vld [vmem:[%s14352_s1 + $0x1] ss:$0 sm:$0xff] }
 0x448   : > { %v2272_v9 = vpop.permute.xlu1 %2271 }
 0x449   : > { %3465 = vrot.lane.b32.xlu0 %v3373_v23, %s9628_s10  ;;  %v2336_v20 = vadd.f32 %v2272_v9, %v2112_v7  ;;  %v3375_v54 = vadd.f32 %v3310_v26, %v3181_v21 }
 0x44a   : > { %v3312_v51 = vpop.permute.xlu0 %3311 }
 0x44b   : > { %v2530_v36 = vadd.f32 %v2466_v52, %v2336_v20 }
 0x44c   : > { %v2788_v53 = vpop.permute.xlu1 %2787 }
 0x44d   : > { %3469 = vrot.lane.b32.xlu0 %v3375_v54, %s9628_s10  ;;  %v2662_v10 = vadd.f32 %v2598_v41, %v2530_v36  ;;  %v2854_v6 = vadd.f32 %v2788_v53, %v2660_v0 }
 0x44e   : > { %v3414_v38 = vpop.permute.xlu0 %3413 }
 0x44f   : > { %3508 = vst.msk [vmem:[%s9688_s9 + $0x10] sm:$0xff] %vm3505_vm7, %v3414_v38  ;;  %v2856_v28 = vadd.f32 %v2792_v57, %v2662_v10  ;;  %v3048_v32 = vadd.f32 %v2982_v33, %v2854_v6  ;;  %v8896_v57 = vld [vmem:[%s14356_s5 + $0x18] sm:$0xff] }
 0x450   : > { %v3304_v16 = vpop.permute.xlu1 %3303  ;;  %v9535_v48 = vpack.c.bf16 %v8896_v57, %v8895_v50 }
 0x451   : > { %v3050_v42 = vadd.f32 %v14812_v43, %v2856_v28  ;;  %v3180_v52 = vadd.f32 %v3114_v12, %v3048_v32  ;;  %v3372_v49 = vadd.f32 %v3304_v16, %v3178_v61 }
 0x452   : > { %v3418_v37 = vpop.permute.xlu0 %3417  ;;  %9536 = vmatprep.subr.bf16.mxu1 %v9535_v48 }
 0x453   : > { %3510 = vst.msk [vmem:[%s9688_s9 + $0x20] sm:$0xff] %vm3505_vm7, %v3418_v37  ;;  %3463 = vrot.lane.b32.xlu1 %v3372_v49, %s9628_s10  ;;  %v3182_v3 = vadd.f32 %v14813_v29, %v3050_v42  ;;  %v3374_v33 = vadd.f32 %v3308_v17, %v3180_v52  ;;  %9538 = vmatpush3.bf16.msra.mxu1 %v9535_v48 }
 0x454   : > { %v3410_v41 = vpop.permute.xlu1 %3409 }
 0x455   : > { %3506 = vst.msk [vmem:[%s9688_s9] sm:$0xff] %vm3505_vm7, %v3410_v41  ;;  %v3376_v34 = vadd.f32 %v3312_v51, %v3182_v3 }
 0x456   : > { %v3422_v5 = vpop.permute.xlu0 %3421  ;;  %v3540_v39 = vld [vmem:[%s9688_s9 + $0x10] sm:$0xff] }
 0x457   : > { %3512 = vst.msk [vmem:[%s9688_s9 + $0x30] sm:$0xff] %vm3505_vm7, %v3422_v5  ;;  %3467 = vrot.lane.b32.xlu1 %v3374_v33, %s9628_s10  ;;  %v3580_v46 = vmul.f32 %v11387_v59, %v3540_v39 }
 0x458   : > { %v3412_v12 = vpop.permute.xlu1 %3411 }
 0x459   : > { %3507 = vst.msk [vmem:[%s9688_s9 + $0x8] sm:$0xff] %vm3505_vm7, %v3412_v12  ;;  %v3620_v26 = vadd.f32 %v11405_v1, %v3580_v46 }
 0x45a   : > { %v3426_v19 = vpop.permute.xlu0 %3425  ;;  %v3542_v25 = vld [vmem:[%s9688_s9 + $0x20] sm:$0xff] }
 0x45b   : > { %3514 = vst.msk [vmem:[%s9688_s9 + $0x40] sm:$0xff] %vm3505_vm7, %v3426_v19  ;;  %3471 = vrot.lane.b32.xlu1 %v3376_v34, %s9628_s10  ;;  %v3582_v23 = vmul.f32 %v11387_v59, %v3542_v25  ;;  %v3652_v20 = vmax.f32 %v3620_v26, 0.0 }
 0x45c   : > { %v3416_v40 = vpop.permute.xlu1 %3415  ;;  %v3538_v22 = vld [vmem:[%s9688_s9] sm:$0xff] }
 0x45d   : > { %3509 = vst.msk [vmem:[%s9688_s9 + $0x18] sm:$0xff] %vm3505_vm7, %v3416_v40  ;;  %v3578_v47 = vmul.f32 %v11387_v59, %v3538_v22  ;;  %v3622_v51 = vadd.f32 %v11405_v1, %v3582_v23 }
 0x45e   : > { %v3430_v2 = vpop.permute.xlu0 %3429  ;;  %v3544_v21 = vld [vmem:[%s9688_s9 + $0x30] sm:$0xff] }
 0x45f   : > { %3516 = vst.msk [vmem:[%s9688_s9 + $0x50] sm:$0xff] %vm3505_vm7, %v3430_v2  ;;  %v3618_v24 = vadd.f32 %v11405_v1, %v3578_v47  ;;  %v3584_v54 = vmul.f32 %v11387_v59, %v3544_v21  ;;  %v3654_v28 = vmax.f32 %v3622_v51, 0.0 }
 0x460   : > { %v3420_v45 = vpop.permute.xlu1 %3419  ;;  %v3539_v58 = vld [vmem:[%s9688_s9 + $0x8] sm:$0xff] }
 0x461   : > { %3511 = vst.msk [vmem:[%s9688_s9 + $0x28] sm:$0xff] %vm3505_vm7, %v3420_v45  ;;  %v3650_v31 = vmax.f32 %v3618_v24, 0.0  ;;  %v3579_v14 = vmul.f32 %v11387_v59, %v3539_v58  ;;  %v3624_v32 = vadd.f32 %v11405_v1, %v3584_v54 }
 0x462   : > { %v3434_v17 = vpop.permute.xlu0 %3433  ;;  %v3546_v36 = vld [vmem:[%s9688_s9 + $0x40] sm:$0xff] }
 0x463   : > { %3518 = vst.msk [vmem:[%s9688_s9 + $0x60] sm:$0xff] %vm3505_vm7, %v3434_v17  ;;  %9319 = vmatprep.mubr.msk.f32.mxu0 %vm252_vm0, %v3650_v31  ;;  %v3619_v60 = vadd.f32 %v11405_v1, %v3579_v14  ;;  %v3586_v61 = vmul.f32 %v11387_v59, %v3546_v36  ;;  %v3656_v29 = vmax.f32 %v3624_v32, 0.0 }
 0x464   : > { %v3424_v4 = vpop.permute.xlu1 %3423  ;;  %v3541_v7 = vld [vmem:[%s9688_s9 + $0x18] sm:$0xff] }
 0x465   : > { %3513 = vst.msk [vmem:[%s9688_s9 + $0x38] sm:$0xff] %vm3505_vm7, %v3424_v4  ;;  %v3651_v35 = vmax.f32 %v3619_v60, 0.0  ;;  %v3581_v9 = vmul.f32 %v11387_v59, %v3541_v7  ;;  %v3626_v3 = vadd.f32 %v11405_v1, %v3586_v61 }
 0x466   : > { %v3438_v56 = vpop.permute.xlu0 %3437  ;;  %v3548_v43 = vld [vmem:[%s9688_s9 + $0x50] sm:$0xff] }
 0x467   : > { %3520 = vst.msk [vmem:[%s9688_s9 + $0x70] sm:$0xff] %vm3505_vm7, %v3438_v56  ;;  %9320 = vmatmul.mubr.msk.f32.vlgmr.msra.gmra.mrb[32].mxu0 %vm252_vm0, %v3651_v35  ;;  %v3621_v62 = vadd.f32 %v11405_v1, %v3581_v9  ;;  %v3588_v5 = vmul.f32 %v11387_v59, %v3548_v43  ;;  %v3658_v50 = vmax.f32 %v3626_v3, 0.0 }
 0x468   : > { %9322 = vmatprep.mubr.msk.f32.mxu0 %vm252_vm0, %v3652_v20  ;;  %v3428_v0 = vpop.permute.xlu1 %3427  ;;  %v3543_v53 = vld [vmem:[%s9688_s9 + $0x28] sm:$0xff] }
 0x469   : > { %3515 = vst.msk [vmem:[%s9688_s9 + $0x48] sm:$0xff] %vm3505_vm7, %v3428_v0  ;;  %v3653_v6 = vmax.f32 %v3621_v62, 0.0  ;;  %v3583_v38 = vmul.f32 %v11387_v59, %v3543_v53  ;;  %v3628_v57 = vadd.f32 %v11405_v1, %v3588_v5 }
 0x46a   : > { %v3550_v12 = vld [vmem:[%s9688_s9 + $0x60] sm:$0xff] }
 0x46b   : > { %9323 = vmatmul.mubr.msk.f32.gmra.mrb[34].mxu0 %vm252_vm0, %v3653_v6  ;;  %v3623_v16 = vadd.f32 %v11405_v1, %v3583_v38  ;;  %v3590_v2 = vmul.f32 %v11387_v59, %v3550_v12  ;;  %v3660_v17 = vmax.f32 %v3628_v57, 0.0 }
 0x46c   : > { %v3442_v10 = vpop.permute.xlu0 %3441  ;;  %9325 = vmatprep.mubr.msk.f32.mxu0 %vm252_vm0, %v3654_v28  ;;  %v3545_v52 = vld [vmem:[%s9688_s9 + $0x38] sm:$0xff] }
 0x46d   : > { %3522 = vst.msk [vmem:[%s9688_s9 + $0x80] sm:$0xff] %vm3505_vm7, %v3442_v10  ;;  %v3432_v42 = vpop.permute.xlu1 %3431  ;;  %v3655_v37 = vmax.f32 %v3623_v16, 0.0  ;;  %v3585_v41 = vmul.f32 %v11387_v59, %v3545_v52  ;;  %v3630_v31 = vadd.f32 %v11405_v1, %v3590_v2 }
 0x46e   : > { %3517 = vst.msk [vmem:[%s9688_s9 + $0x58] sm:$0xff] %vm3505_vm7, %v3432_v42  ;;  %v3552_v48 = vld [vmem:[%s9688_s9 + $0x70] sm:$0xff] }
 0x46f   : > { %9326 = vmatmul.mubr.msk.f32.gmra.mrb[36].mxu0 %vm252_vm0, %v3655_v37  ;;  %v3625_v33 = vadd.f32 %v11405_v1, %v3585_v41  ;;  %v3592_v14 = vmul.f32 %v11387_v59, %v3552_v48  ;;  %v3662_v35 = vmax.f32 %v3630_v31, 0.0 }
 0x470   : > { %9328 = vmatprep.mubr.msk.f32.mxu0 %vm252_vm0, %v3656_v29  ;;  %v3547_v19 = vld [vmem:[%s9688_s9 + $0x48] sm:$0xff] }
 0x471   : > { %v3446_v49 = vpop.permute.xlu0 %3445  ;;  %v3657_v40 = vmax.f32 %v3625_v33, 0.0  ;;  %v3587_v22 = vmul.f32 %v11387_v59, %v3547_v19  ;;  %v3632_v9 = vadd.f32 %v11405_v1, %v3592_v14 }
 0x472   : > { %3524 = vst.msk [vmem:[%s9688_s9 + $0x90] sm:$0xff] %vm3505_vm7, %v3446_v49  ;;  %v3436_v34 = vpop.permute.xlu1 %3435 }
 0x473   : > { %3519 = vst.msk [vmem:[%s9688_s9 + $0x68] sm:$0xff] %vm3505_vm7, %v3436_v34  ;;  %9329 = vmatmul.mubr.msk.f32.gmra.mrb[38].mxu0 %vm252_vm0, %v3657_v40  ;;  %v3627_v47 = vadd.f32 %v11405_v1, %v3587_v22  ;;  %v3664_v10 = vmax.f32 %v3632_v9, 0.0 }
 0x474   : > { %9331 = vmatprep.mubr.msk.f32.mxu0 %vm252_vm0, %v3658_v50  ;;  %v3554_v23 = vld [vmem:[%s9688_s9 + $0x80] sm:$0xff] }
 0x475   : > { %v3450_v39 = vpop.permute.xlu0 %3449  ;;  %v3549_v24 = vld [vmem:[%s9688_s9 + $0x58] sm:$0xff]  ;;  %v3659_v45 = vmax.f32 %v3627_v47, 0.0  ;;  %v3594_v20 = vmul.f32 %v11387_v59, %v3554_v23 }
 0x476   : > { %3526 = vst.msk [vmem:[%s9688_s9 + $0xa0] sm:$0xff] %vm3505_vm7, %v3450_v39  ;;  %v3440_v46 = vpop.permute.xlu1 %3439  ;;  %v3589_v58 = vmul.f32 %v11387_v59, %v3549_v24 }
 0x477   : > { %3521 = vst.msk [vmem:[%s9688_s9 + $0x78] sm:$0xff] %vm3505_vm7, %v3440_v46  ;;  %9332 = vmatmul.mubr.msk.f32.gmra.mrb[40].mxu0 %vm252_vm0, %v3659_v45  ;;  %v3634_v6 = vadd.f32 %v11405_v1, %v3594_v20 }
 0x478   : > { %v3629_v26 = vadd.f32 %v11405_v1, %v3589_v58  ;;  %9334 = vmatprep.mubr.msk.f32.mxu0 %vm252_vm0, %v3660_v17 }
 0x479   : > { %v3454_v25 = vpop.permute.xlu0 %3453  ;;  %v3556_v54 = vld [vmem:[%s9688_s9 + $0x90] sm:$0xff]  ;;  %v3666_v52 = vmax.f32 %v3634_v6, 0.0 }
 0x47a   : > { %3528 = vst.msk [vmem:[%s9688_s9 + $0xb0] sm:$0xff] %vm3505_vm7, %v3454_v25  ;;  %v3444_v60 = vpop.permute.xlu1 %3443  ;;  %v3551_v21 = vld [vmem:[%s9688_s9 + $0x68] sm:$0xff]  ;;  %v3661_v4 = vmax.f32 %v3629_v26, 0.0  ;;  %v3596_v38 = vmul.f32 %v11387_v59, %v3556_v54 }
 0x47b   : > { %3523 = vst.msk [vmem:[%s9688_s9 + $0x88] sm:$0xff] %vm3505_vm7, %v3444_v60  ;;  %v3591_v7 = vmul.f32 %v11387_v59, %v3551_v21 }
 0x47c   : > { %9335 = vmatmul.mubr.msk.f32.gmra.mrb[42].mxu0 %vm252_vm0, %v3661_v4  ;;  %v3636_v49 = vadd.f32 %v11405_v1, %v3596_v38 }
 0x47d   : > { %v3458_v56 = vpop.permute.xlu0 %3457  ;;  %v3631_v51 = vadd.f32 %v11405_v1, %v3591_v7  ;;  %9337 = vmatprep.mubr.msk.f32.mxu0 %vm252_vm0, %v3662_v35  ;;  %v3558_v32 = vld [vmem:[%s9688_s9 + $0xa0] sm:$0xff] }
 0x47e   : > { %3530 = vst.msk [vmem:[%s9688_s9 + $0xc0] sm:$0xff] %vm3505_vm7, %v3458_v56  ;;  %v3448_v62 = vpop.permute.xlu1 %3447  ;;  %v3553_v36 = vld [vmem:[%s9688_s9 + $0x78] sm:$0xff]  ;;  %v3598_v37 = vmul.f32 %v11387_v59, %v3558_v32  ;;  %v3668_v34 = vmax.f32 %v3636_v49, 0.0 }
 0x47f   : > { %3525 = vst.msk [vmem:[%s9688_s9 + $0x98] sm:$0xff] %vm3505_vm7, %v3448_v62  ;;  %v3663_v0 = vmax.f32 %v3631_v51, 0.0  ;;  %v3593_v53 = vmul.f32 %v11387_v59, %v3553_v36 }
 0x480   : > { %v3638_v19 = vadd.f32 %v11405_v1, %v3598_v37 }
 0x481   : > { %9338 = vmatmul.mubr.msk.f32.gmra.mrb[44].mxu0 %vm252_vm0, %v3663_v0  ;;  %v3633_v28 = vadd.f32 %v11405_v1, %v3593_v53  ;;  %v3560_v29 = vld [vmem:[%s9688_s9 + $0xb0] sm:$0xff] }
 0x482   : > { %9340 = vmatprep.mubr.msk.f32.mxu0 %vm252_vm0, %v3664_v10  ;;  %v3452_v61 = vpop.permute.xlu1 %3451  ;;  %v3555_v16 = vld [vmem:[%s9688_s9 + $0x88] sm:$0xff]  ;;  %v3600_v39 = vmul.f32 %v11387_v59, %v3560_v29  ;;  %v3670_v47 = vmax.f32 %v3638_v19, 0.0 }
 0x483   : > { %3527 = vst.msk [vmem:[%s9688_s9 + $0xa8] sm:$0xff] %vm3505_vm7, %v3452_v61  ;;  %v3665_v43 = vmax.f32 %v3633_v28, 0.0  ;;  %v3595_v42 = vmul.f32 %v11387_v59, %v3555_v16 }
 0x484   : > { %v3640_v48 = vadd.f32 %v11405_v1, %v3600_v39 }
 0x485   : > { %9341 = vmatmul.mubr.msk.f32.gmra.mrb[46].mxu0 %vm252_vm0, %v3665_v43  ;;  %v3635_v41 = vadd.f32 %v11405_v1, %v3595_v42  ;;  %v3562_v22 = vld [vmem:[%s9688_s9 + $0xc0] sm:$0xff] }
 0x486   : > { %9343 = vmatprep.mubr.msk.f32.mxu0 %vm252_vm0, %v3666_v52  ;;  %v3456_v3 = vpop.permute.xlu1 %3455  ;;  %v3557_v5 = vld [vmem:[%s9688_s9 + $0x98] sm:$0xff]  ;;  %v3602_v46 = vmul.f32 %v11387_v59, %v3562_v22  ;;  %v3672_v17 = vmax.f32 %v3640_v48, 0.0  ;;  %v4498_v22 = vld [vmem:[#allocation2 + $0x8] sm:$0xff] }
 0x487   : > { %3529 = vst.msk [vmem:[%s9688_s9 + $0xb8] sm:$0xff] %vm3505_vm7, %v3456_v3  ;;  %v3667_v33 = vmax.f32 %v3635_v41, 0.0  ;;  %v3597_v12 = vmul.f32 %v11387_v59, %v3557_v5  ;;  %4562 = vrot.lane.b32.xlu0 %v4498_v22, %s9620_s18 }
 0x488   : > { %v3642_v31 = vadd.f32 %v11405_v1, %v3602_v46 }
 0x489   : > { %9344 = vmatmul.mubr.msk.f32.gmra.mrb[48].mxu0 %vm252_vm0, %v3667_v33  ;;  %v3637_v40 = vadd.f32 %v11405_v1, %v3597_v12 }
 0x48a   : > { %9346 = vmatprep.mubr.msk.f32.mxu0 %vm252_vm0, %v3668_v34  ;;  %v3559_v50 = vld [vmem:[%s9688_s9 + $0xa8] sm:$0xff]  ;;  %v3674_v23 = vmax.f32 %v3642_v31, 0.0 }
 0x48b   : > { %v3669_v57 = vmax.f32 %v3637_v40, 0.0  ;;  %v3599_v2 = vmul.f32 %v11387_v59, %v3559_v50  ;;  %v4499_v40 = vld [vmem:[#allocation2 + $0x10] sm:$0xff] }
 0x48c   : > { %4564 = vrot.lane.b32.xlu1 %v4499_v40, %s9620_s18 }
 0x48d   : > { %9347 = vmatmul.mubr.msk.f32.gmra.mrb[50].mxu0 %vm252_vm0, %v3669_v57  ;;  %v3639_v24 = vadd.f32 %v11405_v1, %v3599_v2 }
 0x48e   : > { %9349 = vmatprep.mubr.msk.f32.mxu0 %vm252_vm0, %v3670_v47  ;;  %v3561_v25 = vld [vmem:[%s9688_s9 + $0xb8] sm:$0xff] }
 0x48f   : > { %v3671_v45 = vmax.f32 %v3639_v24, 0.0  ;;  %v3601_v58 = vmul.f32 %v11387_v59, %v3561_v25 }
 0x491   : > { %9350 = vmatmul.mubr.msk.f32.gmra.mrb[52].mxu0 %vm252_vm0, %v3671_v45  ;;  %v3641_v14 = vadd.f32 %v11405_v1, %v3601_v58 }
 0x492   : > { %9352 = vmatprep.mubr.msk.f32.mxu0 %vm252_vm0, %v3672_v17 }
 0x493   : > { %v3673_v26 = vmax.f32 %v3641_v14, 0.0 }
 0x495   : > { %9353 = vmatmul.mubr.msk.f32.gmra.mrb[54].mxu0 %vm252_vm0, %v3673_v26 }
 0x496   : > { %9355 = vmatprep.mubr.msk.f32.mxu0 %vm252_vm0, %v3674_v23 }
 0x49b   : > { %v3462_v60 = vpop.permute.xlu0 %3461  ;;  %v3460_v21 = vpop.permute.xlu1 %3459 }
 0x49c   : > { %3532 = vst.msk [vmem:[%s9688_s9 + $0xd0] sm:$0xff] %vm3505_vm7, %v3462_v60  ;;  %3531 = vst.msk [vmem:[%s9688_s9 + $0xc8] sm:$0xff] %vm3505_vm7, %v3460_v21 }
 0x4a3   : > { %v3563_v4 = vld [vmem:[%s9688_s9 + $0xc8] sm:$0xff]  ;;  %v3564_v7 = vld [vmem:[%s9688_s9 + $0xd0] sm:$0xff] }
 0x4a4   : > { %v3603_v56 = vmul.f32 %v11387_v59, %v3563_v4  ;;  %v3604_v35 = vmul.f32 %v11387_v59, %v3564_v7 }
 0x4a6   : > { %v3643_v9 = vadd.f32 %v11405_v1, %v3603_v56  ;;  %v3644_v20 = vadd.f32 %v11405_v1, %v3604_v35 }
 0x4a8   : > { %v3675_v51 = vmax.f32 %v3643_v9, 0.0  ;;  %v3676_v54 = vmax.f32 %v3644_v20, 0.0 }
 0x4aa   : > { %9356 = vmatmul.mubr.msk.f32.gmra.mrb[56].mxu0 %vm252_vm0, %v3675_v51 }
 0x4ab   : > { %9358 = vmatprep.mubr.msk.f32.mxu0 %vm252_vm0, %v3676_v54 }
 0x4bb   : > { %v3466_v62 = vpop.permute.xlu0 %3465 }
 0x4bc   : > { %3534 = vst.msk [vmem:[%s9688_s9 + $0xe0] sm:$0xff] %vm3505_vm7, %v3466_v62 }
 0x4bf   : > { %v3470_v36 = vpop.permute.xlu0 %3469 }
 0x4c0   : > { %3536 = vst.msk [vmem:[%s9688_s9 + $0xf0] sm:$0xff] %vm3505_vm7, %v3470_v36 }
 0x4c3   : > { %v3566_v53 = vld [vmem:[%s9688_s9 + $0xe0] sm:$0xff] }
 0x4c4   : > { %v3606_v6 = vmul.f32 %v11387_v59, %v3566_v53 }
 0x4c5   : > { %v3464_v0 = vpop.permute.xlu1 %3463 }
 0x4c6   : > { %3533 = vst.msk [vmem:[%s9688_s9 + $0xd8] sm:$0xff] %vm3505_vm7, %v3464_v0  ;;  %v3646_v16 = vadd.f32 %v11405_v1, %v3606_v6 }
 0x4c7   : > { %v3568_v38 = vld [vmem:[%s9688_s9 + $0xf0] sm:$0xff] }
 0x4c8   : > { %v3608_v43 = vmul.f32 %v11387_v59, %v3568_v38  ;;  %v3678_v41 = vmax.f32 %v3646_v16, 0.0 }
 0x4c9   : > { %v3468_v10 = vpop.permute.xlu1 %3467 }
 0x4ca   : > { %3535 = vst.msk [vmem:[%s9688_s9 + $0xe8] sm:$0xff] %vm3505_vm7, %v3468_v10  ;;  %v3648_v29 = vadd.f32 %v11405_v1, %v3608_v43 }
 0x4cc   : > { %v3680_v34 = vmax.f32 %v3648_v29, 0.0 }
 0x4cd   : > { %v3472_v28 = vpop.permute.xlu1 %3471  ;;  %v3565_v32 = vld [vmem:[%s9688_s9 + $0xd8] sm:$0xff] }
 0x4ce   : > { %3537 = vst.msk [vmem:[%s9688_s9 + $0xf8] sm:$0xff] %vm3505_vm7, %v3472_v28  ;;  %v3605_v61 = vmul.f32 %v11387_v59, %v3565_v32 }
 0x4d0   : > { %v3645_v42 = vadd.f32 %v11405_v1, %v3605_v61 }
 0x4d1   : > { %v3567_v52 = vld [vmem:[%s9688_s9 + $0xe8] sm:$0xff] }
 0x4d2   : > { %v3677_v49 = vmax.f32 %v3645_v42, 0.0  ;;  %v3607_v37 = vmul.f32 %v11387_v59, %v3567_v52 }
 0x4d4   : > { %9359 = vmatmul.mubr.msk.f32.gmra.mrb[58].mxu0 %vm252_vm0, %v3677_v49  ;;  %v3647_v3 = vadd.f32 %v11405_v1, %v3607_v37 }
 0x4d5   : > { %9361 = vmatprep.mubr.msk.f32.mxu0 %vm252_vm0, %v3678_v41  ;;  %v3569_v5 = vld [vmem:[%s9688_s9 + $0xf8] sm:$0xff] }
 0x4d6   : > { %v3679_v33 = vmax.f32 %v3647_v3, 0.0  ;;  %v3609_v12 = vmul.f32 %v11387_v59, %v3569_v5  ;;  %v11585_v59 = vld [vmem:[%s14355_s4 + $0x1] ss:$0 sm:$0xff] }
 0x4d8   : > { %9362 = vmatmul.mubr.msk.f32.gmra.mrb[60].mxu0 %vm252_vm0, %v3679_v33  ;;  %v3649_v19 = vadd.f32 %v11405_v1, %v3609_v12 }
 0x4d9   : > { %9364 = vmatprep.mubr.msk.f32.mxu0 %vm252_vm0, %v3680_v34 }
 0x4da   : > { %v3681_v39 = vmax.f32 %v3649_v19, 0.0 }
 0x4dc   : > { %9365 = vmatmul.mubr.msk.f32.gmra.mrb[62].mxu0 %vm252_vm0, %v3681_v39 }
 0x53a   : > { %v9321_v50 = vpop.f32.mrb[32].mxu0 }
 0x53b   : > { %v3861_v57 = vadd.f32 %v9321_v50, %v11585_v59  ;;  %v3855_v1 = vpop.f32.mrb[33].mxu0 }
 0x53c   : > { %v3856_v2 = vadd.f32 %v11585_v59, %v3855_v1 }
 0x53d   : > { %v4015_v46 = vmax.f32 %v3861_v57, 0.0 }
 0x53e   : > { %v4014_v47 = vmax.f32 %v3856_v2, 0.0  ;;  %v9324_v48 = vpop.f32.mrb[34].mxu0 }
 0x53f   : > { %v3871_v24 = vadd.f32 %v9324_v48, %v11585_v59  ;;  %v3865_v25 = vpop.f32.mrb[35].mxu0 }
 0x540   : > { %v3866_v45 = vadd.f32 %v11585_v59, %v3865_v25  ;;  %9371 = vmatprep.mubr.msk.f32.mxu1 %vm252_vm0, %v4014_v47 }
 0x541   : > { %9372 = vmatmul.mubr.msk.f32.vlgmr.msra.gmra.mrb[32].mxu1 %vm252_vm0, %v4015_v46  ;;  %v4017_v31 = vmax.f32 %v3871_v24, 0.0 }
 0x542   : > { %v4016_v58 = vmax.f32 %v3866_v45, 0.0  ;;  %v9327_v17 = vpop.f32.mrb[36].mxu0 }
 0x543   : > { %v3881_v14 = vadd.f32 %v9327_v17, %v11585_v59  ;;  %v3875_v26 = vpop.f32.mrb[37].mxu0 }
 0x544   : > { %v3876_v23 = vadd.f32 %v11585_v59, %v3875_v26  ;;  %9374 = vmatprep.mubr.msk.f32.mxu1 %vm252_vm0, %v4016_v58 }
 0x545   : > { %9375 = vmatmul.mubr.msk.f32.gmra.mrb[34].mxu1 %vm252_vm0, %v4017_v31  ;;  %v4019_v4 = vmax.f32 %v3881_v14, 0.0 }
 0x546   : > { %v4018_v60 = vmax.f32 %v3876_v23, 0.0  ;;  %v9330_v21 = vpop.f32.mrb[38].mxu0 }
 0x547   : > { %v3891_v7 = vadd.f32 %v9330_v21, %v11585_v59  ;;  %v3885_v56 = vpop.f32.mrb[39].mxu0 }
 0x548   : > { %v3886_v35 = vadd.f32 %v11585_v59, %v3885_v56  ;;  %9377 = vmatprep.mubr.msk.f32.mxu1 %vm252_vm0, %v4018_v60 }
 0x549   : > { %9378 = vmatmul.mubr.msk.f32.gmra.mrb[36].mxu1 %vm252_vm0, %v4019_v4  ;;  %v4021_v51 = vmax.f32 %v3891_v7, 0.0 }
 0x54a   : > { %v4020_v9 = vmax.f32 %v3886_v35, 0.0  ;;  %v9333_v20 = vpop.f32.mrb[40].mxu0 }
 0x54b   : > { %v3901_v54 = vadd.f32 %v9333_v20, %v11585_v59  ;;  %v3895_v62 = vpop.f32.mrb[41].mxu0 }
 0x54c   : > { %v3896_v36 = vadd.f32 %v11585_v59, %v3895_v62  ;;  %9380 = vmatprep.mubr.msk.f32.mxu1 %vm252_vm0, %v4020_v9  ;;  %v4690_v62 = vld [vmem:[#allocation2 + $0x9] sm:$0xff] }
 0x54d   : > { %9381 = vmatmul.mubr.msk.f32.gmra.mrb[38].mxu1 %vm252_vm0, %v4021_v51  ;;  %v4023_v10 = vmax.f32 %v3901_v54, 0.0  ;;  %v5435_v54 = vld [vmem:[#allocation2 + $0x11f] sm:$0xff]  ;;  %4786 = vrot.lane.b32.xlu0 %v4690_v62, %s9621_s19 }
 0x54e   : > { %v4022_v0 = vmax.f32 %v3896_v36, 0.0  ;;  %5562 = vrot.lane.b32.xlu1 %v5435_v54, %s9622_s23  ;;  %v5629_v36 = vld [vmem:[#allocation2 + $0x120] sm:$0xff] }
 0x54f   : > { %v9336_v53 = vpop.f32.mrb[42].mxu0 }
 0x550   : > { %v3911_v6 = vadd.f32 %v9336_v53, %v11585_v59  ;;  %v3905_v38 = vpop.f32.mrb[43].mxu0  ;;  %9383 = vmatprep.mubr.msk.f32.mxu1 %vm252_vm0, %v4022_v0  ;;  %v5628_v0 = vld [vmem:[#allocation2 + $0x118] sm:$0xff] }
 0x551   : > { %v3906_v28 = vadd.f32 %v11585_v59, %v3905_v38  ;;  %9384 = vmatmul.mubr.msk.f32.gmra.mrb[40].mxu1 %vm252_vm0, %v4023_v10  ;;  %5692 = vrot.lane.b32.xlu0 %v5628_v0, %s9623_s24 }
 0x552   : > { %v4025_v16 = vmax.f32 %v3911_v6, 0.0  ;;  %5694 = vrot.lane.b32.xlu1 %v5629_v36, %s9623_s24 }
 0x553   : > { %v4024_v32 = vmax.f32 %v3906_v28, 0.0 }
 0x554   : > { %v9339_v61 = vpop.f32.mrb[44].mxu0 }
 0x555   : > { %v3921_v43 = vadd.f32 %v9339_v61, %v11585_v59  ;;  %v3915_v42 = vpop.f32.mrb[45].mxu0  ;;  %9386 = vmatprep.mubr.msk.f32.mxu1 %vm252_vm0, %v4024_v32 }
 0x556   : > { %v3916_v52 = vadd.f32 %v11585_v59, %v3915_v42  ;;  %9387 = vmatmul.mubr.msk.f32.gmra.mrb[42].mxu1 %vm252_vm0, %v4025_v16 }
 0x557   : > { %v4027_v41 = vmax.f32 %v3921_v43, 0.0 }
 0x558   : > { %v4026_v49 = vmax.f32 %v3916_v52, 0.0  ;;  %v9342_v37 = vpop.f32.mrb[46].mxu0 }
 0x559   : > { %v3931_v29 = vadd.f32 %v9342_v37, %v11585_v59  ;;  %v3925_v3 = vpop.f32.mrb[47].mxu0 }
 0x55a   : > { %v3926_v5 = vadd.f32 %v11585_v59, %v3925_v3  ;;  %9389 = vmatprep.mubr.msk.f32.mxu1 %vm252_vm0, %v4026_v49 }
 0x55b   : > { %9390 = vmatmul.mubr.msk.f32.gmra.mrb[44].mxu1 %vm252_vm0, %v4027_v41  ;;  %v4029_v34 = vmax.f32 %v3931_v29, 0.0 }
 0x55c   : > { %v4028_v33 = vmax.f32 %v3926_v5, 0.0  ;;  %v9345_v12 = vpop.f32.mrb[48].mxu0 }
 0x55d   : > { %v3941_v19 = vadd.f32 %v9345_v12, %v11585_v59  ;;  %v3935_v39 = vpop.f32.mrb[49].mxu0 }
 0x55e   : > { %v3936_v40 = vadd.f32 %v11585_v59, %v3935_v39  ;;  %9392 = vmatprep.mubr.msk.f32.mxu1 %vm252_vm0, %v4028_v33 }
 0x55f   : > { %9393 = vmatmul.mubr.msk.f32.gmra.mrb[46].mxu1 %vm252_vm0, %v4029_v34  ;;  %v4031_v57 = vmax.f32 %v3941_v19, 0.0 }
 0x560   : > { %v4030_v22 = vmax.f32 %v3936_v40, 0.0  ;;  %v9348_v50 = vpop.f32.mrb[50].mxu0 }
 0x561   : > { %v3951_v1 = vadd.f32 %v9348_v50, %v11585_v59  ;;  %v3945_v2 = vpop.f32.mrb[51].mxu0 }
 0x562   : > { %v3946_v47 = vadd.f32 %v11585_v59, %v3945_v2  ;;  %9395 = vmatprep.mubr.msk.f32.mxu1 %vm252_vm0, %v4030_v22 }
 0x563   : > { %9396 = vmatmul.mubr.msk.f32.gmra.mrb[48].mxu1 %vm252_vm0, %v4031_v57  ;;  %v4033_v24 = vmax.f32 %v3951_v1, 0.0 }
 0x564   : > { %v4032_v48 = vmax.f32 %v3946_v47, 0.0  ;;  %v9351_v46 = vpop.f32.mrb[52].mxu0 }
 0x565   : > { %v3961_v25 = vadd.f32 %v9351_v46, %v11585_v59  ;;  %v3955_v45 = vpop.f32.mrb[53].mxu0 }
 0x566   : > { %v3956_v58 = vadd.f32 %v11585_v59, %v3955_v45  ;;  %9398 = vmatprep.mubr.msk.f32.mxu1 %vm252_vm0, %v4032_v48 }
 0x567   : > { %9399 = vmatmul.mubr.msk.f32.gmra.mrb[50].mxu1 %vm252_vm0, %v4033_v24  ;;  %v4035_v14 = vmax.f32 %v3961_v25, 0.0  ;;  %v14814_v25 = vld [vmem:[#allocation4_spill] sm:$0xff] }
 0x568   : > { %v4034_v17 = vmax.f32 %v3956_v58, 0.0  ;;  %v9354_v31 = vpop.f32.mrb[54].mxu0 }
 0x569   : > { %v3971_v26 = vadd.f32 %v9354_v31, %v11585_v59  ;;  %v3965_v23 = vpop.f32.mrb[55].mxu0 }
 0x56a   : > { %v3966_v60 = vadd.f32 %v11585_v59, %v3965_v23  ;;  %9401 = vmatprep.mubr.msk.f32.mxu1 %vm252_vm0, %v4034_v17  ;;  %v14815_v23 = vld [vmem:[#allocation3_spill] sm:$0xff] }
 0x56b   : > { %9402 = vmatmul.mubr.msk.f32.gmra.mrb[52].mxu1 %vm252_vm0, %v4035_v14  ;;  %v4037_v4 = vmax.f32 %v3971_v26, 0.0 }
 0x56c   : > { %v4036_v21 = vmax.f32 %v3966_v60, 0.0 }
 0x56e   : > { %9404 = vmatprep.mubr.msk.f32.mxu1 %vm252_vm0, %v4036_v21 }
 0x56f   : > { %9405 = vmatmul.mubr.msk.f32.gmra.mrb[54].mxu1 %vm252_vm0, %v4037_v4 }
 0x57d   : > { %v9357_v7 = vpop.f32.mrb[56].mxu0 }
 0x57e   : > { %v3981_v56 = vadd.f32 %v9357_v7, %v11585_v59  ;;  %v3975_v35 = vpop.f32.mrb[57].mxu0 }
 0x57f   : > { %v3976_v9 = vadd.f32 %v11585_v59, %v3975_v35 }
 0x580   : > { %v4039_v51 = vmax.f32 %v3981_v56, 0.0 }
 0x581   : > { %v4038_v20 = vmax.f32 %v3976_v9, 0.0 }
 0x583   : > { %9407 = vmatprep.mubr.msk.f32.mxu1 %vm252_vm0, %v4038_v20 }
 0x584   : > { %9408 = vmatmul.mubr.msk.f32.gmra.mrb[56].mxu1 %vm252_vm0, %v4039_v51 }
 0x5a7   : > { %v9360_v53 = vpop.f32.mrb[58].mxu0 }
 0x5a8   : > { %v3991_v10 = vadd.f32 %v9360_v53, %v11585_v59  ;;  %v3985_v6 = vpop.f32.mrb[59].mxu0 }
 0x5a9   : > { %v3986_v38 = vadd.f32 %v11585_v59, %v3985_v6 }
 0x5aa   : > { %v4041_v61 = vmax.f32 %v3991_v10, 0.0  ;;  %v14816_v10 = vld [vmem:[#allocation6_spill] sm:$0xff] }
 0x5ab   : > { %v4040_v28 = vmax.f32 %v3986_v38, 0.0  ;;  %v9363_v32 = vpop.f32.mrb[60].mxu0 }
 0x5ac   : > { %v4001_v16 = vadd.f32 %v9363_v32, %v11585_v59  ;;  %v3995_v43 = vpop.f32.mrb[61].mxu0 }
 0x5ad   : > { %v3996_v42 = vadd.f32 %v11585_v59, %v3995_v43  ;;  %9410 = vmatprep.mubr.msk.f32.mxu1 %vm252_vm0, %v4040_v28  ;;  %v14817_v43 = vld [vmem:[#allocation5_spill] sm:$0xff] }
 0x5ae   : > { %9411 = vmatmul.mubr.msk.f32.gmra.mrb[58].mxu1 %vm252_vm0, %v4041_v61  ;;  %v4043_v37 = vmax.f32 %v4001_v16, 0.0 }
 0x5af   : > { %v4042_v52 = vmax.f32 %v3996_v42, 0.0  ;;  %v9366_v49 = vpop.f32.mrb[62].mxu0 }
 0x5b0   : > { %v4011_v41 = vadd.f32 %v9366_v49, %v11585_v59  ;;  %v4005_v29 = vpop.f32.mrb[63].mxu0 }
 0x5b1   : > { %v4006_v3 = vadd.f32 %v11585_v59, %v4005_v29  ;;  %9413 = vmatprep.mubr.msk.f32.mxu1 %vm252_vm0, %v4042_v52 }
 0x5b2   : > { %9414 = vmatmul.mubr.msk.f32.gmra.mrb[60].mxu1 %vm252_vm0, %v4043_v37  ;;  %v4045_v33 = vmax.f32 %v4011_v41, 0.0 }
 0x5b3   : > { %v4044_v5 = vmax.f32 %v4006_v3, 0.0 }
 0x5b5   : > { %9416 = vmatprep.mubr.msk.f32.mxu1 %vm252_vm0, %v4044_v5 }
 0x5b6   : > { %9417 = vmatmul.mubr.msk.f32.gmra.mrb[62].mxu1 %vm252_vm0, %v4045_v33  ;;  %v14818_v33 = vld [vmem:[#allocation7_spill] sm:$0xff] }
 0x614   : > { %v9373_v12 = vpop.f32.mrb[32].mxu1 }
 0x615   : > { %4371 = vst.msk [vmem:[#allocation2 + $0x20] sm:$0xff] %vm350_vm2, %v9373_v12  ;;  %v4211_v34 = vpop.f32.mrb[33].mxu1 }
 0x616   : > { %4370 = vst.msk [vmem:[#allocation2 + $0x18] sm:$0xff] %vm350_vm2, %v4211_v34 }
 0x618   : > { %v9376_v19 = vpop.f32.mrb[34].mxu1 }
 0x619   : > { %4373 = vst.msk [vmem:[#allocation2 + $0x30] sm:$0xff] %vm350_vm2, %v9376_v19  ;;  %v4221_v59 = vpop.f32.mrb[35].mxu1 }
 0x61a   : > { %4372 = vst.msk [vmem:[#allocation2 + $0x28] sm:$0xff] %vm350_vm2, %v4221_v59 }
 0x61c   : > { %v9379_v39 = vpop.f32.mrb[36].mxu1  ;;  %v4501_v40 = vld [vmem:[#allocation2 + $0x20] sm:$0xff] }
 0x61d   : > { %4375 = vst.msk [vmem:[#allocation2 + $0x40] sm:$0xff] %vm350_vm2, %v9379_v39  ;;  %4568 = vrot.lane.b32.xlu1 %v4501_v40, %s9620_s18  ;;  %v4231_v22 = vpop.f32.mrb[37].mxu1  ;;  %v4500_v50 = vld [vmem:[#allocation2 + $0x18] sm:$0xff] }
 0x61e   : > { %4374 = vst.msk [vmem:[#allocation2 + $0x38] sm:$0xff] %vm350_vm2, %v4231_v22  ;;  %4566 = vrot.lane.b32.xlu0 %v4500_v50, %s9620_s18  ;;  %v4692_v2 = vld [vmem:[#allocation2 + $0x19] sm:$0xff]  ;;  %v4691_v46 = vld [vmem:[#allocation2 + $0x11] sm:$0xff] }
 0x61f   : > { %v4405_v48 = vld [vmem:[#allocation2 + $0x1f] sm:$0xff]  ;;  %v4723_v45 = vmul.f32 %v14814_v25, %v4691_v46  ;;  %v4404_v31 = vld [vmem:[#allocation2 + $0x17] sm:$0xff]  ;;  %v11742_v46 = vpop.permute.xlu1 %4564 }
 0x620   : > { %v9382_v57 = vpop.f32.mrb[38].mxu1  ;;  %v4503_v26 = vld [vmem:[#allocation2 + $0x30] sm:$0xff]  ;;  %v4916_v60 = vmul.f32 %v14815_v23, %v4404_v31 }
 0x621   : > { %4377 = vst.msk [vmem:[#allocation2 + $0x50] sm:$0xff] %vm350_vm2, %v9382_v57  ;;  %5114 = vrot.lane.b32.xlu1 %v4501_v40, %s9624_s25  ;;  %v4241_v1 = vpop.f32.mrb[39].mxu1  ;;  %v4502_v56 = vld [vmem:[#allocation2 + $0x28] sm:$0xff] }
 0x622   : > { %4376 = vst.msk [vmem:[#allocation2 + $0x48] sm:$0xff] %vm350_vm2, %v4241_v1  ;;  %4790 = vrot.lane.b32.xlu0 %v4692_v2, %s9621_s19  ;;  %v4694_v20 = vld [vmem:[#allocation2 + $0x29] sm:$0xff]  ;;  %v4693_v0 = vld [vmem:[#allocation2 + $0x21] sm:$0xff] }
 0x623   : > { %v4407_v54 = vld [vmem:[#allocation2 + $0x2f] sm:$0xff]  ;;  %v4725_v6 = vmul.f32 %v14816_v10, %v4693_v0  ;;  %v5243_v32 = vmul.f32 %v14814_v25, %v4693_v0  ;;  %v4406_v61 = vld [vmem:[#allocation2 + $0x27] sm:$0xff] }
 0x624   : > { %v9385_v47 = vpop.f32.mrb[40].mxu1  ;;  %v4505_v16 = vld [vmem:[#allocation2 + $0x40] sm:$0xff]  ;;  %v4918_v42 = vmul.f32 %v14817_v43, %v4406_v61  ;;  %v5436_v52 = vmul.f32 %v14815_v23, %v4406_v61 }
 0x625   : > { %4379 = vst.msk [vmem:[#allocation2 + $0x60] sm:$0xff] %vm350_vm2, %v9385_v47  ;;  %4982 = vrot.lane.b32.xlu1 %v4405_v48, %s9626_s27  ;;  %v4251_v24 = vpop.f32.mrb[41].mxu1  ;;  %v4504_v49 = vld [vmem:[#allocation2 + $0x38] sm:$0xff]  ;;  %v14819_v47 = vld [vmem:[#allocation9_spill] sm:$0xff] }
 0x626   : > { %4378 = vst.msk [vmem:[#allocation2 + $0x58] sm:$0xff] %vm350_vm2, %v4251_v24  ;;  %5112 = vrot.lane.b32.xlu0 %v4500_v50, %s9624_s25  ;;  %v4409_v37 = vld [vmem:[#allocation2 + $0x3f] sm:$0xff]  ;;  %v4695_v5 = vld [vmem:[#allocation2 + $0x31] sm:$0xff]  ;;  %v11745_v24 = vpop.permute.xlu0 %4562 }
 0x627   : > { %v4696_v41 = vld [vmem:[#allocation2 + $0x39] sm:$0xff]  ;;  %v4727_v12 = vmul.f32 %v14818_v33, %v4695_v5  ;;  %v5245_v34 = vmul.f32 %v14816_v10, %v4695_v5  ;;  %v5763_v19 = vmul.f32 %v14814_v25, %v4695_v5 }
 0x628   : > { %v4408_v59 = vld [vmem:[#allocation2 + $0x37] sm:$0xff] }
 0x629   : > { %v9388_v58 = vpop.f32.mrb[42].mxu1  ;;  %4788 = vrot.lane.b32.xlu1 %v4723_v45, %s9621_s19  ;;  %v4507_v39 = vld [vmem:[#allocation2 + $0x50] sm:$0xff]  ;;  %v4920_v40 = vmul.f32 %v10184_v13, %v4408_v59  ;;  %v5438_v22 = vmul.f32 %v14817_v43, %v4408_v59  ;;  %v4506_v50 = vld [vmem:[#allocation2 + $0x48] sm:$0xff] }
 0x62a   : > { %4381 = vst.msk [vmem:[#allocation2 + $0x70] sm:$0xff] %vm350_vm2, %v9388_v58  ;;  %v4261_v17 = vpop.f32.mrb[43].mxu1  ;;  %5306 = vrot.lane.b32.xlu0 %v4692_v2, %s9625_s26  ;;  %v4411_v57 = vld [vmem:[#allocation2 + $0x4f] sm:$0xff]  ;;  %v4697_v2 = vld [vmem:[#allocation2 + $0x41] sm:$0xff] }
 0x62b   : > { %4380 = vst.msk [vmem:[#allocation2 + $0x68] sm:$0xff] %vm350_vm2, %v4261_v17  ;;  %v4698_v1 = vld [vmem:[#allocation2 + $0x49] sm:$0xff]  ;;  %v4729_v48 = vmul.f32 %v14819_v47, %v4697_v2  ;;  %v5247_v45 = vmul.f32 %v14818_v33, %v4697_v2  ;;  %v5765_v31 = vmul.f32 %v14816_v10, %v4697_v2 }
 0x62d   : > { %4572 = vrot.lane.b32.xlu1 %v4503_v26, %s9620_s18  ;;  %v4508_v0 = vld [vmem:[#allocation2 + $0x58] sm:$0xff] }
 0x62e   : > { %v9391_v14 = vpop.f32.mrb[44].mxu1  ;;  %4980 = vrot.lane.b32.xlu0 %v4916_v60, %s9626_s27 }
 0x62f   : > { %4383 = vst.msk [vmem:[#allocation2 + $0x80] sm:$0xff] %vm350_vm2, %v9391_v14  ;;  %v4271_v21 = vpop.f32.mrb[45].mxu1  ;;  %v11753_v14 = vpop.permute.xlu1 %5562 }
 0x630   : > { %4382 = vst.msk [vmem:[#allocation2 + $0x78] sm:$0xff] %vm350_vm2, %v4271_v21  ;;  %14820 = vst [vmem:[#allocation16_spill] sm:$0xff] %v11753_v14  ;;  %v4410_v21 = vld [vmem:[#allocation2 + $0x47] sm:$0xff] }
 0x631   : > { %5118 = vrot.lane.b32.xlu1 %v4503_v26, %s9624_s25 }
 0x632   : > { %v9394_v4 = vpop.f32.mrb[46].mxu1  ;;  %4570 = vrot.lane.b32.xlu0 %v4502_v56, %s9620_s18 }
 0x633   : > { %4385 = vst.msk [vmem:[#allocation2 + $0x90] sm:$0xff] %vm350_vm2, %v9394_v4  ;;  %v4281_v7 = vpop.f32.mrb[47].mxu1 }
 0x634   : > { %4384 = vst.msk [vmem:[#allocation2 + $0x88] sm:$0xff] %vm350_vm2, %v4281_v7  ;;  %v4509_v7 = vld [vmem:[#allocation2 + $0x60] sm:$0xff] }
 0x635   : > { %5634 = vrot.lane.b32.xlu1 %v4503_v26, %s9623_s24  ;;  %v11755_v26 = vpop.permute.xlu0 %4786 }
 0x636   : > { %v9397_v35 = vpop.f32.mrb[48].mxu1  ;;  %4794 = vrot.lane.b32.xlu0 %v4694_v20, %s9621_s19 }
 0x637   : > { %4387 = vst.msk [vmem:[#allocation2 + $0xa0] sm:$0xff] %vm350_vm2, %v9397_v35  ;;  %v4291_v9 = vpop.f32.mrb[49].mxu1  ;;  %v4703_v25 = vld [vmem:[#allocation2 + $0x71] sm:$0xff] }
 0x638   : > { %4386 = vst.msk [vmem:[#allocation2 + $0x98] sm:$0xff] %vm350_vm2, %v4291_v9  ;;  %v11763_v9 = vpop.permute.xlu1 %5694 }
 0x639   : > { %4986 = vrot.lane.b32.xlu1 %v4407_v54, %s9626_s27  ;;  %14821 = vst [vmem:[#allocation12_spill] sm:$0xff] %v11763_v9  ;;  %v14835_v9 = vld [vmem:[#allocation32_spill] sm:$0xff] }
 0x63a   : > { %v9400_v51 = vpop.f32.mrb[50].mxu1  ;;  %5116 = vrot.lane.b32.xlu0 %v4502_v56, %s9624_s25 }
 0x63b   : > { %4389 = vst.msk [vmem:[#allocation2 + $0xb0] sm:$0xff] %vm350_vm2, %v9400_v51  ;;  %v4301_v62 = vpop.f32.mrb[51].mxu1  ;;  %v11767_v51 = vpop.permute.xlu0 %5692 }
 0x63c   : > { %4388 = vst.msk [vmem:[#allocation2 + $0xa8] sm:$0xff] %vm350_vm2, %v4301_v62  ;;  %14822 = vst [vmem:[#allocation28_spill] sm:$0xff] %v11767_v51  ;;  %v4735_v51 = vmul.f32 %v14835_v9, %v4703_v25 }
 0x63d   : > { %5502 = vrot.lane.b32.xlu1 %v4407_v54, %s9622_s23  ;;  %v5440_v54 = vmul.f32 %v10184_v13, %v4410_v21 }
 0x63e   : > { %v9403_v36 = vpop.f32.mrb[52].mxu1  ;;  %5310 = vrot.lane.b32.xlu0 %v4694_v20, %s9625_s26 }
 0x63f   : > { %4391 = vst.msk [vmem:[#allocation2 + $0xc0] sm:$0xff] %vm350_vm2, %v9403_v36  ;;  %v4311_v53 = vpop.f32.mrb[53].mxu1 }
 0x640   : > { %4390 = vst.msk [vmem:[#allocation2 + $0xb8] sm:$0xff] %vm350_vm2, %v4311_v53 }
 0x641   : > { %4792 = vrot.lane.b32.xlu1 %v4725_v6, %s9621_s19 }
 0x642   : > { %v9406_v38 = vpop.f32.mrb[54].mxu1  ;;  %5632 = vrot.lane.b32.xlu0 %v4502_v56, %s9623_s24  ;;  %v4922_v56 = vmul.f32 %v10223_v44, %v4410_v21 }
 0x643   : > { %4393 = vst.msk [vmem:[#allocation2 + $0xd0] sm:$0xff] %vm350_vm2, %v9406_v38  ;;  %v4321_v28 = vpop.f32.mrb[55].mxu1  ;;  %v4413_v38 = vld [vmem:[#allocation2 + $0x5f] sm:$0xff] }
 0x644   : > { %4392 = vst.msk [vmem:[#allocation2 + $0xc8] sm:$0xff] %vm350_vm2, %v4321_v28  ;;  %v4700_v28 = vld [vmem:[#allocation2 + $0x59] sm:$0xff] }
 0x645   : > { %5308 = vrot.lane.b32.xlu1 %v5243_v32, %s9625_s26 }
 0x646   : > { %5826 = vrot.lane.b32.xlu0 %v4694_v20, %s9627_s28 }
 0x649   : > { %4576 = vrot.lane.b32.xlu1 %v4505_v16, %s9620_s18 }
 0x64a   : > { %4984 = vrot.lane.b32.xlu0 %v4918_v42, %s9626_s27 }
 0x64d   : > { %5122 = vrot.lane.b32.xlu1 %v4505_v16, %s9624_s25 }
 0x64e   : > { %5500 = vrot.lane.b32.xlu0 %v5436_v52, %s9622_s23  ;;  %v14823_v52 = vld [vmem:[#allocation14_spill] sm:$0xff] }
 0x651   : > { %5638 = vrot.lane.b32.xlu1 %v4505_v16, %s9623_s24  ;;  %v4699_v16 = vld [vmem:[#allocation2 + $0x51] sm:$0xff] }
 0x652   : > { %4574 = vrot.lane.b32.xlu0 %v4504_v49, %s9620_s18 }
 0x655   : > { %4990 = vrot.lane.b32.xlu1 %v4409_v37, %s9626_s27 }
 0x656   : > { %4798 = vrot.lane.b32.xlu0 %v4696_v41, %s9621_s19 }
 0x657   : > { %v9409_v29 = vpop.f32.mrb[56].mxu1 }
 0x658   : > { %4395 = vst.msk [vmem:[#allocation2 + $0xe0] sm:$0xff] %vm350_vm2, %v9409_v29  ;;  %v4331_v3 = vpop.f32.mrb[57].mxu1  ;;  %v5249_v29 = vmul.f32 %v14819_v47, %v4699_v16 }
 0x659   : > { %4394 = vst.msk [vmem:[#allocation2 + $0xd8] sm:$0xff] %vm350_vm2, %v4331_v3  ;;  %5506 = vrot.lane.b32.xlu1 %v4409_v37, %s9622_s23 }
 0x65a   : > { %5120 = vrot.lane.b32.xlu0 %v4504_v49, %s9624_s25 }
 0x65d   : > { %4796 = vrot.lane.b32.xlu1 %v4727_v12, %s9621_s19  ;;  %v5767_v12 = vmul.f32 %v14818_v33, %v4699_v16  ;;  %v4704_v33 = vld [vmem:[#allocation2 + $0x79] sm:$0xff] }
 0x65e   : > { %5314 = vrot.lane.b32.xlu0 %v4696_v41, %s9625_s26 }
 0x661   : > { %5312 = vrot.lane.b32.xlu1 %v5245_v34, %s9625_s26 }
 0x662   : > { %5636 = vrot.lane.b32.xlu0 %v4504_v49, %s9623_s24  ;;  %v4731_v49 = vmul.f32 %v14823_v52, %v4699_v16 }
 0x665   : > { %5828 = vrot.lane.b32.xlu1 %v5763_v19, %s9627_s28  ;;  %v4412_v19 = vld [vmem:[#allocation2 + $0x57] sm:$0xff] }
 0x666   : > { %5830 = vrot.lane.b32.xlu0 %v4696_v41, %s9627_s28 }
 0x669   : > { %4580 = vrot.lane.b32.xlu1 %v4507_v39, %s9620_s18 }
 0x66a   : > { %4988 = vrot.lane.b32.xlu0 %v4920_v40, %s9626_s27  ;;  %v4511_v40 = vld [vmem:[#allocation2 + $0x70] sm:$0xff] }
 0x66d   : > { %5126 = vrot.lane.b32.xlu1 %v4507_v39, %s9624_s25 }
 0x66e   : > { %5504 = vrot.lane.b32.xlu0 %v5438_v22, %s9622_s23  ;;  %v4924_v22 = vmul.f32 %v10276_v11, %v4412_v19 }
 0x671   : > { %5642 = vrot.lane.b32.xlu1 %v4507_v39, %s9623_s24 }
 0x672   : > { %4578 = vrot.lane.b32.xlu0 %v4506_v50, %s9620_s18 }
 0x675   : > { %4994 = vrot.lane.b32.xlu1 %v4411_v57, %s9626_s27 }
 0x676   : > { %4802 = vrot.lane.b32.xlu0 %v4698_v1, %s9621_s19 }
 0x679   : > { %5510 = vrot.lane.b32.xlu1 %v4411_v57, %s9622_s23 }
 0x67a   : > { %5124 = vrot.lane.b32.xlu0 %v4506_v50, %s9624_s25 }
 0x67d   : > { %4800 = vrot.lane.b32.xlu1 %v4729_v48, %s9621_s19 }
 0x67e   : > { %5318 = vrot.lane.b32.xlu0 %v4698_v1, %s9625_s26 }
 0x681   : > { %5316 = vrot.lane.b32.xlu1 %v5247_v45, %s9625_s26  ;;  %v9412_v58 = vpop.f32.mrb[58].mxu1  ;;  %v4510_v45 = vld [vmem:[#allocation2 + $0x68] sm:$0xff] }
 0x682   : > { %4397 = vst.msk [vmem:[#allocation2 + $0xf0] sm:$0xff] %vm350_vm2, %v9412_v58  ;;  %5640 = vrot.lane.b32.xlu0 %v4506_v50, %s9623_s24  ;;  %v4341_v17 = vpop.f32.mrb[59].mxu1 }
 0x683   : > { %4396 = vst.msk [vmem:[#allocation2 + $0xe8] sm:$0xff] %vm350_vm2, %v4341_v17 }
 0x685   : > { %5832 = vrot.lane.b32.xlu1 %v5765_v31, %s9627_s28  ;;  %v9415_v60 = vpop.f32.mrb[60].mxu1  ;;  %v4415_v31 = vld [vmem:[#allocation2 + $0x6f] sm:$0xff] }
 0x686   : > { %4399 = vst.msk [vmem:[#allocation2 + $0x100] sm:$0xff] %vm350_vm2, %v9415_v60  ;;  %5834 = vrot.lane.b32.xlu0 %v4698_v1, %s9627_s28  ;;  %v4351_v4 = vpop.f32.mrb[61].mxu1  ;;  %v5442_v1 = vmul.f32 %v10223_v44, %v4412_v19  ;;  %v4702_v60 = vld [vmem:[#allocation2 + $0x69] sm:$0xff] }
 0x687   : > { %4398 = vst.msk [vmem:[#allocation2 + $0xf8] sm:$0xff] %vm350_vm2, %v4351_v4 }
 0x689   : > { %4584 = vrot.lane.b32.xlu1 %v4509_v7, %s9620_s18  ;;  %v9418_v35 = vpop.f32.mrb[62].mxu1 }
 0x68a   : > { %4401 = vst.msk [vmem:[#allocation2 + $0x110] sm:$0xff] %vm350_vm2, %v9418_v35  ;;  %4992 = vrot.lane.b32.xlu0 %v4922_v56, %s9626_s27  ;;  %v4361_v20 = vpop.f32.mrb[63].mxu1  ;;  %v14827_v35 = vld [vmem:[#allocation22_spill] sm:$0xff] }
 0x68b   : > { %4400 = vst.msk [vmem:[#allocation2 + $0x108] sm:$0xff] %vm350_vm2, %v4361_v20 }
 0x68d   : > { %5130 = vrot.lane.b32.xlu1 %v4509_v7, %s9624_s25 }
 0x68e   : > { %5508 = vrot.lane.b32.xlu0 %v5440_v54, %s9622_s23 }
 0x68f   : > { %v11773_v62 = vpop.permute.xlu1 %4568 }
 0x690   : > { %v11775_v36 = vpop.permute.xlu0 %4566 }
 0x691   : > { %5646 = vrot.lane.b32.xlu1 %v4509_v7, %s9623_s24  ;;  %v4701_v7 = vld [vmem:[#allocation2 + $0x61] sm:$0xff] }
 0x692   : > { %4582 = vrot.lane.b32.xlu0 %v4508_v0, %s9620_s18  ;;  %v4733_v20 = vmul.f32 %v14827_v35, %v4701_v7 }
 0x693   : > { %v11779_v53 = vpop.permute.xlu1 %5114 }
 0x694   : > { %v11781_v6 = vpop.permute.xlu0 %4790 }
 0x695   : > { %4998 = vrot.lane.b32.xlu1 %v4413_v38, %s9626_s27 }
 0x696   : > { %4806 = vrot.lane.b32.xlu0 %v4700_v28, %s9621_s19 }
 0x697   : > { %v11785_v32 = vpop.permute.xlu1 %4982 }
 0x698   : > { %v11787_v61 = vpop.permute.xlu0 %5112 }
 0x699   : > { %5514 = vrot.lane.b32.xlu1 %v4413_v38, %s9622_s23  ;;  %v5251_v38 = vmul.f32 %v14823_v52, %v4701_v7 }
 0x69a   : > { %5128 = vrot.lane.b32.xlu0 %v4508_v0, %s9624_s25 }
 0x69b   : > { %v11791_v42 = vpop.permute.xlu1 %4788 }
 0x69c   : > { %v11794_v37 = vpop.permute.xlu0 %5306 }
 0x69d   : > { %4804 = vrot.lane.b32.xlu1 %v4731_v49, %s9621_s19  ;;  %v5769_v49 = vmul.f32 %v14819_v47, %v4701_v7  ;;  %v4417_v47 = vld [vmem:[#allocation2 + $0x7f] sm:$0xff] }
 0x69e   : > { %5322 = vrot.lane.b32.xlu0 %v4700_v28, %s9625_s26 }
 0x69f   : > { %v11798_v41 = vpop.permute.xlu1 %4572 }
 0x6a0   : > { %v11801_v3 = vpop.permute.xlu0 %4980 }
 0x6a1   : > { %5320 = vrot.lane.b32.xlu1 %v5249_v29, %s9625_s26 }
 0x6a2   : > { %5644 = vrot.lane.b32.xlu0 %v4508_v0, %s9623_s24 }
 0x6a3   : > { %v11805_v5 = vpop.permute.xlu1 %5118 }
 0x6a4   : > { %v11808_v34 = vpop.permute.xlu0 %4570 }
 0x6a5   : > { %5836 = vrot.lane.b32.xlu1 %v5767_v12, %s9627_s28  ;;  %v11864_v12 = vld [vmem:[#allocation2 + $0x67] sm:$0xff] }
 0x6a6   : > { %5838 = vrot.lane.b32.xlu0 %v4700_v28, %s9627_s28  ;;  %v5444_v7 = vmul.f32 %v10276_v11, %v11864_v12 }
 0x6a7   : > { %v11812_v59 = vpop.permute.xlu1 %5634 }
 0x6a8   : > { %14824 = vst [vmem:[#allocation46_spill] sm:$0xff] %v11812_v59  ;;  %v11814_v39 = vpop.permute.xlu0 %4794 }
 0x6a9   : > { %4588 = vrot.lane.b32.xlu1 %v4511_v40, %s9620_s18 }
 0x6aa   : > { %4996 = vrot.lane.b32.xlu0 %v4924_v22, %s9626_s27  ;;  %v4513_v22 = vld [vmem:[#allocation2 + $0x80] sm:$0xff] }
 0x6ab   : > { %v11819_v50 = vpop.permute.xlu1 %4986 }
 0x6ac   : > { %v11821_v57 = vpop.permute.xlu0 %5116 }
 0x6ad   : > { %5134 = vrot.lane.b32.xlu1 %v4511_v40, %s9624_s25 }
 0x6ae   : > { %5512 = vrot.lane.b32.xlu0 %v5442_v1, %s9622_s23  ;;  %v4926_v1 = vmul.f32 %v10339_v63, %v11864_v12 }
 0x6af   : > { %v11826_v2 = vpop.permute.xlu1 %5502 }
 0x6b0   : > { %v11828_v48 = vpop.permute.xlu0 %5310 }
 0x6b1   : > { %14825 = vst [vmem:[#allocation35_spill] sm:$0xff] %v11828_v48  ;;  %5650 = vrot.lane.b32.xlu1 %v4511_v40, %s9623_s24 }
 0x6b2   : > { %4586 = vrot.lane.b32.xlu0 %v4510_v45, %s9620_s18 }
 0x6b3   : > { %v11832_v58 = vpop.permute.xlu1 %4792 }
 0x6b4   : > { %v11834_v17 = vpop.permute.xlu0 %5632 }
 0x6b5   : > { %5002 = vrot.lane.b32.xlu1 %v4415_v31, %s9626_s27 }
 0x6b6   : > { %4810 = vrot.lane.b32.xlu0 %v4702_v60, %s9621_s19 }
 0x6b7   : > { %v11838_v21 = vpop.permute.xlu1 %5308 }
 0x6b8   : > { %v11840_v4 = vpop.permute.xlu0 %5826 }
 0x6b9   : > { %14826 = vst [vmem:[#allocation58_spill] sm:$0xff] %v11840_v4  ;;  %5518 = vrot.lane.b32.xlu1 %v4415_v31, %s9622_s23 }
 0x6ba   : > { %5132 = vrot.lane.b32.xlu0 %v4510_v45, %s9624_s25 }
 0x6bb   : > { %v11844_v56 = vpop.permute.xlu1 %4576 }
 0x6bc   : > { %v11847_v54 = vpop.permute.xlu0 %4984 }
 0x6bd   : > { %4808 = vrot.lane.b32.xlu1 %v4733_v20, %s9621_s19 }
 0x6be   : > { %5326 = vrot.lane.b32.xlu0 %v4702_v60, %s9625_s26 }
 0x6bf   : > { %v11851_v0 = vpop.permute.xlu1 %5122 }
 0x6c0   : > { %14828 = vst [vmem:[#allocation67_spill] sm:$0xff] %v11851_v0  ;;  %v11854_v28 = vpop.permute.xlu0 %5500 }
 0x6c1   : > { %5324 = vrot.lane.b32.xlu1 %v5251_v38, %s9625_s26  ;;  %v4512_v38 = vld [vmem:[#allocation2 + $0x78] sm:$0xff] }
 0x6c2   : > { %5648 = vrot.lane.b32.xlu0 %v4510_v45, %s9623_s24 }
 0x6c3   : > { %v11858_v16 = vpop.permute.xlu1 %5638 }
 0x6c4   : > { %14829 = vst [vmem:[#allocation20_spill] sm:$0xff] %v11858_v16  ;;  %v11861_v29 = vpop.permute.xlu0 %4574 }
 0x6c5   : > { %5840 = vrot.lane.b32.xlu1 %v5769_v49, %s9627_s28 }
 0x6c6   : > { %5842 = vrot.lane.b32.xlu0 %v4702_v60, %s9627_s28 }
 0x6c7   : > { %v11867_v19 = vpop.permute.xlu1 %4990 }
 0x6c8   : > { %v11869_v40 = vpop.permute.xlu0 %4798 }
 0x6c9   : > { %4592 = vrot.lane.b32.xlu1 %v4513_v22, %s9620_s18 }
 0x6ca   : > { %5000 = vrot.lane.b32.xlu0 %v4926_v1, %s9626_s27 }
 0x6cb   : > { %v11875_v45 = vpop.permute.xlu1 %5506 }
 0x6cc   : > { %14830 = vst [vmem:[#allocation54_spill] sm:$0xff] %v11875_v45  ;;  %v11877_v31 = vpop.permute.xlu0 %5120 }
 0x6cd   : > { %5138 = vrot.lane.b32.xlu1 %v4513_v22, %s9624_s25 }
 0x6ce   : > { %5516 = vrot.lane.b32.xlu0 %v5444_v7, %s9622_s23 }
 0x6cf   : > { %v11883_v60 = vpop.permute.xlu1 %4796 }
 0x6d0   : > { %v11885_v20 = vpop.permute.xlu0 %5314 }
 0x6d1   : > { %14831 = vst [vmem:[#allocation72_spill] sm:$0xff] %v11885_v20  ;;  %5654 = vrot.lane.b32.xlu1 %v4513_v22, %s9623_s24 }
 0x6d2   : > { %4590 = vrot.lane.b32.xlu0 %v4512_v38, %s9620_s18 }
 0x6d3   : > { %v11889_v49 = vpop.permute.xlu1 %5312 }
 0x6d4   : > { %v11891_v1 = vpop.permute.xlu0 %5636 }
 0x6d5   : > { %14832 = vst [vmem:[#allocation26_spill] sm:$0xff] %v11891_v1  ;;  %5006 = vrot.lane.b32.xlu1 %v4417_v47, %s9626_s27  ;;  %v5253_v1 = vmul.f32 %v14827_v35, %v4703_v25 }
 0x6d6   : > { %4814 = vrot.lane.b32.xlu0 %v4704_v33, %s9621_s19 }
 0x6d7   : > { %v11895_v7 = vpop.permute.xlu1 %5828 }
 0x6d8   : > { %14833 = vst [vmem:[#allocation37_spill] sm:$0xff] %v11895_v7  ;;  %v11897_v10 = vpop.permute.xlu0 %5830  ;;  %v5771_v7 = vmul.f32 %v14823_v52, %v4703_v25 }
 0x6d9   : > { %14834 = vst [vmem:[#allocation51_spill] sm:$0xff] %v11897_v10  ;;  %5522 = vrot.lane.b32.xlu1 %v4417_v47, %s9622_s23 }
 0x6da   : > { %5136 = vrot.lane.b32.xlu0 %v4512_v38, %s9624_s25 }
 0x6db   : > { %v11901_v22 = vpop.permute.xlu1 %4580 }
 0x6dc   : > { %v11904_v14 = vpop.permute.xlu0 %4988 }
 0x6dd   : > { %4812 = vrot.lane.b32.xlu1 %v4735_v51, %s9621_s19  ;;  %v11921_v51 = vld [vmem:[#allocation2 + $0x77] sm:$0xff] }
 0x6de   : > { %5330 = vrot.lane.b32.xlu0 %v4704_v33, %s9625_s26 }
 0x6df   : > { %v11908_v16 = vpop.permute.xlu1 %5126 }
 0x6e0   : > { %14836 = vst [vmem:[#allocation60_spill] sm:$0xff] %v11908_v16  ;;  %v11911_v10 = vpop.permute.xlu0 %5504 }
 0x6e1   : > { %14837 = vst [vmem:[#allocation18_spill] sm:$0xff] %v11911_v10  ;;  %5328 = vrot.lane.b32.xlu1 %v5253_v1, %s9625_s26  ;;  %v4515_v10 = vld [vmem:[#allocation2 + $0x90] sm:$0xff] }
 0x6e2   : > { %5652 = vrot.lane.b32.xlu0 %v4512_v38, %s9623_s24  ;;  %v4928_v38 = vmul.f32 %v10402_v55, %v11921_v51 }
 0x6e3   : > { %v11915_v47 = vpop.permute.xlu1 %5642 }
 0x6e4   : > { %14838 = vst [vmem:[#allocation21_spill] sm:$0xff] %v11915_v47  ;;  %v11918_v20 = vpop.permute.xlu0 %4578  ;;  %v4514_v47 = vld [vmem:[#allocation2 + $0x88] sm:$0xff] }
 0x6e5   : > { %14839 = vst [vmem:[#allocation24_spill] sm:$0xff] %v11918_v20  ;;  %5844 = vrot.lane.b32.xlu1 %v5771_v7, %s9627_s28  ;;  %v5446_v7 = vmul.f32 %v10339_v63, %v11921_v51 }
 0x6e6   : > { %5846 = vrot.lane.b32.xlu0 %v4704_v33, %s9627_s28 }
 0x6e7   : > { %v11924_v16 = vpop.permute.xlu1 %4994 }
 0x6e8   : > { %14840 = vst [vmem:[#allocation15_spill] sm:$0xff] %v11924_v16  ;;  %v11926_v45 = vpop.permute.xlu0 %4802 }
 0x6e9   : > { %14841 = vst [vmem:[#allocation63_spill] sm:$0xff] %v11926_v45  ;;  %4596 = vrot.lane.b32.xlu1 %v4515_v10, %s9620_s18  ;;  %v4706_v45 = vld [vmem:[#allocation2 + $0x89] sm:$0xff] }
 0x6ea   : > { %5004 = vrot.lane.b32.xlu0 %v4928_v38, %s9626_s27 }
 0x6eb   : > { %v11932_v25 = vpop.permute.xlu1 %5510 }
 0x6ec   : > { %14842 = vst [vmem:[#allocation48_spill] sm:$0xff] %v11932_v25  ;;  %v11934_v1 = vpop.permute.xlu0 %5124 }
 0x6ed   : > { %14843 = vst [vmem:[#allocation77_spill] sm:$0xff] %v11934_v1  ;;  %5142 = vrot.lane.b32.xlu1 %v4515_v10, %s9624_s25  ;;  %v11950_v1 = vld [vmem:[#allocation2 + $0x8f] sm:$0xff] }
 0x6ee   : > { %5520 = vrot.lane.b32.xlu0 %v5446_v7, %s9622_s23  ;;  %14847 = vst [vmem:[#allocation40_spill] sm:$0xff] %v11950_v1 }
 0x6ef   : > { %v11940_v33 = vpop.permute.xlu1 %4800 }
 0x6f0   : > { %v11942_v52 = vpop.permute.xlu0 %5318 }
 0x6f1   : > { %14844 = vst [vmem:[#allocation86_spill] sm:$0xff] %v11942_v52  ;;  %5658 = vrot.lane.b32.xlu1 %v4515_v10, %s9623_s24  ;;  %v4705_v10 = vld [vmem:[#allocation2 + $0x81] sm:$0xff] }
 0x6f2   : > { %4594 = vrot.lane.b32.xlu0 %v4514_v47, %s9620_s18 }
 0x6f3   : > { %v11946_v38 = vpop.permute.xlu1 %5316 }
 0x6f4   : > { %14845 = vst [vmem:[#allocation17_spill] sm:$0xff] %v11946_v38  ;;  %v11948_v25 = vpop.permute.xlu0 %5640 }
 0x6f5   : > { %14846 = vst [vmem:[#allocation31_spill] sm:$0xff] %v11948_v25  ;;  %5010 = vrot.lane.b32.xlu1 %v11950_v1, %s9626_s27  ;;  %v14851_v25 = vld [vmem:[#allocation44_spill] sm:$0xff] }
 0x6f6   : > { %4818 = vrot.lane.b32.xlu0 %v4706_v45, %s9621_s19  ;;  %v4737_v59 = vmul.f32 %v14851_v25, %v4705_v10 }
 0x6f7   : > { %v11955_v7 = vpop.permute.xlu1 %5832 }
 0x6f8   : > { %14848 = vst [vmem:[#allocation38_spill] sm:$0xff] %v11955_v7  ;;  %v11957_v52 = vpop.permute.xlu0 %5834 }
 0x6f9   : > { %14849 = vst [vmem:[#allocation50_spill] sm:$0xff] %v11957_v52  ;;  %5526 = vrot.lane.b32.xlu1 %v11950_v1, %s9622_s23  ;;  %v5255_v52 = vmul.f32 %v14835_v9, %v4705_v10 }
 0x6fa   : > { %5140 = vrot.lane.b32.xlu0 %v4514_v47, %s9624_s25 }
 0x6fb   : > { %v11962_v38 = vpop.permute.xlu1 %4584 }
 0x6fc   : > { %14850 = vst [vmem:[#allocation69_spill] sm:$0xff] %v11962_v38  ;;  %v11965_v0 = vpop.permute.xlu0 %4992  ;;  %v5773_v38 = vmul.f32 %v14827_v35, %v4705_v10 }
 0x6fd   : > { %14852 = vst [vmem:[#allocation79_spill] sm:$0xff] %v11965_v0  ;;  %4816 = vrot.lane.b32.xlu1 %v4737_v59, %s9621_s19  ;;  %v11982_v59 = vld [vmem:[#allocation2 + $0x87] sm:$0xff] }
 0x6fe   : > { %5334 = vrot.lane.b32.xlu0 %v4706_v45, %s9625_s26 }
 0x6ff   : > { %v11969_v16 = vpop.permute.xlu1 %5130 }
 0x700   : > { %14853 = vst [vmem:[#allocation30_spill] sm:$0xff] %v11969_v16  ;;  %v11972_v7 = vpop.permute.xlu0 %5508 }
 0x701   : > { %14854 = vst [vmem:[#allocation23_spill] sm:$0xff] %v11972_v7  ;;  %5332 = vrot.lane.b32.xlu1 %v5255_v52, %s9625_s26  ;;  %v4517_v7 = vld [vmem:[#allocation2 + $0xa0] sm:$0xff]  ;;  %v4930_v52 = vmul.f32 %v10467_v18, %v11982_v59 }
 0x702   : > { %5656 = vrot.lane.b32.xlu0 %v4514_v47, %s9623_s24 }
 0x703   : > { %v11976_v1 = vpop.permute.xlu1 %5646 }
 0x704   : > { %14855 = vst [vmem:[#allocation43_spill] sm:$0xff] %v11976_v1  ;;  %v11979_v4 = vpop.permute.xlu0 %4582  ;;  %v4516_v1 = vld [vmem:[#allocation2 + $0x98] sm:$0xff] }
 0x705   : > { %14856 = vst [vmem:[#allocation55_spill] sm:$0xff] %v11979_v4  ;;  %5848 = vrot.lane.b32.xlu1 %v5773_v38, %s9627_s28  ;;  %v5448_v38 = vmul.f32 %v10402_v55, %v11982_v59 }
 0x706   : > { %5850 = vrot.lane.b32.xlu0 %v4706_v45, %s9627_s28 }
 0x707   : > { %v11985_v16 = vpop.permute.xlu1 %4998 }
 0x708   : > { %14857 = vst [vmem:[#allocation82_spill] sm:$0xff] %v11985_v16  ;;  %v11987_v0 = vpop.permute.xlu0 %4806 }
 0x709   : > { %14858 = vst [vmem:[#allocation65_spill] sm:$0xff] %v11987_v0  ;;  %4600 = vrot.lane.b32.xlu1 %v4517_v7, %s9620_s18  ;;  %v4708_v0 = vld [vmem:[#allocation2 + $0x99] sm:$0xff] }
 0x70a   : > { %5008 = vrot.lane.b32.xlu0 %v4930_v52, %s9626_s27 }
 0x70b   : > { %v11993_v47 = vpop.permute.xlu1 %5514 }
 0x70c   : > { %14859 = vst [vmem:[#allocation96_spill] sm:$0xff] %v11993_v47  ;;  %v11995_v10 = vpop.permute.xlu0 %5128 }
 0x70d   : > { %14860 = vst [vmem:[#allocation105_spill] sm:$0xff] %v11995_v10  ;;  %5146 = vrot.lane.b32.xlu1 %v4517_v7, %s9624_s25  ;;  %v12011_v10 = vld [vmem:[#allocation2 + $0x9f] sm:$0xff] }
 0x70e   : > { %5524 = vrot.lane.b32.xlu0 %v5448_v38, %s9622_s23  ;;  %14865 = vst [vmem:[#allocation52_spill] sm:$0xff] %v12011_v10 }
 0x70f   : > { %v12001_v45 = vpop.permute.xlu1 %4804 }
 0x710   : > { %14861 = vst [vmem:[#allocation13_spill] sm:$0xff] %v12001_v45  ;;  %v12003_v35 = vpop.permute.xlu0 %5322 }
 0x711   : > { %14862 = vst [vmem:[#allocation34_spill] sm:$0xff] %v12003_v35  ;;  %5662 = vrot.lane.b32.xlu1 %v4517_v7, %s9623_s24  ;;  %v4707_v7 = vld [vmem:[#allocation2 + $0x91] sm:$0xff] }
 0x712   : > { %4598 = vrot.lane.b32.xlu0 %v4516_v1, %s9620_s18 }
 0x713   : > { %v12007_v52 = vpop.permute.xlu1 %5320 }
 0x714   : > { %14863 = vst [vmem:[#allocation42_spill] sm:$0xff] %v12007_v52  ;;  %v12009_v47 = vpop.permute.xlu0 %5644 }
 0x715   : > { %14864 = vst [vmem:[#allocation73_spill] sm:$0xff] %v12009_v47  ;;  %5014 = vrot.lane.b32.xlu1 %v12011_v10, %s9626_s27  ;;  %v14869_v47 = vld [vmem:[#allocation61_spill] sm:$0xff] }
 0x716   : > { %4822 = vrot.lane.b32.xlu0 %v4708_v0, %s9621_s19  ;;  %v4739_v16 = vmul.f32 %v14869_v47, %v4707_v7 }
 0x717   : > { %v12016_v38 = vpop.permute.xlu1 %5836 }
 0x718   : > { %14866 = vst [vmem:[#allocation68_spill] sm:$0xff] %v12016_v38  ;;  %v12018_v35 = vpop.permute.xlu0 %5838 }
 0x719   : > { %14867 = vst [vmem:[#allocation88_spill] sm:$0xff] %v12018_v35  ;;  %5530 = vrot.lane.b32.xlu1 %v12011_v10, %s9622_s23  ;;  %v5257_v35 = vmul.f32 %v14851_v25, %v4707_v7 }
 0x71a   : > { %5144 = vrot.lane.b32.xlu0 %v4516_v1, %s9624_s25 }
 0x71b   : > { %v12023_v52 = vpop.permute.xlu1 %4588 }
 0x71c   : > { %14868 = vst [vmem:[#allocation98_spill] sm:$0xff] %v12023_v52  ;;  %v12026_v4 = vpop.permute.xlu0 %4996  ;;  %v5775_v52 = vmul.f32 %v14835_v9, %v4707_v7 }
 0x71d   : > { %14870 = vst [vmem:[#allocation27_spill] sm:$0xff] %v12026_v4  ;;  %4820 = vrot.lane.b32.xlu1 %v4739_v16, %s9621_s19  ;;  %v12043_v16 = vld [vmem:[#allocation2 + $0x97] sm:$0xff] }
 0x71e   : > { %5338 = vrot.lane.b32.xlu0 %v4708_v0, %s9625_s26  ;;  %14875 = vst [vmem:[#allocation84_spill] sm:$0xff] %v12043_v16 }
 0x71f   : > { %v12030_v45 = vpop.permute.xlu1 %5134 }
 0x720   : > { %14871 = vst [vmem:[#allocation25_spill] sm:$0xff] %v12030_v45  ;;  %v12033_v38 = vpop.permute.xlu0 %5512 }
 0x721   : > { %14872 = vst [vmem:[#allocation47_spill] sm:$0xff] %v12033_v38  ;;  %5336 = vrot.lane.b32.xlu1 %v5257_v35, %s9625_s26  ;;  %v4519_v38 = vld [vmem:[#allocation2 + $0xb0] sm:$0xff]  ;;  %v4932_v35 = vmul.f32 %v10534_v15, %v12043_v16 }
 0x722   : > { %5660 = vrot.lane.b32.xlu0 %v4516_v1, %s9623_s24 }
 0x723   : > { %v12037_v10 = vpop.permute.xlu1 %5650 }
 0x724   : > { %14873 = vst [vmem:[#allocation91_spill] sm:$0xff] %v12037_v10  ;;  %v12040_v20 = vpop.permute.xlu0 %4586  ;;  %v4518_v10 = vld [vmem:[#allocation2 + $0xa8] sm:$0xff] }
 0x725   : > { %14874 = vst [vmem:[#allocation101_spill] sm:$0xff] %v12040_v20  ;;  %5852 = vrot.lane.b32.xlu1 %v5775_v52, %s9627_s28  ;;  %v5450_v52 = vmul.f32 %v10467_v18, %v12043_v16 }
 0x726   : > { %5854 = vrot.lane.b32.xlu0 %v4708_v0, %s9627_s28 }
 0x727   : > { %v12046_v45 = vpop.permute.xlu1 %5002 }
 0x728   : > { %14876 = vst [vmem:[#allocation115_spill] sm:$0xff] %v12046_v45  ;;  %v12048_v4 = vpop.permute.xlu0 %4810 }
 0x729   : > { %14877 = vst [vmem:[#allocation124_spill] sm:$0xff] %v12048_v4  ;;  %4604 = vrot.lane.b32.xlu1 %v4519_v38, %s9620_s18  ;;  %v4710_v4 = vld [vmem:[#allocation2 + $0xa9] sm:$0xff] }
 0x72a   : > { %5012 = vrot.lane.b32.xlu0 %v4932_v35, %s9626_s27 }
 0x72b   : > { %v12054_v1 = vpop.permute.xlu1 %5518 }
 0x72c   : > { %14878 = vst [vmem:[#allocation36_spill] sm:$0xff] %v12054_v1  ;;  %v12056_v7 = vpop.permute.xlu0 %5132 }
 0x72d   : > { %14879 = vst [vmem:[#allocation33_spill] sm:$0xff] %v12056_v7  ;;  %5150 = vrot.lane.b32.xlu1 %v4519_v38, %s9624_s25  ;;  %v12072_v7 = vld [vmem:[#allocation2 + $0xaf] sm:$0xff] }
 0x72e   : > { %5528 = vrot.lane.b32.xlu0 %v5450_v52, %s9622_s23  ;;  %14884 = vst [vmem:[#allocation107_spill] sm:$0xff] %v12072_v7 }
 0x72f   : > { %v12062_v0 = vpop.permute.xlu1 %4808 }
 0x730   : > { %14880 = vst [vmem:[#allocation59_spill] sm:$0xff] %v12062_v0  ;;  %v12064_v9 = vpop.permute.xlu0 %5326 }
 0x731   : > { %14881 = vst [vmem:[#allocation64_spill] sm:$0xff] %v12064_v9  ;;  %5666 = vrot.lane.b32.xlu1 %v4519_v38, %s9623_s24  ;;  %v4709_v38 = vld [vmem:[#allocation2 + $0xa1] sm:$0xff] }
 0x732   : > { %4602 = vrot.lane.b32.xlu0 %v4518_v10, %s9620_s18 }
 0x733   : > { %v12068_v35 = vpop.permute.xlu1 %5324 }
 0x734   : > { %14882 = vst [vmem:[#allocation70_spill] sm:$0xff] %v12068_v35  ;;  %v12070_v1 = vpop.permute.xlu0 %5648 }
 0x735   : > { %14883 = vst [vmem:[#allocation87_spill] sm:$0xff] %v12070_v1  ;;  %5018 = vrot.lane.b32.xlu1 %v12072_v7, %s9626_s27  ;;  %v14888_v1 = vld [vmem:[#allocation80_spill] sm:$0xff] }
 0x736   : > { %4826 = vrot.lane.b32.xlu0 %v4710_v4, %s9621_s19  ;;  %v4741_v45 = vmul.f32 %v14888_v1, %v4709_v38 }
 0x737   : > { %v12077_v52 = vpop.permute.xlu1 %5840 }
 0x738   : > { %14885 = vst [vmem:[#allocation117_spill] sm:$0xff] %v12077_v52  ;;  %v12079_v9 = vpop.permute.xlu0 %5842 }
 0x739   : > { %14886 = vst [vmem:[#allocation19_spill] sm:$0xff] %v12079_v9  ;;  %5534 = vrot.lane.b32.xlu1 %v12072_v7, %s9622_s23  ;;  %v5259_v9 = vmul.f32 %v14869_v47, %v4709_v38 }
 0x73a   : > { %5148 = vrot.lane.b32.xlu0 %v4518_v10, %s9624_s25 }
 0x73b   : > { %v12084_v35 = vpop.permute.xlu1 %4592 }
 0x73c   : > { %14887 = vst [vmem:[#allocation57_spill] sm:$0xff] %v12084_v35  ;;  %v12087_v20 = vpop.permute.xlu0 %5000  ;;  %v5777_v35 = vmul.f32 %v14851_v25, %v4709_v38 }
 0x73d   : > { %14889 = vst [vmem:[#allocation45_spill] sm:$0xff] %v12087_v20  ;;  %4824 = vrot.lane.b32.xlu1 %v4741_v45, %s9621_s19  ;;  %v12104_v45 = vld [vmem:[#allocation2 + $0xa7] sm:$0xff] }
 0x73e   : > { %5342 = vrot.lane.b32.xlu0 %v4710_v4, %s9625_s26  ;;  %14894 = vst [vmem:[#allocation143_spill] sm:$0xff] %v12104_v45 }
 0x73f   : > { %v12091_v0 = vpop.permute.xlu1 %5138 }
 0x740   : > { %14890 = vst [vmem:[#allocation92_spill] sm:$0xff] %v12091_v0  ;;  %v12094_v52 = vpop.permute.xlu0 %5516 }
 0x741   : > { %14891 = vst [vmem:[#allocation120_spill] sm:$0xff] %v12094_v52  ;;  %5340 = vrot.lane.b32.xlu1 %v5259_v9, %s9625_s26  ;;  %v4521_v52 = vld [vmem:[#allocation2 + $0xc0] sm:$0xff]  ;;  %v14897_v9 = vld [vmem:[#allocation74_spill] sm:$0xff] }
 0x742   : > { %5664 = vrot.lane.b32.xlu0 %v4518_v10, %s9623_s24  ;;  %v4934_v10 = vmul.f32 %v14897_v9, %v12104_v45 }
 0x743   : > { %v12098_v7 = vpop.permute.xlu1 %5654 }
 0x744   : > { %14892 = vst [vmem:[#allocation103_spill] sm:$0xff] %v12098_v7  ;;  %v12101_v16 = vpop.permute.xlu0 %4590 }
 0x745   : > { %14893 = vst [vmem:[#allocation134_spill] sm:$0xff] %v12101_v16  ;;  %5856 = vrot.lane.b32.xlu1 %v5777_v35, %s9627_s28  ;;  %v5452_v35 = vmul.f32 %v10534_v15, %v12104_v45 }
 0x746   : > { %5858 = vrot.lane.b32.xlu0 %v4710_v4, %s9627_s28 }
 0x747   : > { %v12107_v0 = vpop.permute.xlu1 %5006 }
 0x748   : > { %14895 = vst [vmem:[#allocation39_spill] sm:$0xff] %v12107_v0  ;;  %v12109_v20 = vpop.permute.xlu0 %4814  ;;  %v4712_v0 = vld [vmem:[#allocation2 + $0xb9] sm:$0xff] }
 0x749   : > { %14896 = vst [vmem:[#allocation29_spill] sm:$0xff] %v12109_v20  ;;  %4608 = vrot.lane.b32.xlu1 %v4521_v52, %s9620_s18  ;;  %v4520_v20 = vld [vmem:[#allocation2 + $0xb8] sm:$0xff] }
 0x74a   : > { %5016 = vrot.lane.b32.xlu0 %v4934_v10, %s9626_s27 }
 0x74b   : > { %v12115_v38 = vpop.permute.xlu1 %5522 }
 0x74c   : > { %14898 = vst [vmem:[#allocation76_spill] sm:$0xff] %v12115_v38  ;;  %v12117_v25 = vpop.permute.xlu0 %5136 }
 0x74d   : > { %14899 = vst [vmem:[#allocation62_spill] sm:$0xff] %v12117_v25  ;;  %5154 = vrot.lane.b32.xlu1 %v4521_v52, %s9624_s25  ;;  %v12133_v25 = vld [vmem:[#allocation2 + $0xbf] sm:$0xff] }
 0x74e   : > { %5532 = vrot.lane.b32.xlu0 %v5452_v35, %s9622_s23  ;;  %14904 = vst [vmem:[#allocation49_spill] sm:$0xff] %v12133_v25 }
 0x74f   : > { %v12123_v4 = vpop.permute.xlu1 %4812 }
 0x750   : > { %14900 = vst [vmem:[#allocation89_spill] sm:$0xff] %v12123_v4  ;;  %v12125_v7 = vpop.permute.xlu0 %5330 }
 0x751   : > { %14901 = vst [vmem:[#allocation106_spill] sm:$0xff] %v12125_v7  ;;  %5670 = vrot.lane.b32.xlu1 %v4521_v52, %s9623_s24  ;;  %v4711_v52 = vld [vmem:[#allocation2 + $0xb1] sm:$0xff] }
 0x752   : > { %4606 = vrot.lane.b32.xlu0 %v4520_v20, %s9620_s18 }
 0x753   : > { %v12129_v10 = vpop.permute.xlu1 %5328 }
 0x754   : > { %14902 = vst [vmem:[#allocation126_spill] sm:$0xff] %v12129_v10  ;;  %v12131_v38 = vpop.permute.xlu0 %5652 }
 0x755   : > { %14903 = vst [vmem:[#allocation136_spill] sm:$0xff] %v12131_v38  ;;  %5022 = vrot.lane.b32.xlu1 %v12133_v25, %s9626_s27  ;;  %v14908_v38 = vld [vmem:[#allocation99_spill] sm:$0xff] }
 0x756   : > { %4830 = vrot.lane.b32.xlu0 %v4712_v0, %s9621_s19  ;;  %v4743_v16 = vmul.f32 %v14908_v38, %v4711_v52 }
 0x757   : > { %v12138_v35 = vpop.permute.xlu1 %5844 }
 0x758   : > { %14905 = vst [vmem:[#allocation78_spill] sm:$0xff] %v12138_v35  ;;  %v12140_v7 = vpop.permute.xlu0 %5846 }
 0x759   : > { %14906 = vst [vmem:[#allocation83_spill] sm:$0xff] %v12140_v7  ;;  %5538 = vrot.lane.b32.xlu1 %v12133_v25, %s9622_s23  ;;  %v5261_v7 = vmul.f32 %v14888_v1, %v4711_v52 }
 0x75a   : > { %5152 = vrot.lane.b32.xlu0 %v4520_v20, %s9624_s25 }
 0x75b   : > { %v12145_v10 = vpop.permute.xlu1 %4596 }
 0x75c   : > { %14907 = vst [vmem:[#allocation95_spill] sm:$0xff] %v12145_v10  ;;  %v12148_v4 = vpop.permute.xlu0 %5004  ;;  %v5779_v10 = vmul.f32 %v14869_v47, %v4711_v52 }
 0x75d   : > { %14909 = vst [vmem:[#allocation139_spill] sm:$0xff] %v12148_v4  ;;  %4828 = vrot.lane.b32.xlu1 %v4743_v16, %s9621_s19  ;;  %v12165_v16 = vld [vmem:[#allocation2 + $0xb7] sm:$0xff] }
 0x75e   : > { %5346 = vrot.lane.b32.xlu0 %v4712_v0, %s9625_s26  ;;  %14914 = vst [vmem:[#allocation66_spill] sm:$0xff] %v12165_v16 }
 0x75f   : > { %v12152_v45 = vpop.permute.xlu1 %5142 }
 0x760   : > { %14910 = vst [vmem:[#allocation122_spill] sm:$0xff] %v12152_v45  ;;  %v12155_v35 = vpop.permute.xlu0 %5520 }
 0x761   : > { %14911 = vst [vmem:[#allocation154_spill] sm:$0xff] %v12155_v35  ;;  %5344 = vrot.lane.b32.xlu1 %v5261_v7, %s9625_s26  ;;  %v4523_v35 = vld [vmem:[#allocation2 + $0xd0] sm:$0xff]  ;;  %v14917_v7 = vld [vmem:[#allocation93_spill] sm:$0xff] }
 0x762   : > { %5668 = vrot.lane.b32.xlu0 %v4520_v20, %s9623_s24  ;;  %v4936_v20 = vmul.f32 %v14917_v7, %v12165_v16 }
 0x763   : > { %v12159_v25 = vpop.permute.xlu1 %5658 }
 0x764   : > { %14912 = vst [vmem:[#allocation163_spill] sm:$0xff] %v12159_v25  ;;  %v12162_v48 = vpop.permute.xlu0 %4594 }
 0x765   : > { %14913 = vst [vmem:[#allocation53_spill] sm:$0xff] %v12162_v48  ;;  %5860 = vrot.lane.b32.xlu1 %v5779_v10, %s9627_s28  ;;  %v5454_v10 = vmul.f32 %v14897_v9, %v12165_v16 }
 0x766   : > { %5862 = vrot.lane.b32.xlu0 %v4712_v0, %s9627_s28 }
 0x767   : > { %v12168_v45 = vpop.permute.xlu1 %5010 }
 0x768   : > { %14915 = vst [vmem:[#allocation111_spill] sm:$0xff] %v12168_v45  ;;  %v12170_v4 = vpop.permute.xlu0 %4818  ;;  %v4714_v45 = vld [vmem:[#allocation2 + $0xc9] sm:$0xff] }
 0x769   : > { %14916 = vst [vmem:[#allocation108_spill] sm:$0xff] %v12170_v4  ;;  %4612 = vrot.lane.b32.xlu1 %v4523_v35, %s9620_s18  ;;  %v4522_v4 = vld [vmem:[#allocation2 + $0xc8] sm:$0xff] }
 0x76a   : > { %5020 = vrot.lane.b32.xlu0 %v4936_v20, %s9626_s27 }
 0x76b   : > { %v12176_v52 = vpop.permute.xlu1 %5526 }
 0x76c   : > { %14918 = vst [vmem:[#allocation125_spill] sm:$0xff] %v12176_v52  ;;  %v12178_v47 = vpop.permute.xlu0 %5140 }
 0x76d   : > { %14919 = vst [vmem:[#allocation145_spill] sm:$0xff] %v12178_v47  ;;  %5158 = vrot.lane.b32.xlu1 %v4523_v35, %s9624_s25  ;;  %v12194_v47 = vld [vmem:[#allocation2 + $0xcf] sm:$0xff] }
 0x76e   : > { %5536 = vrot.lane.b32.xlu0 %v5454_v10, %s9622_s23  ;;  %14924 = vst [vmem:[#allocation85_spill] sm:$0xff] %v12194_v47 }
 0x76f   : > { %v12184_v0 = vpop.permute.xlu1 %4816 }
 0x770   : > { %14920 = vst [vmem:[#allocation156_spill] sm:$0xff] %v12184_v0  ;;  %v12186_v25 = vpop.permute.xlu0 %5334 }
 0x771   : > { %14921 = vst [vmem:[#allocation41_spill] sm:$0xff] %v12186_v25  ;;  %5674 = vrot.lane.b32.xlu1 %v4523_v35, %s9623_s24  ;;  %v4713_v35 = vld [vmem:[#allocation2 + $0xc1] sm:$0xff] }
 0x772   : > { %4610 = vrot.lane.b32.xlu0 %v4522_v4, %s9620_s18 }
 0x773   : > { %v12190_v20 = vpop.permute.xlu1 %5332 }
 0x774   : > { %14922 = vst [vmem:[#allocation97_spill] sm:$0xff] %v12190_v20  ;;  %v12192_v52 = vpop.permute.xlu0 %5656 }
 0x775   : > { %14923 = vst [vmem:[#allocation81_spill] sm:$0xff] %v12192_v52  ;;  %5026 = vrot.lane.b32.xlu1 %v12194_v47, %s9626_s27  ;;  %v14928_v52 = vld [vmem:[#allocation118_spill] sm:$0xff] }
 0x776   : > { %4834 = vrot.lane.b32.xlu0 %v4714_v45, %s9621_s19  ;;  %v4745_v48 = vmul.f32 %v14928_v52, %v4713_v35 }
 0x777   : > { %v12199_v10 = vpop.permute.xlu1 %5848 }
 0x778   : > { %14925 = vst [vmem:[#allocation159_spill] sm:$0xff] %v12199_v10  ;;  %v12201_v25 = vpop.permute.xlu0 %5850 }
 0x779   : > { %14926 = vst [vmem:[#allocation141_spill] sm:$0xff] %v12201_v25  ;;  %5542 = vrot.lane.b32.xlu1 %v12194_v47, %s9622_s23  ;;  %v5263_v25 = vmul.f32 %v14908_v38, %v4713_v35 }
 0x77a   : > { %5156 = vrot.lane.b32.xlu0 %v4522_v4, %s9624_s25 }
 0x77b   : > { %v12206_v20 = vpop.permute.xlu1 %4600 }
 0x77c   : > { %14927 = vst [vmem:[#allocation71_spill] sm:$0xff] %v12206_v20  ;;  %v12209_v0 = vpop.permute.xlu0 %5008  ;;  %v5781_v20 = vmul.f32 %v14888_v1, %v4713_v35 }
 0x77d   : > { %14929 = vst [vmem:[#allocation56_spill] sm:$0xff] %v12209_v0  ;;  %4832 = vrot.lane.b32.xlu1 %v4745_v48, %s9621_s19  ;;  %v12226_v48 = vld [vmem:[#allocation2 + $0xc7] sm:$0xff] }
 0x77e   : > { %5350 = vrot.lane.b32.xlu0 %v4714_v45, %s9625_s26  ;;  %14934 = vst [vmem:[#allocation144_spill] sm:$0xff] %v12226_v48 }
 0x77f   : > { %v12213_v16 = vpop.permute.xlu1 %5146 }
 0x780   : > { %14930 = vst [vmem:[#allocation102_spill] sm:$0xff] %v12213_v16  ;;  %v12216_v10 = vpop.permute.xlu0 %5524 }
 0x781   : > { %14931 = vst [vmem:[#allocation130_spill] sm:$0xff] %v12216_v10  ;;  %5348 = vrot.lane.b32.xlu1 %v5263_v25, %s9625_s26  ;;  %v4525_v10 = vld [vmem:[#allocation2 + $0xe0] sm:$0xff]  ;;  %v14937_v25 = vld [vmem:[#allocation112_spill] sm:$0xff] }
 0x782   : > { %5672 = vrot.lane.b32.xlu0 %v4522_v4, %s9623_s24  ;;  %v4938_v4 = vmul.f32 %v14937_v25, %v12226_v48 }
 0x783   : > { %v12220_v47 = vpop.permute.xlu1 %5662 }
 0x784   : > { %14932 = vst [vmem:[#allocation114_spill] sm:$0xff] %v12220_v47  ;;  %v12223_v9 = vpop.permute.xlu0 %4598 }
 0x785   : > { %14933 = vst [vmem:[#allocation127_spill] sm:$0xff] %v12223_v9  ;;  %5864 = vrot.lane.b32.xlu1 %v5781_v20, %s9627_s28  ;;  %v5456_v20 = vmul.f32 %v14917_v7, %v12226_v48  ;;  %v4716_v48 = vld [vmem:[#allocation2 + $0xd9] sm:$0xff] }
 0x786   : > { %5866 = vrot.lane.b32.xlu0 %v4714_v45, %s9627_s28 }
 0x787   : > { %v12229_v16 = vpop.permute.xlu1 %5014 }
 0x788   : > { %14935 = vst [vmem:[#allocation165_spill] sm:$0xff] %v12229_v16  ;;  %v12231_v0 = vpop.permute.xlu0 %4822 }
 0x789   : > { %14936 = vst [vmem:[#allocation116_spill] sm:$0xff] %v12231_v0  ;;  %4616 = vrot.lane.b32.xlu1 %v4525_v10, %s9620_s18  ;;  %v4524_v0 = vld [vmem:[#allocation2 + $0xd8] sm:$0xff] }
 0x78a   : > { %5024 = vrot.lane.b32.xlu0 %v4938_v4, %s9626_s27 }
 0x78b   : > { %v12237_v35 = vpop.permute.xlu1 %5530 }
 0x78c   : > { %14938 = vst [vmem:[#allocation110_spill] sm:$0xff] %v12237_v35  ;;  %v12239_v1 = vpop.permute.xlu0 %5144 }
 0x78d   : > { %14939 = vst [vmem:[#allocation90_spill] sm:$0xff] %v12239_v1  ;;  %5162 = vrot.lane.b32.xlu1 %v4525_v10, %s9624_s25  ;;  %v12255_v1 = vld [vmem:[#allocation2 + $0xdf] sm:$0xff] }
 0x78e   : > { %5540 = vrot.lane.b32.xlu0 %v5456_v20, %s9622_s23  ;;  %14944 = vst [vmem:[#allocation100_spill] sm:$0xff] %v12255_v1 }
 0x78f   : > { %v12245_v45 = vpop.permute.xlu1 %4820 }
 0x790   : > { %14940 = vst [vmem:[#allocation75_spill] sm:$0xff] %v12245_v45  ;;  %v12247_v47 = vpop.permute.xlu0 %5338 }
 0x791   : > { %14941 = vst [vmem:[#allocation179_spill] sm:$0xff] %v12247_v47  ;;  %5678 = vrot.lane.b32.xlu1 %v4525_v10, %s9623_s24  ;;  %v4715_v10 = vld [vmem:[#allocation2 + $0xd1] sm:$0xff] }
 0x792   : > { %4614 = vrot.lane.b32.xlu0 %v4524_v0, %s9620_s18 }
 0x793   : > { %v12251_v4 = vpop.permute.xlu1 %5336 }
 0x794   : > { %14942 = vst [vmem:[#allocation161_spill] sm:$0xff] %v12251_v4  ;;  %v12253_v35 = vpop.permute.xlu0 %5660 }
 0x795   : > { %14943 = vst [vmem:[#allocation121_spill] sm:$0xff] %v12253_v35  ;;  %5030 = vrot.lane.b32.xlu1 %v12255_v1, %s9626_s27  ;;  %v14948_v35 = vld [vmem:[#allocation137_spill] sm:$0xff] }
 0x796   : > { %4838 = vrot.lane.b32.xlu0 %v4716_v48, %s9621_s19  ;;  %v4747_v16 = vmul.f32 %v14948_v35, %v4715_v10 }
 0x797   : > { %v12260_v20 = vpop.permute.xlu1 %5852 }
 0x798   : > { %14945 = vst [vmem:[#allocation150_spill] sm:$0xff] %v12260_v20  ;;  %v12262_v47 = vpop.permute.xlu0 %5854 }
 0x799   : > { %14946 = vst [vmem:[#allocation174_spill] sm:$0xff] %v12262_v47  ;;  %5546 = vrot.lane.b32.xlu1 %v12255_v1, %s9622_s23  ;;  %v5265_v47 = vmul.f32 %v14928_v52, %v4715_v10 }
 0x79a   : > { %5160 = vrot.lane.b32.xlu0 %v4524_v0, %s9624_s25 }
 0x79b   : > { %v12267_v4 = vpop.permute.xlu1 %4604 }
 0x79c   : > { %14947 = vst [vmem:[#allocation104_spill] sm:$0xff] %v12267_v4  ;;  %v12270_v9 = vpop.permute.xlu0 %5012  ;;  %v5783_v4 = vmul.f32 %v14908_v38, %v4715_v10 }
 0x79d   : > { %14949 = vst [vmem:[#allocation146_spill] sm:$0xff] %v12270_v9  ;;  %4836 = vrot.lane.b32.xlu1 %v4747_v16, %s9621_s19  ;;  %v12287_v16 = vld [vmem:[#allocation2 + $0xd7] sm:$0xff] }
 0x79e   : > { %5354 = vrot.lane.b32.xlu0 %v4716_v48, %s9625_s26  ;;  %14954 = vst [vmem:[#allocation109_spill] sm:$0xff] %v12287_v16 }
 0x79f   : > { %v12274_v45 = vpop.permute.xlu1 %5150 }
 0x7a0   : > { %14950 = vst [vmem:[#allocation164_spill] sm:$0xff] %v12274_v45  ;;  %v12277_v20 = vpop.permute.xlu0 %5528 }
 0x7a1   : > { %14951 = vst [vmem:[#allocation133_spill] sm:$0xff] %v12277_v20  ;;  %5352 = vrot.lane.b32.xlu1 %v5265_v47, %s9625_s26  ;;  %v4527_v20 = vld [vmem:[#allocation2 + $0xf0] sm:$0xff] }
 0x7a2   : > { %5676 = vrot.lane.b32.xlu0 %v4524_v0, %s9623_s24  ;;  %v14957_v47 = vld [vmem:[#allocation131_spill] sm:$0xff] }
 0x7a3   : > { %v12281_v1 = vpop.permute.xlu1 %5666  ;;  %v4940_v0 = vmul.f32 %v14957_v47, %v12287_v16 }
 0x7a4   : > { %14952 = vst [vmem:[#allocation135_spill] sm:$0xff] %v12281_v1  ;;  %v12284_v7 = vpop.permute.xlu0 %4602 }
 0x7a5   : > { %14953 = vst [vmem:[#allocation176_spill] sm:$0xff] %v12284_v7  ;;  %5868 = vrot.lane.b32.xlu1 %v5783_v4, %s9627_s28  ;;  %v5458_v4 = vmul.f32 %v14937_v25, %v12287_v16  ;;  %v4718_v16 = vld [vmem:[#allocation2 + $0xe9] sm:$0xff] }
 0x7a6   : > { %5870 = vrot.lane.b32.xlu0 %v4716_v48, %s9627_s28 }
 0x7a7   : > { %v12290_v45 = vpop.permute.xlu1 %5018 }
 0x7a8   : > { %14955 = vst [vmem:[#allocation181_spill] sm:$0xff] %v12290_v45  ;;  %v12292_v9 = vpop.permute.xlu0 %4826 }
 0x7a9   : > { %14956 = vst [vmem:[#allocation140_spill] sm:$0xff] %v12292_v9  ;;  %4620 = vrot.lane.b32.xlu1 %v4527_v20, %s9620_s18  ;;  %v4526_v9 = vld [vmem:[#allocation2 + $0xe8] sm:$0xff] }
 0x7aa   : > { %5028 = vrot.lane.b32.xlu0 %v4940_v0, %s9626_s27 }
 0x7ab   : > { %v12298_v10 = vpop.permute.xlu1 %5534 }
 0x7ac   : > { %14958 = vst [vmem:[#allocation119_spill] sm:$0xff] %v12298_v10  ;;  %v12300_v38 = vpop.permute.xlu0 %5148 }
 0x7ad   : > { %14959 = vst [vmem:[#allocation170_spill] sm:$0xff] %v12300_v38  ;;  %5166 = vrot.lane.b32.xlu1 %v4527_v20, %s9624_s25  ;;  %v12316_v38 = vld [vmem:[#allocation2 + $0xef] sm:$0xff] }
 0x7ae   : > { %5544 = vrot.lane.b32.xlu0 %v5458_v4, %s9622_s23  ;;  %14964 = vst [vmem:[#allocation153_spill] sm:$0xff] %v12316_v38 }
 0x7af   : > { %v12306_v48 = vpop.permute.xlu1 %4824 }
 0x7b0   : > { %14960 = vst [vmem:[#allocation94_spill] sm:$0xff] %v12306_v48  ;;  %v12308_v1 = vpop.permute.xlu0 %5342 }
 0x7b1   : > { %14961 = vst [vmem:[#allocation166_spill] sm:$0xff] %v12308_v1  ;;  %5682 = vrot.lane.b32.xlu1 %v4527_v20, %s9623_s24  ;;  %v4717_v20 = vld [vmem:[#allocation2 + $0xe1] sm:$0xff] }
 0x7b2   : > { %4618 = vrot.lane.b32.xlu0 %v4526_v9, %s9620_s18 }
 0x7b3   : > { %v12312_v0 = vpop.permute.xlu1 %5340 }
 0x7b4   : > { %14962 = vst [vmem:[#allocation183_spill] sm:$0xff] %v12312_v0  ;;  %v12314_v10 = vpop.permute.xlu0 %5664 }
 0x7b5   : > { %14963 = vst [vmem:[#allocation123_spill] sm:$0xff] %v12314_v10  ;;  %5034 = vrot.lane.b32.xlu1 %v12316_v38, %s9626_s27  ;;  %v14968_v10 = vld [vmem:[#allocation157_spill] sm:$0xff] }
 0x7b6   : > { %4842 = vrot.lane.b32.xlu0 %v4718_v16, %s9621_s19  ;;  %v4749_v45 = vmul.f32 %v14968_v10, %v4717_v20 }
 0x7b7   : > { %v12321_v4 = vpop.permute.xlu1 %5856 }
 0x7b8   : > { %14965 = vst [vmem:[#allocation155_spill] sm:$0xff] %v12321_v4  ;;  %v12323_v1 = vpop.permute.xlu0 %5858 }
 0x7b9   : > { %14966 = vst [vmem:[#allocation128_spill] sm:$0xff] %v12323_v1  ;;  %5550 = vrot.lane.b32.xlu1 %v12316_v38, %s9622_s23  ;;  %v5267_v1 = vmul.f32 %v14948_v35, %v4717_v20 }
 0x7ba   : > { %5164 = vrot.lane.b32.xlu0 %v4526_v9, %s9624_s25 }
 0x7bb   : > { %v12328_v0 = vpop.permute.xlu1 %4608 }
 0x7bc   : > { %14967 = vst [vmem:[#allocation160_spill] sm:$0xff] %v12328_v0  ;;  %v12331_v7 = vpop.permute.xlu0 %5016  ;;  %v5785_v0 = vmul.f32 %v14928_v52, %v4717_v20 }
 0x7bd   : > { %14969 = vst [vmem:[#allocation138_spill] sm:$0xff] %v12331_v7  ;;  %4840 = vrot.lane.b32.xlu1 %v4749_v45, %s9621_s19  ;;  %v12348_v45 = vld [vmem:[#allocation2 + $0xe7] sm:$0xff] }
 0x7be   : > { %5358 = vrot.lane.b32.xlu0 %v4718_v16, %s9625_s26  ;;  %14974 = vst [vmem:[#allocation180_spill] sm:$0xff] %v12348_v45 }
 0x7bf   : > { %v12335_v48 = vpop.permute.xlu1 %5154 }
 0x7c0   : > { %14970 = vst [vmem:[#allocation113_spill] sm:$0xff] %v12335_v48  ;;  %v12338_v4 = vpop.permute.xlu0 %5532 }
 0x7c1   : > { %14971 = vst [vmem:[#allocation142_spill] sm:$0xff] %v12338_v4  ;;  %5356 = vrot.lane.b32.xlu1 %v5267_v1, %s9625_s26  ;;  %v4529_v4 = vld [vmem:[#allocation2 + $0x100] sm:$0xff]  ;;  %v4942_v1 = vmul.f32 %v14806_v27, %v12348_v45 }
 0x7c2   : > { %5680 = vrot.lane.b32.xlu0 %v4526_v9, %s9623_s24 }
 0x7c3   : > { %v12342_v38 = vpop.permute.xlu1 %5670 }
 0x7c4   : > { %14972 = vst [vmem:[#allocation173_spill] sm:$0xff] %v12342_v38  ;;  %v12345_v25 = vpop.permute.xlu0 %4606  ;;  %v4528_v38 = vld [vmem:[#allocation2 + $0xf8] sm:$0xff] }
 0x7c5   : > { %14973 = vst [vmem:[#allocation147_spill] sm:$0xff] %v12345_v25  ;;  %5872 = vrot.lane.b32.xlu1 %v5785_v0, %s9627_s28  ;;  %v5460_v0 = vmul.f32 %v14957_v47, %v12348_v45  ;;  %v8934_v45 = vld [vmem:[%s14354_s3 + $0x28] sm:$0xff] }
 0x7c6   : > { %5874 = vrot.lane.b32.xlu0 %v4718_v16, %s9627_s28 }
 0x7c7   : > { %v12351_v48 = vpop.permute.xlu1 %5022 }
 0x7c8   : > { %14975 = vst [vmem:[#allocation158_spill] sm:$0xff] %v12351_v48  ;;  %v12353_v7 = vpop.permute.xlu0 %4830  ;;  %v4719_v48 = vld [vmem:[#allocation2 + $0xf1] sm:$0xff] }
 0x7c9   : > { %14976 = vst [vmem:[#allocation132_spill] sm:$0xff] %v12353_v7  ;;  %4624 = vrot.lane.b32.xlu1 %v4529_v4, %s9620_s18 }
 0x7ca   : > { %5032 = vrot.lane.b32.xlu0 %v4942_v1, %s9626_s27  ;;  %v8933_v1 = vld [vmem:[%s14354_s3 + $0x20] sm:$0xff] }
 0x7cb   : > { %v12359_v9 = vpop.permute.xlu1 %5538 }
 0x7cc   : > { %14977 = vst [vmem:[#allocation162_spill] sm:$0xff] %v12359_v9  ;;  %v12361_v20 = vpop.permute.xlu0 %5152 }
 0x7cd   : > { %14978 = vst [vmem:[#allocation167_spill] sm:$0xff] %v12361_v20  ;;  %5170 = vrot.lane.b32.xlu1 %v4529_v4, %s9624_s25  ;;  %v12383_v20 = vld [vmem:[#allocation2 + $0xff] sm:$0xff] }
 0x7ce   : > { %5548 = vrot.lane.b32.xlu0 %v5460_v0, %s9622_s23  ;;  %v9539_v0 = vpack.c.bf16 %v8934_v45, %v8933_v1  ;;  %14982 = vst [vmem:[#allocation172_spill] sm:$0xff] %v12383_v20  ;;  %v14986_v1 = vld [vmem:[#allocation177_spill] sm:$0xff] }
 0x7cf   : > { %v12367_v16 = vpop.permute.xlu1 %4828 }
 0x7d0   : > { %v12369_v52 = vpop.permute.xlu0 %5346  ;;  %9540 = vmatprep.subr.bf16.mxu0 %v9539_v0 }
 0x7d1   : > { %14979 = vst [vmem:[#allocation178_spill] sm:$0xff] %v12369_v52  ;;  %5686 = vrot.lane.b32.xlu1 %v4529_v4, %s9623_s24  ;;  %v4720_v4 = vld [vmem:[#allocation2 + $0xf9] sm:$0xff]  ;;  %9542 = vmatpush3.bf16.msra.mxu0 %v9539_v0 }
 0x7d2   : > { %4622 = vrot.lane.b32.xlu0 %v4528_v38, %s9620_s18 }
 0x7d3   : > { %v12379_v47 = vpop.permute.xlu1 %5344 }
 0x7d4   : > { %14980 = vst [vmem:[#allocation152_spill] sm:$0xff] %v12379_v47  ;;  %v12381_v9 = vpop.permute.xlu0 %5668 }
 0x7d5   : > { %14981 = vst [vmem:[#allocation182_spill] sm:$0xff] %v12381_v9  ;;  %5038 = vrot.lane.b32.xlu1 %v12383_v20, %s9626_s27  ;;  %v4751_v9 = vmul.f32 %v14986_v1, %v4719_v48 }
 0x7d6   : > { %4846 = vrot.lane.b32.xlu0 %v4720_v4, %s9621_s19 }
 0x7d7   : > { %v12388_v52 = vpop.permute.xlu1 %5860 }
 0x7d8   : > { %14983 = vst [vmem:[#allocation175_spill] sm:$0xff] %v12388_v52  ;;  %v12390_v7 = vpop.permute.xlu0 %5862 }
 0x7d9   : > { %14984 = vst [vmem:[#allocation129_spill] sm:$0xff] %v12390_v7  ;;  %5554 = vrot.lane.b32.xlu1 %v12383_v20, %s9622_s23  ;;  %v5269_v7 = vmul.f32 %v14968_v10, %v4719_v48 }
 0x7da   : > { %5168 = vrot.lane.b32.xlu0 %v4528_v38, %s9624_s25 }
 0x7db   : > { %v12395_v45 = vpop.permute.xlu1 %4612 }
 0x7dc   : > { %14985 = vst [vmem:[#allocation149_spill] sm:$0xff] %v12395_v45  ;;  %v12398_v47 = vpop.permute.xlu0 %5020  ;;  %v5787_v45 = vmul.f32 %v14948_v35, %v4719_v48  ;;  %v4402_v48 = vld [vmem:[#allocation2 + $0x7] sm:$0xff] }
 0x7dd   : > { %14987 = vst [vmem:[#allocation169_spill] sm:$0xff] %v12398_v47  ;;  %4844 = vrot.lane.b32.xlu1 %v4751_v9, %s9621_s19  ;;  %v12415_v9 = vld [vmem:[#allocation2 + $0xf7] sm:$0xff]  ;;  %v4434_v35 = vmul.f32 %v14815_v23, %v4402_v48  ;;  %v5240_v48 = vld [vmem:[#allocation2 + $0x109] sm:$0xff] }
 0x7de   : > { %5362 = vrot.lane.b32.xlu0 %v4720_v4, %s9625_s26  ;;  %14992 = vst [vmem:[#allocation10_spill] sm:$0xff] %v12415_v9 }
 0x7df   : > { %v12402_v0 = vpop.permute.xlu1 %5158 }
 0x7e0   : > { %14988 = vst [vmem:[#allocation148_spill] sm:$0xff] %v12402_v0  ;;  %v12405_v52 = vpop.permute.xlu0 %5536 }
 0x7e1   : > { %14989 = vst [vmem:[#allocation11_spill] sm:$0xff] %v12405_v52  ;;  %5360 = vrot.lane.b32.xlu1 %v5269_v7, %s9625_s26  ;;  %v5109_v52 = vld [vmem:[#allocation2 + $0x110] sm:$0xff] }
 0x7e2   : > { %5684 = vrot.lane.b32.xlu0 %v4528_v38, %s9623_s24  ;;  %v4944_v38 = vmul.f32 %v10941_v8, %v12415_v9 }
 0x7e3   : > { %v12409_v20 = vpop.permute.xlu1 %5674 }
 0x7e4   : > { %14990 = vst [vmem:[#allocation168_spill] sm:$0xff] %v12409_v20  ;;  %v12412_v25 = vpop.permute.xlu0 %4610 }
 0x7e5   : > { %14991 = vst [vmem:[#allocation8_spill] sm:$0xff] %v12412_v25  ;;  %5876 = vrot.lane.b32.xlu1 %v5787_v45, %s9627_s28  ;;  %v4915_v25 = vld [vmem:[#allocation2 + $0x10f] sm:$0xff] }
 0x7e6   : > { %5878 = vrot.lane.b32.xlu0 %v4720_v4, %s9627_s28  ;;  %v5462_v4 = vmul.f32 %v14806_v27, %v12415_v9 }
 0x7e7   : > { %v12418_v0 = vpop.permute.xlu1 %5026 }
 0x7e8   : > { %14993 = vst [vmem:[#allocation5_spill] sm:$0xff] %v12418_v0  ;;  %v12420_v47 = vpop.permute.xlu0 %4834 }
 0x7e9   : > { %14994 = vst [vmem:[#allocation185_spill] sm:$0xff] %v12420_v47  ;;  %5174 = vrot.lane.b32.xlu1 %v5109_v52, %s9624_s25 }
 0x7ea   : > { %5036 = vrot.lane.b32.xlu0 %v4944_v38, %s9626_s27  ;;  %v5108_v38 = vld [vmem:[#allocation2 + $0x108] sm:$0xff] }
 0x7eb   : > { %v12426_v7 = vpop.permute.xlu1 %5542 }
 0x7ec   : > { %14995 = vst [vmem:[#allocation186_spill] sm:$0xff] %v12426_v7  ;;  %v12428_v45 = vpop.permute.xlu0 %5156  ;;  %v4658_v7 = vadd.f32 %v11745_v24, %v4434_v35 }
 0x7ed   : > { %14996 = vst [vmem:[#allocation187_spill] sm:$0xff] %v12428_v45  ;;  %5690 = vrot.lane.b32.xlu1 %v5109_v52, %s9623_s24  ;;  %v5241_v52 = vld [vmem:[#allocation2 + $0x111] sm:$0xff] }
 0x7ee   : > { %5552 = vrot.lane.b32.xlu0 %v5462_v4, %s9622_s23  ;;  %v4403_v4 = vld [vmem:[#allocation2 + $0xf] sm:$0xff]  ;;  %v4882_v23 = vadd.f32 %v11755_v26, %v4658_v7  ;;  %v5791_v26 = vmul.f32 %v14986_v1, %v5241_v52  ;;  %v9587_v7 = vld [vmem:[#allocation2 + $0x17] sm:$0xff] }
 0x7ef   : > { %v12435_v20 = vpop.permute.xlu1 %4832 }
 0x7f0   : > { %14997 = vst [vmem:[#allocation188_spill] sm:$0xff] %v12435_v20  ;;  %v12437_v47 = vpop.permute.xlu0 %5350  ;;  %v4659_v20 = vadd.f32 %v11742_v46, %v4403_v4  ;;  %v5076_v35 = vadd.f32 %v11801_v3, %v4882_v23  ;;  %v4721_v46 = vld [vmem:[#allocation2 + $0x101] sm:$0xff] }
 0x7f1   : > { %14998 = vst [vmem:[#allocation189_spill] sm:$0xff] %v12437_v47  ;;  %5042 = vrot.lane.b32.xlu1 %v4915_v25, %s9626_s27  ;;  %v15002_v47 = vld [vmem:[#allocation184_spill] sm:$0xff] }
 0x7f2   : > { %5172 = vrot.lane.b32.xlu0 %v5108_v38, %s9624_s25  ;;  %v5273_v0 = vmul.f32 %v15002_v47, %v5241_v52  ;;  %v9588_v4 = vld [vmem:[#allocation2 + $0x1f] sm:$0xff]  ;;  %v5208_v23 = vadd.f32 %v11787_v61, %v5076_v35 }
 0x7f3   : > { %v12442_v45 = vpop.permute.xlu1 %5348 }
 0x7f4   : > { %14999 = vst [vmem:[#allocation190_spill] sm:$0xff] %v12442_v45  ;;  %v12444_v9 = vpop.permute.xlu0 %5672 }
 0x7f5   : > { %15000 = vst [vmem:[#allocation191_spill] sm:$0xff] %v12444_v9  ;;  %5558 = vrot.lane.b32.xlu1 %v4915_v25, %s9622_s23  ;;  %v4883_v9 = vadd.f32 %v11791_v42, %v4659_v20  ;;  %v5434_v42 = vld [vmem:[#allocation2 + $0x117] sm:$0xff] }
 0x7f6   : > { %5366 = vrot.lane.b32.xlu0 %v5240_v48, %s9625_s26 }
 0x7f7   : > { %v12449_v27 = vpop.permute.xlu1 %5864  ;;  %v5077_v20 = vadd.f32 %v11785_v32, %v4883_v9  ;;  %v5402_v9 = vadd.f32 %v11794_v37, %v5208_v23 }
 0x7f8   : > { %15001 = vst [vmem:[#allocation192_spill] sm:$0xff] %v12449_v27  ;;  %v12453_v24 = vpop.permute.xlu0 %5866  ;;  %v4436_v27 = vmul.f32 %v9587_v7, %v14817_v43 }
 0x7f9   : > { %15003 = vst [vmem:[#allocation193_spill] sm:$0xff] %v12453_v24  ;;  %5368 = vrot.lane.b32.xlu1 %v5273_v0, %s9625_s26  ;;  %v4661_v24 = vadd.f32 %v9588_v4, %v11773_v62  ;;  %v9589_v0 = vld [vmem:[#allocation2 + $0x27] sm:$0xff]  ;;  %v4753_v62 = vmul.f32 %v15002_v47, %v4721_v46 }
 0x7fa   : > { %5688 = vrot.lane.b32.xlu0 %v5108_v38, %s9623_s24  ;;  %v4660_v3 = vadd.f32 %v11775_v36, %v4436_v27  ;;  %v4438_v38 = vmul.f32 %v9589_v0, %v10184_v13  ;;  %v9590_v27 = vld [vmem:[#allocation2 + $0x2f] sm:$0xff]  ;;  %v9592_v0 = vld [vmem:[#allocation2 + $0x3f] sm:$0xff] }
 0x7fb   : > { %v12459_v25 = vpop.permute.xlu1 %4616  ;;  %v4885_v52 = vadd.f32 %v11832_v58, %v4661_v24  ;;  %v4663_v36 = vadd.f32 %v9590_v27, %v11798_v41  ;;  %v4914_v58 = vld [vmem:[#allocation2 + $0x107] sm:$0xff]  ;;  %v5596_v41 = vadd.f32 %v11854_v28, %v5402_v9 }
 0x7fc   : > { %v12463_v45 = vpop.permute.xlu0 %5024  ;;  %v4884_v61 = vadd.f32 %v11781_v6, %v4660_v3  ;;  %v4662_v32 = vadd.f32 %v11808_v34, %v4438_v38  ;;  %v5271_v6 = vmul.f32 %v14986_v1, %v4721_v46  ;;  %v9591_v3 = vld [vmem:[#allocation2 + $0x37] sm:$0xff]  ;;  %v9593_v38 = vld [vmem:[#allocation2 + $0x47] sm:$0xff] }
 0x7fd   : > { %5884 = vrot.lane.b32.xlu1 %v5791_v26, %s9627_s28  ;;  %v5466_v26 = vmul.f32 %v11004_v30, %v5434_v42  ;;  %v5079_v42 = vadd.f32 %v11819_v50, %v4885_v52  ;;  %v4887_v34 = vadd.f32 %v11883_v60, %v4663_v36  ;;  %v4442_v28 = vmul.f32 %v9593_v38, %v10276_v11  ;;  %v9594_v60 = vld [vmem:[#allocation2 + $0x57] sm:$0xff] }
 0x7fe   : > { %5882 = vrot.lane.b32.xlu0 %v5240_v48, %s9627_s28  ;;  %v5209_v48 = vadd.f32 %v11779_v53, %v5077_v20  ;;  %v5078_v24 = vadd.f32 %v11847_v54, %v4884_v61  ;;  %v4886_v4 = vadd.f32 %v11814_v39, %v4662_v32  ;;  %v4440_v53 = vmul.f32 %v9591_v3, %v10223_v44  ;;  %v15012_v3 = vld [vmem:[#allocation13_spill] sm:$0xff]  ;;  %v15064_v1 = vld [vmem:[#allocation120_spill] sm:$0xff] }
 0x7ff   : > { %v12473_v7 = vpop.permute.xlu1 %5162  ;;  %v4946_v20 = vmul.f32 %v11004_v30, %v4914_v58  ;;  %v4665_v39 = vadd.f32 %v9592_v0, %v11844_v56  ;;  %v4444_v52 = vmul.f32 %v9594_v60, %v10339_v63  ;;  %v12508_v61 = vmul.f32 %v10402_v55, %v11864_v12  ;;  %v5760_v0 = vld [vmem:[#allocation2 + $0x119] sm:$0xff] }
 0x800   : > { %v12477_v35 = vpop.permute.xlu0 %5540  ;;  %v5403_v23 = vadd.f32 %v11838_v21, %v5209_v48  ;;  %v5080_v50 = vadd.f32 %v11904_v14, %v4886_v4  ;;  %v5210_v21 = vadd.f32 %v11821_v57, %v5078_v24  ;;  %v5789_v14 = vmul.f32 %v14968_v10, %v4721_v46  ;;  %v9595_v46 = vld [vmem:[#allocation2 + $0x4f] sm:$0xff]  ;;  %v15005_v48 = vld [vmem:[#allocation24_spill] sm:$0xff] }
 0x801   : > { %4848 = vrot.lane.b32.xlu1 %v4753_v62, %s9621_s19  ;;  %v4664_v62 = vadd.f32 %v11861_v29, %v4440_v53  ;;  %v5728_v56 = vadd.f32 %v11834_v17, %v5596_v41  ;;  %v5211_v27 = vadd.f32 %v11805_v5, %v5079_v42  ;;  %v4889_v36 = vadd.f32 %v11940_v33, %v4665_v39  ;;  %v15008_v42 = vld [vmem:[#allocation74_spill] sm:$0xff]  ;;  %v15010_v41 = vld [vmem:[#allocation15_spill] sm:$0xff] }
 0x802   : > { %5560 = vrot.lane.b32.xlu0 %v5466_v26, %s9622_s23  ;;  %v5081_v26 = vadd.f32 %v11867_v19, %v4887_v34  ;;  %v5597_v57 = vadd.f32 %v11826_v2, %v5403_v23  ;;  %v12522_v12 = vmul.f32 %v10467_v18, %v11921_v51  ;;  %v5464_v17 = vmul.f32 %v10941_v8, %v4914_v58  ;;  %v15007_v58 = vld [vmem:[#allocation84_spill] sm:$0xff]  ;;  %v5761_v39 = vld [vmem:[#allocation2 + $0x121] sm:$0xff] }
 0x803   : > { %v12492_v37 = vpop.permute.xlu1 %5678  ;;  %v4888_v29 = vadd.f32 %v11869_v40, %v4664_v62  ;;  %v5405_v19 = vadd.f32 %v11889_v49, %v5211_v27  ;;  %v4667_v5 = vadd.f32 %v9595_v46, %v11901_v22  ;;  %v5212_v33 = vadd.f32 %v11877_v31, %v5080_v50  ;;  %v15004_v40 = vld [vmem:[#allocation35_spill] sm:$0xff]  ;;  %v15009_v22 = vld [vmem:[#allocation58_spill] sm:$0xff]  ;;  %v15017_v27 = vld [vmem:[#allocation93_spill] sm:$0xff] }
 0x804   : > { %v12496_v54 = vpop.permute.xlu0 %4614  ;;  %v12532_v2 = vmul.f32 %v10534_v15, %v11982_v59  ;;  %v5404_v51 = vadd.f32 %v15004_v40, %v5210_v21  ;;  %v4666_v24 = vadd.f32 %v15005_v48, %v4442_v28  ;;  %v12540_v49 = vmul.f32 %v15008_v42, %v15007_v58  ;;  %v15011_v59 = vld [vmem:[#allocation67_spill] sm:$0xff]  ;;  %v15013_v50 = vld [vmem:[#allocation46_spill] sm:$0xff]  ;;  %v15020_v40 = vld [vmem:[#allocation69_spill] sm:$0xff] }
 0x805   : > { %5364 = vrot.lane.b32.xlu1 %v5271_v6, %s9625_s26  ;;  %v15006_v6 = vld [vmem:[#allocation79_spill] sm:$0xff]  ;;  %v5922_v31 = vadd.f32 %v15009_v22, %v5728_v56  ;;  %v5083_v34 = vadd.f32 %v15010_v41, %v4889_v36  ;;  %v5213_v23 = vadd.f32 %v15011_v59, %v5081_v26  ;;  %v4891_v53 = vadd.f32 %v15012_v3, %v4667_v5  ;;  %v15014_v28 = vld [vmem:[#allocation18_spill] sm:$0xff]  ;;  %v9596_v5 = vld [vmem:[#allocation2 + $0x5f] sm:$0xff] }
 0x806   : > { %5040 = vrot.lane.b32.xlu0 %v4946_v20, %s9626_s27  ;;  %v5082_v4 = vadd.f32 %v15006_v6, %v4888_v29  ;;  %v5729_v38 = vadd.f32 %v15013_v50, %v5597_v57  ;;  %v5598_v60 = vadd.f32 %v15014_v28, %v5404_v51  ;;  %v15015_v21 = vld [vmem:[#allocation63_spill] sm:$0xff]  ;;  %v15018_v36 = vld [vmem:[#allocation54_spill] sm:$0xff]  ;;  %v4669_v48 = vadd.f32 %v9596_v5, %v15020_v40  ;;  %v15021_v6 = vld [vmem:[#allocation72_spill] sm:$0xff] }
 0x807   : > { %v12516_v32 = vpop.permute.xlu1 %5030  ;;  %v4890_v62 = vadd.f32 %v15015_v21, %v4666_v24  ;;  %v5599_v26 = vadd.f32 %v15018_v36, %v5405_v19  ;;  %v5406_v58 = vadd.f32 %v15021_v6, %v5212_v33  ;;  %v15022_v57 = vld [vmem:[#allocation77_spill] sm:$0xff]  ;;  %v15023_v24 = vld [vmem:[#allocation55_spill] sm:$0xff]  ;;  %v5793_v19 = vmul.f32 %v15002_v47, %v5761_v39  ;;  %v15026_v50 = vld [vmem:[#allocation82_spill] sm:$0xff] }
 0x808   : > { %v12524_v9 = vpop.permute.xlu0 %4838  ;;  %v5214_v51 = vadd.f32 %v15022_v57, %v5082_v4  ;;  %v4668_v22 = vadd.f32 %v15023_v24, %v4444_v52  ;;  %v15024_v41 = vld [vmem:[#allocation27_spill] sm:$0xff]  ;;  %v15025_v3 = vld [vmem:[#allocation37_spill] sm:$0xff]  ;;  %v5085_v28 = vadd.f32 %v15026_v50, %v4891_v53  ;;  %v15027_v21 = vld [vmem:[#allocation60_spill] sm:$0xff] }
 0x809   : > { %5880 = vrot.lane.b32.xlu1 %v5789_v14, %s9627_s28  ;;  %v15016_v14 = vld [vmem:[#allocation143_spill] sm:$0xff]  ;;  %v5084_v59 = vadd.f32 %v15024_v41, %v4890_v62  ;;  %v15031_v40 = vld [vmem:[#allocation65_spill] sm:$0xff]  ;;  %v15032_v6 = vld [vmem:[#allocation66_spill] sm:$0xff] }
 0x80a   : > { %5556 = vrot.lane.b32.xlu0 %v5464_v17, %s9622_s23  ;;  %v12554_v29 = vmul.f32 %v15017_v27, %v15016_v14  ;;  %v15019_v17 = vld [vmem:[#allocation17_spill] sm:$0xff]  ;;  %v5215_v14 = vadd.f32 %v15027_v21, %v5083_v34  ;;  %v15028_v33 = vld [vmem:[#allocation59_spill] sm:$0xff]  ;;  %v4892_v62 = vadd.f32 %v15031_v40, %v4668_v22  ;;  %v15035_v24 = vld [vmem:[#allocation20_spill] sm:$0xff] }
 0x80b   : > { %v12547_v20 = vpop.permute.xlu1 %5546  ;;  %v5407_v46 = vadd.f32 %v15019_v17, %v5213_v23  ;;  %v5923_v23 = vadd.f32 %v15025_v3, %v5729_v38  ;;  %v4893_v36 = vadd.f32 %v15028_v33, %v4669_v48  ;;  %v15030_v5 = vld [vmem:[#allocation23_spill] sm:$0xff]  ;;  %v15034_v38 = vld [vmem:[#allocation48_spill] sm:$0xff]  ;;  %v5731_v34 = vadd.f32 %v15035_v24, %v5599_v26  ;;  %v15036_v41 = vld [vmem:[#allocation42_spill] sm:$0xff] }
 0x80c   : > { %v12556_v56 = vpop.permute.xlu0 %5160  ;;  %v5600_v52 = vadd.f32 %v15030_v5, %v5406_v58  ;;  %v5409_v48 = vadd.f32 %v15036_v41, %v5215_v14  ;;  %v9597_v3 = vld [vmem:[#allocation2 + $0x6f] sm:$0xff]  ;;  %v15041_v40 = vld [vmem:[#allocation45_spill] sm:$0xff] }
 0x80d   : > { %5986 = vrot.lane.b32.xlu1 %v5922_v31, %s9629_s11  ;;  %v15029_v31 = vld [vmem:[#allocation26_spill] sm:$0xff]  ;;  %v5601_v53 = vadd.f32 %v15034_v38, %v5407_v46  ;;  %v15043_v38 = vld [vmem:[#allocation115_spill] sm:$0xff] }
 0x80e   : > { %5886 = vrot.lane.b32.xlu0 %v5760_v0, %s9627_s28  ;;  %v5730_v4 = vadd.f32 %v15029_v31, %v5598_v60  ;;  %v15033_v0 = vld [vmem:[#allocation112_spill] sm:$0xff]  ;;  %v15037_v50 = vld [vmem:[#allocation98_spill] sm:$0xff]  ;;  %v15038_v60 = vld [vmem:[#allocation105_spill] sm:$0xff]  ;;  %v5087_v14 = vadd.f32 %v15043_v38, %v4893_v36 }
 0x80f   : > { %v12572_v17 = vpop.permute.xlu1 %4836  ;;  %v12579_v57 = vmul.f32 %v15033_v0, %v15032_v6  ;;  %v4671_v21 = vadd.f32 %v9597_v3, %v15037_v50  ;;  %v5216_v58 = vadd.f32 %v15038_v60, %v5084_v59  ;;  %v15039_v22 = vld [vmem:[#allocation86_spill] sm:$0xff]  ;;  %v15040_v31 = vld [vmem:[#allocation101_spill] sm:$0xff]  ;;  %v5086_v6 = vadd.f32 %v15041_v40, %v4892_v62  ;;  %v15046_v59 = vld [vmem:[#allocation51_spill] sm:$0xff] }
 0x810   : > { %v12581_v39 = vpop.permute.xlu0 %5354  ;;  %v5408_v33 = vadd.f32 %v15039_v22, %v5214_v51  ;;  %v4670_v5 = vadd.f32 %v15040_v31, %v12508_v61  ;;  %v15042_v46 = vld [vmem:[#allocation38_spill] sm:$0xff]  ;;  %v15045_v3 = vld [vmem:[#allocation89_spill] sm:$0xff]  ;;  %v5924_v60 = vadd.f32 %v15046_v59, %v5730_v4  ;;  %v15047_v51 = vld [vmem:[#allocation31_spill] sm:$0xff] }
 0x811   : > { %5988 = vrot.lane.b32.xlu1 %v5923_v23, %s9629_s11  ;;  %v5925_v26 = vadd.f32 %v15042_v46, %v5731_v34  ;;  %v15044_v24 = vld [vmem:[#allocation30_spill] sm:$0xff]  ;;  %v4895_v50 = vadd.f32 %v15045_v3, %v4671_v21  ;;  %v5732_v22 = vadd.f32 %v15047_v51, %v5600_v52  ;;  %v15048_v47 = vld [vmem:[#allocation47_spill] sm:$0xff]  ;;  %v15049_v31 = vld [vmem:[#allocation124_spill] sm:$0xff] }
 0x812   : > { %5888 = vrot.lane.b32.xlu0 %v5793_v19, %s9627_s28  ;;  %v5217_v41 = vadd.f32 %v15044_v24, %v5085_v28  ;;  %v5602_v61 = vadd.f32 %v15048_v47, %v5408_v33  ;;  %v4894_v62 = vadd.f32 %v15049_v31, %v4670_v5  ;;  %v15050_v19 = vld [vmem:[#allocation96_spill] sm:$0xff]  ;;  %v15051_v46 = vld [vmem:[#allocation21_spill] sm:$0xff]  ;;  %v15052_v38 = vld [vmem:[#allocation70_spill] sm:$0xff] }
 0x813   : > { %v12598_v23 = vpop.permute.xlu1 %5352  ;;  %v5603_v34 = vadd.f32 %v15050_v19, %v5409_v48  ;;  %v5733_v36 = vadd.f32 %v15051_v46, %v5601_v53  ;;  %v9598_v24 = vld [vmem:[#allocation2 + $0x7f] sm:$0xff]  ;;  %v15055_v52 = vld [vmem:[#allocation34_spill] sm:$0xff]  ;;  %v15057_v5 = vld [vmem:[#allocation139_spill] sm:$0xff] }
 0x814   : > { %v12604_v40 = vpop.permute.xlu0 %5676  ;;  %v5411_v28 = vadd.f32 %v15052_v38, %v5217_v41  ;;  %v15053_v21 = vld [vmem:[#allocation57_spill] sm:$0xff]  ;;  %v5410_v51 = vadd.f32 %v15055_v52, %v5216_v58  ;;  %v15056_v47 = vld [vmem:[#allocation134_spill] sm:$0xff]  ;;  %v5088_v31 = vadd.f32 %v15057_v5, %v4894_v62  ;;  %v15058_v48 = vld [vmem:[#allocation68_spill] sm:$0xff] }
 0x815   : > { %v4673_v3 = vadd.f32 %v9598_v24, %v15053_v21  ;;  %5992 = vrot.lane.b32.xlu1 %v5925_v26, %s9629_s11  ;;  %v15054_v4 = vld [vmem:[#allocation33_spill] sm:$0xff]  ;;  %v4672_v33 = vadd.f32 %v15056_v47, %v12522_v12  ;;  %v5927_v53 = vadd.f32 %v15058_v48, %v5733_v36  ;;  %v15059_v19 = vld [vmem:[#allocation39_spill] sm:$0xff]  ;;  %v15061_v24 = vld [vmem:[#allocation156_spill] sm:$0xff] }
 0x816   : > { %v5218_v59 = vadd.f32 %v15054_v4, %v5086_v6  ;;  %5990 = vrot.lane.b32.xlu0 %v5924_v60, %s9629_s11  ;;  %v5089_v41 = vadd.f32 %v15059_v19, %v4895_v50  ;;  %v15060_v46 = vld [vmem:[#allocation25_spill] sm:$0xff]  ;;  %v15062_v6 = vld [vmem:[#allocation50_spill] sm:$0xff]  ;;  %v5604_v12 = vadd.f32 %v15064_v1, %v5410_v51  ;;  %v15066_v60 = vld [vmem:[#allocation36_spill] sm:$0xff] }
 0x817   : > { %v5219_v38 = vadd.f32 %v15060_v46, %v5087_v14  ;;  %v4897_v21 = vadd.f32 %v15061_v24, %v4673_v3  ;;  %v12621_v26 = vpop.permute.xlu1 %5868  ;;  %v5926_v4 = vadd.f32 %v15062_v6, %v5732_v22  ;;  %v15063_v58 = vld [vmem:[#allocation73_spill] sm:$0xff]  ;;  %v5605_v36 = vadd.f32 %v15066_v60, %v5411_v28  ;;  %v15067_v48 = vld [vmem:[#allocation43_spill] sm:$0xff]  ;;  %v15068_v19 = vld [vmem:[#allocation126_spill] sm:$0xff] }
 0x818   : > { %v5734_v52 = vadd.f32 %v15063_v58, %v5602_v61  ;;  %v15065_v47 = vld [vmem:[#allocation29_spill] sm:$0xff]  ;;  %v12627_v5 = vpop.permute.xlu0 %5870  ;;  %v5735_v50 = vadd.f32 %v15067_v48, %v5603_v34  ;;  %v15069_v46 = vld [vmem:[#allocation40_spill] sm:$0xff]  ;;  %v15070_v3 = vld [vmem:[#allocation95_spill] sm:$0xff] }
 0x819   : > { %v4896_v62 = vadd.f32 %v15065_v47, %v4672_v33  ;;  %v5413_v14 = vadd.f32 %v15068_v19, %v5219_v38  ;;  %v4675_v24 = vadd.f32 %v15070_v3, %v15069_v46  ;;  %5996 = vrot.lane.b32.xlu1 %v5927_v53, %s9629_s11  ;;  %v15071_v22 = vld [vmem:[#allocation62_spill] sm:$0xff]  ;;  %v15072_v61 = vld [vmem:[#allocation64_spill] sm:$0xff]  ;;  %v15073_v1 = vld [vmem:[#allocation53_spill] sm:$0xff] }
 0x81a   : > { %v5220_v6 = vadd.f32 %v15071_v22, %v5088_v31  ;;  %v5412_v58 = vadd.f32 %v15072_v61, %v5218_v59  ;;  %v4674_v51 = vadd.f32 %v15073_v1, %v12532_v2  ;;  %v15074_v33 = vld [vmem:[#allocation56_spill] sm:$0xff]  ;;  %5994 = vrot.lane.b32.xlu0 %v5926_v4, %s9629_s11  ;;  %v15075_v28 = vld [vmem:[#allocation117_spill] sm:$0xff]  ;;  %v15076_v60 = vld [vmem:[#allocation111_spill] sm:$0xff] }
 0x81b   : > { %v5090_v47 = vadd.f32 %v15074_v33, %v4896_v62  ;;  %v5929_v34 = vadd.f32 %v15075_v28, %v5735_v50  ;;  %v5091_v38 = vadd.f32 %v15076_v60, %v4897_v21  ;;  %v15077_v48 = vld [vmem:[#allocation92_spill] sm:$0xff]  ;;  %v15078_v46 = vld [vmem:[#allocation75_spill] sm:$0xff]  ;;  %v12645_v53 = vpop.permute.xlu1 %4620  ;;  %v15081_v10 = vld [vmem:[#allocation154_spill] sm:$0xff] }
 0x81c   : > { %v5221_v19 = vadd.f32 %v15077_v48, %v5089_v41  ;;  %v4899_v3 = vadd.f32 %v15078_v46, %v4675_v24  ;;  %v15079_v31 = vld [vmem:[#allocation88_spill] sm:$0xff]  ;;  %v15080_v59 = vld [vmem:[#allocation87_spill] sm:$0xff]  ;;  %v5606_v2 = vadd.f32 %v15081_v10, %v5412_v58  ;;  %v12651_v33 = vpop.permute.xlu0 %5028  ;;  %v15085_v60 = vld [vmem:[#allocation97_spill] sm:$0xff] }
 0x81d   : > { %v5928_v22 = vadd.f32 %v15079_v31, %v5734_v52  ;;  %v5736_v61 = vadd.f32 %v15080_v59, %v5604_v12  ;;  %v15082_v1 = vld [vmem:[#allocation108_spill] sm:$0xff]  ;;  %v15084_v28 = vld [vmem:[#allocation91_spill] sm:$0xff]  ;;  %6000 = vrot.lane.b32.xlu1 %v5929_v34, %s9629_s11  ;;  %v15088_v52 = vld [vmem:[#allocation145_spill] sm:$0xff] }
 0x81e   : > { %v4898_v62 = vadd.f32 %v15082_v1, %v4674_v51  ;;  %v15083_v4 = vld [vmem:[#allocation76_spill] sm:$0xff]  ;;  %v5737_v21 = vadd.f32 %v15084_v28, %v5605_v36  ;;  %v5415_v41 = vadd.f32 %v15085_v60, %v5221_v19  ;;  %v15087_v24 = vld [vmem:[#allocation71_spill] sm:$0xff]  ;;  %v5222_v31 = vadd.f32 %v15088_v52, %v5090_v47  ;;  %v15089_v12 = vld [vmem:[#allocation106_spill] sm:$0xff] }
 0x81f   : > { %v5607_v50 = vadd.f32 %v15083_v4, %v5413_v14  ;;  %v15086_v48 = vld [vmem:[#allocation52_spill] sm:$0xff]  ;;  %v5414_v59 = vadd.f32 %v15089_v12, %v5220_v6  ;;  %v15090_v10 = vld [vmem:[#allocation127_spill] sm:$0xff]  ;;  %v15091_v51 = vld [vmem:[#allocation146_spill] sm:$0xff]  ;;  %5998 = vrot.lane.b32.xlu0 %v5928_v22, %s9629_s11  ;;  %v12669_v34 = vpop.permute.xlu1 %5166 }
 0x820   : > { %v4677_v46 = vadd.f32 %v15087_v24, %v15086_v48  ;;  %v4676_v58 = vadd.f32 %v15090_v10, %v12540_v49  ;;  %v5092_v1 = vadd.f32 %v15091_v51, %v4898_v62  ;;  %v15092_v14 = vld [vmem:[#allocation78_spill] sm:$0xff]  ;;  %v15093_v4 = vld [vmem:[#allocation165_spill] sm:$0xff]  ;;  %v15096_v47 = vld [vmem:[#allocation19_spill] sm:$0xff]  ;;  %v12675_v51 = vpop.permute.xlu0 %5544 }
 0x821   : > { %v5931_v36 = vadd.f32 %v15092_v14, %v5737_v21  ;;  %v5093_v19 = vadd.f32 %v15093_v4, %v4899_v3  ;;  %v15094_v28 = vld [vmem:[#allocation122_spill] sm:$0xff]  ;;  %v5930_v52 = vadd.f32 %v15096_v47, %v5736_v61  ;;  %v15097_v6 = vld [vmem:[#allocation136_spill] sm:$0xff]  ;;  %v15100_v22 = vld [vmem:[#allocation125_spill] sm:$0xff] }
 0x822   : > { %v5223_v60 = vadd.f32 %v15094_v28, %v5091_v38  ;;  %v15095_v48 = vld [vmem:[#allocation94_spill] sm:$0xff]  ;;  %v5738_v12 = vadd.f32 %v15097_v6, %v5606_v2  ;;  %v15099_v10 = vld [vmem:[#allocation116_spill] sm:$0xff]  ;;  %v5609_v21 = vadd.f32 %v15100_v22, %v5415_v41  ;;  %v15101_v14 = vld [vmem:[#allocation103_spill] sm:$0xff] }
 0x823   : > { %v4901_v24 = vadd.f32 %v15095_v48, %v4677_v46  ;;  %v15098_v0 = vld [vmem:[#allocation130_spill] sm:$0xff]  ;;  %v4900_v62 = vadd.f32 %v15099_v10, %v4676_v58  ;;  %v5739_v3 = vadd.f32 %v15101_v14, %v5607_v50  ;;  %v15102_v4 = vld [vmem:[#allocation161_spill] sm:$0xff]  ;;  %v15103_v28 = vld [vmem:[#allocation107_spill] sm:$0xff]  ;;  %6004 = vrot.lane.b32.xlu1 %v5931_v36, %s9629_s11  ;;  %6002 = vrot.lane.b32.xlu0 %v5930_v52, %s9629_s11  ;;  %v12693_v36 = vpop.permute.xlu1 %5682 }
 0x824   : > { %v5608_v49 = vadd.f32 %v15098_v0, %v5414_v59  ;;  %v5417_v38 = vadd.f32 %v15102_v4, %v5223_v60  ;;  %v15104_v46 = vld [vmem:[#allocation104_spill] sm:$0xff]  ;;  %v15105_v61 = vld [vmem:[#allocation90_spill] sm:$0xff]  ;;  %v15106_v2 = vld [vmem:[#allocation41_spill] sm:$0xff] }
 0x825   : > { %v4679_v48 = vadd.f32 %v15104_v46, %v15103_v28  ;;  %v5224_v47 = vadd.f32 %v15105_v61, %v5092_v1  ;;  %v5416_v6 = vadd.f32 %v15106_v2, %v5222_v31  ;;  %v15107_v0 = vld [vmem:[#allocation176_spill] sm:$0xff]  ;;  %v15108_v58 = vld [vmem:[#allocation138_spill] sm:$0xff]  ;;  %v15109_v41 = vld [vmem:[#allocation159_spill] sm:$0xff] }
 0x826   : > { %v4678_v59 = vadd.f32 %v15107_v0, %v12554_v29  ;;  %v5094_v10 = vadd.f32 %v15108_v58, %v4900_v62  ;;  %v5933_v50 = vadd.f32 %v15109_v41, %v5739_v3  ;;  %v15110_v22 = vld [vmem:[#allocation181_spill] sm:$0xff]  ;;  %v15111_v14 = vld [vmem:[#allocation102_spill] sm:$0xff]  ;;  %v15112_v1 = vld [vmem:[#allocation83_spill] sm:$0xff]  ;;  %v12699_v58 = vpop.permute.xlu0 %4618 }
 0x827   : > { %v5095_v60 = vadd.f32 %v15110_v22, %v4901_v24  ;;  %v5225_v4 = vadd.f32 %v15111_v14, %v5093_v19  ;;  %v4903_v28 = vadd.f32 %v12367_v16, %v4679_v48  ;;  %v5932_v46 = vadd.f32 %v15112_v1, %v5738_v12  ;;  %v15113_v31 = vld [vmem:[#allocation81_spill] sm:$0xff]  ;;  %v15115_v0 = vld [vmem:[#allocation140_spill] sm:$0xff]  ;;  %v15116_v52 = vld [vmem:[#allocation110_spill] sm:$0xff] }
 0x828   : > { %v5740_v61 = vadd.f32 %v15113_v31, %v5608_v49  ;;  %v15114_v2 = vld [vmem:[#allocation133_spill] sm:$0xff]  ;;  %v4902_v62 = vadd.f32 %v15115_v0, %v4678_v59  ;;  %v5611_v3 = vadd.f32 %v15116_v52, %v5417_v38  ;;  %v15117_v41 = vld [vmem:[#allocation163_spill] sm:$0xff]  ;;  %v15120_v16 = vld [vmem:[#allocation160_spill] sm:$0xff]  ;;  %6008 = vrot.lane.b32.xlu1 %v5933_v50, %s9629_s11  ;;  %v12717_v50 = vpop.permute.xlu1 %5034 }
 0x829   : > { %v5610_v29 = vadd.f32 %v15114_v2, %v5416_v6  ;;  %v5741_v24 = vadd.f32 %v15117_v41, %v5609_v21  ;;  %v15118_v22 = vld [vmem:[#allocation183_spill] sm:$0xff]  ;;  %v15119_v14 = vld [vmem:[#allocation49_spill] sm:$0xff]  ;;  %v15121_v12 = vld [vmem:[#allocation170_spill] sm:$0xff]  ;;  %6006 = vrot.lane.b32.xlu0 %v5932_v46, %s9629_s11 }
 0x82a   : > { %v5419_v19 = vadd.f32 %v15118_v22, %v5225_v4  ;;  %v4681_v48 = vadd.f32 %v15120_v16, %v15119_v14  ;;  %v5226_v1 = vadd.f32 %v15121_v12, %v5094_v10  ;;  %v15122_v49 = vld [vmem:[#allocation179_spill] sm:$0xff]  ;;  %v15124_v2 = vld [vmem:[#allocation169_spill] sm:$0xff]  ;;  %v15125_v38 = vld [vmem:[#allocation150_spill] sm:$0xff] }
 0x82b   : > { %v5418_v31 = vadd.f32 %v15122_v49, %v5224_v47  ;;  %v15123_v6 = vld [vmem:[#allocation147_spill] sm:$0xff]  ;;  %v5096_v0 = vadd.f32 %v15124_v2, %v4902_v62  ;;  %v5935_v21 = vadd.f32 %v15125_v38, %v5741_v24  ;;  %v15126_v52 = vld [vmem:[#allocation158_spill] sm:$0xff]  ;;  %v15127_v41 = vld [vmem:[#allocation164_spill] sm:$0xff]  ;;  %v12723_v2 = vpop.permute.xlu0 %4842 }
 0x82c   : > { %v4680_v59 = vadd.f32 %v15123_v6, %v12579_v57  ;;  %v5097_v4 = vadd.f32 %v15126_v52, %v4903_v28  ;;  %v5227_v22 = vadd.f32 %v15127_v41, %v5095_v60  ;;  %v15128_v14 = vld [vmem:[#allocation188_spill] sm:$0xff]  ;;  %v15129_v10 = vld [vmem:[#allocation141_spill] sm:$0xff]  ;;  %v15131_v27 = vld [vmem:[#allocation142_spill] sm:$0xff] }
 0x82d   : > { %v4905_v16 = vadd.f32 %v15128_v14, %v4681_v48  ;;  %v5934_v12 = vadd.f32 %v15129_v10, %v5740_v61  ;;  %v15130_v47 = vld [vmem:[#allocation121_spill] sm:$0xff]  ;;  %v5612_v57 = vadd.f32 %v15131_v27, %v5418_v31  ;;  %v15132_v6 = vld [vmem:[#allocation132_spill] sm:$0xff]  ;;  %v15133_v46 = vld [vmem:[#allocation119_spill] sm:$0xff]  ;;  %6012 = vrot.lane.b32.xlu1 %v5935_v21, %s9629_s11 }
 0x82e   : > { %v5742_v49 = vadd.f32 %v15130_v47, %v5610_v29  ;;  %v4904_v62 = vadd.f32 %v15132_v6, %v4680_v59  ;;  %v5613_v24 = vadd.f32 %v15133_v46, %v5419_v19  ;;  %v15134_v38 = vld [vmem:[#allocation114_spill] sm:$0xff]  ;;  %v15135_v52 = vld [vmem:[#allocation152_spill] sm:$0xff]  ;;  %v15136_v48 = vld [vmem:[#allocation167_spill] sm:$0xff]  ;;  %v12736_v6 = vpop.permute.xlu1 %5550 }
 0x82f   : > { %v5743_v28 = vadd.f32 %v15134_v38, %v5611_v3  ;;  %v5421_v60 = vadd.f32 %v15135_v52, %v5227_v22  ;;  %v5228_v41 = vadd.f32 %v15136_v48, %v5096_v0  ;;  %v15137_v14 = vld [vmem:[#allocation166_spill] sm:$0xff]  ;;  %6010 = vrot.lane.b32.xlu0 %v5934_v12, %s9629_s11  ;;  %v15138_v27 = vld [vmem:[#allocation155_spill] sm:$0xff]  ;;  %v15139_v59 = vld [vmem:[#allocation5_spill] sm:$0xff]  ;;  %v12741_v52 = vpop.permute.xlu0 %5164 }
 0x830   : > { %v5420_v61 = vadd.f32 %v15137_v14, %v5226_v1  ;;  %v5098_v29 = vadd.f32 %v12463_v45, %v4904_v62  ;;  %v5099_v10 = vadd.f32 %v15139_v59, %v4905_v16  ;;  %v15140_v47 = vld [vmem:[#allocation113_spill] sm:$0xff]  ;;  %v15141_v3 = vld [vmem:[#allocation174_spill] sm:$0xff]  ;;  %v15142_v46 = vld [vmem:[#allocation123_spill] sm:$0xff] }
 0x831   : > { %v5937_v31 = vadd.f32 %v15138_v27, %v5743_v28  ;;  %v5229_v19 = vadd.f32 %v15140_v47, %v5097_v4  ;;  %v5936_v22 = vadd.f32 %v15141_v3, %v5742_v49  ;;  %v5744_v21 = vadd.f32 %v15142_v46, %v5612_v57  ;;  %v15143_v38 = vld [vmem:[#allocation11_spill] sm:$0xff]  ;;  %v15144_v1 = vld [vmem:[#allocation162_spill] sm:$0xff]  ;;  %v15150_v59 = vld [vmem:[#allocation148_spill] sm:$0xff] }
 0x832   : > { %v5614_v0 = vadd.f32 %v15143_v38, %v5420_v61  ;;  %v5615_v45 = vadd.f32 %v15144_v1, %v5421_v60  ;;  %v15145_v62 = vld [vmem:[#allocation135_spill] sm:$0xff]  ;;  %v15146_v48 = vld [vmem:[#allocation190_spill] sm:$0xff]  ;;  %v5231_v61 = vadd.f32 %v15150_v59, %v5099_v10  ;;  %v12752_v47 = vpop.permute.xlu1 %4840  ;;  %v15151_v3 = vld [vmem:[#allocation128_spill] sm:$0xff] }
 0x833   : > { %v5745_v12 = vadd.f32 %v15145_v62, %v5613_v24  ;;  %v5423_v28 = vadd.f32 %v15146_v48, %v5229_v19  ;;  %6016 = vrot.lane.b32.xlu1 %v5937_v31, %s9629_s11  ;;  %v15147_v16 = vld [vmem:[#allocation187_spill] sm:$0xff]  ;;  %v15148_v14 = vld [vmem:[#allocation178_spill] sm:$0xff]  ;;  %6014 = vrot.lane.b32.xlu0 %v5936_v22, %s9629_s11  ;;  %v5938_v60 = vadd.f32 %v15151_v3, %v5744_v21  ;;  %v12757_v38 = vpop.permute.xlu0 %5358  ;;  %v15153_v31 = vld [vmem:[#allocation144_spill] sm:$0xff] }
 0x834   : > { %v5230_v4 = vadd.f32 %v15147_v16, %v5098_v29  ;;  %v5422_v27 = vadd.f32 %v15148_v14, %v5228_v41  ;;  %v15149_v49 = vld [vmem:[#allocation175_spill] sm:$0xff]  ;;  %v15152_v46 = vld [vmem:[#allocation182_spill] sm:$0xff]  ;;  %v15156_v22 = vld [vmem:[#allocation173_spill] sm:$0xff] }
 0x835   : > { %v5939_v57 = vadd.f32 %v15149_v49, %v5745_v12  ;;  %v5746_v24 = vadd.f32 %v15152_v46, %v5614_v0  ;;  %v15154_v29 = vld [vmem:[#allocation131_spill] sm:$0xff]  ;;  %v15155_v41 = vld [vmem:[#allocation186_spill] sm:$0xff]  ;;  %v5747_v48 = vadd.f32 %v15156_v22, %v5615_v45  ;;  %v5425_v12 = vadd.f32 %v12598_v23, %v5231_v61  ;;  %v15157_v10 = vld [vmem:[#allocation189_spill] sm:$0xff] }
 0x836   : > { %v5616_v19 = vadd.f32 %v12477_v35, %v5422_v27  ;;  %v4458_v1 = vmul.f32 %v15154_v29, %v15153_v31  ;;  %v5617_v62 = vadd.f32 %v15155_v41, %v5423_v28  ;;  %v5424_v16 = vadd.f32 %v15157_v10, %v5230_v4  ;;  %v15158_v21 = vld [vmem:[#allocation8_spill] sm:$0xff]  ;;  %v5357_v27 = vpop.permute.xlu1 %5356  ;;  %v15160_v49 = vld [vmem:[#allocation129_spill] sm:$0xff]  ;;  %v15161_v3 = vld [vmem:[#allocation191_spill] sm:$0xff] }
 0x837   : > { %6020 = vrot.lane.b32.xlu1 %v5939_v57, %s9629_s11  ;;  %6018 = vrot.lane.b32.xlu0 %v5938_v60, %s9629_s11  ;;  %v15159_v35 = vld [vmem:[#allocation192_spill] sm:$0xff]  ;;  %v5940_v59 = vadd.f32 %v15160_v49, %v5746_v24  ;;  %v5681_v45 = vpop.permute.xlu0 %5680  ;;  %v15162_v31 = vld [vmem:[#allocation185_spill] sm:$0xff]  ;;  %v5619_v57 = vadd.f32 %v12547_v20, %v5425_v12 }
 0x838   : > { %v4682_v0 = vadd.f32 %v15158_v21, %v4458_v1  ;;  %v5941_v14 = vadd.f32 %v15159_v35, %v5747_v48  ;;  %v5748_v46 = vadd.f32 %v15161_v3, %v5616_v19  ;;  %v5618_v28 = vadd.f32 %v12675_v51, %v5424_v16  ;;  %v15163_v61 = vld [vmem:[#allocation168_spill] sm:$0xff]  ;;  %v15164_v41 = vld [vmem:[#allocation193_spill] sm:$0xff] }
 0x839   : > { %v5749_v4 = vadd.f32 %v15163_v61, %v5617_v62  ;;  %v5751_v48 = vadd.f32 %v12492_v37, %v5619_v57  ;;  %v15165_v21 = vld [vmem:[#allocation85_spill] sm:$0xff] }
 0x83a   : > { %v4906_v23 = vadd.f32 %v15162_v31, %v4682_v0  ;;  %v5873_v24 = vpop.permute.xlu1 %5872  ;;  %v5942_v19 = vadd.f32 %v15164_v41, %v5748_v46  ;;  %v5750_v51 = vadd.f32 %v12604_v40, %v5618_v28  ;;  %v15166_v0 = vld [vmem:[#allocation149_spill] sm:$0xff] }
 0x83b   : > { %6024 = vrot.lane.b32.xlu1 %v5941_v14, %s9629_s11  ;;  %6022 = vrot.lane.b32.xlu0 %v5940_v59, %s9629_s11  ;;  %v5943_v60 = vadd.f32 %v12621_v26, %v5749_v4  ;;  %v5875_v22 = vpop.permute.xlu0 %5874  ;;  %v5945_v62 = vadd.f32 %v5873_v24, %v5751_v48  ;;  %v4683_v35 = vadd.f32 %v15166_v0, %v15165_v21 }
 0x83c   : > { %v5100_v1 = vadd.f32 %v12651_v33, %v4906_v23  ;;  %v5944_v26 = vadd.f32 %v12627_v5, %v5750_v51 }
 0x83d   : > { %v4907_v49 = vadd.f32 %v12572_v17, %v4683_v35 }
 0x83e   : > { %v5232_v20 = vadd.f32 %v12556_v56, %v5100_v1  ;;  %v12785_v12 = vpop.permute.xlu1 %4624 }
 0x83f   : > { %6028 = vrot.lane.b32.xlu1 %v5943_v60, %s9629_s11  ;;  %6026 = vrot.lane.b32.xlu0 %v5942_v19, %s9629_s11  ;;  %v5033_v33 = vpop.permute.xlu0 %5032  ;;  %v5101_v46 = vadd.f32 %v12516_v32, %v4907_v49  ;;  %v15168_v60 = vld [vmem:[#allocation151_spill] sm:$0xff] }
 0x840   : > { %v5426_v37 = vadd.f32 %v12581_v39, %v5232_v20 }
 0x841   : > { %v5233_v39 = vadd.f32 %v12473_v7, %v5101_v46 }
 0x842   : > { %v12790_v40 = vpop.permute.xlu1 %5170 }
 0x843   : > { %6032 = vrot.lane.b32.xlu1 %v5945_v62, %s9629_s11  ;;  %6030 = vrot.lane.b32.xlu0 %v5944_v26, %s9629_s11  ;;  %v5549_v10 = vpop.permute.xlu0 %5548  ;;  %v5427_v57 = vadd.f32 %v5357_v27, %v5233_v39 }
 0x844   : > { %v5620_v16 = vadd.f32 %v5549_v10, %v5426_v37 }
 0x845   : > { %v5621_v17 = vadd.f32 %v12736_v6, %v5427_v57  ;;  %v15171_v57 = vld [vmem:[#allocation180_spill] sm:$0xff] }
 0x846   : > { %v5752_v56 = vadd.f32 %v5681_v45, %v5620_v16  ;;  %v12795_v14 = vpop.permute.xlu1 %5686  ;;  %v15167_v45 = vld [vmem:[#allocation109_spill] sm:$0xff] }
 0x847   : > { %v4623_v5 = vpop.permute.xlu0 %4622  ;;  %v4460_v1 = vmul.f32 %v15168_v60, %v15167_v45  ;;  %v5753_v51 = vadd.f32 %v12693_v36, %v5621_v17  ;;  %v15169_v36 = vld [vmem:[#allocation100_spill] sm:$0xff]  ;;  %v4462_v45 = vmul.f32 %v10941_v8, %v15171_v57 }
 0x848   : > { %v5946_v59 = vadd.f32 %v5875_v22, %v5752_v56 }
 0x849   : > { %v4684_v24 = vadd.f32 %v12496_v54, %v4460_v1  ;;  %v4686_v17 = vadd.f32 %v12699_v58, %v4462_v45 }
 0x84a   : > { %6034 = vrot.lane.b32.xlu0 %v5946_v59, %s9629_s11  ;;  %v5039_v3 = vpop.permute.xlu1 %5038  ;;  %v15170_v59 = vld [vmem:[#allocation153_spill] sm:$0xff] }
 0x84b   : > { %v4847_v28 = vpop.permute.xlu0 %4846  ;;  %v4908_v32 = vadd.f32 %v12524_v9, %v4684_v24  ;;  %v4687_v46 = vadd.f32 %v12645_v53, %v15170_v59 }
 0x84d   : > { %v5102_v22 = vadd.f32 %v5033_v33, %v4908_v32  ;;  %v4685_v33 = vadd.f32 %v12459_v25, %v15169_v36  ;;  %v15172_v32 = vld [vmem:[#allocation172_spill] sm:$0xff] }
 0x84e   : > { %v5555_v31 = vpop.permute.xlu1 %5554 }
 0x84f   : > { %v5169_v23 = vpop.permute.xlu0 %5168  ;;  %v5234_v20 = vadd.f32 %v12741_v52, %v5102_v22  ;;  %v4909_v56 = vadd.f32 %v12752_v47, %v4685_v33  ;;  %v4910_v47 = vadd.f32 %v12723_v2, %v4686_v17 }
 0x851   : > { %v5428_v6 = vadd.f32 %v12757_v38, %v5234_v20  ;;  %v5103_v38 = vadd.f32 %v12717_v50, %v4909_v56 }
 0x852   : > { %v4845_v61 = vpop.permute.xlu1 %4844 }
 0x853   : > { %v12801_v4 = vpop.permute.xlu0 %5362  ;;  %v4911_v1 = vadd.f32 %v4845_v61, %v4687_v46  ;;  %v5235_v24 = vadd.f32 %v12669_v34, %v5103_v38  ;;  %v15174_v38 = vld [vmem:[#allocation16_spill] sm:$0xff] }
 0x855   : > { %v5105_v22 = vadd.f32 %v5039_v3, %v4911_v1 }
 0x856   : > { %v5361_v41 = vpop.permute.xlu1 %5360 }
 0x857   : > { %v5685_v19 = vpop.permute.xlu0 %5684  ;;  %v5429_v53 = vadd.f32 %v5361_v41, %v5235_v24  ;;  %v5237_v34 = vadd.f32 %v12790_v40, %v5105_v22 }
 0x859   : > { %v5623_v58 = vadd.f32 %v5555_v31, %v5429_v53  ;;  %v8969_v53 = vld [vmem:[%s14356_s5 + $0x20] sm:$0xff] }
 0x85a   : > { %v5877_v7 = vpop.permute.xlu1 %5876 }
 0x85b   : > { %v5947_v48 = vadd.f32 %v5877_v7, %v5753_v51  ;;  %v5879_v27 = vpop.permute.xlu0 %5878  ;;  %v4689_v51 = vadd.f32 %v12785_v12, %v15172_v32  ;;  %v15173_v7 = vld [vmem:[#allocation10_spill] sm:$0xff]  ;;  %v5755_v33 = vadd.f32 %v12795_v14, %v5623_v58  ;;  %v12852_v32 = vld [vmem:[%s14353_s2 + $0x2] ss:$0 sm:$0xff] }
 0x85c   : > { %v4464_v50 = vmul.f32 %v11004_v30, %v15173_v7  ;;  %v8970_v7 = vld [vmem:[%s14356_s5 + $0x28] sm:$0xff] }
 0x85d   : > { %6036 = vrot.lane.b32.xlu1 %v5947_v48, %s9629_s11 }
 0x85e   : > { %v5175_v62 = vpop.permute.xlu1 %5174 }
 0x85f   : > { %v5037_v26 = vpop.permute.xlu0 %5036 }
 0x860   : > { %v5104_v48 = vadd.f32 %v5037_v26, %v4910_v47 }
 0x862   : > { %v5691_v37 = vpop.permute.xlu1 %5690 }
 0x863   : > { %v5553_v54 = vpop.permute.xlu0 %5552 }
 0x864   : > { %v5622_v10 = vadd.f32 %v5553_v54, %v5428_v6  ;;  %v4688_v6 = vadd.f32 %v4623_v5, %v4464_v50 }
 0x866   : > { %v5754_v16 = vadd.f32 %v5685_v19, %v5622_v10  ;;  %v5043_v21 = vpop.permute.xlu1 %5042  ;;  %v4912_v10 = vadd.f32 %v4847_v28, %v4688_v6 }
 0x867   : > { %v5173_v9 = vpop.permute.xlu0 %5172 }
 0x868   : > { %v5948_v0 = vadd.f32 %v5879_v27, %v5754_v16  ;;  %v5236_v16 = vadd.f32 %v5169_v23, %v5104_v48  ;;  %v9543_v48 = vpack.c.bf16 %v8970_v7, %v8969_v53 }
 0x86a   : > { %6038 = vrot.lane.b32.xlu0 %v5948_v0, %s9629_s11  ;;  %v5559_v35 = vpop.permute.xlu1 %5558  ;;  %v5430_v59 = vadd.f32 %v12801_v4, %v5236_v16  ;;  %9544 = vmatprep.subr.bf16.mxu1 %v9543_v48 }
 0x86b   : > { %v5367_v52 = vpop.permute.xlu0 %5366  ;;  %9546 = vmatpush3.bf16.msra.mxu1 %v9543_v48 }
 0x86e   : > { %v5369_v49 = vpop.permute.xlu1 %5368 }
 0x86f   : > { %v5689_v39 = vpop.permute.xlu0 %5688 }
 0x872   : > { %v5885_v25 = vpop.permute.xlu1 %5884 }
 0x873   : > { %v5883_v19 = vpop.permute.xlu0 %5882 }
 0x876   : > { %v4849_v27 = vpop.permute.xlu1 %4848 }
 0x877   : > { %v4913_v20 = vadd.f32 %v4849_v27, %v4689_v51  ;;  %v5561_v61 = vpop.permute.xlu0 %5560 }
 0x879   : > { %v5107_v54 = vadd.f32 %v5043_v21, %v4913_v20 }
 0x87a   : > { %v5365_v2 = vpop.permute.xlu1 %5364 }
 0x87b   : > { %v5239_v0 = vadd.f32 %v5175_v62, %v5107_v54  ;;  %v5431_v36 = vadd.f32 %v5365_v2, %v5237_v34  ;;  %v5041_v12 = vpop.permute.xlu0 %5040 }
 0x87c   : > { %v5106_v3 = vadd.f32 %v5041_v12, %v4912_v10 }
 0x87d   : > { %v5625_v41 = vadd.f32 %v5559_v35, %v5431_v36  ;;  %v5433_v5 = vadd.f32 %v5369_v49, %v5239_v0 }
 0x87e   : > { %v5238_v26 = vadd.f32 %v5173_v9, %v5106_v3  ;;  %v5881_v56 = vpop.permute.xlu1 %5880 }
 0x87f   : > { %v5757_v31 = vadd.f32 %v5691_v37, %v5625_v41  ;;  %v5949_v21 = vadd.f32 %v5881_v56, %v5755_v33  ;;  %v5557_v46 = vpop.permute.xlu0 %5556  ;;  %v5627_v14 = vadd.f32 %v15174_v38, %v5433_v5  ;;  %v15175_v37 = vld [vmem:[#allocation28_spill] sm:$0xff] }
 0x880   : > { %v5432_v40 = vadd.f32 %v5367_v52, %v5238_v26  ;;  %v5624_v28 = vadd.f32 %v5557_v46, %v5430_v59 }
 0x881   : > { %6040 = vrot.lane.b32.xlu1 %v5949_v21, %s9629_s11  ;;  %v5951_v4 = vadd.f32 %v5885_v25, %v5757_v31  ;;  %v12844_v25 = vld [vmem:[%s14352_s1 + $0x2] ss:$0 sm:$0xff] }
 0x882   : > { %v5756_v23 = vadd.f32 %v5689_v39, %v5624_v28  ;;  %v5987_v62 = vpop.permute.xlu1 %5986  ;;  %v5626_v35 = vadd.f32 %v5561_v61, %v5432_v40  ;;  %v15176_v39 = vld [vmem:[#allocation12_spill] sm:$0xff] }
 0x883   : > { %6083 = vst.msk [vmem:[%s9688_s9] sm:$0xff] %vm6082_vm8, %v5987_v62  ;;  %v5887_v9 = vpop.permute.xlu0 %5886  ;;  %v5759_v45 = vadd.f32 %v15176_v39, %v5627_v14 }
 0x884   : > { %v5950_v49 = vadd.f32 %v5883_v19, %v5756_v23  ;;  %v5758_v57 = vadd.f32 %v15175_v37, %v5626_v35 }
 0x885   : > { %6044 = vrot.lane.b32.xlu1 %v5951_v4, %s9629_s11 }
 0x886   : > { %6042 = vrot.lane.b32.xlu0 %v5950_v49, %s9629_s11  ;;  %v5989_v52 = vpop.permute.xlu1 %5988  ;;  %v5952_v17 = vadd.f32 %v5887_v9, %v5758_v57 }
 0x887   : > { %6084 = vst.msk [vmem:[%s9688_s9 + $0x8] sm:$0xff] %vm6082_vm8, %v5989_v52  ;;  %v5889_v1 = vpop.permute.xlu0 %5888 }
 0x888   : > { %v5953_v24 = vadd.f32 %v5889_v1, %v5759_v45 }
 0x88a   : > { %6046 = vrot.lane.b32.xlu0 %v5952_v17, %s9629_s11  ;;  %6048 = vrot.lane.b32.xlu1 %v5953_v24, %s9629_s11  ;;  %v5993_v19 = vpop.permute.xlu1 %5992  ;;  %v6115_v47 = vld [vmem:[%s9688_s9] sm:$0xff] }
 0x88b   : > { %6086 = vst.msk [vmem:[%s9688_s9 + $0x18] sm:$0xff] %vm6082_vm8, %v5993_v19  ;;  %v5991_v51 = vpop.permute.xlu0 %5990  ;;  %v6155_v22 = vmul.f32 %v12844_v25, %v6115_v47 }
 0x88c   : > { %6085 = vst.msk [vmem:[%s9688_s9 + $0x10] sm:$0xff] %vm6082_vm8, %v5991_v51 }
 0x88d   : > { %v6195_v50 = vadd.f32 %v12852_v32, %v6155_v22 }
 0x88e   : > { %v5997_v27 = vpop.permute.xlu1 %5996  ;;  %v6116_v20 = vld [vmem:[%s9688_s9 + $0x8] sm:$0xff] }
 0x88f   : > { %6088 = vst.msk [vmem:[%s9688_s9 + $0x28] sm:$0xff] %vm6082_vm8, %v5997_v27  ;;  %v5995_v61 = vpop.permute.xlu0 %5994  ;;  %v6227_v6 = vmax.f32 %v6195_v50, 0.0  ;;  %v6156_v58 = vmul.f32 %v12844_v25, %v6116_v20 }
 0x890   : > { %6087 = vst.msk [vmem:[%s9688_s9 + $0x20] sm:$0xff] %vm6082_vm8, %v5995_v61 }
 0x891   : > { %9423 = vmatprep.mubr.msk.f32.mxu0 %vm252_vm0, %v6227_v6  ;;  %v6196_v54 = vadd.f32 %v12852_v32, %v6156_v58 }
 0x892   : > { %v6001_v34 = vpop.permute.xlu1 %6000  ;;  %v6118_v10 = vld [vmem:[%s9688_s9 + $0x18] sm:$0xff] }
 0x893   : > { %6090 = vst.msk [vmem:[%s9688_s9 + $0x38] sm:$0xff] %vm6082_vm8, %v6001_v34  ;;  %v5999_v16 = vpop.permute.xlu0 %5998  ;;  %v6228_v2 = vmax.f32 %v6196_v54, 0.0  ;;  %v6117_v0 = vld [vmem:[%s9688_s9 + $0x10] sm:$0xff]  ;;  %v6158_v36 = vmul.f32 %v12844_v25, %v6118_v10 }
 0x894   : > { %6089 = vst.msk [vmem:[%s9688_s9 + $0x30] sm:$0xff] %vm6082_vm8, %v5999_v16  ;;  %v6157_v12 = vmul.f32 %v12844_v25, %v6117_v0 }
 0x895   : > { %9424 = vmatmul.mubr.msk.f32.vlgmr.msra.gmra.mrb[64].mxu0 %vm252_vm0, %v6228_v2  ;;  %v6198_v3 = vadd.f32 %v12852_v32, %v6158_v36 }
 0x896   : > { %v6005_v41 = vpop.permute.xlu1 %6004  ;;  %v6197_v33 = vadd.f32 %v12852_v32, %v6157_v12  ;;  %v6120_v26 = vld [vmem:[%s9688_s9 + $0x28] sm:$0xff] }
 0x897   : > { %6092 = vst.msk [vmem:[%s9688_s9 + $0x48] sm:$0xff] %vm6082_vm8, %v6005_v41  ;;  %v6003_v56 = vpop.permute.xlu0 %6002  ;;  %v6119_v59 = vld [vmem:[%s9688_s9 + $0x20] sm:$0xff]  ;;  %v6160_v5 = vmul.f32 %v12844_v25, %v6120_v26  ;;  %v6230_v46 = vmax.f32 %v6198_v3, 0.0 }
 0x898   : > { %6091 = vst.msk [vmem:[%s9688_s9 + $0x40] sm:$0xff] %vm6082_vm8, %v6003_v56  ;;  %v6229_v31 = vmax.f32 %v6197_v33, 0.0  ;;  %v6159_v21 = vmul.f32 %v12844_v25, %v6119_v59 }
 0x899   : > { %v6200_v40 = vadd.f32 %v12852_v32, %v6160_v5 }
 0x89a   : > { %9426 = vmatprep.mubr.msk.f32.mxu0 %vm252_vm0, %v6229_v31  ;;  %v6009_v28 = vpop.permute.xlu1 %6008  ;;  %v6199_v23 = vadd.f32 %v12852_v32, %v6159_v21  ;;  %v6122_v62 = vld [vmem:[%s9688_s9 + $0x38] sm:$0xff] }
 0x89b   : > { %6094 = vst.msk [vmem:[%s9688_s9 + $0x58] sm:$0xff] %vm6082_vm8, %v6009_v28  ;;  %v6007_v35 = vpop.permute.xlu0 %6006  ;;  %9427 = vmatmul.mubr.msk.f32.gmra.mrb[66].mxu0 %vm252_vm0, %v6230_v46  ;;  %v6121_v38 = vld [vmem:[%s9688_s9 + $0x30] sm:$0xff]  ;;  %v6162_v14 = vmul.f32 %v12844_v25, %v6122_v62  ;;  %v6232_v49 = vmax.f32 %v6200_v40, 0.0 }
 0x89c   : > { %6093 = vst.msk [vmem:[%s9688_s9 + $0x50] sm:$0xff] %vm6082_vm8, %v6007_v35  ;;  %v6231_v9 = vmax.f32 %v6199_v23, 0.0  ;;  %v6161_v4 = vmul.f32 %v12844_v25, %v6121_v38 }
 0x89d   : > { %v6202_v37 = vadd.f32 %v12852_v32, %v6162_v14 }
 0x89e   : > { %9429 = vmatprep.mubr.msk.f32.mxu0 %vm252_vm0, %v6231_v9  ;;  %v6201_v52 = vadd.f32 %v12852_v32, %v6161_v4  ;;  %v6124_v39 = vld [vmem:[%s9688_s9 + $0x48] sm:$0xff] }
 0x89f   : > { %v6013_v57 = vpop.permute.xlu1 %6012  ;;  %9430 = vmatmul.mubr.msk.f32.gmra.mrb[68].mxu0 %vm252_vm0, %v6232_v49  ;;  %v6123_v1 = vld [vmem:[%s9688_s9 + $0x40] sm:$0xff]  ;;  %v6164_v17 = vmul.f32 %v12844_v25, %v6124_v39  ;;  %v6234_v47 = vmax.f32 %v6202_v37, 0.0 }
 0x8a0   : > { %6096 = vst.msk [vmem:[%s9688_s9 + $0x68] sm:$0xff] %vm6082_vm8, %v6013_v57  ;;  %v6233_v24 = vmax.f32 %v6201_v52, 0.0  ;;  %v6163_v19 = vmul.f32 %v12844_v25, %v6123_v1 }
 0x8a1   : > { %v6011_v45 = vpop.permute.xlu0 %6010  ;;  %v6204_v51 = vadd.f32 %v12852_v32, %v6164_v17 }
 0x8a2   : > { %6095 = vst.msk [vmem:[%s9688_s9 + $0x60] sm:$0xff] %vm6082_vm8, %v6011_v45  ;;  %9432 = vmatprep.mubr.msk.f32.mxu0 %vm252_vm0, %v6233_v24  ;;  %v6203_v53 = vadd.f32 %v12852_v32, %v6163_v19  ;;  %v6126_v7 = vld [vmem:[%s9688_s9 + $0x58] sm:$0xff] }
 0x8a3   : > { %9433 = vmatmul.mubr.msk.f32.gmra.mrb[70].mxu0 %vm252_vm0, %v6234_v47  ;;  %v6125_v48 = vld [vmem:[%s9688_s9 + $0x50] sm:$0xff]  ;;  %v6166_v27 = vmul.f32 %v12844_v25, %v6126_v7  ;;  %v6236_v6 = vmax.f32 %v6204_v51, 0.0 }
 0x8a4   : > { %v6235_v20 = vmax.f32 %v6203_v53, 0.0  ;;  %v6165_v61 = vmul.f32 %v12844_v25, %v6125_v48 }
 0x8a5   : > { %v6017_v22 = vpop.permute.xlu1 %6016  ;;  %v6015_v50 = vpop.permute.xlu0 %6014  ;;  %v6206_v58 = vadd.f32 %v12852_v32, %v6166_v27 }
 0x8a6   : > { %6098 = vst.msk [vmem:[%s9688_s9 + $0x78] sm:$0xff] %vm6082_vm8, %v6017_v22  ;;  %6097 = vst.msk [vmem:[%s9688_s9 + $0x70] sm:$0xff] %vm6082_vm8, %v6015_v50  ;;  %9435 = vmatprep.mubr.msk.f32.mxu0 %vm252_vm0, %v6235_v20  ;;  %v6205_v34 = vadd.f32 %v12852_v32, %v6165_v61 }
 0x8a7   : > { %v6128_v10 = vld [vmem:[%s9688_s9 + $0x68] sm:$0xff]  ;;  %9436 = vmatmul.mubr.msk.f32.gmra.mrb[72].mxu0 %vm252_vm0, %v6236_v6  ;;  %v6238_v3 = vmax.f32 %v6206_v58, 0.0 }
 0x8a8   : > { %v6168_v0 = vmul.f32 %v12844_v25, %v6128_v10  ;;  %v6237_v36 = vmax.f32 %v6205_v34, 0.0 }
 0x8a9   : > { %v6021_v54 = vpop.permute.xlu1 %6020  ;;  %v6019_v16 = vpop.permute.xlu0 %6018  ;;  %v6127_v2 = vld [vmem:[%s9688_s9 + $0x60] sm:$0xff] }
 0x8aa   : > { %6100 = vst.msk [vmem:[%s9688_s9 + $0x88] sm:$0xff] %vm6082_vm8, %v6021_v54  ;;  %6099 = vst.msk [vmem:[%s9688_s9 + $0x80] sm:$0xff] %vm6082_vm8, %v6019_v16  ;;  %v6167_v12 = vmul.f32 %v12844_v25, %v6127_v2  ;;  %v6208_v41 = vadd.f32 %v12852_v32, %v6168_v0  ;;  %9438 = vmatprep.mubr.msk.f32.mxu0 %vm252_vm0, %v6237_v36 }
 0x8ab   : > { %9439 = vmatmul.mubr.msk.f32.gmra.mrb[74].mxu0 %vm252_vm0, %v6238_v3 }
 0x8ac   : > { %v6207_v26 = vadd.f32 %v12852_v32, %v6167_v12  ;;  %v6240_v40 = vmax.f32 %v6208_v41, 0.0 }
 0x8ad   : > { %v6025_v33 = vpop.permute.xlu1 %6024  ;;  %v6130_v56 = vld [vmem:[%s9688_s9 + $0x78] sm:$0xff]  ;;  %v6023_v59 = vpop.permute.xlu0 %6022  ;;  %v6129_v5 = vld [vmem:[%s9688_s9 + $0x70] sm:$0xff] }
 0x8ae   : > { %6102 = vst.msk [vmem:[%s9688_s9 + $0x98] sm:$0xff] %vm6082_vm8, %v6025_v33  ;;  %v6170_v31 = vmul.f32 %v12844_v25, %v6130_v56  ;;  %6101 = vst.msk [vmem:[%s9688_s9 + $0x90] sm:$0xff] %vm6082_vm8, %v6023_v59  ;;  %v6239_v21 = vmax.f32 %v6207_v26, 0.0  ;;  %v6169_v46 = vmul.f32 %v12844_v25, %v6129_v5 }
 0x8b0   : > { %v6210_v28 = vadd.f32 %v12852_v32, %v6170_v31  ;;  %9441 = vmatprep.mubr.msk.f32.mxu0 %vm252_vm0, %v6239_v21  ;;  %v6209_v62 = vadd.f32 %v12852_v32, %v6169_v46 }
 0x8b1   : > { %v6029_v23 = vpop.permute.xlu1 %6028  ;;  %v6132_v35 = vld [vmem:[%s9688_s9 + $0x88] sm:$0xff]  ;;  %v6027_v38 = vpop.permute.xlu0 %6026  ;;  %9442 = vmatmul.mubr.msk.f32.gmra.mrb[76].mxu0 %vm252_vm0, %v6240_v40  ;;  %v6131_v14 = vld [vmem:[%s9688_s9 + $0x80] sm:$0xff] }
 0x8b2   : > { %6104 = vst.msk [vmem:[%s9688_s9 + $0xa8] sm:$0xff] %vm6082_vm8, %v6029_v23  ;;  %v6172_v9 = vmul.f32 %v12844_v25, %v6132_v35  ;;  %6103 = vst.msk [vmem:[%s9688_s9 + $0xa0] sm:$0xff] %vm6082_vm8, %v6027_v38  ;;  %v6241_v4 = vmax.f32 %v6209_v62, 0.0  ;;  %v6171_v49 = vmul.f32 %v12844_v25, %v6131_v14  ;;  %v6242_v37 = vmax.f32 %v6210_v28, 0.0 }
 0x8b4   : > { %v6212_v57 = vadd.f32 %v12852_v32, %v6172_v9  ;;  %9444 = vmatprep.mubr.msk.f32.mxu0 %vm252_vm0, %v6241_v4  ;;  %v6211_v39 = vadd.f32 %v12852_v32, %v6171_v49 }
 0x8b5   : > { %v6033_v52 = vpop.permute.xlu1 %6032  ;;  %v6134_v45 = vld [vmem:[%s9688_s9 + $0x98] sm:$0xff]  ;;  %v6031_v1 = vpop.permute.xlu0 %6030  ;;  %9445 = vmatmul.mubr.msk.f32.gmra.mrb[78].mxu0 %vm252_vm0, %v6242_v37  ;;  %v6133_v17 = vld [vmem:[%s9688_s9 + $0x90] sm:$0xff] }
 0x8b6   : > { %6106 = vst.msk [vmem:[%s9688_s9 + $0xb8] sm:$0xff] %vm6082_vm8, %v6033_v52  ;;  %v6174_v24 = vmul.f32 %v12844_v25, %v6134_v45  ;;  %6105 = vst.msk [vmem:[%s9688_s9 + $0xb0] sm:$0xff] %vm6082_vm8, %v6031_v1  ;;  %v6243_v19 = vmax.f32 %v6211_v39, 0.0  ;;  %v6173_v47 = vmul.f32 %v12844_v25, %v6133_v17  ;;  %v6244_v51 = vmax.f32 %v6212_v57, 0.0 }
 0x8b8   : > { %v6214_v22 = vadd.f32 %v12852_v32, %v6174_v24  ;;  %9447 = vmatprep.mubr.msk.f32.mxu0 %vm252_vm0, %v6243_v19  ;;  %v6213_v53 = vadd.f32 %v12852_v32, %v6173_v47 }
 0x8b9   : > { %v6136_v7 = vld [vmem:[%s9688_s9 + $0xa8] sm:$0xff]  ;;  %9448 = vmatmul.mubr.msk.f32.gmra.mrb[80].mxu0 %vm252_vm0, %v6244_v51  ;;  %v6135_v50 = vld [vmem:[%s9688_s9 + $0xa0] sm:$0xff] }
 0x8ba   : > { %v6176_v48 = vmul.f32 %v12844_v25, %v6136_v7  ;;  %v6245_v27 = vmax.f32 %v6213_v53, 0.0  ;;  %v6175_v20 = vmul.f32 %v12844_v25, %v6135_v50  ;;  %v6246_v61 = vmax.f32 %v6214_v22, 0.0 }
 0x8bc   : > { %v6216_v6 = vadd.f32 %v12852_v32, %v6176_v48  ;;  %9450 = vmatprep.mubr.msk.f32.mxu0 %vm252_vm0, %v6245_v27  ;;  %v6215_v58 = vadd.f32 %v12852_v32, %v6175_v20  ;;  %v6035_v16 = vpop.permute.xlu0 %6034 }
 0x8bd   : > { %v6138_v54 = vld [vmem:[%s9688_s9 + $0xb8] sm:$0xff]  ;;  %9451 = vmatmul.mubr.msk.f32.gmra.mrb[82].mxu0 %vm252_vm0, %v6246_v61  ;;  %v6137_v34 = vld [vmem:[%s9688_s9 + $0xb0] sm:$0xff]  ;;  %6107 = vst.msk [vmem:[%s9688_s9 + $0xc0] sm:$0xff] %vm6082_vm8, %v6035_v16 }
 0x8be   : > { %v6178_v10 = vmul.f32 %v12844_v25, %v6138_v54  ;;  %v6247_v2 = vmax.f32 %v6215_v58, 0.0  ;;  %v6177_v0 = vmul.f32 %v12844_v25, %v6137_v34  ;;  %v6248_v36 = vmax.f32 %v6216_v6, 0.0  ;;  %v13050_v34 = vld [vmem:[%s14355_s4 + $0x2] ss:$0 sm:$0xff]  ;;  %v7267_v16 = vld [vmem:[#allocation2 + $0x9] sm:$0xff] }
 0x8c0   : > { %v6218_v12 = vadd.f32 %v12852_v32, %v6178_v10  ;;  %9453 = vmatprep.mubr.msk.f32.mxu0 %vm252_vm0, %v6247_v2  ;;  %v6217_v3 = vadd.f32 %v12852_v32, %v6177_v0  ;;  %v7076_v10 = vld [vmem:[#allocation2 + $0x10] sm:$0xff] }
 0x8c1   : > { %9454 = vmatmul.mubr.msk.f32.gmra.mrb[84].mxu0 %vm252_vm0, %v6248_v36  ;;  %7141 = vrot.lane.b32.xlu1 %v7076_v10, %s9620_s18 }
 0x8c2   : > { %v6249_v41 = vmax.f32 %v6217_v3, 0.0  ;;  %v6250_v33 = vmax.f32 %v6218_v12, 0.0 }
 0x8c4   : > { %9456 = vmatprep.mubr.msk.f32.mxu0 %vm252_vm0, %v6249_v41  ;;  %v6139_v26 = vld [vmem:[%s9688_s9 + $0xc0] sm:$0xff] }
 0x8c5   : > { %9457 = vmatmul.mubr.msk.f32.gmra.mrb[86].mxu0 %vm252_vm0, %v6250_v33  ;;  %v6179_v56 = vmul.f32 %v12844_v25, %v6139_v26 }
 0x8c7   : > { %v6219_v59 = vadd.f32 %v12852_v32, %v6179_v56 }
 0x8c9   : > { %v6251_v5 = vmax.f32 %v6219_v59, 0.0 }
 0x8cb   : > { %9459 = vmatprep.mubr.msk.f32.mxu0 %vm252_vm0, %v6251_v5 }
 0x8cf   : > { %v6037_v31 = vpop.permute.xlu1 %6036 }
 0x8d0   : > { %6108 = vst.msk [vmem:[%s9688_s9 + $0xc8] sm:$0xff] %vm6082_vm8, %v6037_v31 }
 0x8d7   : > { %v6140_v21 = vld [vmem:[%s9688_s9 + $0xc8] sm:$0xff] }
 0x8d8   : > { %v6180_v46 = vmul.f32 %v12844_v25, %v6140_v21 }
 0x8da   : > { %v6220_v40 = vadd.f32 %v12852_v32, %v6180_v46 }
 0x8dc   : > { %v6039_v28 = vpop.permute.xlu0 %6038  ;;  %v6252_v23 = vmax.f32 %v6220_v40, 0.0 }
 0x8dd   : > { %6109 = vst.msk [vmem:[%s9688_s9 + $0xd0] sm:$0xff] %vm6082_vm8, %v6039_v28 }
 0x8de   : > { %9460 = vmatmul.mubr.msk.f32.gmra.mrb[88].mxu0 %vm252_vm0, %v6252_v23 }
 0x8e4   : > { %v6141_v62 = vld [vmem:[%s9688_s9 + $0xd0] sm:$0xff] }
 0x8e5   : > { %v6181_v35 = vmul.f32 %v12844_v25, %v6141_v62 }
 0x8e7   : > { %v6221_v38 = vadd.f32 %v12852_v32, %v6181_v35 }
 0x8e9   : > { %v6253_v14 = vmax.f32 %v6221_v38, 0.0 }
 0x8eb   : > { %9462 = vmatprep.mubr.msk.f32.mxu0 %vm252_vm0, %v6253_v14 }
 0x8f3   : > { %v6041_v9 = vpop.permute.xlu1 %6040 }
 0x8f4   : > { %6110 = vst.msk [vmem:[%s9688_s9 + $0xd8] sm:$0xff] %vm6082_vm8, %v6041_v9 }
 0x8f7   : > { %v6045_v4 = vpop.permute.xlu1 %6044 }
 0x8f8   : > { %6112 = vst.msk [vmem:[%s9688_s9 + $0xe8] sm:$0xff] %vm6082_vm8, %v6045_v4  ;;  %v6043_v49 = vpop.permute.xlu0 %6042 }
 0x8f9   : > { %6111 = vst.msk [vmem:[%s9688_s9 + $0xe0] sm:$0xff] %vm6082_vm8, %v6043_v49 }
 0x8fb   : > { %v6142_v37 = vld [vmem:[%s9688_s9 + $0xd8] sm:$0xff] }
 0x8fc   : > { %v6047_v57 = vpop.permute.xlu0 %6046  ;;  %v6049_v52 = vpop.permute.xlu1 %6048  ;;  %v6182_v39 = vmul.f32 %v12844_v25, %v6142_v37 }
 0x8fd   : > { %6113 = vst.msk [vmem:[%s9688_s9 + $0xf0] sm:$0xff] %vm6082_vm8, %v6047_v57  ;;  %6114 = vst.msk [vmem:[%s9688_s9 + $0xf8] sm:$0xff] %vm6082_vm8, %v6049_v52 }
 0x8fe   : > { %v6222_v45 = vadd.f32 %v12852_v32, %v6182_v39 }
 0x8ff   : > { %v6144_v1 = vld [vmem:[%s9688_s9 + $0xe8] sm:$0xff] }
 0x900   : > { %v6254_v17 = vmax.f32 %v6222_v45, 0.0  ;;  %v6143_v24 = vld [vmem:[%s9688_s9 + $0xe0] sm:$0xff]  ;;  %v6184_v19 = vmul.f32 %v12844_v25, %v6144_v1 }
 0x901   : > { %v6183_v47 = vmul.f32 %v12844_v25, %v6143_v24 }
 0x902   : > { %9463 = vmatmul.mubr.msk.f32.gmra.mrb[90].mxu0 %vm252_vm0, %v6254_v17  ;;  %v6224_v51 = vadd.f32 %v12852_v32, %v6184_v19 }
 0x903   : > { %v6223_v22 = vadd.f32 %v12852_v32, %v6183_v47 }
 0x904   : > { %v6145_v53 = vld [vmem:[%s9688_s9 + $0xf0] sm:$0xff]  ;;  %v6146_v7 = vld [vmem:[%s9688_s9 + $0xf8] sm:$0xff]  ;;  %v6256_v20 = vmax.f32 %v6224_v51, 0.0 }
 0x905   : > { %v6255_v50 = vmax.f32 %v6223_v22, 0.0  ;;  %v6185_v48 = vmul.f32 %v12844_v25, %v6145_v53  ;;  %v6186_v27 = vmul.f32 %v12844_v25, %v6146_v7  ;;  %v7075_v25 = vld [vmem:[#allocation2 + $0x8] sm:$0xff] }
 0x906   : > { %7139 = vrot.lane.b32.xlu0 %v7075_v25, %s9620_s18 }
 0x907   : > { %9465 = vmatprep.mubr.msk.f32.mxu0 %vm252_vm0, %v6255_v50  ;;  %v6225_v61 = vadd.f32 %v12852_v32, %v6185_v48  ;;  %v6226_v6 = vadd.f32 %v12852_v32, %v6186_v27 }
 0x908   : > { %9466 = vmatmul.mubr.msk.f32.gmra.mrb[92].mxu0 %vm252_vm0, %v6256_v20 }
 0x909   : > { %v6257_v58 = vmax.f32 %v6225_v61, 0.0  ;;  %v6258_v54 = vmax.f32 %v6226_v6, 0.0 }
 0x90a   : > { %7363 = vrot.lane.b32.xlu0 %v7267_v16, %s9621_s19 }
 0x90b   : > { %9468 = vmatprep.mubr.msk.f32.mxu0 %vm252_vm0, %v6257_v58 }
 0x90c   : > { %9469 = vmatmul.mubr.msk.f32.gmra.mrb[94].mxu0 %vm252_vm0, %v6258_v54 }
 0x968   : > { %v9425_v32 = vpop.f32.mrb[64].mxu0 }
 0x969   : > { %v6438_v2 = vadd.f32 %v9425_v32, %v13050_v34  ;;  %v6432_v0 = vpop.f32.mrb[65].mxu0 }
 0x96a   : > { %v6433_v36 = vadd.f32 %v13050_v34, %v6432_v0 }
 0x96b   : > { %v6592_v3 = vmax.f32 %v6438_v2, 0.0 }
 0x96c   : > { %v6591_v12 = vmax.f32 %v6433_v36, 0.0 }
 0x96e   : > { %v9428_v41 = vpop.f32.mrb[66].mxu0  ;;  %9475 = vmatprep.mubr.msk.f32.mxu1 %vm252_vm0, %v6591_v12 }
 0x96f   : > { %v6448_v33 = vadd.f32 %v9428_v41, %v13050_v34  ;;  %v6442_v26 = vpop.f32.mrb[67].mxu0  ;;  %9476 = vmatmul.mubr.msk.f32.vlgmr.msra.gmra.mrb[64].mxu1 %vm252_vm0, %v6592_v3 }
 0x970   : > { %v6443_v56 = vadd.f32 %v13050_v34, %v6442_v26 }
 0x971   : > { %v6594_v31 = vmax.f32 %v6448_v33, 0.0 }
 0x972   : > { %v6593_v59 = vmax.f32 %v6443_v56, 0.0  ;;  %v9431_v5 = vpop.f32.mrb[68].mxu0 }
 0x973   : > { %v6458_v21 = vadd.f32 %v9431_v5, %v13050_v34  ;;  %v6452_v46 = vpop.f32.mrb[69].mxu0 }
 0x974   : > { %v6453_v40 = vadd.f32 %v13050_v34, %v6452_v46  ;;  %9478 = vmatprep.mubr.msk.f32.mxu1 %vm252_vm0, %v6593_v59 }
 0x975   : > { %9479 = vmatmul.mubr.msk.f32.gmra.mrb[66].mxu1 %vm252_vm0, %v6594_v31  ;;  %v6596_v62 = vmax.f32 %v6458_v21, 0.0 }
 0x976   : > { %v6595_v28 = vmax.f32 %v6453_v40, 0.0  ;;  %v9434_v23 = vpop.f32.mrb[70].mxu0 }
 0x977   : > { %v6468_v35 = vadd.f32 %v9434_v23, %v13050_v34  ;;  %v6462_v38 = vpop.f32.mrb[71].mxu0 }
 0x978   : > { %v6463_v14 = vadd.f32 %v13050_v34, %v6462_v38  ;;  %9481 = vmatprep.mubr.msk.f32.mxu1 %vm252_vm0, %v6595_v28 }
 0x979   : > { %9482 = vmatmul.mubr.msk.f32.gmra.mrb[68].mxu1 %vm252_vm0, %v6596_v62  ;;  %v6598_v49 = vmax.f32 %v6468_v35, 0.0 }
 0x97a   : > { %v6597_v9 = vmax.f32 %v6463_v14, 0.0  ;;  %v9437_v4 = vpop.f32.mrb[72].mxu0 }
 0x97b   : > { %v6478_v37 = vadd.f32 %v9437_v4, %v13050_v34  ;;  %v6472_v57 = vpop.f32.mrb[73].mxu0 }
 0x97c   : > { %v6473_v52 = vadd.f32 %v13050_v34, %v6472_v57  ;;  %9484 = vmatprep.mubr.msk.f32.mxu1 %vm252_vm0, %v6597_v9 }
 0x97d   : > { %9485 = vmatmul.mubr.msk.f32.gmra.mrb[70].mxu1 %vm252_vm0, %v6598_v49  ;;  %v6600_v1 = vmax.f32 %v6478_v37, 0.0 }
 0x97e   : > { %v6599_v39 = vmax.f32 %v6473_v52, 0.0  ;;  %v9440_v45 = vpop.f32.mrb[74].mxu0 }
 0x97f   : > { %v6488_v17 = vadd.f32 %v9440_v45, %v13050_v34  ;;  %v6482_v24 = vpop.f32.mrb[75].mxu0  ;;  %v8205_v45 = vld [vmem:[#allocation2 + $0x118] sm:$0xff] }
 0x980   : > { %v6483_v19 = vadd.f32 %v13050_v34, %v6482_v24  ;;  %9487 = vmatprep.mubr.msk.f32.mxu1 %vm252_vm0, %v6599_v39  ;;  %v8012_v39 = vld [vmem:[#allocation2 + $0x11f] sm:$0xff]  ;;  %8269 = vrot.lane.b32.xlu0 %v8205_v45, %s9623_s24 }
 0x981   : > { %9488 = vmatmul.mubr.msk.f32.gmra.mrb[72].mxu1 %vm252_vm0, %v6600_v1  ;;  %v6602_v22 = vmax.f32 %v6488_v17, 0.0  ;;  %8139 = vrot.lane.b32.xlu1 %v8012_v39, %s9622_s23  ;;  %v8206_v1 = vld [vmem:[#allocation2 + $0x120] sm:$0xff] }
 0x982   : > { %v6601_v47 = vmax.f32 %v6483_v19, 0.0 }
 0x984   : > { %v9443_v51 = vpop.f32.mrb[76].mxu0  ;;  %9490 = vmatprep.mubr.msk.f32.mxu1 %vm252_vm0, %v6601_v47 }
 0x985   : > { %v6498_v53 = vadd.f32 %v9443_v51, %v13050_v34  ;;  %v6492_v7 = vpop.f32.mrb[77].mxu0  ;;  %9491 = vmatmul.mubr.msk.f32.gmra.mrb[74].mxu1 %vm252_vm0, %v6602_v22  ;;  %8271 = vrot.lane.b32.xlu1 %v8206_v1, %s9623_s24 }
 0x986   : > { %v6493_v50 = vadd.f32 %v13050_v34, %v6492_v7 }
 0x987   : > { %v6604_v20 = vmax.f32 %v6498_v53, 0.0 }
 0x988   : > { %v6603_v48 = vmax.f32 %v6493_v50, 0.0  ;;  %v9446_v27 = vpop.f32.mrb[78].mxu0 }
 0x989   : > { %v6508_v61 = vadd.f32 %v9446_v27, %v13050_v34  ;;  %v6502_v6 = vpop.f32.mrb[79].mxu0 }
 0x98a   : > { %v6503_v58 = vadd.f32 %v13050_v34, %v6502_v6  ;;  %9493 = vmatprep.mubr.msk.f32.mxu1 %vm252_vm0, %v6603_v48 }
 0x98b   : > { %9494 = vmatmul.mubr.msk.f32.gmra.mrb[76].mxu1 %vm252_vm0, %v6604_v20  ;;  %v6606_v10 = vmax.f32 %v6508_v61, 0.0 }
 0x98c   : > { %v6605_v54 = vmax.f32 %v6503_v58, 0.0  ;;  %v9449_v25 = vpop.f32.mrb[80].mxu0 }
 0x98d   : > { %v6518_v32 = vadd.f32 %v9449_v25, %v13050_v34  ;;  %v6512_v16 = vpop.f32.mrb[81].mxu0 }
 0x98e   : > { %v6513_v2 = vadd.f32 %v13050_v34, %v6512_v16  ;;  %9496 = vmatprep.mubr.msk.f32.mxu1 %vm252_vm0, %v6605_v54 }
 0x98f   : > { %9497 = vmatmul.mubr.msk.f32.gmra.mrb[78].mxu1 %vm252_vm0, %v6606_v10  ;;  %v6608_v12 = vmax.f32 %v6518_v32, 0.0 }
 0x990   : > { %v6607_v0 = vmax.f32 %v6513_v2, 0.0  ;;  %v9452_v36 = vpop.f32.mrb[82].mxu0 }
 0x991   : > { %v6528_v3 = vadd.f32 %v9452_v36, %v13050_v34  ;;  %v6522_v41 = vpop.f32.mrb[83].mxu0 }
 0x992   : > { %v6523_v33 = vadd.f32 %v13050_v34, %v6522_v41  ;;  %9499 = vmatprep.mubr.msk.f32.mxu1 %vm252_vm0, %v6607_v0 }
 0x993   : > { %9500 = vmatmul.mubr.msk.f32.gmra.mrb[80].mxu1 %vm252_vm0, %v6608_v12  ;;  %v6610_v59 = vmax.f32 %v6528_v3, 0.0 }
 0x994   : > { %v6609_v26 = vmax.f32 %v6523_v33, 0.0  ;;  %v9455_v56 = vpop.f32.mrb[84].mxu0 }
 0x995   : > { %v6538_v5 = vadd.f32 %v9455_v56, %v13050_v34  ;;  %v6532_v31 = vpop.f32.mrb[85].mxu0 }
 0x996   : > { %v6533_v21 = vadd.f32 %v13050_v34, %v6532_v31  ;;  %9502 = vmatprep.mubr.msk.f32.mxu1 %vm252_vm0, %v6609_v26 }
 0x997   : > { %9503 = vmatmul.mubr.msk.f32.gmra.mrb[82].mxu1 %vm252_vm0, %v6610_v59  ;;  %v6612_v28 = vmax.f32 %v6538_v5, 0.0 }
 0x998   : > { %v6611_v46 = vmax.f32 %v6533_v21, 0.0  ;;  %v9458_v40 = vpop.f32.mrb[86].mxu0  ;;  %v15177_v21 = vld [vmem:[#allocation4_spill] sm:$0xff] }
 0x999   : > { %v6548_v23 = vadd.f32 %v9458_v40, %v13050_v34  ;;  %v6542_v62 = vpop.f32.mrb[87].mxu0 }
 0x99a   : > { %v6543_v35 = vadd.f32 %v13050_v34, %v6542_v62  ;;  %9505 = vmatprep.mubr.msk.f32.mxu1 %vm252_vm0, %v6611_v46 }
 0x99b   : > { %9506 = vmatmul.mubr.msk.f32.gmra.mrb[84].mxu1 %vm252_vm0, %v6612_v28  ;;  %v6614_v14 = vmax.f32 %v6548_v23, 0.0 }
 0x99c   : > { %v6613_v38 = vmax.f32 %v6543_v35, 0.0  ;;  %v15178_v35 = vld [vmem:[#allocation3_spill] sm:$0xff] }
 0x99e   : > { %9508 = vmatprep.mubr.msk.f32.mxu1 %vm252_vm0, %v6613_v38 }
 0x99f   : > { %9509 = vmatmul.mubr.msk.f32.gmra.mrb[86].mxu1 %vm252_vm0, %v6614_v14 }
 0x9b1   : > { %v9461_v9 = vpop.f32.mrb[88].mxu0 }
 0x9b2   : > { %v6558_v4 = vadd.f32 %v9461_v9, %v13050_v34  ;;  %v6552_v49 = vpop.f32.mrb[89].mxu0 }
 0x9b3   : > { %v6553_v37 = vadd.f32 %v13050_v34, %v6552_v49 }
 0x9b4   : > { %v6616_v52 = vmax.f32 %v6558_v4, 0.0 }
 0x9b5   : > { %v6615_v57 = vmax.f32 %v6553_v37, 0.0 }
 0x9b7   : > { %9511 = vmatprep.mubr.msk.f32.mxu1 %vm252_vm0, %v6615_v57 }
 0x9b8   : > { %9512 = vmatmul.mubr.msk.f32.gmra.mrb[88].mxu1 %vm252_vm0, %v6616_v52 }
 0x9d5   : > { %v9464_v17 = vpop.f32.mrb[90].mxu0 }
 0x9d6   : > { %v6568_v24 = vadd.f32 %v9464_v17, %v13050_v34  ;;  %v6562_v19 = vpop.f32.mrb[91].mxu0 }
 0x9d7   : > { %v6563_v47 = vadd.f32 %v13050_v34, %v6562_v19 }
 0x9d8   : > { %v6618_v22 = vmax.f32 %v6568_v24, 0.0 }
 0x9d9   : > { %v6617_v51 = vmax.f32 %v6563_v47, 0.0 }
 0x9db   : > { %v9467_v53 = vpop.f32.mrb[92].mxu0  ;;  %9514 = vmatprep.mubr.msk.f32.mxu1 %vm252_vm0, %v6617_v51  ;;  %v15179_v51 = vld [vmem:[#allocation6_spill] sm:$0xff] }
 0x9dc   : > { %v6578_v7 = vadd.f32 %v9467_v53, %v13050_v34  ;;  %v6572_v50 = vpop.f32.mrb[93].mxu0  ;;  %9515 = vmatmul.mubr.msk.f32.gmra.mrb[90].mxu1 %vm252_vm0, %v6618_v22 }
 0x9dd   : > { %v6573_v48 = vadd.f32 %v13050_v34, %v6572_v50 }
 0x9de   : > { %v6620_v61 = vmax.f32 %v6578_v7, 0.0 }
 0x9df   : > { %v6619_v27 = vmax.f32 %v6573_v48, 0.0  ;;  %v9470_v20 = vpop.f32.mrb[94].mxu0 }
 0x9e0   : > { %v6588_v6 = vadd.f32 %v9470_v20, %v13050_v34  ;;  %v6582_v58 = vpop.f32.mrb[95].mxu0 }
 0x9e1   : > { %v6583_v54 = vadd.f32 %v13050_v34, %v6582_v58  ;;  %9517 = vmatprep.mubr.msk.f32.mxu1 %vm252_vm0, %v6619_v27 }
 0x9e2   : > { %9518 = vmatmul.mubr.msk.f32.gmra.mrb[92].mxu1 %vm252_vm0, %v6620_v61  ;;  %v6622_v10 = vmax.f32 %v6588_v6, 0.0 }
 0x9e3   : > { %v6621_v25 = vmax.f32 %v6583_v54, 0.0 }
 0x9e5   : > { %9520 = vmatprep.mubr.msk.f32.mxu1 %vm252_vm0, %v6621_v25 }
 0x9e6   : > { %9521 = vmatmul.mubr.msk.f32.gmra.mrb[94].mxu1 %vm252_vm0, %v6622_v10  ;;  %v15180_v10 = vld [vmem:[#allocation7_spill] sm:$0xff]  ;;  %vm8659_vm0 = vcmask 130144  }
 0xa42   : > { %v9477_v32 = vpop.f32.mrb[64].mxu1 }
 0xa43   : > { %6948 = vst.msk [vmem:[#allocation2 + $0x20] sm:$0xff] %vm350_vm2, %v9477_v32  ;;  %v6788_v16 = vpop.f32.mrb[65].mxu1 }
 0xa44   : > { %6947 = vst.msk [vmem:[#allocation2 + $0x18] sm:$0xff] %vm350_vm2, %v6788_v16 }
 0xa48   : > { %v9480_v2 = vpop.f32.mrb[66].mxu1 }
 0xa49   : > { %6950 = vst.msk [vmem:[#allocation2 + $0x30] sm:$0xff] %vm350_vm2, %v9480_v2  ;;  %v6798_v34 = vpop.f32.mrb[67].mxu1 }
 0xa4a   : > { %6949 = vst.msk [vmem:[#allocation2 + $0x28] sm:$0xff] %vm350_vm2, %v6798_v34  ;;  %v7078_v0 = vld [vmem:[#allocation2 + $0x20] sm:$0xff] }
 0xa4b   : > { %7145 = vrot.lane.b32.xlu1 %v7078_v0, %s9620_s18  ;;  %v7077_v36 = vld [vmem:[#allocation2 + $0x18] sm:$0xff] }
 0xa4c   : > { %7143 = vrot.lane.b32.xlu0 %v7077_v36, %s9620_s18  ;;  %v9483_v12 = vpop.f32.mrb[68].mxu1  ;;  %v7269_v41 = vld [vmem:[#allocation2 + $0x19] sm:$0xff]  ;;  %v7268_v59 = vld [vmem:[#allocation2 + $0x11] sm:$0xff] }
 0xa4d   : > { %6952 = vst.msk [vmem:[#allocation2 + $0x40] sm:$0xff] %vm350_vm2, %v9483_v12  ;;  %v6808_v3 = vpop.f32.mrb[69].mxu1  ;;  %v6982_v56 = vld [vmem:[#allocation2 + $0x1f] sm:$0xff]  ;;  %v7300_v46 = vmul.f32 %v15177_v21, %v7268_v59  ;;  %v6981_v40 = vld [vmem:[#allocation2 + $0x17] sm:$0xff] }
 0xa4e   : > { %6951 = vst.msk [vmem:[#allocation2 + $0x38] sm:$0xff] %vm350_vm2, %v6808_v3  ;;  %v7493_v38 = vmul.f32 %v15178_v35, %v6981_v40  ;;  %v13213_v40 = vpop.permute.xlu0 %7139 }
 0xa4f   : > { %7691 = vrot.lane.b32.xlu1 %v7078_v0, %s9624_s25 }
 0xa50   : > { %7367 = vrot.lane.b32.xlu0 %v7269_v41, %s9621_s19  ;;  %v9486_v33 = vpop.f32.mrb[70].mxu1  ;;  %v7080_v62 = vld [vmem:[#allocation2 + $0x30] sm:$0xff] }
 0xa51   : > { %6954 = vst.msk [vmem:[#allocation2 + $0x50] sm:$0xff] %vm350_vm2, %v9486_v33  ;;  %v6818_v26 = vpop.f32.mrb[71].mxu1  ;;  %v7079_v4 = vld [vmem:[#allocation2 + $0x28] sm:$0xff] }
 0xa52   : > { %6953 = vst.msk [vmem:[#allocation2 + $0x48] sm:$0xff] %vm350_vm2, %v6818_v26  ;;  %v7271_v57 = vld [vmem:[#allocation2 + $0x29] sm:$0xff]  ;;  %v7270_v24 = vld [vmem:[#allocation2 + $0x21] sm:$0xff] }
 0xa53   : > { %7559 = vrot.lane.b32.xlu1 %v6982_v56, %s9626_s27  ;;  %v6984_v45 = vld [vmem:[#allocation2 + $0x2f] sm:$0xff]  ;;  %v7302_v22 = vmul.f32 %v15179_v51, %v7270_v24  ;;  %v7820_v50 = vmul.f32 %v15177_v21, %v7270_v24  ;;  %v6983_v48 = vld [vmem:[#allocation2 + $0x27] sm:$0xff] }
 0xa54   : > { %7689 = vrot.lane.b32.xlu0 %v7077_v36, %s9624_s25  ;;  %v9489_v5 = vpop.f32.mrb[72].mxu1  ;;  %v7082_v27 = vld [vmem:[#allocation2 + $0x40] sm:$0xff]  ;;  %v7495_v20 = vmul.f32 %v14817_v43, %v6983_v48  ;;  %v8013_v61 = vmul.f32 %v15178_v35, %v6983_v48 }
 0xa55   : > { %6956 = vst.msk [vmem:[#allocation2 + $0x60] sm:$0xff] %vm350_vm2, %v9489_v5  ;;  %v6828_v31 = vpop.f32.mrb[73].mxu1  ;;  %v7081_v6 = vld [vmem:[#allocation2 + $0x38] sm:$0xff]  ;;  %v15181_v5 = vld [vmem:[#allocation9_spill] sm:$0xff] }
 0xa56   : > { %6955 = vst.msk [vmem:[#allocation2 + $0x58] sm:$0xff] %vm350_vm2, %v6828_v31  ;;  %v6986_v58 = vld [vmem:[#allocation2 + $0x3f] sm:$0xff]  ;;  %v7272_v25 = vld [vmem:[#allocation2 + $0x31] sm:$0xff] }
 0xa57   : > { %7365 = vrot.lane.b32.xlu1 %v7300_v46, %s9621_s19  ;;  %v7273_v54 = vld [vmem:[#allocation2 + $0x39] sm:$0xff]  ;;  %v7304_v32 = vmul.f32 %v15180_v10, %v7272_v25  ;;  %v7822_v34 = vmul.f32 %v15179_v51, %v7272_v25  ;;  %v8340_v0 = vmul.f32 %v15177_v21, %v7272_v25  ;;  %v13209_v21 = vpop.permute.xlu1 %7141 }
 0xa58   : > { %7883 = vrot.lane.b32.xlu0 %v7269_v41, %s9625_s26  ;;  %v9492_v28 = vpop.f32.mrb[74].mxu1  ;;  %v6985_v36 = vld [vmem:[#allocation2 + $0x37] sm:$0xff] }
 0xa59   : > { %6958 = vst.msk [vmem:[#allocation2 + $0x70] sm:$0xff] %vm350_vm2, %v9492_v28  ;;  %v6838_v23 = vpop.f32.mrb[75].mxu1  ;;  %v7084_v12 = vld [vmem:[#allocation2 + $0x50] sm:$0xff]  ;;  %v7497_v3 = vmul.f32 %v10184_v13, %v6985_v36  ;;  %v8015_v41 = vmul.f32 %v14817_v43, %v6985_v36  ;;  %v7083_v33 = vld [vmem:[#allocation2 + $0x48] sm:$0xff] }
 0xa5a   : > { %6957 = vst.msk [vmem:[#allocation2 + $0x68] sm:$0xff] %vm350_vm2, %v6838_v23  ;;  %v6988_v26 = vld [vmem:[#allocation2 + $0x4f] sm:$0xff]  ;;  %v7274_v59 = vld [vmem:[#allocation2 + $0x41] sm:$0xff] }
 0xa5b   : > { %7149 = vrot.lane.b32.xlu1 %v7080_v62, %s9620_s18  ;;  %v7275_v56 = vld [vmem:[#allocation2 + $0x49] sm:$0xff]  ;;  %v7306_v31 = vmul.f32 %v15181_v5, %v7274_v59  ;;  %v7824_v46 = vmul.f32 %v15180_v10, %v7274_v59 }
 0xa5c   : > { %7557 = vrot.lane.b32.xlu0 %v7493_v38, %s9626_s27  ;;  %v13220_v38 = vpop.permute.xlu1 %8139 }
 0xa5d   : > { %15182 = vst [vmem:[#allocation35_spill] sm:$0xff] %v13220_v38 }
 0xa5e   : > { %v9495_v14 = vpop.f32.mrb[76].mxu1 }
 0xa5f   : > { %6960 = vst.msk [vmem:[#allocation2 + $0x80] sm:$0xff] %vm350_vm2, %v9495_v14  ;;  %v6848_v9 = vpop.f32.mrb[77].mxu1  ;;  %7695 = vrot.lane.b32.xlu1 %v7080_v62, %s9624_s25  ;;  %v6987_v14 = vld [vmem:[#allocation2 + $0x47] sm:$0xff] }
 0xa60   : > { %6959 = vst.msk [vmem:[#allocation2 + $0x78] sm:$0xff] %vm350_vm2, %v6848_v9  ;;  %7147 = vrot.lane.b32.xlu0 %v7079_v4, %s9620_s18  ;;  %v13223_v9 = vpop.permute.xlu0 %7363 }
 0xa62   : > { %v9498_v49 = vpop.f32.mrb[78].mxu1 }
 0xa63   : > { %6962 = vst.msk [vmem:[#allocation2 + $0x90] sm:$0xff] %vm350_vm2, %v9498_v49  ;;  %v6858_v37 = vpop.f32.mrb[79].mxu1  ;;  %8211 = vrot.lane.b32.xlu1 %v7080_v62, %s9623_s24  ;;  %v8342_v62 = vmul.f32 %v15179_v51, %v7274_v59 }
 0xa64   : > { %6961 = vst.msk [vmem:[#allocation2 + $0x88] sm:$0xff] %vm350_vm2, %v6858_v37  ;;  %7371 = vrot.lane.b32.xlu0 %v7271_v57, %s9621_s19  ;;  %v7086_v37 = vld [vmem:[#allocation2 + $0x60] sm:$0xff] }
 0xa66   : > { %v9501_v52 = vpop.f32.mrb[80].mxu1 }
 0xa67   : > { %6964 = vst.msk [vmem:[#allocation2 + $0xa0] sm:$0xff] %vm350_vm2, %v9501_v52  ;;  %v6868_v39 = vpop.f32.mrb[81].mxu1  ;;  %7563 = vrot.lane.b32.xlu1 %v6984_v45, %s9626_s27  ;;  %v13230_v52 = vpop.permute.xlu1 %8271  ;;  %v7280_v38 = vld [vmem:[#allocation2 + $0x71] sm:$0xff] }
 0xa68   : > { %6963 = vst.msk [vmem:[#allocation2 + $0x98] sm:$0xff] %vm350_vm2, %v6868_v39  ;;  %7693 = vrot.lane.b32.xlu0 %v7079_v4, %s9624_s25  ;;  %15183 = vst [vmem:[#allocation24_spill] sm:$0xff] %v13230_v52  ;;  %v13233_v39 = vpop.permute.xlu0 %8269 }
 0xa69   : > { %15184 = vst [vmem:[#allocation79_spill] sm:$0xff] %v13233_v39  ;;  %v7281_v39 = vld [vmem:[#allocation2 + $0x79] sm:$0xff] }
 0xa6a   : > { %v9504_v1 = vpop.f32.mrb[82].mxu1 }
 0xa6b   : > { %6966 = vst.msk [vmem:[#allocation2 + $0xb0] sm:$0xff] %vm350_vm2, %v9504_v1  ;;  %v6878_v17 = vpop.f32.mrb[83].mxu1  ;;  %8079 = vrot.lane.b32.xlu1 %v6984_v45, %s9622_s23 }
 0xa6c   : > { %6965 = vst.msk [vmem:[#allocation2 + $0xa8] sm:$0xff] %vm350_vm2, %v6878_v17  ;;  %7887 = vrot.lane.b32.xlu0 %v7271_v57, %s9625_s26  ;;  %v8017_v17 = vmul.f32 %v10184_v13, %v6987_v14 }
 0xa6e   : > { %v9507_v19 = vpop.f32.mrb[84].mxu1 }
 0xa6f   : > { %6968 = vst.msk [vmem:[#allocation2 + $0xc0] sm:$0xff] %vm350_vm2, %v9507_v19  ;;  %v6888_v47 = vpop.f32.mrb[85].mxu1  ;;  %7369 = vrot.lane.b32.xlu1 %v7302_v22, %s9621_s19 }
 0xa70   : > { %6967 = vst.msk [vmem:[#allocation2 + $0xb8] sm:$0xff] %vm350_vm2, %v6888_v47  ;;  %8209 = vrot.lane.b32.xlu0 %v7079_v4, %s9623_s24  ;;  %v7085_v47 = vld [vmem:[#allocation2 + $0x58] sm:$0xff] }
 0xa72   : > { %v9510_v53 = vpop.f32.mrb[86].mxu1 }
 0xa73   : > { %6970 = vst.msk [vmem:[#allocation2 + $0xd0] sm:$0xff] %vm350_vm2, %v9510_v53  ;;  %v6898_v7 = vpop.f32.mrb[87].mxu1  ;;  %7885 = vrot.lane.b32.xlu1 %v7820_v50, %s9625_s26  ;;  %v6990_v53 = vld [vmem:[#allocation2 + $0x5f] sm:$0xff] }
 0xa74   : > { %6969 = vst.msk [vmem:[#allocation2 + $0xc8] sm:$0xff] %vm350_vm2, %v6898_v7  ;;  %8403 = vrot.lane.b32.xlu0 %v7271_v57, %s9627_s28  ;;  %v7499_v57 = vmul.f32 %v10223_v44, %v6987_v14  ;;  %v7277_v7 = vld [vmem:[#allocation2 + $0x59] sm:$0xff] }
 0xa77   : > { %7153 = vrot.lane.b32.xlu1 %v7082_v27, %s9620_s18 }
 0xa78   : > { %7561 = vrot.lane.b32.xlu0 %v7495_v20, %s9626_s27 }
 0xa7b   : > { %7699 = vrot.lane.b32.xlu1 %v7082_v27, %s9624_s25 }
 0xa7c   : > { %8077 = vrot.lane.b32.xlu0 %v8013_v61, %s9622_s23  ;;  %v15185_v61 = vld [vmem:[#allocation14_spill] sm:$0xff] }
 0xa7f   : > { %8215 = vrot.lane.b32.xlu1 %v7082_v27, %s9623_s24  ;;  %v7276_v27 = vld [vmem:[#allocation2 + $0x51] sm:$0xff] }
 0xa80   : > { %7151 = vrot.lane.b32.xlu0 %v7081_v6, %s9620_s18  ;;  %v7826_v25 = vmul.f32 %v15181_v5, %v7276_v27 }
 0xa83   : > { %7567 = vrot.lane.b32.xlu1 %v6986_v58, %s9626_s27 }
 0xa84   : > { %7375 = vrot.lane.b32.xlu0 %v7273_v54, %s9621_s19 }
 0xa87   : > { %8083 = vrot.lane.b32.xlu1 %v6986_v58, %s9622_s23 }
 0xa88   : > { %7697 = vrot.lane.b32.xlu0 %v7081_v6, %s9624_s25 }
 0xa8b   : > { %7373 = vrot.lane.b32.xlu1 %v7304_v32, %s9621_s19  ;;  %v9513_v16 = vpop.f32.mrb[88].mxu1 }
 0xa8c   : > { %6972 = vst.msk [vmem:[#allocation2 + $0xe0] sm:$0xff] %vm350_vm2, %v9513_v16  ;;  %7891 = vrot.lane.b32.xlu0 %v7273_v54, %s9625_s26  ;;  %v6908_v2 = vpop.f32.mrb[89].mxu1 }
 0xa8d   : > { %6971 = vst.msk [vmem:[#allocation2 + $0xd8] sm:$0xff] %vm350_vm2, %v6908_v2  ;;  %v8344_v2 = vmul.f32 %v15180_v10, %v7276_v27 }
 0xa8f   : > { %7889 = vrot.lane.b32.xlu1 %v7822_v34, %s9625_s26 }
 0xa90   : > { %8213 = vrot.lane.b32.xlu0 %v7081_v6, %s9623_s24  ;;  %v7308_v6 = vmul.f32 %v15185_v61, %v7276_v27 }
 0xa93   : > { %8405 = vrot.lane.b32.xlu1 %v8340_v0, %s9627_s28  ;;  %v13278_v0 = vld [vmem:[#allocation2 + $0x57] sm:$0xff] }
 0xa94   : > { %8407 = vrot.lane.b32.xlu0 %v7273_v54, %s9627_s28 }
 0xa97   : > { %7157 = vrot.lane.b32.xlu1 %v7084_v12, %s9620_s18 }
 0xa98   : > { %7565 = vrot.lane.b32.xlu0 %v7497_v3, %s9626_s27  ;;  %v7088_v3 = vld [vmem:[#allocation2 + $0x70] sm:$0xff] }
 0xa9b   : > { %7703 = vrot.lane.b32.xlu1 %v7084_v12, %s9624_s25 }
 0xa9c   : > { %8081 = vrot.lane.b32.xlu0 %v8015_v41, %s9622_s23  ;;  %v7501_v41 = vmul.f32 %v10276_v11, %v13278_v0 }
 0xa9f   : > { %8219 = vrot.lane.b32.xlu1 %v7084_v12, %s9623_s24 }
 0xaa0   : > { %7155 = vrot.lane.b32.xlu0 %v7083_v33, %s9620_s18 }
 0xaa3   : > { %7571 = vrot.lane.b32.xlu1 %v6988_v26, %s9626_s27 }
 0xaa4   : > { %7379 = vrot.lane.b32.xlu0 %v7275_v56, %s9621_s19 }
 0xaa7   : > { %8087 = vrot.lane.b32.xlu1 %v6988_v26, %s9622_s23  ;;  %v8019_v26 = vmul.f32 %v10223_v44, %v13278_v0 }
 0xaa8   : > { %7701 = vrot.lane.b32.xlu0 %v7083_v33, %s9624_s25 }
 0xaab   : > { %7377 = vrot.lane.b32.xlu1 %v7306_v31, %s9621_s19  ;;  %v7087_v31 = vld [vmem:[#allocation2 + $0x68] sm:$0xff] }
 0xaac   : > { %7895 = vrot.lane.b32.xlu0 %v7275_v56, %s9625_s26 }
 0xaaf   : > { %7893 = vrot.lane.b32.xlu1 %v7824_v46, %s9625_s26  ;;  %v9516_v28 = vpop.f32.mrb[90].mxu1 }
 0xab0   : > { %6974 = vst.msk [vmem:[#allocation2 + $0xf0] sm:$0xff] %vm350_vm2, %v9516_v28  ;;  %8217 = vrot.lane.b32.xlu0 %v7083_v33, %s9623_s24  ;;  %v6918_v23 = vpop.f32.mrb[91].mxu1 }
 0xab1   : > { %6973 = vst.msk [vmem:[#allocation2 + $0xe8] sm:$0xff] %vm350_vm2, %v6918_v23  ;;  %v6992_v23 = vld [vmem:[#allocation2 + $0x6f] sm:$0xff] }
 0xab3   : > { %8409 = vrot.lane.b32.xlu1 %v8342_v62, %s9627_s28  ;;  %v7279_v62 = vld [vmem:[#allocation2 + $0x69] sm:$0xff] }
 0xab4   : > { %8411 = vrot.lane.b32.xlu0 %v7275_v56, %s9627_s28 }
 0xab5   : > { %v9519_v4 = vpop.f32.mrb[92].mxu1 }
 0xab6   : > { %6976 = vst.msk [vmem:[#allocation2 + $0x100] sm:$0xff] %vm350_vm2, %v9519_v4  ;;  %v6928_v49 = vpop.f32.mrb[93].mxu1 }
 0xab7   : > { %6975 = vst.msk [vmem:[#allocation2 + $0xf8] sm:$0xff] %vm350_vm2, %v6928_v49  ;;  %7161 = vrot.lane.b32.xlu1 %v7086_v37, %s9620_s18  ;;  %v7278_v49 = vld [vmem:[#allocation2 + $0x61] sm:$0xff] }
 0xab8   : > { %7569 = vrot.lane.b32.xlu0 %v7499_v57, %s9626_s27  ;;  %v15190_v57 = vld [vmem:[#allocation22_spill] sm:$0xff]  ;;  %v8346_v27 = vmul.f32 %v15181_v5, %v7278_v49 }
 0xab9   : > { %v9522_v45 = vpop.f32.mrb[94].mxu1 }
 0xaba   : > { %6978 = vst.msk [vmem:[#allocation2 + $0x110] sm:$0xff] %vm350_vm2, %v9522_v45  ;;  %v6938_v1 = vpop.f32.mrb[95].mxu1  ;;  %v7310_v45 = vmul.f32 %v15190_v57, %v7278_v49 }
 0xabb   : > { %6977 = vst.msk [vmem:[#allocation2 + $0x108] sm:$0xff] %vm350_vm2, %v6938_v1  ;;  %7707 = vrot.lane.b32.xlu1 %v7086_v37, %s9624_s25 }
 0xabc   : > { %8085 = vrot.lane.b32.xlu0 %v8017_v17, %s9622_s23 }
 0xabd   : > { %v13240_v24 = vpop.permute.xlu1 %7145 }
 0xabe   : > { %v13242_v19 = vpop.permute.xlu0 %7143 }
 0xabf   : > { %8223 = vrot.lane.b32.xlu1 %v7086_v37, %s9623_s24 }
 0xac0   : > { %7159 = vrot.lane.b32.xlu0 %v7085_v47, %s9620_s18 }
 0xac1   : > { %v13246_v51 = vpop.permute.xlu1 %7691 }
 0xac2   : > { %v13248_v22 = vpop.permute.xlu0 %7367 }
 0xac3   : > { %7575 = vrot.lane.b32.xlu1 %v6990_v53, %s9626_s27 }
 0xac4   : > { %7383 = vrot.lane.b32.xlu0 %v7277_v7, %s9621_s19 }
 0xac5   : > { %v13252_v50 = vpop.permute.xlu1 %7559 }
 0xac6   : > { %v13254_v48 = vpop.permute.xlu0 %7689 }
 0xac7   : > { %8091 = vrot.lane.b32.xlu1 %v6990_v53, %s9622_s23 }
 0xac8   : > { %7705 = vrot.lane.b32.xlu0 %v7085_v47, %s9624_s25 }
 0xac9   : > { %v13258_v20 = vpop.permute.xlu1 %7365 }
 0xaca   : > { %v13261_v58 = vpop.permute.xlu0 %7883 }
 0xacb   : > { %7381 = vrot.lane.b32.xlu1 %v7308_v6, %s9621_s19 }
 0xacc   : > { %7899 = vrot.lane.b32.xlu0 %v7277_v7, %s9625_s26 }
 0xacd   : > { %v13265_v54 = vpop.permute.xlu1 %7149 }
 0xace   : > { %v13268_v32 = vpop.permute.xlu0 %7557 }
 0xacf   : > { %7897 = vrot.lane.b32.xlu1 %v7826_v25, %s9625_s26  ;;  %v13335_v25 = vld [vmem:[#allocation2 + $0x67] sm:$0xff] }
 0xad0   : > { %8221 = vrot.lane.b32.xlu0 %v7085_v47, %s9623_s24  ;;  %v7828_v47 = vmul.f32 %v15185_v61, %v7278_v49 }
 0xad1   : > { %v13272_v16 = vpop.permute.xlu1 %7695 }
 0xad2   : > { %v13275_v34 = vpop.permute.xlu0 %7147 }
 0xad3   : > { %8413 = vrot.lane.b32.xlu1 %v8344_v2, %s9627_s28 }
 0xad4   : > { %8415 = vrot.lane.b32.xlu0 %v7277_v7, %s9627_s28 }
 0xad5   : > { %v13281_v36 = vpop.permute.xlu1 %8211 }
 0xad6   : > { %15186 = vst [vmem:[#allocation84_spill] sm:$0xff] %v13281_v36  ;;  %v13283_v12 = vpop.permute.xlu0 %7371 }
 0xad7   : > { %7165 = vrot.lane.b32.xlu1 %v7088_v3, %s9620_s18 }
 0xad8   : > { %7573 = vrot.lane.b32.xlu0 %v7501_v41, %s9626_s27  ;;  %v7090_v41 = vld [vmem:[#allocation2 + $0x80] sm:$0xff] }
 0xad9   : > { %v13289_v10 = vpop.permute.xlu1 %7563 }
 0xada   : > { %v13291_v33 = vpop.permute.xlu0 %7693 }
 0xadb   : > { %7711 = vrot.lane.b32.xlu1 %v7088_v3, %s9624_s25 }
 0xadc   : > { %8089 = vrot.lane.b32.xlu0 %v8019_v26, %s9622_s23  ;;  %v7503_v26 = vmul.f32 %v10339_v63, %v13335_v25 }
 0xadd   : > { %v13297_v56 = vpop.permute.xlu1 %8079 }
 0xade   : > { %15187 = vst [vmem:[#allocation74_spill] sm:$0xff] %v13297_v56  ;;  %v13299_v59 = vpop.permute.xlu0 %7887 }
 0xadf   : > { %8227 = vrot.lane.b32.xlu1 %v7088_v3, %s9623_s24 }
 0xae0   : > { %7163 = vrot.lane.b32.xlu0 %v7087_v31, %s9620_s18 }
 0xae1   : > { %v13303_v46 = vpop.permute.xlu1 %7369 }
 0xae2   : > { %v13305_v28 = vpop.permute.xlu0 %8209 }
 0xae3   : > { %15188 = vst [vmem:[#allocation58_spill] sm:$0xff] %v13305_v28  ;;  %7579 = vrot.lane.b32.xlu1 %v6992_v23, %s9626_s27  ;;  %v7092_v28 = vld [vmem:[#allocation2 + $0x90] sm:$0xff] }
 0xae4   : > { %7387 = vrot.lane.b32.xlu0 %v7279_v62, %s9621_s19 }
 0xae5   : > { %v13309_v14 = vpop.permute.xlu1 %7885 }
 0xae6   : > { %v13311_v4 = vpop.permute.xlu0 %8403 }
 0xae7   : > { %15189 = vst [vmem:[#allocation15_spill] sm:$0xff] %v13311_v4  ;;  %8095 = vrot.lane.b32.xlu1 %v6992_v23, %s9622_s23  ;;  %v8021_v23 = vmul.f32 %v10276_v11, %v13335_v25 }
 0xae8   : > { %7709 = vrot.lane.b32.xlu0 %v7087_v31, %s9624_s25 }
 0xae9   : > { %v13315_v37 = vpop.permute.xlu1 %7153 }
 0xaea   : > { %v13318_v1 = vpop.permute.xlu0 %7561 }
 0xaeb   : > { %7385 = vrot.lane.b32.xlu1 %v7310_v45, %s9621_s19  ;;  %v7089_v45 = vld [vmem:[#allocation2 + $0x78] sm:$0xff] }
 0xaec   : > { %7903 = vrot.lane.b32.xlu0 %v7279_v62, %s9625_s26 }
 0xaed   : > { %v13322_v17 = vpop.permute.xlu1 %7699 }
 0xaee   : > { %15191 = vst [vmem:[#allocation67_spill] sm:$0xff] %v13322_v17  ;;  %v13325_v53 = vpop.permute.xlu0 %8077 }
 0xaef   : > { %7901 = vrot.lane.b32.xlu1 %v7828_v47, %s9625_s26 }
 0xaf0   : > { %8225 = vrot.lane.b32.xlu0 %v7087_v31, %s9623_s24 }
 0xaf1   : > { %v13329_v7 = vpop.permute.xlu1 %8215 }
 0xaf2   : > { %15192 = vst [vmem:[#allocation13_spill] sm:$0xff] %v13329_v7  ;;  %v13332_v6 = vpop.permute.xlu0 %7151  ;;  %v15202_v7 = vld [vmem:[#allocation32_spill] sm:$0xff] }
 0xaf3   : > { %8417 = vrot.lane.b32.xlu1 %v8346_v27, %s9627_s28  ;;  %v7312_v4 = vmul.f32 %v15202_v7, %v7280_v38 }
 0xaf4   : > { %8419 = vrot.lane.b32.xlu0 %v7279_v62, %s9627_s28 }
 0xaf5   : > { %v13338_v2 = vpop.permute.xlu1 %7567 }
 0xaf6   : > { %v13340_v3 = vpop.permute.xlu0 %7375 }
 0xaf7   : > { %15193 = vst [vmem:[#allocation46_spill] sm:$0xff] %v13340_v3  ;;  %7169 = vrot.lane.b32.xlu1 %v7090_v41, %s9620_s18 }
 0xaf8   : > { %7577 = vrot.lane.b32.xlu0 %v7503_v26, %s9626_s27  ;;  %v6994_v26 = vld [vmem:[#allocation2 + $0x7f] sm:$0xff] }
 0xaf9   : > { %v13346_v5 = vpop.permute.xlu1 %8083 }
 0xafa   : > { %15194 = vst [vmem:[#allocation18_spill] sm:$0xff] %v13346_v5  ;;  %v13348_v31 = vpop.permute.xlu0 %7697 }
 0xafb   : > { %15195 = vst [vmem:[#allocation63_spill] sm:$0xff] %v13348_v31  ;;  %7715 = vrot.lane.b32.xlu1 %v7090_v41, %s9624_s25 }
 0xafc   : > { %8093 = vrot.lane.b32.xlu0 %v8021_v23, %s9622_s23 }
 0xafd   : > { %v13354_v62 = vpop.permute.xlu1 %7373 }
 0xafe   : > { %v13356_v49 = vpop.permute.xlu0 %7891 }
 0xaff   : > { %15196 = vst [vmem:[#allocation143_spill] sm:$0xff] %v13356_v49  ;;  %8231 = vrot.lane.b32.xlu1 %v7090_v41, %s9623_s24  ;;  %v8348_v49 = vmul.f32 %v15185_v61, %v7280_v38 }
 0xb00   : > { %7167 = vrot.lane.b32.xlu0 %v7089_v45, %s9620_s18 }
 0xb01   : > { %v13360_v47 = vpop.permute.xlu1 %7889 }
 0xb02   : > { %15197 = vst [vmem:[#allocation54_spill] sm:$0xff] %v13360_v47  ;;  %v13362_v27 = vpop.permute.xlu0 %8213 }
 0xb03   : > { %15198 = vst [vmem:[#allocation17_spill] sm:$0xff] %v13362_v27  ;;  %7583 = vrot.lane.b32.xlu1 %v6994_v26, %s9626_s27 }
 0xb04   : > { %7391 = vrot.lane.b32.xlu0 %v7281_v39, %s9621_s19 }
 0xb05   : > { %v13366_v23 = vpop.permute.xlu1 %8405 }
 0xb06   : > { %15199 = vst [vmem:[#allocation69_spill] sm:$0xff] %v13366_v23  ;;  %v13368_v52 = vpop.permute.xlu0 %8407  ;;  %v7830_v23 = vmul.f32 %v15190_v57, %v7280_v38 }
 0xb07   : > { %15200 = vst [vmem:[#allocation72_spill] sm:$0xff] %v13368_v52  ;;  %8099 = vrot.lane.b32.xlu1 %v6994_v26, %s9622_s23 }
 0xb08   : > { %7713 = vrot.lane.b32.xlu0 %v7089_v45, %s9624_s25 }
 0xb09   : > { %v13372_v41 = vpop.permute.xlu1 %7157 }
 0xb0a   : > { %15201 = vst [vmem:[#allocation77_spill] sm:$0xff] %v13372_v41  ;;  %v13375_v27 = vpop.permute.xlu0 %7565 }
 0xb0b   : > { %7389 = vrot.lane.b32.xlu1 %v7312_v4, %s9621_s19  ;;  %v13392_v4 = vld [vmem:[#allocation2 + $0x77] sm:$0xff] }
 0xb0c   : > { %7907 = vrot.lane.b32.xlu0 %v7281_v39, %s9625_s26 }
 0xb0d   : > { %v13379_v5 = vpop.permute.xlu1 %7703 }
 0xb0e   : > { %15203 = vst [vmem:[#allocation55_spill] sm:$0xff] %v13379_v5  ;;  %v13382_v52 = vpop.permute.xlu0 %8081 }
 0xb0f   : > { %15204 = vst [vmem:[#allocation27_spill] sm:$0xff] %v13382_v52  ;;  %7905 = vrot.lane.b32.xlu1 %v7830_v23, %s9625_s26 }
 0xb10   : > { %8229 = vrot.lane.b32.xlu0 %v7089_v45, %s9623_s24  ;;  %v7505_v45 = vmul.f32 %v10402_v55, %v13392_v4 }
 0xb11   : > { %v13386_v26 = vpop.permute.xlu1 %8219 }
 0xb12   : > { %15205 = vst [vmem:[#allocation37_spill] sm:$0xff] %v13386_v26  ;;  %v13389_v36 = vpop.permute.xlu0 %7155  ;;  %v7091_v26 = vld [vmem:[#allocation2 + $0x88] sm:$0xff] }
 0xb13   : > { %15206 = vst [vmem:[#allocation82_spill] sm:$0xff] %v13389_v36  ;;  %8421 = vrot.lane.b32.xlu1 %v8348_v49, %s9627_s28  ;;  %v8023_v49 = vmul.f32 %v10339_v63, %v13392_v4 }
 0xb14   : > { %8423 = vrot.lane.b32.xlu0 %v7281_v39, %s9627_s28 }
 0xb15   : > { %v13395_v5 = vpop.permute.xlu1 %7571 }
 0xb16   : > { %15207 = vst [vmem:[#allocation60_spill] sm:$0xff] %v13395_v5  ;;  %v13397_v17 = vpop.permute.xlu0 %7379 }
 0xb17   : > { %15208 = vst [vmem:[#allocation59_spill] sm:$0xff] %v13397_v17  ;;  %7173 = vrot.lane.b32.xlu1 %v7092_v28, %s9620_s18  ;;  %v7283_v17 = vld [vmem:[#allocation2 + $0x89] sm:$0xff] }
 0xb18   : > { %7581 = vrot.lane.b32.xlu0 %v7505_v45, %s9626_s27 }
 0xb19   : > { %v13403_v38 = vpop.permute.xlu1 %8087 }
 0xb1a   : > { %15209 = vst [vmem:[#allocation26_spill] sm:$0xff] %v13403_v38  ;;  %v13405_v61 = vpop.permute.xlu0 %7701 }
 0xb1b   : > { %15210 = vst [vmem:[#allocation23_spill] sm:$0xff] %v13405_v61  ;;  %7719 = vrot.lane.b32.xlu1 %v7092_v28, %s9624_s25  ;;  %v6996_v61 = vld [vmem:[#allocation2 + $0x8f] sm:$0xff] }
 0xb1c   : > { %8097 = vrot.lane.b32.xlu0 %v8023_v49, %s9622_s23 }
 0xb1d   : > { %v13411_v39 = vpop.permute.xlu1 %7377 }
 0xb1e   : > { %15211 = vst [vmem:[#allocation65_spill] sm:$0xff] %v13411_v39  ;;  %v13413_v23 = vpop.permute.xlu0 %7895 }
 0xb1f   : > { %15212 = vst [vmem:[#allocation66_spill] sm:$0xff] %v13413_v23  ;;  %8235 = vrot.lane.b32.xlu1 %v7092_v28, %s9623_s24  ;;  %v7282_v23 = vld [vmem:[#allocation2 + $0x81] sm:$0xff] }
 0xb20   : > { %7171 = vrot.lane.b32.xlu0 %v7091_v26, %s9620_s18 }
 0xb21   : > { %v13417_v45 = vpop.permute.xlu1 %7893 }
 0xb22   : > { %15213 = vst [vmem:[#allocation48_spill] sm:$0xff] %v13417_v45  ;;  %v13419_v38 = vpop.permute.xlu0 %8217  ;;  %v15218_v45 = vld [vmem:[#allocation44_spill] sm:$0xff] }
 0xb23   : > { %15214 = vst [vmem:[#allocation20_spill] sm:$0xff] %v13419_v38  ;;  %7587 = vrot.lane.b32.xlu1 %v6996_v61, %s9626_s27  ;;  %v7314_v36 = vmul.f32 %v15218_v45, %v7282_v23 }
 0xb24   : > { %7395 = vrot.lane.b32.xlu0 %v7283_v17, %s9621_s19 }
 0xb25   : > { %v13423_v49 = vpop.permute.xlu1 %8409 }
 0xb26   : > { %15215 = vst [vmem:[#allocation42_spill] sm:$0xff] %v13423_v49  ;;  %v13425_v5 = vpop.permute.xlu0 %8411  ;;  %v7832_v49 = vmul.f32 %v15202_v7, %v7282_v23 }
 0xb27   : > { %15216 = vst [vmem:[#allocation98_spill] sm:$0xff] %v13425_v5  ;;  %8103 = vrot.lane.b32.xlu1 %v6996_v61, %s9622_s23 }
 0xb28   : > { %7717 = vrot.lane.b32.xlu0 %v7091_v26, %s9624_s25 }
 0xb29   : > { %v13429_v28 = vpop.permute.xlu1 %7161 }
 0xb2a   : > { %15217 = vst [vmem:[#allocation105_spill] sm:$0xff] %v13429_v28  ;;  %v13432_v38 = vpop.permute.xlu0 %7569  ;;  %v8350_v28 = vmul.f32 %v15190_v57, %v7282_v23 }
 0xb2b   : > { %15219 = vst [vmem:[#allocation86_spill] sm:$0xff] %v13432_v38  ;;  %7393 = vrot.lane.b32.xlu1 %v7314_v36, %s9621_s19  ;;  %v13449_v36 = vld [vmem:[#allocation2 + $0x87] sm:$0xff] }
 0xb2c   : > { %7911 = vrot.lane.b32.xlu0 %v7283_v17, %s9625_s26 }
 0xb2d   : > { %v13436_v41 = vpop.permute.xlu1 %7707 }
 0xb2e   : > { %15220 = vst [vmem:[#allocation101_spill] sm:$0xff] %v13436_v41  ;;  %v13439_v5 = vpop.permute.xlu0 %8085 }
 0xb2f   : > { %15221 = vst [vmem:[#allocation45_spill] sm:$0xff] %v13439_v5  ;;  %7909 = vrot.lane.b32.xlu1 %v7832_v49, %s9625_s26  ;;  %v7094_v5 = vld [vmem:[#allocation2 + $0xa0] sm:$0xff]  ;;  %v8025_v49 = vmul.f32 %v10402_v55, %v13449_v36 }
 0xb30   : > { %8233 = vrot.lane.b32.xlu0 %v7091_v26, %s9623_s24  ;;  %v7507_v26 = vmul.f32 %v10467_v18, %v13449_v36 }
 0xb31   : > { %v13443_v61 = vpop.permute.xlu1 %8223 }
 0xb32   : > { %15222 = vst [vmem:[#allocation38_spill] sm:$0xff] %v13443_v61  ;;  %v13446_v52 = vpop.permute.xlu0 %7159  ;;  %v7093_v61 = vld [vmem:[#allocation2 + $0x98] sm:$0xff] }
 0xb33   : > { %15223 = vst [vmem:[#allocation115_spill] sm:$0xff] %v13446_v52  ;;  %8425 = vrot.lane.b32.xlu1 %v8350_v28, %s9627_s28 }
 0xb34   : > { %8427 = vrot.lane.b32.xlu0 %v7283_v17, %s9627_s28 }
 0xb35   : > { %v13452_v41 = vpop.permute.xlu1 %7575 }
 0xb36   : > { %15224 = vst [vmem:[#allocation30_spill] sm:$0xff] %v13452_v41  ;;  %v13454_v38 = vpop.permute.xlu0 %7383  ;;  %v7285_v41 = vld [vmem:[#allocation2 + $0x99] sm:$0xff] }
 0xb37   : > { %15225 = vst [vmem:[#allocation89_spill] sm:$0xff] %v13454_v38  ;;  %7177 = vrot.lane.b32.xlu1 %v7094_v5, %s9620_s18 }
 0xb38   : > { %7585 = vrot.lane.b32.xlu0 %v7507_v26, %s9626_s27 }
 0xb39   : > { %v13460_v57 = vpop.permute.xlu1 %8091 }
 0xb3a   : > { %15226 = vst [vmem:[#allocation51_spill] sm:$0xff] %v13460_v57  ;;  %v13462_v23 = vpop.permute.xlu0 %7705 }
 0xb3b   : > { %15227 = vst [vmem:[#allocation31_spill] sm:$0xff] %v13462_v23  ;;  %7723 = vrot.lane.b32.xlu1 %v7094_v5, %s9624_s25  ;;  %v13478_v23 = vld [vmem:[#allocation2 + $0x9f] sm:$0xff] }
 0xb3c   : > { %8101 = vrot.lane.b32.xlu0 %v8025_v49, %s9622_s23  ;;  %15232 = vst [vmem:[#allocation70_spill] sm:$0xff] %v13478_v23 }
 0xb3d   : > { %v13468_v17 = vpop.permute.xlu1 %7381 }
 0xb3e   : > { %15228 = vst [vmem:[#allocation47_spill] sm:$0xff] %v13468_v17  ;;  %v13470_v28 = vpop.permute.xlu0 %7899 }
 0xb3f   : > { %15229 = vst [vmem:[#allocation124_spill] sm:$0xff] %v13470_v28  ;;  %8239 = vrot.lane.b32.xlu1 %v7094_v5, %s9623_s24  ;;  %v7284_v5 = vld [vmem:[#allocation2 + $0x91] sm:$0xff] }
 0xb40   : > { %7175 = vrot.lane.b32.xlu0 %v7093_v61, %s9620_s18 }
 0xb41   : > { %v13474_v26 = vpop.permute.xlu1 %7897 }
 0xb42   : > { %15230 = vst [vmem:[#allocation96_spill] sm:$0xff] %v13474_v26  ;;  %v13476_v57 = vpop.permute.xlu0 %8221 }
 0xb43   : > { %15231 = vst [vmem:[#allocation21_spill] sm:$0xff] %v13476_v57  ;;  %7591 = vrot.lane.b32.xlu1 %v13478_v23, %s9626_s27  ;;  %v15236_v57 = vld [vmem:[#allocation61_spill] sm:$0xff] }
 0xb44   : > { %7399 = vrot.lane.b32.xlu0 %v7285_v41, %s9621_s19  ;;  %v7316_v38 = vmul.f32 %v15236_v57, %v7284_v5 }
 0xb45   : > { %v13483_v49 = vpop.permute.xlu1 %8413 }
 0xb46   : > { %15233 = vst [vmem:[#allocation57_spill] sm:$0xff] %v13483_v49  ;;  %v13485_v28 = vpop.permute.xlu0 %8415 }
 0xb47   : > { %15234 = vst [vmem:[#allocation33_spill] sm:$0xff] %v13485_v28  ;;  %8107 = vrot.lane.b32.xlu1 %v13478_v23, %s9622_s23  ;;  %v7834_v28 = vmul.f32 %v15218_v45, %v7284_v5 }
 0xb48   : > { %7721 = vrot.lane.b32.xlu0 %v7093_v61, %s9624_s25 }
 0xb49   : > { %v13490_v26 = vpop.permute.xlu1 %7165 }
 0xb4a   : > { %15235 = vst [vmem:[#allocation34_spill] sm:$0xff] %v13490_v26  ;;  %v13493_v17 = vpop.permute.xlu0 %7573  ;;  %v8352_v26 = vmul.f32 %v15202_v7, %v7284_v5 }
 0xb4b   : > { %15237 = vst [vmem:[#allocation134_spill] sm:$0xff] %v13493_v17  ;;  %7397 = vrot.lane.b32.xlu1 %v7316_v38, %s9621_s19  ;;  %v13510_v38 = vld [vmem:[#allocation2 + $0x97] sm:$0xff] }
 0xb4c   : > { %7915 = vrot.lane.b32.xlu0 %v7285_v41, %s9625_s26 }
 0xb4d   : > { %v13497_v52 = vpop.permute.xlu1 %7711 }
 0xb4e   : > { %15238 = vst [vmem:[#allocation139_spill] sm:$0xff] %v13497_v52  ;;  %v13500_v49 = vpop.permute.xlu0 %8089 }
 0xb4f   : > { %15239 = vst [vmem:[#allocation68_spill] sm:$0xff] %v13500_v49  ;;  %7913 = vrot.lane.b32.xlu1 %v7834_v28, %s9625_s26  ;;  %v7096_v49 = vld [vmem:[#allocation2 + $0xb0] sm:$0xff] }
 0xb50   : > { %8237 = vrot.lane.b32.xlu0 %v7093_v61, %s9623_s24  ;;  %v7509_v61 = vmul.f32 %v10534_v15, %v13510_v38 }
 0xb51   : > { %v13504_v23 = vpop.permute.xlu1 %8227 }
 0xb52   : > { %15240 = vst [vmem:[#allocation39_spill] sm:$0xff] %v13504_v23  ;;  %v13507_v47 = vpop.permute.xlu0 %7163  ;;  %v7095_v23 = vld [vmem:[#allocation2 + $0xa8] sm:$0xff] }
 0xb53   : > { %15241 = vst [vmem:[#allocation25_spill] sm:$0xff] %v13507_v47  ;;  %8429 = vrot.lane.b32.xlu1 %v8352_v26, %s9627_s28  ;;  %v8027_v26 = vmul.f32 %v10467_v18, %v13510_v38 }
 0xb54   : > { %8431 = vrot.lane.b32.xlu0 %v7285_v41, %s9627_s28 }
 0xb55   : > { %v13513_v52 = vpop.permute.xlu1 %7579 }
 0xb56   : > { %15242 = vst [vmem:[#allocation156_spill] sm:$0xff] %v13513_v52  ;;  %v13515_v17 = vpop.permute.xlu0 %7387 }
 0xb57   : > { %15243 = vst [vmem:[#allocation50_spill] sm:$0xff] %v13515_v17  ;;  %7181 = vrot.lane.b32.xlu1 %v7096_v49, %s9620_s18  ;;  %v13539_v17 = vld [vmem:[#allocation2 + $0xaf] sm:$0xff] }
 0xb58   : > { %7589 = vrot.lane.b32.xlu0 %v7509_v61, %s9626_s27  ;;  %15250 = vst [vmem:[#allocation40_spill] sm:$0xff] %v13539_v17 }
 0xb59   : > { %v13521_v7 = vpop.permute.xlu1 %8095 }
 0xb5a   : > { %15244 = vst [vmem:[#allocation73_spill] sm:$0xff] %v13521_v7  ;;  %v13523_v28 = vpop.permute.xlu0 %7709 }
 0xb5b   : > { %15245 = vst [vmem:[#allocation120_spill] sm:$0xff] %v13523_v28  ;;  %7727 = vrot.lane.b32.xlu1 %v7096_v49, %s9624_s25  ;;  %v7287_v28 = vld [vmem:[#allocation2 + $0xa9] sm:$0xff] }
 0xb5c   : > { %8105 = vrot.lane.b32.xlu0 %v8027_v26, %s9622_s23 }
 0xb5d   : > { %v13529_v41 = vpop.permute.xlu1 %7385 }
 0xb5e   : > { %15246 = vst [vmem:[#allocation29_spill] sm:$0xff] %v13529_v41  ;;  %v13531_v5 = vpop.permute.xlu0 %7903 }
 0xb5f   : > { %15247 = vst [vmem:[#allocation36_spill] sm:$0xff] %v13531_v5  ;;  %8243 = vrot.lane.b32.xlu1 %v7096_v49, %s9623_s24  ;;  %v7286_v49 = vld [vmem:[#allocation2 + $0xa1] sm:$0xff] }
 0xb60   : > { %7179 = vrot.lane.b32.xlu0 %v7095_v23, %s9620_s18 }
 0xb61   : > { %v13535_v61 = vpop.permute.xlu1 %7901 }
 0xb62   : > { %15248 = vst [vmem:[#allocation43_spill] sm:$0xff] %v13535_v61  ;;  %v13537_v7 = vpop.permute.xlu0 %8225 }
 0xb63   : > { %15249 = vst [vmem:[#allocation126_spill] sm:$0xff] %v13537_v7  ;;  %7595 = vrot.lane.b32.xlu1 %v13539_v17, %s9626_s27  ;;  %v15254_v7 = vld [vmem:[#allocation80_spill] sm:$0xff] }
 0xb64   : > { %7403 = vrot.lane.b32.xlu0 %v7287_v28, %s9621_s19  ;;  %v7318_v52 = vmul.f32 %v15254_v7, %v7286_v49 }
 0xb65   : > { %v13544_v26 = vpop.permute.xlu1 %8417 }
 0xb66   : > { %15251 = vst [vmem:[#allocation95_spill] sm:$0xff] %v13544_v26  ;;  %v13546_v5 = vpop.permute.xlu0 %8419 }
 0xb67   : > { %15252 = vst [vmem:[#allocation62_spill] sm:$0xff] %v13546_v5  ;;  %8111 = vrot.lane.b32.xlu1 %v13539_v17, %s9622_s23  ;;  %v7836_v5 = vmul.f32 %v15236_v57, %v7286_v49 }
 0xb68   : > { %7725 = vrot.lane.b32.xlu0 %v7095_v23, %s9624_s25 }
 0xb69   : > { %v13551_v61 = vpop.permute.xlu1 %7169 }
 0xb6a   : > { %15253 = vst [vmem:[#allocation64_spill] sm:$0xff] %v13551_v61  ;;  %v13554_v47 = vpop.permute.xlu0 %7577  ;;  %v8354_v61 = vmul.f32 %v15218_v45, %v7286_v49 }
 0xb6b   : > { %15255 = vst [vmem:[#allocation53_spill] sm:$0xff] %v13554_v47  ;;  %7401 = vrot.lane.b32.xlu1 %v7318_v52, %s9621_s19  ;;  %v13571_v52 = vld [vmem:[#allocation2 + $0xa7] sm:$0xff] }
 0xb6c   : > { %7919 = vrot.lane.b32.xlu0 %v7287_v28, %s9625_s26 }
 0xb6d   : > { %v13558_v41 = vpop.permute.xlu1 %7715 }
 0xb6e   : > { %15256 = vst [vmem:[#allocation56_spill] sm:$0xff] %v13558_v41  ;;  %v13561_v26 = vpop.permute.xlu0 %8093 }
 0xb6f   : > { %15257 = vst [vmem:[#allocation117_spill] sm:$0xff] %v13561_v26  ;;  %7917 = vrot.lane.b32.xlu1 %v7836_v5, %s9625_s26  ;;  %v7098_v26 = vld [vmem:[#allocation2 + $0xc0] sm:$0xff] }
 0xb70   : > { %8241 = vrot.lane.b32.xlu0 %v7095_v23, %s9623_s24  ;;  %v7511_v23 = vmul.f32 %v15008_v42, %v13571_v52 }
 0xb71   : > { %v13565_v17 = vpop.permute.xlu1 %8231 }
 0xb72   : > { %15258 = vst [vmem:[#allocation111_spill] sm:$0xff] %v13565_v17  ;;  %v13568_v31 = vpop.permute.xlu0 %7167  ;;  %v7097_v17 = vld [vmem:[#allocation2 + $0xb8] sm:$0xff] }
 0xb73   : > { %15259 = vst [vmem:[#allocation92_spill] sm:$0xff] %v13568_v31  ;;  %8433 = vrot.lane.b32.xlu1 %v8354_v61, %s9627_s28  ;;  %v8029_v61 = vmul.f32 %v10534_v15, %v13571_v52 }
 0xb74   : > { %8435 = vrot.lane.b32.xlu0 %v7287_v28, %s9627_s28 }
 0xb75   : > { %v13574_v41 = vpop.permute.xlu1 %7583 }
 0xb76   : > { %15260 = vst [vmem:[#allocation75_spill] sm:$0xff] %v13574_v41  ;;  %v13576_v47 = vpop.permute.xlu0 %7391 }
 0xb77   : > { %15261 = vst [vmem:[#allocation88_spill] sm:$0xff] %v13576_v47  ;;  %7185 = vrot.lane.b32.xlu1 %v7098_v26, %s9620_s18  ;;  %v7289_v47 = vld [vmem:[#allocation2 + $0xb9] sm:$0xff] }
 0xb78   : > { %7593 = vrot.lane.b32.xlu0 %v7511_v23, %s9626_s27 }
 0xb79   : > { %v13582_v45 = vpop.permute.xlu1 %8099 }
 0xb7a   : > { %15262 = vst [vmem:[#allocation87_spill] sm:$0xff] %v13582_v45  ;;  %v13584_v5 = vpop.permute.xlu0 %7713 }
 0xb7b   : > { %15263 = vst [vmem:[#allocation154_spill] sm:$0xff] %v13584_v5  ;;  %7731 = vrot.lane.b32.xlu1 %v7098_v26, %s9624_s25  ;;  %v13600_v5 = vld [vmem:[#allocation2 + $0xbf] sm:$0xff] }
 0xb7c   : > { %8109 = vrot.lane.b32.xlu0 %v8029_v61, %s9622_s23  ;;  %15268 = vst [vmem:[#allocation52_spill] sm:$0xff] %v13600_v5 }
 0xb7d   : > { %v13590_v28 = vpop.permute.xlu1 %7389 }
 0xb7e   : > { %15264 = vst [vmem:[#allocation108_spill] sm:$0xff] %v13590_v28  ;;  %v13592_v49 = vpop.permute.xlu0 %7907 }
 0xb7f   : > { %15265 = vst [vmem:[#allocation76_spill] sm:$0xff] %v13592_v49  ;;  %8247 = vrot.lane.b32.xlu1 %v7098_v26, %s9623_s24  ;;  %v7288_v26 = vld [vmem:[#allocation2 + $0xb1] sm:$0xff] }
 0xb80   : > { %7183 = vrot.lane.b32.xlu0 %v7097_v17, %s9620_s18 }
 0xb81   : > { %v13596_v23 = vpop.permute.xlu1 %7905 }
 0xb82   : > { %15266 = vst [vmem:[#allocation91_spill] sm:$0xff] %v13596_v23  ;;  %v13598_v45 = vpop.permute.xlu0 %8229 }
 0xb83   : > { %15267 = vst [vmem:[#allocation97_spill] sm:$0xff] %v13598_v45  ;;  %7599 = vrot.lane.b32.xlu1 %v13600_v5, %s9626_s27  ;;  %v15272_v45 = vld [vmem:[#allocation99_spill] sm:$0xff] }
 0xb84   : > { %7407 = vrot.lane.b32.xlu0 %v7289_v47, %s9621_s19  ;;  %v7320_v41 = vmul.f32 %v15272_v45, %v7288_v26 }
 0xb85   : > { %v13605_v61 = vpop.permute.xlu1 %8421 }
 0xb86   : > { %15269 = vst [vmem:[#allocation71_spill] sm:$0xff] %v13605_v61  ;;  %v13607_v49 = vpop.permute.xlu0 %8423 }
 0xb87   : > { %15270 = vst [vmem:[#allocation145_spill] sm:$0xff] %v13607_v49  ;;  %8115 = vrot.lane.b32.xlu1 %v13600_v5, %s9622_s23  ;;  %v7838_v49 = vmul.f32 %v15254_v7, %v7288_v26 }
 0xb88   : > { %7729 = vrot.lane.b32.xlu0 %v7097_v17, %s9624_s25 }
 0xb89   : > { %v13612_v23 = vpop.permute.xlu1 %7173 }
 0xb8a   : > { %15271 = vst [vmem:[#allocation106_spill] sm:$0xff] %v13612_v23  ;;  %v13615_v31 = vpop.permute.xlu0 %7581  ;;  %v8356_v23 = vmul.f32 %v15236_v57, %v7288_v26 }
 0xb8b   : > { %15273 = vst [vmem:[#allocation127_spill] sm:$0xff] %v13615_v31  ;;  %7405 = vrot.lane.b32.xlu1 %v7320_v41, %s9621_s19  ;;  %v13632_v41 = vld [vmem:[#allocation2 + $0xb7] sm:$0xff] }
 0xb8c   : > { %7923 = vrot.lane.b32.xlu0 %v7289_v47, %s9625_s26  ;;  %15278 = vst [vmem:[#allocation94_spill] sm:$0xff] %v13632_v41 }
 0xb8d   : > { %v13619_v28 = vpop.permute.xlu1 %7719 }
 0xb8e   : > { %15274 = vst [vmem:[#allocation146_spill] sm:$0xff] %v13619_v28  ;;  %v13622_v61 = vpop.permute.xlu0 %8097 }
 0xb8f   : > { %15275 = vst [vmem:[#allocation78_spill] sm:$0xff] %v13622_v61  ;;  %7921 = vrot.lane.b32.xlu1 %v7838_v49, %s9625_s26  ;;  %v7100_v61 = vld [vmem:[#allocation2 + $0xd0] sm:$0xff]  ;;  %v15281_v49 = vld [vmem:[#allocation93_spill] sm:$0xff] }
 0xb90   : > { %8245 = vrot.lane.b32.xlu0 %v7097_v17, %s9623_s24  ;;  %v7513_v17 = vmul.f32 %v15281_v49, %v13632_v41 }
 0xb91   : > { %v13626_v5 = vpop.permute.xlu1 %8235 }
 0xb92   : > { %15276 = vst [vmem:[#allocation165_spill] sm:$0xff] %v13626_v5  ;;  %v13629_v3 = vpop.permute.xlu0 %7171 }
 0xb93   : > { %15277 = vst [vmem:[#allocation122_spill] sm:$0xff] %v13629_v3  ;;  %8437 = vrot.lane.b32.xlu1 %v8356_v23, %s9627_s28  ;;  %v8031_v23 = vmul.f32 %v15008_v42, %v13632_v41 }
 0xb94   : > { %8439 = vrot.lane.b32.xlu0 %v7289_v47, %s9627_s28 }
 0xb95   : > { %v13635_v28 = vpop.permute.xlu1 %7587 }
 0xb96   : > { %15279 = vst [vmem:[#allocation19_spill] sm:$0xff] %v13635_v28  ;;  %v13637_v31 = vpop.permute.xlu0 %7395  ;;  %v7291_v28 = vld [vmem:[#allocation2 + $0xc9] sm:$0xff] }
 0xb97   : > { %15280 = vst [vmem:[#allocation136_spill] sm:$0xff] %v13637_v31  ;;  %7189 = vrot.lane.b32.xlu1 %v7100_v61, %s9620_s18  ;;  %v7099_v31 = vld [vmem:[#allocation2 + $0xc8] sm:$0xff] }
 0xb98   : > { %7597 = vrot.lane.b32.xlu0 %v7513_v17, %s9626_s27 }
 0xb99   : > { %v13643_v57 = vpop.permute.xlu1 %8103 }
 0xb9a   : > { %15282 = vst [vmem:[#allocation130_spill] sm:$0xff] %v13643_v57  ;;  %v13645_v26 = vpop.permute.xlu0 %7717 }
 0xb9b   : > { %15283 = vst [vmem:[#allocation116_spill] sm:$0xff] %v13645_v26  ;;  %7735 = vrot.lane.b32.xlu1 %v7100_v61, %s9624_s25  ;;  %v13661_v26 = vld [vmem:[#allocation2 + $0xcf] sm:$0xff] }
 0xb9c   : > { %8113 = vrot.lane.b32.xlu0 %v8031_v23, %s9622_s23  ;;  %15288 = vst [vmem:[#allocation104_spill] sm:$0xff] %v13661_v26 }
 0xb9d   : > { %v13651_v47 = vpop.permute.xlu1 %7393 }
 0xb9e   : > { %15284 = vst [vmem:[#allocation125_spill] sm:$0xff] %v13651_v47  ;;  %v13653_v5 = vpop.permute.xlu0 %7911 }
 0xb9f   : > { %15285 = vst [vmem:[#allocation103_spill] sm:$0xff] %v13653_v5  ;;  %8251 = vrot.lane.b32.xlu1 %v7100_v61, %s9623_s24  ;;  %v7290_v61 = vld [vmem:[#allocation2 + $0xc1] sm:$0xff] }
 0xba0   : > { %7187 = vrot.lane.b32.xlu0 %v7099_v31, %s9620_s18 }
 0xba1   : > { %v13657_v17 = vpop.permute.xlu1 %7909 }
 0xba2   : > { %15286 = vst [vmem:[#allocation161_spill] sm:$0xff] %v13657_v17  ;;  %v13659_v57 = vpop.permute.xlu0 %8233 }
 0xba3   : > { %15287 = vst [vmem:[#allocation107_spill] sm:$0xff] %v13659_v57  ;;  %7603 = vrot.lane.b32.xlu1 %v13661_v26, %s9626_s27  ;;  %v15292_v57 = vld [vmem:[#allocation118_spill] sm:$0xff] }
 0xba4   : > { %7411 = vrot.lane.b32.xlu0 %v7291_v28, %s9621_s19  ;;  %v7322_v3 = vmul.f32 %v15292_v57, %v7290_v61 }
 0xba5   : > { %v13666_v23 = vpop.permute.xlu1 %8425 }
 0xba6   : > { %15289 = vst [vmem:[#allocation90_spill] sm:$0xff] %v13666_v23  ;;  %v13668_v5 = vpop.permute.xlu0 %8427 }
 0xba7   : > { %15290 = vst [vmem:[#allocation41_spill] sm:$0xff] %v13668_v5  ;;  %8119 = vrot.lane.b32.xlu1 %v13661_v26, %s9622_s23  ;;  %v7840_v5 = vmul.f32 %v15272_v45, %v7290_v61 }
 0xba8   : > { %7733 = vrot.lane.b32.xlu0 %v7099_v31, %s9624_s25 }
 0xba9   : > { %v13673_v17 = vpop.permute.xlu1 %7177 }
 0xbaa   : > { %15291 = vst [vmem:[#allocation176_spill] sm:$0xff] %v13673_v17  ;;  %v13676_v47 = vpop.permute.xlu0 %7585  ;;  %v8358_v17 = vmul.f32 %v15254_v7, %v7290_v61 }
 0xbab   : > { %15293 = vst [vmem:[#allocation138_spill] sm:$0xff] %v13676_v47  ;;  %7409 = vrot.lane.b32.xlu1 %v7322_v3, %s9621_s19  ;;  %v13693_v3 = vld [vmem:[#allocation2 + $0xc7] sm:$0xff] }
 0xbac   : > { %7927 = vrot.lane.b32.xlu0 %v7291_v28, %s9625_s26  ;;  %15298 = vst [vmem:[#allocation81_spill] sm:$0xff] %v13693_v3 }
 0xbad   : > { %v13680_v41 = vpop.permute.xlu1 %7723 }
 0xbae   : > { %15294 = vst [vmem:[#allocation159_spill] sm:$0xff] %v13680_v41  ;;  %v13683_v23 = vpop.permute.xlu0 %8101 }
 0xbaf   : > { %15295 = vst [vmem:[#allocation181_spill] sm:$0xff] %v13683_v23  ;;  %7925 = vrot.lane.b32.xlu1 %v7840_v5, %s9625_s26  ;;  %v7102_v23 = vld [vmem:[#allocation2 + $0xe0] sm:$0xff]  ;;  %v15301_v5 = vld [vmem:[#allocation112_spill] sm:$0xff] }
 0xbb0   : > { %8249 = vrot.lane.b32.xlu0 %v7099_v31, %s9623_s24  ;;  %v7515_v31 = vmul.f32 %v15301_v5, %v13693_v3 }
 0xbb1   : > { %v13687_v26 = vpop.permute.xlu1 %8239 }
 0xbb2   : > { %15296 = vst [vmem:[#allocation102_spill] sm:$0xff] %v13687_v26  ;;  %v13690_v56 = vpop.permute.xlu0 %7175 }
 0xbb3   : > { %15297 = vst [vmem:[#allocation83_spill] sm:$0xff] %v13690_v56  ;;  %8441 = vrot.lane.b32.xlu1 %v8358_v17, %s9627_s28  ;;  %v8033_v17 = vmul.f32 %v15281_v49, %v13693_v3  ;;  %v7293_v3 = vld [vmem:[#allocation2 + $0xd9] sm:$0xff] }
 0xbb4   : > { %8443 = vrot.lane.b32.xlu0 %v7291_v28, %s9627_s28 }
 0xbb5   : > { %v13696_v41 = vpop.permute.xlu1 %7591 }
 0xbb6   : > { %15299 = vst [vmem:[#allocation133_spill] sm:$0xff] %v13696_v41  ;;  %v13698_v47 = vpop.permute.xlu0 %7399 }
 0xbb7   : > { %15300 = vst [vmem:[#allocation140_spill] sm:$0xff] %v13698_v47  ;;  %7193 = vrot.lane.b32.xlu1 %v7102_v23, %s9620_s18  ;;  %v7101_v47 = vld [vmem:[#allocation2 + $0xd8] sm:$0xff] }
 0xbb8   : > { %7601 = vrot.lane.b32.xlu0 %v7515_v31, %s9626_s27 }
 0xbb9   : > { %v13704_v7 = vpop.permute.xlu1 %8107 }
 0xbba   : > { %15302 = vst [vmem:[#allocation110_spill] sm:$0xff] %v13704_v7  ;;  %v13706_v61 = vpop.permute.xlu0 %7721 }
 0xbbb   : > { %15303 = vst [vmem:[#allocation163_spill] sm:$0xff] %v13706_v61  ;;  %7739 = vrot.lane.b32.xlu1 %v7102_v23, %s9624_s25  ;;  %v13722_v61 = vld [vmem:[#allocation2 + $0xdf] sm:$0xff] }
 0xbbc   : > { %8117 = vrot.lane.b32.xlu0 %v8033_v17, %s9622_s23  ;;  %15308 = vst [vmem:[#allocation179_spill] sm:$0xff] %v13722_v61 }
 0xbbd   : > { %v13712_v28 = vpop.permute.xlu1 %7397 }
 0xbbe   : > { %15304 = vst [vmem:[#allocation183_spill] sm:$0xff] %v13712_v28  ;;  %v13714_v26 = vpop.permute.xlu0 %7915 }
 0xbbf   : > { %15305 = vst [vmem:[#allocation49_spill] sm:$0xff] %v13714_v26  ;;  %8255 = vrot.lane.b32.xlu1 %v7102_v23, %s9623_s24  ;;  %v7292_v23 = vld [vmem:[#allocation2 + $0xd1] sm:$0xff] }
 0xbc0   : > { %7191 = vrot.lane.b32.xlu0 %v7101_v47, %s9620_s18 }
 0xbc1   : > { %v13718_v31 = vpop.permute.xlu1 %7913 }
 0xbc2   : > { %15306 = vst [vmem:[#allocation160_spill] sm:$0xff] %v13718_v31  ;;  %v13720_v7 = vpop.permute.xlu0 %8237 }
 0xbc3   : > { %15307 = vst [vmem:[#allocation170_spill] sm:$0xff] %v13720_v7  ;;  %7607 = vrot.lane.b32.xlu1 %v13722_v61, %s9626_s27  ;;  %v15312_v7 = vld [vmem:[#allocation137_spill] sm:$0xff] }
 0xbc4   : > { %7415 = vrot.lane.b32.xlu0 %v7293_v3, %s9621_s19  ;;  %v7324_v41 = vmul.f32 %v15312_v7, %v7292_v23 }
 0xbc5   : > { %v13727_v17 = vpop.permute.xlu1 %8429 }
 0xbc6   : > { %15309 = vst [vmem:[#allocation147_spill] sm:$0xff] %v13727_v17  ;;  %v13729_v26 = vpop.permute.xlu0 %8431 }
 0xbc7   : > { %15310 = vst [vmem:[#allocation169_spill] sm:$0xff] %v13729_v26  ;;  %8123 = vrot.lane.b32.xlu1 %v13722_v61, %s9622_s23  ;;  %v7842_v26 = vmul.f32 %v15292_v57, %v7292_v23 }
 0xbc8   : > { %7737 = vrot.lane.b32.xlu0 %v7101_v47, %s9624_s25 }
 0xbc9   : > { %v13734_v31 = vpop.permute.xlu1 %7181 }
 0xbca   : > { %15311 = vst [vmem:[#allocation150_spill] sm:$0xff] %v13734_v31  ;;  %v13737_v56 = vpop.permute.xlu0 %7589  ;;  %v8360_v31 = vmul.f32 %v15272_v45, %v7292_v23 }
 0xbcb   : > { %15313 = vst [vmem:[#allocation158_spill] sm:$0xff] %v13737_v56  ;;  %7413 = vrot.lane.b32.xlu1 %v7324_v41, %s9621_s19  ;;  %v13754_v41 = vld [vmem:[#allocation2 + $0xd7] sm:$0xff] }
 0xbcc   : > { %7931 = vrot.lane.b32.xlu0 %v7293_v3, %s9625_s26 }
 0xbcd   : > { %v13741_v28 = vpop.permute.xlu1 %7727 }
 0xbce   : > { %15314 = vst [vmem:[#allocation164_spill] sm:$0xff] %v13741_v28  ;;  %v13744_v17 = vpop.permute.xlu0 %8105 }
 0xbcf   : > { %15315 = vst [vmem:[#allocation188_spill] sm:$0xff] %v13744_v17  ;;  %7929 = vrot.lane.b32.xlu1 %v7842_v26, %s9625_s26  ;;  %v7104_v17 = vld [vmem:[#allocation2 + $0xf0] sm:$0xff]  ;;  %v7517_v26 = vmul.f32 %v15154_v29, %v13754_v41 }
 0xbd0   : > { %8253 = vrot.lane.b32.xlu0 %v7101_v47, %s9623_s24 }
 0xbd1   : > { %v13748_v61 = vpop.permute.xlu1 %8243 }
 0xbd2   : > { %15316 = vst [vmem:[#allocation141_spill] sm:$0xff] %v13748_v61  ;;  %v13751_v39 = vpop.permute.xlu0 %7179  ;;  %v7103_v61 = vld [vmem:[#allocation2 + $0xe8] sm:$0xff] }
 0xbd3   : > { %15317 = vst [vmem:[#allocation121_spill] sm:$0xff] %v13751_v39  ;;  %8445 = vrot.lane.b32.xlu1 %v8360_v31, %s9627_s28  ;;  %v8035_v31 = vmul.f32 %v15301_v5, %v13754_v41 }
 0xbd4   : > { %8447 = vrot.lane.b32.xlu0 %v7293_v3, %s9627_s28 }
 0xbd5   : > { %v13757_v28 = vpop.permute.xlu1 %7595 }
 0xbd6   : > { %15318 = vst [vmem:[#allocation142_spill] sm:$0xff] %v13757_v28  ;;  %v13759_v56 = vpop.permute.xlu0 %7403 }
 0xbd7   : > { %15319 = vst [vmem:[#allocation132_spill] sm:$0xff] %v13759_v56  ;;  %7197 = vrot.lane.b32.xlu1 %v7104_v17, %s9620_s18  ;;  %v7295_v56 = vld [vmem:[#allocation2 + $0xe9] sm:$0xff] }
 0xbd8   : > { %7605 = vrot.lane.b32.xlu0 %v7517_v26, %s9626_s27 }
 0xbd9   : > { %v13765_v45 = vpop.permute.xlu1 %8111 }
 0xbda   : > { %15320 = vst [vmem:[#allocation119_spill] sm:$0xff] %v13765_v45  ;;  %v13767_v47 = vpop.permute.xlu0 %7725 }
 0xbdb   : > { %15321 = vst [vmem:[#allocation114_spill] sm:$0xff] %v13767_v47  ;;  %7743 = vrot.lane.b32.xlu1 %v7104_v17, %s9624_s25  ;;  %v13783_v47 = vld [vmem:[#allocation2 + $0xef] sm:$0xff] }
 0xbdc   : > { %8121 = vrot.lane.b32.xlu0 %v8035_v31, %s9622_s23  ;;  %15326 = vst [vmem:[#allocation5_spill] sm:$0xff] %v13783_v47 }
 0xbdd   : > { %v13773_v3 = vpop.permute.xlu1 %7401 }
 0xbde   : > { %15322 = vst [vmem:[#allocation152_spill] sm:$0xff] %v13773_v3  ;;  %v13775_v23 = vpop.permute.xlu0 %7919 }
 0xbdf   : > { %15323 = vst [vmem:[#allocation167_spill] sm:$0xff] %v13775_v23  ;;  %8259 = vrot.lane.b32.xlu1 %v7104_v17, %s9623_s24  ;;  %v7294_v17 = vld [vmem:[#allocation2 + $0xe1] sm:$0xff] }
 0xbe0   : > { %7195 = vrot.lane.b32.xlu0 %v7103_v61, %s9620_s18 }
 0xbe1   : > { %v13779_v26 = vpop.permute.xlu1 %7917 }
 0xbe2   : > { %15324 = vst [vmem:[#allocation166_spill] sm:$0xff] %v13779_v26  ;;  %v13781_v45 = vpop.permute.xlu0 %8241 }
 0xbe3   : > { %15325 = vst [vmem:[#allocation155_spill] sm:$0xff] %v13781_v45  ;;  %7611 = vrot.lane.b32.xlu1 %v13783_v47, %s9626_s27  ;;  %v15330_v45 = vld [vmem:[#allocation157_spill] sm:$0xff] }
 0xbe4   : > { %7419 = vrot.lane.b32.xlu0 %v7295_v56, %s9621_s19  ;;  %v7326_v28 = vmul.f32 %v15330_v45, %v7294_v17 }
 0xbe5   : > { %v13788_v31 = vpop.permute.xlu1 %8433 }
 0xbe6   : > { %15327 = vst [vmem:[#allocation113_spill] sm:$0xff] %v13788_v31  ;;  %v13790_v23 = vpop.permute.xlu0 %8435 }
 0xbe7   : > { %15328 = vst [vmem:[#allocation174_spill] sm:$0xff] %v13790_v23  ;;  %8127 = vrot.lane.b32.xlu1 %v13783_v47, %s9622_s23  ;;  %v7844_v23 = vmul.f32 %v15312_v7, %v7294_v17 }
 0xbe8   : > { %7741 = vrot.lane.b32.xlu0 %v7103_v61, %s9624_s25 }
 0xbe9   : > { %v13795_v26 = vpop.permute.xlu1 %7185 }
 0xbea   : > { %15329 = vst [vmem:[#allocation123_spill] sm:$0xff] %v13795_v26  ;;  %v13798_v39 = vpop.permute.xlu0 %7593  ;;  %v8362_v26 = vmul.f32 %v15292_v57, %v7294_v17 }
 0xbeb   : > { %15331 = vst [vmem:[#allocation11_spill] sm:$0xff] %v13798_v39  ;;  %7417 = vrot.lane.b32.xlu1 %v7326_v28, %s9621_s19  ;;  %v13815_v28 = vld [vmem:[#allocation2 + $0xe7] sm:$0xff] }
 0xbec   : > { %7935 = vrot.lane.b32.xlu0 %v7295_v56, %s9625_s26  ;;  %15336 = vst [vmem:[#allocation178_spill] sm:$0xff] %v13815_v28 }
 0xbed   : > { %v13802_v3 = vpop.permute.xlu1 %7731 }
 0xbee   : > { %15332 = vst [vmem:[#allocation162_spill] sm:$0xff] %v13802_v3  ;;  %v13805_v31 = vpop.permute.xlu0 %8109 }
 0xbef   : > { %15333 = vst [vmem:[#allocation135_spill] sm:$0xff] %v13805_v31  ;;  %7933 = vrot.lane.b32.xlu1 %v7844_v23, %s9625_s26  ;;  %v7106_v31 = vld [vmem:[#allocation2 + $0x100] sm:$0xff] }
 0xbf0   : > { %8257 = vrot.lane.b32.xlu0 %v7103_v61, %s9623_s24  ;;  %v7519_v61 = vmul.f32 %v15168_v60, %v13815_v28 }
 0xbf1   : > { %v13809_v47 = vpop.permute.xlu1 %8247 }
 0xbf2   : > { %15334 = vst [vmem:[#allocation190_spill] sm:$0xff] %v13809_v47  ;;  %v13812_v5 = vpop.permute.xlu0 %7183  ;;  %v7105_v47 = vld [vmem:[#allocation2 + $0xf8] sm:$0xff] }
 0xbf3   : > { %15335 = vst [vmem:[#allocation187_spill] sm:$0xff] %v13812_v5  ;;  %8449 = vrot.lane.b32.xlu1 %v8362_v26, %s9627_s28  ;;  %v8037_v26 = vmul.f32 %v15154_v29, %v13815_v28  ;;  %v7297_v29 = vld [vmem:[#allocation2 + $0xf9] sm:$0xff] }
 0xbf4   : > { %8451 = vrot.lane.b32.xlu0 %v7295_v56, %s9627_s28 }
 0xbf5   : > { %v13818_v3 = vpop.permute.xlu1 %7599 }
 0xbf6   : > { %15337 = vst [vmem:[#allocation175_spill] sm:$0xff] %v13818_v3  ;;  %v13820_v39 = vpop.permute.xlu0 %7407 }
 0xbf7   : > { %15338 = vst [vmem:[#allocation148_spill] sm:$0xff] %v13820_v39  ;;  %7201 = vrot.lane.b32.xlu1 %v7106_v31, %s9620_s18 }
 0xbf8   : > { %7609 = vrot.lane.b32.xlu0 %v7519_v61, %s9626_s27 }
 0xbf9   : > { %v13826_v57 = vpop.permute.xlu1 %8115 }
 0xbfa   : > { %15339 = vst [vmem:[#allocation128_spill] sm:$0xff] %v13826_v57  ;;  %v13828_v23 = vpop.permute.xlu0 %7729 }
 0xbfb   : > { %15340 = vst [vmem:[#allocation182_spill] sm:$0xff] %v13828_v23  ;;  %7747 = vrot.lane.b32.xlu1 %v7106_v31, %s9624_s25  ;;  %v13844_v23 = vld [vmem:[#allocation2 + $0xff] sm:$0xff] }
 0xbfc   : > { %8125 = vrot.lane.b32.xlu0 %v8037_v26, %s9622_s23  ;;  %15345 = vst [vmem:[#allocation8_spill] sm:$0xff] %v13844_v23 }
 0xbfd   : > { %v13834_v56 = vpop.permute.xlu1 %7405 }
 0xbfe   : > { %15341 = vst [vmem:[#allocation144_spill] sm:$0xff] %v13834_v56  ;;  %v13836_v17 = vpop.permute.xlu0 %7923 }
 0xbff   : > { %15342 = vst [vmem:[#allocation186_spill] sm:$0xff] %v13836_v17  ;;  %8263 = vrot.lane.b32.xlu1 %v7106_v31, %s9623_s24  ;;  %v7296_v31 = vld [vmem:[#allocation2 + $0xf1] sm:$0xff] }
 0xc00   : > { %7199 = vrot.lane.b32.xlu0 %v7105_v47, %s9620_s18  ;;  %v8364_v56 = vmul.f32 %v15312_v7, %v7296_v31  ;;  %s9630_s18 = smov 12  }
 0xc01   : > { %v13840_v61 = vpop.permute.xlu1 %7921 }
 0xc02   : > { %15343 = vst [vmem:[#allocation173_spill] sm:$0xff] %v13840_v61  ;;  %v13842_v57 = vpop.permute.xlu0 %8245 }
 0xc03   : > { %15344 = vst [vmem:[#allocation189_spill] sm:$0xff] %v13842_v57  ;;  %7615 = vrot.lane.b32.xlu1 %v13844_v23, %s9626_s27  ;;  %v15349_v57 = vld [vmem:[#allocation177_spill] sm:$0xff] }
 0xc04   : > { %7423 = vrot.lane.b32.xlu0 %v7297_v29, %s9621_s19  ;;  %v7328_v39 = vmul.f32 %v15349_v57, %v7296_v31 }
 0xc05   : > { %v13849_v26 = vpop.permute.xlu1 %8437 }
 0xc06   : > { %15346 = vst [vmem:[#allocation192_spill] sm:$0xff] %v13849_v26  ;;  %v13851_v17 = vpop.permute.xlu0 %8439 }
 0xc07   : > { %15347 = vst [vmem:[#allocation129_spill] sm:$0xff] %v13851_v17  ;;  %8131 = vrot.lane.b32.xlu1 %v13844_v23, %s9622_s23  ;;  %v7846_v17 = vmul.f32 %v15330_v45, %v7296_v31 }
 0xc08   : > { %7745 = vrot.lane.b32.xlu0 %v7105_v47, %s9624_s25 }
 0xc09   : > { %v13856_v61 = vpop.permute.xlu1 %7189 }
 0xc0a   : > { %15348 = vst [vmem:[#allocation191_spill] sm:$0xff] %v13856_v61  ;;  %v13859_v3 = vpop.permute.xlu0 %7597  ;;  %v9599_v61 = vld [vmem:[#allocation2 + $0x17] sm:$0xff] }
 0xc0b   : > { %15350 = vst [vmem:[#allocation185_spill] sm:$0xff] %v13859_v3  ;;  %7421 = vrot.lane.b32.xlu1 %v7328_v39, %s9621_s19  ;;  %v13876_v39 = vld [vmem:[#allocation2 + $0xf7] sm:$0xff] }
 0xc0c   : > { %7939 = vrot.lane.b32.xlu0 %v7297_v29, %s9625_s26  ;;  %15355 = vst [vmem:[#allocation109_spill] sm:$0xff] %v13876_v39 }
 0xc0d   : > { %v13863_v5 = vpop.permute.xlu1 %7735 }
 0xc0e   : > { %15351 = vst [vmem:[#allocation168_spill] sm:$0xff] %v13863_v5  ;;  %v13866_v26 = vpop.permute.xlu0 %8113 }
 0xc0f   : > { %15352 = vst [vmem:[#allocation193_spill] sm:$0xff] %v13866_v26  ;;  %7937 = vrot.lane.b32.xlu1 %v7846_v17, %s9625_s26  ;;  %v7686_v26 = vld [vmem:[#allocation2 + $0x110] sm:$0xff] }
 0xc10   : > { %8261 = vrot.lane.b32.xlu0 %v7105_v47, %s9623_s24  ;;  %v7521_v47 = vmul.f32 %v10941_v8, %v13876_v39 }
 0xc11   : > { %v13870_v23 = vpop.permute.xlu1 %8251 }
 0xc12   : > { %15353 = vst [vmem:[#allocation85_spill] sm:$0xff] %v13870_v23  ;;  %v13873_v28 = vpop.permute.xlu0 %7187 }
 0xc13   : > { %15354 = vst [vmem:[#allocation149_spill] sm:$0xff] %v13873_v28  ;;  %8453 = vrot.lane.b32.xlu1 %v8364_v56, %s9627_s28  ;;  %v8039_v56 = vmul.f32 %v15168_v60, %v13876_v39  ;;  %v6980_v39 = vld [vmem:[#allocation2 + $0xf] sm:$0xff] }
 0xc14   : > { %8455 = vrot.lane.b32.xlu0 %v7297_v29, %s9627_s28  ;;  %v6979_v29 = vld [vmem:[#allocation2 + $0x7] sm:$0xff] }
 0xc15   : > { %v13879_v5 = vpop.permute.xlu1 %7603  ;;  %v7011_v28 = vmul.f32 %v15178_v35, %v6979_v29  ;;  %v15365_v35 = vld [vmem:[#allocation184_spill] sm:$0xff] }
 0xc16   : > { %15356 = vst [vmem:[#allocation151_spill] sm:$0xff] %v13879_v5  ;;  %v13881_v3 = vpop.permute.xlu0 %7411 }
 0xc17   : > { %15357 = vst [vmem:[#allocation100_spill] sm:$0xff] %v13881_v3  ;;  %7751 = vrot.lane.b32.xlu1 %v7686_v26, %s9624_s25  ;;  %v7492_v3 = vld [vmem:[#allocation2 + $0x10f] sm:$0xff]  ;;  %v7235_v5 = vadd.f32 %v13213_v40, %v7011_v28 }
 0xc18   : > { %7613 = vrot.lane.b32.xlu0 %v7521_v47, %s9626_s27  ;;  %v7685_v47 = vld [vmem:[#allocation2 + $0x108] sm:$0xff] }
 0xc19   : > { %v13887_v7 = vpop.permute.xlu1 %8119 }
 0xc1a   : > { %15358 = vst [vmem:[#allocation153_spill] sm:$0xff] %v13887_v7  ;;  %v13889_v17 = vpop.permute.xlu0 %7733 }
 0xc1b   : > { %15359 = vst [vmem:[#allocation180_spill] sm:$0xff] %v13889_v17  ;;  %8267 = vrot.lane.b32.xlu1 %v7686_v26, %s9623_s24  ;;  %v7818_v26 = vld [vmem:[#allocation2 + $0x111] sm:$0xff] }
 0xc1c   : > { %8129 = vrot.lane.b32.xlu0 %v8039_v56, %s9622_s23  ;;  %v7817_v56 = vld [vmem:[#allocation2 + $0x109] sm:$0xff]  ;;  %v7850_v29 = vmul.f32 %v15365_v35, %v7818_v26 }
 0xc1d   : > { %v13895_v31 = vpop.permute.xlu1 %7409 }
 0xc1e   : > { %15360 = vst [vmem:[#allocation172_spill] sm:$0xff] %v13895_v31  ;;  %v13897_v23 = vpop.permute.xlu0 %7927 }
 0xc1f   : > { %15361 = vst [vmem:[#allocation10_spill] sm:$0xff] %v13897_v23  ;;  %7619 = vrot.lane.b32.xlu1 %v7492_v3, %s9626_s27  ;;  %v7236_v23 = vadd.f32 %v13209_v21, %v6980_v39  ;;  %v9600_v21 = vld [vmem:[#allocation2 + $0x1f] sm:$0xff] }
 0xc20   : > { %7749 = vrot.lane.b32.xlu0 %v7685_v47, %s9624_s25  ;;  %v7238_v28 = vadd.f32 %v9600_v21, %v13240_v24  ;;  %v8011_v24 = vld [vmem:[#allocation2 + $0x117] sm:$0xff] }
 0xc21   : > { %v13902_v7 = vpop.permute.xlu1 %7925 }
 0xc22   : > { %15362 = vst [vmem:[#allocation16_spill] sm:$0xff] %v13902_v7  ;;  %v13904_v17 = vpop.permute.xlu0 %8249  ;;  %v7013_v7 = vmul.f32 %v9599_v61, %v14817_v43 }
 0xc23   : > { %15363 = vst [vmem:[#allocation28_spill] sm:$0xff] %v13904_v17  ;;  %8135 = vrot.lane.b32.xlu1 %v7492_v3, %s9622_s23  ;;  %v7460_v17 = vadd.f32 %v13258_v20, %v7236_v23  ;;  %v7459_v3 = vadd.f32 %v13223_v9, %v7235_v5  ;;  %v13929_v23 = vld [vmem:[#allocation2 + $0x101] sm:$0xff] }
 0xc24   : > { %7943 = vrot.lane.b32.xlu0 %v7817_v56, %s9625_s26  ;;  %v7237_v40 = vadd.f32 %v13242_v19, %v7013_v7  ;;  %v9601_v19 = vld [vmem:[#allocation2 + $0x27] sm:$0xff]  ;;  %v7462_v7 = vadd.f32 %v13303_v46, %v7238_v28  ;;  %v9604_v46 = vld [vmem:[#allocation2 + $0x2f] sm:$0xff] }
 0xc25   : > { %v13910_v31 = vpop.permute.xlu1 %8441  ;;  %v7653_v61 = vadd.f32 %v13268_v32, %v7459_v3  ;;  %v7654_v9 = vadd.f32 %v13252_v50, %v7460_v17  ;;  %v7015_v5 = vmul.f32 %v9601_v19, %v10184_v13  ;;  %v9603_v3 = vld [vmem:[#allocation2 + $0x47] sm:$0xff]  ;;  %v7330_v13 = vmul.f32 %v15365_v35, %v13929_v23  ;;  %v15369_v19 = vld [vmem:[#allocation63_spill] sm:$0xff] }
 0xc26   : > { %15364 = vst [vmem:[#allocation12_spill] sm:$0xff] %v13910_v31  ;;  %v13914_v8 = vpop.permute.xlu0 %8443  ;;  %v8368_v31 = vmul.f32 %v15349_v57, %v7818_v26  ;;  %v7461_v43 = vadd.f32 %v13248_v22, %v7237_v40  ;;  %v8338_v22 = vld [vmem:[#allocation2 + $0x121] sm:$0xff]  ;;  %v9602_v26 = vld [vmem:[#allocation2 + $0x37] sm:$0xff]  ;;  %v7019_v50 = vmul.f32 %v9603_v3, %v10276_v11  ;;  %v7656_v11 = vadd.f32 %v13289_v10, %v7462_v7  ;;  %v9606_v3 = vld [vmem:[#allocation2 + $0x4f] sm:$0xff] }
 0xc27   : > { %7945 = vrot.lane.b32.xlu1 %v7850_v29, %s9625_s26  ;;  %v7239_v32 = vadd.f32 %v13275_v34, %v7015_v5  ;;  %v7017_v29 = vmul.f32 %v9602_v26, %v10223_v44  ;;  %v8043_v44 = vmul.f32 %v11004_v30, %v8011_v24  ;;  %v7786_v21 = vadd.f32 %v13246_v51, %v7654_v9  ;;  %v8337_v7 = vld [vmem:[#allocation2 + $0x119] sm:$0xff] }
 0xc28   : > { %8265 = vrot.lane.b32.xlu0 %v7685_v47, %s9623_s24  ;;  %v7655_v47 = vadd.f32 %v13318_v1, %v7461_v43  ;;  %v7785_v1 = vadd.f32 %v13254_v48, %v7653_v61  ;;  %v8370_v28 = vmul.f32 %v15365_v35, %v8338_v22  ;;  %v13971_v10 = vmul.f32 %v10534_v15, %v13449_v36  ;;  %v15373_v22 = vld [vmem:[#allocation112_spill] sm:$0xff] }
 0xc29   : > { %v13922_v39 = vpop.permute.xlu1 %7193  ;;  %v7463_v40 = vadd.f32 %v13283_v12, %v7239_v32  ;;  %v7980_v51 = vadd.f32 %v13309_v14, %v7786_v21  ;;  %v7241_v15 = vadd.f32 %v13332_v6, %v7017_v29  ;;  %v7788_v36 = vadd.f32 %v13272_v16, %v7656_v11  ;;  %v15367_v6 = vld [vmem:[#allocation74_spill] sm:$0xff] }
 0xc2a   : > { %v13927_v20 = vpop.permute.xlu0 %7601  ;;  %v7787_v48 = vadd.f32 %v13291_v33, %v7655_v47  ;;  %v13988_v35 = vmul.f32 %v15281_v49, %v13571_v52  ;;  %v15368_v16 = vld [vmem:[#allocation46_spill] sm:$0xff]  ;;  %v7848_v5 = vmul.f32 %v15349_v57, %v13929_v23  ;;  %v8366_v29 = vmul.f32 %v15330_v45, %v13929_v23  ;;  %v15376_v57 = vld [vmem:[#allocation171_spill] sm:$0xff]  ;;  %v15381_v45 = vld [vmem:[#allocation84_spill] sm:$0xff] }
 0xc2b   : > { %8461 = vrot.lane.b32.xlu1 %v8368_v31, %s9627_s28  ;;  %v7240_v31 = vadd.f32 %v9604_v46, %v13265_v54  ;;  %v7491_v54 = vld [vmem:[#allocation2 + $0x107] sm:$0xff]  ;;  %v7657_v12 = vadd.f32 %v13375_v27, %v7463_v40  ;;  %v8174_v61 = vadd.f32 %v15367_v6, %v7980_v51  ;;  %v7465_v9 = vadd.f32 %v15368_v16, %v7241_v15  ;;  %v9607_v16 = vld [vmem:[#allocation2 + $0x5f] sm:$0xff] }
 0xc2c   : > { %8459 = vrot.lane.b32.xlu0 %v7817_v56, %s9627_s28  ;;  %v7021_v56 = vmul.f32 %v10339_v63, %v13278_v0  ;;  %v13960_v63 = vmul.f32 %v10402_v55, %v13335_v25  ;;  %v13964_v0 = vmul.f32 %v10467_v18, %v13392_v4  ;;  %v7037_v55 = vmul.f32 %v15168_v60, %v13754_v41  ;;  %v9605_v25 = vld [vmem:[#allocation2 + $0x3f] sm:$0xff]  ;;  %v15377_v11 = vld [vmem:[#allocation58_spill] sm:$0xff] }
 0xc2d   : > { %v13940_v17 = vpop.permute.xlu1 %7739  ;;  %v7464_v43 = vadd.f32 %v13354_v62, %v7240_v31  ;;  %v7242_v62 = vadd.f32 %v9605_v25, %v13315_v37  ;;  %v7979_v18 = vadd.f32 %v13261_v58, %v7785_v1  ;;  %v13981_v4 = vmul.f32 %v15008_v42, %v13510_v38  ;;  %v15366_v38 = vld [vmem:[#allocation65_spill] sm:$0xff]  ;;  %v15375_v31 = vld [vmem:[#allocation86_spill] sm:$0xff]  ;;  %v15382_v25 = vld [vmem:[#allocation143_spill] sm:$0xff] }
 0xc2e   : > { %v13948_v34 = vpop.permute.xlu0 %8117  ;;  %v7523_v27 = vmul.f32 %v11004_v30, %v7491_v54  ;;  %v7981_v42 = vadd.f32 %v13299_v59, %v7787_v48  ;;  %v7789_v52 = vadd.f32 %v15369_v19, %v7657_v12  ;;  %v15372_v59 = vld [vmem:[#allocation94_spill] sm:$0xff]  ;;  %v7659_v1 = vadd.f32 %v15375_v31, %v7465_v9  ;;  %v15380_v12 = vld [vmem:[#allocation67_spill] sm:$0xff]  ;;  %v15398_v31 = vld [vmem:[#allocation69_spill] sm:$0xff] }
 0xc2f   : > { %7425 = vrot.lane.b32.xlu1 %v7330_v13, %s9621_s19  ;;  %v8173_v58 = vadd.f32 %v13325_v53, %v7979_v18  ;;  %v7658_v37 = vadd.f32 %v13338_v2, %v7464_v43  ;;  %v7466_v41 = vadd.f32 %v15366_v38, %v7242_v62  ;;  %v15370_v53 = vld [vmem:[#allocation54_spill] sm:$0xff]  ;;  %v15371_v2 = vld [vmem:[#allocation27_spill] sm:$0xff]  ;;  %v14005_v32 = vmul.f32 %v15373_v22, %v15372_v59  ;;  %v15374_v13 = vld [vmem:[#allocation77_spill] sm:$0xff] }
 0xc30   : > { %8137 = vrot.lane.b32.xlu0 %v8043_v44, %s9622_s23  ;;  %v7982_v24 = vadd.f32 %v15370_v53, %v7788_v36  ;;  %v8175_v47 = vadd.f32 %v15371_v2, %v7981_v42  ;;  %v7244_v46 = vadd.f32 %v9606_v3, %v15374_v13  ;;  %v8041_v40 = vmul.f32 %v15376_v57, %v7491_v54  ;;  %v15379_v43 = vld [vmem:[#allocation60_spill] sm:$0xff]  ;;  %v15383_v18 = vld [vmem:[#allocation115_spill] sm:$0xff]  ;;  %v15385_v54 = vld [vmem:[#allocation18_spill] sm:$0xff] }
 0xc31   : > { %v13973_v33 = vpop.permute.xlu1 %8255  ;;  %v8305_v21 = vadd.f32 %v15377_v11, %v8173_v58  ;;  %v7660_v51 = vadd.f32 %v15379_v43, %v7466_v41  ;;  %v8306_v23 = vadd.f32 %v15381_v45, %v8174_v61  ;;  %v7983_v62 = vadd.f32 %v15382_v25, %v7789_v52  ;;  %v15386_v58 = vld [vmem:[#allocation17_spill] sm:$0xff]  ;;  %v15387_v42 = vld [vmem:[#allocation59_spill] sm:$0xff]  ;;  %v15388_v41 = vld [vmem:[#allocation48_spill] sm:$0xff] }
 0xc32   : > { %v7192_v14 = vpop.permute.xlu0 %7191  ;;  %v15389_v61 = vld [vmem:[#allocation105_spill] sm:$0xff]  ;;  %v15390_v19 = vld [vmem:[#allocation23_spill] sm:$0xff]  ;;  %v15395_v22 = vld [vmem:[#allocation134_spill] sm:$0xff] }
 0xc33   : > { %v7261_v60 = vadd.f32 %v7192_v14, %v7037_v55  ;;  %8465 = vrot.lane.b32.xlu1 %v8370_v28, %s9627_s28  ;;  %v15378_v28 = vld [vmem:[#allocation82_spill] sm:$0xff]  ;;  %v7790_v55 = vadd.f32 %v15380_v12, %v7658_v37  ;;  %v7245_v14 = vadd.f32 %v15383_v18, %v7021_v56  ;;  %v7246_v9 = vadd.f32 %v9607_v16, %v15389_v61  ;;  %v15391_v56 = vld [vmem:[#allocation45_spill] sm:$0xff]  ;;  %v15396_v3 = vld [vmem:[#allocation104_spill] sm:$0xff] }
 0xc34   : > { %7617 = vrot.lane.b32.xlu0 %v7523_v27, %s9626_s27  ;;  %v7243_v48 = vadd.f32 %v15378_v28, %v7019_v50  ;;  %v15384_v27 = vld [vmem:[#allocation47_spill] sm:$0xff]  ;;  %v8307_v50 = vadd.f32 %v15386_v58, %v8175_v47  ;;  %v7791_v52 = vadd.f32 %v15390_v19, %v7659_v1  ;;  %v8500_v11 = vadd.f32 %v15398_v31, %v8306_v23  ;;  %v15399_v1 = vld [vmem:[#allocation30_spill] sm:$0xff]  ;;  %v15401_v12 = vld [vmem:[#allocation53_spill] sm:$0xff] }
 0xc35   : > { %v7608_v49 = vpop.permute.xlu1 %7607  ;;  %v7468_v15 = vadd.f32 %v15384_v27, %v7244_v46  ;;  %v7984_v37 = vadd.f32 %v15388_v41, %v7790_v55  ;;  %v15394_v47 = vld [vmem:[#allocation55_spill] sm:$0xff]  ;;  %v15402_v45 = vld [vmem:[#allocation13_spill] sm:$0xff]  ;;  %v15403_v25 = vld [vmem:[#allocation96_spill] sm:$0xff] }
 0xc36   : > { %v7416_v26 = vpop.permute.xlu0 %7415  ;;  %v7467_v38 = vadd.f32 %v15387_v42, %v7243_v48  ;;  %v7792_v59 = vadd.f32 %v15394_v47, %v7660_v51  ;;  %v15397_v13 = vld [vmem:[#allocation191_spill] sm:$0xff]  ;;  %v15400_v48 = vld [vmem:[#allocation29_spill] sm:$0xff]  ;;  %v15404_v18 = vld [vmem:[#allocation34_spill] sm:$0xff] }
 0xc37   : > { %v14011_v44 = vadd.f32 %v7416_v26, %v7261_v60  ;;  %7941 = vrot.lane.b32.xlu1 %v7848_v5, %s9625_s26  ;;  %v8176_v60 = vadd.f32 %v15385_v54, %v7982_v24  ;;  %v8177_v5 = vadd.f32 %v15391_v56, %v7983_v62  ;;  %v15393_v24 = vld [vmem:[#allocation15_spill] sm:$0xff]  ;;  %v7260_v46 = vadd.f32 %v15397_v13, %v15396_v3  ;;  %v15406_v23 = vld [vmem:[#allocation26_spill] sm:$0xff]  ;;  %v15411_v56 = vld [vmem:[#allocation108_spill] sm:$0xff] }
 0xc38   : > { %8463 = vrot.lane.b32.xlu0 %v8337_v7, %s9627_s28  ;;  %v15392_v7 = vld [vmem:[#allocation89_spill] sm:$0xff]  ;;  %v8499_v2 = vadd.f32 %v15393_v24, %v8305_v21  ;;  %v7661_v26 = vadd.f32 %v15395_v22, %v7467_v38  ;;  %v7662_v28 = vadd.f32 %v15399_v1, %v7468_v15  ;;  %v7470_v43 = vadd.f32 %v15400_v48, %v7246_v9  ;;  %v9608_v62 = vld [vmem:[#allocation2 + $0x6f] sm:$0xff]  ;;  %v15407_v15 = vld [vmem:[#allocation20_spill] sm:$0xff] }
 0xc39   : > { %v14024_v36 = vpop.permute.xlu1 %8123  ;;  %v7469_v53 = vadd.f32 %v15392_v7, %v7245_v14  ;;  %v8308_v21 = vadd.f32 %v15402_v45, %v8176_v60  ;;  %v7986_v51 = vadd.f32 %v15403_v25, %v7792_v59  ;;  %v7248_v14 = vadd.f32 %v9608_v62, %v15404_v18  ;;  %v15408_v41 = vld [vmem:[#allocation66_spill] sm:$0xff]  ;;  %v15409_v60 = vld [vmem:[#allocation31_spill] sm:$0xff]  ;;  %v15410_v9 = vld [vmem:[#allocation25_spill] sm:$0xff] }
 0xc3a   : > { %v14030_v6 = vpop.permute.xlu0 %7737  ;;  %v8178_v42 = vadd.f32 %v15406_v23, %v7984_v37  ;;  %v8309_v38 = vadd.f32 %v15407_v15, %v8177_v5  ;;  %v7985_v16 = vadd.f32 %v15408_v41, %v7791_v52  ;;  %v7793_v61 = vadd.f32 %v15409_v60, %v7661_v26  ;;  %v15413_v37 = vld [vmem:[#allocation156_spill] sm:$0xff]  ;;  %v15414_v5 = vld [vmem:[#allocation101_spill] sm:$0xff]  ;;  %v15416_v13 = vld [vmem:[#allocation51_spill] sm:$0xff] }
 0xc3b   : > { %8457 = vrot.lane.b32.xlu1 %v8366_v29, %s9627_s28  ;;  %v7663_v55 = vadd.f32 %v15401_v12, %v7469_v53  ;;  %v7247_v19 = vadd.f32 %v15410_v9, %v13960_v63  ;;  %v7472_v7 = vadd.f32 %v15411_v56, %v7248_v14  ;;  %v7664_v47 = vadd.f32 %v15413_v37, %v7470_v43  ;;  %v15415_v52 = vld [vmem:[#allocation120_spill] sm:$0xff]  ;;  %v15418_v63 = vld [vmem:[#allocation50_spill] sm:$0xff]  ;;  %v15420_v43 = vld [vmem:[#allocation37_spill] sm:$0xff] }
 0xc3c   : > { %8133 = vrot.lane.b32.xlu0 %v8041_v40, %s9622_s23  ;;  %v15405_v40 = vld [vmem:[#allocation72_spill] sm:$0xff]  ;;  %v7794_v59 = vadd.f32 %v15414_v5, %v7662_v28  ;;  %v8180_v26 = vadd.f32 %v15416_v13, %v7986_v51  ;;  %v8310_v12 = vadd.f32 %v15420_v43, %v8178_v42  ;;  %v15421_v28 = vld [vmem:[#allocation43_spill] sm:$0xff]  ;;  %v15427_v23 = vld [vmem:[#allocation57_spill] sm:$0xff] }
 0xc3d   : > { %v7414_v29 = vpop.permute.xlu1 %7413  ;;  %v8501_v58 = vadd.f32 %v15405_v40, %v8307_v50  ;;  %v15412_v50 = vld [vmem:[#allocation42_spill] sm:$0xff]  ;;  %v7795_v22 = vadd.f32 %v15415_v52, %v7663_v55  ;;  %v9609_v55 = vld [vmem:[#allocation2 + $0x7f] sm:$0xff]  ;;  %v15425_v14 = vld [vmem:[#allocation75_spill] sm:$0xff] }
 0xc3e   : > { %v7484_v27 = vadd.f32 %v7414_v29, %v7260_v46  ;;  %v14050_v54 = vpop.permute.xlu0 %7931  ;;  %v8502_v24 = vadd.f32 %v15412_v50, %v8308_v21  ;;  %v15417_v46 = vld [vmem:[#allocation68_spill] sm:$0xff]  ;;  %v7988_v29 = vadd.f32 %v15421_v28, %v7794_v59  ;;  %v8504_v42 = vadd.f32 %v15427_v23, %v8310_v12  ;;  %v15428_v15 = vld [vmem:[#allocation139_spill] sm:$0xff]  ;;  %v15430_v60 = vld [vmem:[#allocation125_spill] sm:$0xff] }
 0xc3f   : > { %8565 = vrot.lane.b32.xlu1 %v8500_v11, %s9630_s18  ;;  %v8179_v31 = vadd.f32 %v15417_v46, %v7985_v16  ;;  %v7471_v11 = vadd.f32 %v15418_v63, %v7247_v19  ;;  %v15422_v45 = vld [vmem:[#allocation64_spill] sm:$0xff]  ;;  %v15433_v50 = vld [vmem:[#allocation117_spill] sm:$0xff]  ;;  %v15436_v52 = vld [vmem:[#allocation91_spill] sm:$0xff] }
 0xc40   : > { %v7678_v53 = vadd.f32 %v7608_v49, %v7484_v27  ;;  %8563 = vrot.lane.b32.xlu0 %v8499_v2, %s9630_s18  ;;  %v15419_v2 = vld [vmem:[#allocation98_spill] sm:$0xff]  ;;  %v7250_v21 = vadd.f32 %v9609_v55, %v15422_v45  ;;  %v15423_v25 = vld [vmem:[#allocation124_spill] sm:$0xff]  ;;  %v7666_v27 = vadd.f32 %v15425_v14, %v7472_v7  ;;  %v15447_v23 = vld [vmem:[#allocation33_spill] sm:$0xff] }
 0xc41   : > { %v14066_v3 = vpop.permute.xlu1 %7929  ;;  %v8503_v48 = vadd.f32 %v15419_v2, %v8309_v38  ;;  %v7987_v51 = vadd.f32 %v15423_v25, %v7793_v61  ;;  %v15424_v62 = vld [vmem:[#allocation92_spill] sm:$0xff]  ;;  %v7796_v38 = vadd.f32 %v15428_v15, %v7664_v47  ;;  %v15431_v61 = vld [vmem:[#allocation21_spill] sm:$0xff]  ;;  %v9610_v13 = vld [vmem:[#allocation2 + $0x8f] sm:$0xff] }
 0xc42   : > { %v14071_v1 = vpop.permute.xlu0 %8253  ;;  %v14074_v49 = vadd.f32 %v13940_v17, %v7678_v53  ;;  %v7249_v18 = vadd.f32 %v15424_v62, %v13964_v0  ;;  %v15426_v17 = vld [vmem:[#allocation127_spill] sm:$0xff]  ;;  %v15429_v41 = vld [vmem:[#allocation36_spill] sm:$0xff]  ;;  %v7474_v9 = vadd.f32 %v15430_v60, %v7250_v21  ;;  %v8311_v56 = vadd.f32 %v15431_v61, %v8179_v31  ;;  %v15432_v53 = vld [vmem:[#allocation38_spill] sm:$0xff] }
 0xc43   : > { %8569 = vrot.lane.b32.xlu1 %v8502_v24, %s9630_s18  ;;  %v7665_v40 = vadd.f32 %v15426_v17, %v7471_v11  ;;  %v7989_v16 = vadd.f32 %v15429_v41, %v7795_v22  ;;  %v8312_v0 = vadd.f32 %v15432_v53, %v8180_v26  ;;  %v8181_v7 = vadd.f32 %v15433_v50, %v7987_v51  ;;  %v15434_v24 = vld [vmem:[#allocation88_spill] sm:$0xff]  ;;  %v15437_v22 = vld [vmem:[#allocation106_spill] sm:$0xff]  ;;  %v15444_v25 = vld [vmem:[#allocation19_spill] sm:$0xff] }
 0xc44   : > { %8567 = vrot.lane.b32.xlu0 %v8501_v58, %s9630_s18  ;;  %v7473_v37 = vadd.f32 %v15434_v24, %v7249_v18  ;;  %v15435_v58 = vld [vmem:[#allocation73_spill] sm:$0xff]  ;;  %v7990_v47 = vadd.f32 %v15436_v52, %v7796_v38  ;;  %v7252_v46 = vadd.f32 %v9610_v13, %v15437_v22  ;;  %v15438_v63 = vld [vmem:[#allocation78_spill] sm:$0xff]  ;;  %v15441_v12 = vld [vmem:[#allocation56_spill] sm:$0xff]  ;;  %v7668_v51 = vadd.f32 %v15444_v25, %v7474_v9 }
 0xc45   : > { %v14091_v19 = vpop.permute.xlu1 %8445  ;;  %v8182_v59 = vadd.f32 %v15435_v58, %v7988_v29  ;;  %v8183_v11 = vadd.f32 %v15438_v63, %v7989_v16  ;;  %v15439_v31 = vld [vmem:[#allocation154_spill] sm:$0xff]  ;;  %v7798_v28 = vadd.f32 %v15441_v12, %v7666_v27  ;;  %v15443_v29 = vld [vmem:[#allocation95_spill] sm:$0xff]  ;;  %v15449_v27 = vld [vmem:[#allocation136_spill] sm:$0xff] }
 0xc46   : > { %v14097_v5 = vpop.permute.xlu0 %8447  ;;  %v7797_v2 = vadd.f32 %v15439_v31, %v7665_v40  ;;  %v15440_v26 = vld [vmem:[#allocation122_spill] sm:$0xff]  ;;  %v8506_v21 = vadd.f32 %v15443_v29, %v8312_v0  ;;  %v15445_v62 = vld [vmem:[#allocation183_spill] sm:$0xff]  ;;  %v15450_v41 = vld [vmem:[#allocation161_spill] sm:$0xff] }
 0xc47   : > { %8573 = vrot.lane.b32.xlu1 %v8504_v42, %s9630_s18  ;;  %v7251_v43 = vadd.f32 %v15440_v26, %v13971_v10  ;;  %v15442_v55 = vld [vmem:[#allocation138_spill] sm:$0xff]  ;;  %v7476_v18 = vadd.f32 %v15445_v62, %v7252_v46  ;;  %v8505_v42 = vadd.f32 %v15447_v23, %v8311_v56  ;;  %v7992_v16 = vadd.f32 %v15450_v41, %v7798_v28  ;;  %v15451_v60 = vld [vmem:[#allocation87_spill] sm:$0xff]  ;;  %v15453_v0 = vld [vmem:[#allocation97_spill] sm:$0xff] }
 0xc48   : > { %v7667_v45 = vadd.f32 %v15442_v55, %v7473_v37  ;;  %8571 = vrot.lane.b32.xlu0 %v8503_v48, %s9630_s18  ;;  %v15446_v17 = vld [vmem:[#allocation178_spill] sm:$0xff]  ;;  %v8184_v61 = vadd.f32 %v15451_v60, %v7990_v47  ;;  %v15452_v9 = vld [vmem:[#allocation39_spill] sm:$0xff]  ;;  %v8315_v50 = vadd.f32 %v15453_v0, %v8183_v11  ;;  %v15455_v37 = vld [vmem:[#allocation176_spill] sm:$0xff] }
 0xc49   : > { %v14113_v14 = vpop.permute.xlu1 %7197  ;;  %v7039_v40 = vmul.f32 %v15376_v57, %v15446_v17  ;;  %v15448_v10 = vld [vmem:[#allocation126_spill] sm:$0xff]  ;;  %v7475_v38 = vadd.f32 %v15449_v27, %v7251_v43  ;;  %v8314_v53 = vadd.f32 %v15452_v9, %v8182_v59  ;;  %v15456_v57 = vld [vmem:[#allocation116_spill] sm:$0xff]  ;;  %v15458_v13 = vld [vmem:[#allocation83_spill] sm:$0xff] }
 0xc4a   : > { %v8313_v15 = vadd.f32 %v15448_v10, %v8181_v7  ;;  %v14121_v48 = vpop.permute.xlu0 %7605  ;;  %v15454_v24 = vld [vmem:[#allocation70_spill] sm:$0xff]  ;;  %v7799_v56 = vadd.f32 %v15456_v57, %v7667_v45  ;;  %v15457_v7 = vld [vmem:[#allocation76_spill] sm:$0xff]  ;;  %v7253_v22 = vadd.f32 %v15458_v13, %v13981_v4  ;;  %v15460_v47 = vld [vmem:[#allocation71_spill] sm:$0xff] }
 0xc4b   : > { %v7254_v58 = vadd.f32 %v15455_v37, %v15454_v24  ;;  %8577 = vrot.lane.b32.xlu1 %v8506_v21, %s9630_s18  ;;  %v7991_v52 = vadd.f32 %v15457_v7, %v7797_v2  ;;  %v15459_v46 = vld [vmem:[#allocation158_spill] sm:$0xff]  ;;  %v8508_v59 = vadd.f32 %v15460_v47, %v8314_v53  ;;  %v15461_v31 = vld [vmem:[#allocation133_spill] sm:$0xff]  ;;  %v15463_v12 = vld [vmem:[#allocation152_spill] sm:$0xff] }
 0xc4c   : > { %v7669_v63 = vadd.f32 %v15459_v46, %v7475_v38  ;;  %8575 = vrot.lane.b32.xlu0 %v8505_v42, %s9630_s18  ;;  %v7670_v11 = vadd.f32 %v15461_v31, %v7476_v18  ;;  %v15462_v26 = vld [vmem:[#allocation146_spill] sm:$0xff]  ;;  %v15466_v25 = vld [vmem:[#allocation181_spill] sm:$0xff]  ;;  %v15467_v62 = vld [vmem:[#allocation140_spill] sm:$0xff] }
 0xc4d   : > { %v7800_v43 = vadd.f32 %v15462_v26, %v7668_v51  ;;  %v7478_v28 = vadd.f32 %v15463_v12, %v7254_v58  ;;  %v14139_v55 = vpop.permute.xlu1 %7743  ;;  %v15464_v45 = vld [vmem:[#allocation62_spill] sm:$0xff]  ;;  %v8185_v4 = vadd.f32 %v15466_v25, %v7991_v52  ;;  %v7477_v17 = vadd.f32 %v15467_v62, %v7253_v22  ;;  %v15468_v42 = vld [vmem:[#allocation145_spill] sm:$0xff]  ;;  %v15469_v27 = vld [vmem:[#allocation111_spill] sm:$0xff] }
 0xc4e   : > { %v8507_v29 = vadd.f32 %v15464_v45, %v8313_v15  ;;  %v15465_v2 = vld [vmem:[#allocation130_spill] sm:$0xff]  ;;  %v14145_v23 = vpop.permute.xlu0 %8121  ;;  %v8509_v10 = vadd.f32 %v15468_v42, %v8315_v50  ;;  %v8316_v18 = vadd.f32 %v15469_v27, %v8184_v61  ;;  %v15470_v38 = vld [vmem:[#allocation160_spill] sm:$0xff]  ;;  %v15473_v15 = vld [vmem:[#allocation163_spill] sm:$0xff] }
 0xc4f   : > { %v8186_v21 = vadd.f32 %v15465_v2, %v7992_v16  ;;  %v7994_v51 = vadd.f32 %v15470_v38, %v7800_v43  ;;  %v15471_v41 = vld [vmem:[#allocation40_spill] sm:$0xff]  ;;  %v15472_v60 = vld [vmem:[#allocation150_spill] sm:$0xff]  ;;  %8581 = vrot.lane.b32.xlu1 %v8508_v59, %s9630_s18  ;;  %v7801_v53 = vadd.f32 %v15473_v15, %v7669_v63  ;;  %v15474_v16 = vld [vmem:[#allocation103_spill] sm:$0xff] }
 0xc50   : > { %v7256_v9 = vadd.f32 %v15472_v60, %v15471_v41  ;;  %v7993_v0 = vadd.f32 %v15474_v16, %v7799_v56  ;;  %v15475_v24 = vld [vmem:[#allocation121_spill] sm:$0xff]  ;;  %v15476_v58 = vld [vmem:[#allocation11_spill] sm:$0xff]  ;;  %8579 = vrot.lane.b32.xlu0 %v8507_v29, %s9630_s18  ;;  %v15477_v50 = vld [vmem:[#allocation90_spill] sm:$0xff] }
 0xc51   : > { %v7255_v37 = vadd.f32 %v15475_v24, %v13988_v35  ;;  %v7671_v57 = vadd.f32 %v15476_v58, %v7477_v17  ;;  %v8510_v61 = vadd.f32 %v15477_v50, %v8316_v18  ;;  %v15478_v7 = vld [vmem:[#allocation142_spill] sm:$0xff]  ;;  %v15479_v13 = vld [vmem:[#allocation159_spill] sm:$0xff]  ;;  %v15480_v46 = vld [vmem:[#allocation144_spill] sm:$0xff]  ;;  %v14163_v59 = vpop.permute.xlu1 %8259 }
 0xc52   : > { %v7672_v52 = vadd.f32 %v15478_v7, %v7478_v28  ;;  %v7802_v22 = vadd.f32 %v15479_v13, %v7670_v11  ;;  %v7480_v47 = vadd.f32 %v15480_v46, %v7256_v9  ;;  %v15481_v63 = vld [vmem:[#allocation107_spill] sm:$0xff]  ;;  %v15482_v56 = vld [vmem:[#allocation165_spill] sm:$0xff]  ;;  %v15483_v43 = vld [vmem:[#allocation188_spill] sm:$0xff]  ;;  %v7196_v2 = vpop.permute.xlu0 %7195 }
 0xc53   : > { %v8317_v31 = vadd.f32 %v15481_v63, %v8185_v4  ;;  %v8318_v26 = vadd.f32 %v15482_v56, %v8186_v21  ;;  %v8187_v35 = vadd.f32 %v15483_v43, %v7993_v0  ;;  %v15484_v12 = vld [vmem:[#allocation132_spill] sm:$0xff]  ;;  %v15485_v29 = vld [vmem:[#allocation110_spill] sm:$0xff]  ;;  %v15488_v42 = vld [vmem:[#allocation123_spill] sm:$0xff]  ;;  %v7263_v27 = vadd.f32 %v7196_v2, %v7039_v40  ;;  %8585 = vrot.lane.b32.xlu1 %v8510_v61, %s9630_s18 }
 0xc54   : > { %v7479_v45 = vadd.f32 %v15484_v12, %v7255_v37  ;;  %v8188_v25 = vadd.f32 %v15485_v29, %v7994_v51  ;;  %v15486_v62 = vld [vmem:[#allocation166_spill] sm:$0xff]  ;;  %v15487_v28 = vld [vmem:[#allocation52_spill] sm:$0xff]  ;;  %v15490_v4 = vld [vmem:[#allocation49_spill] sm:$0xff]  ;;  %8583 = vrot.lane.b32.xlu0 %v8509_v10, %s9630_s18 }
 0xc55   : > { %v7996_v17 = vadd.f32 %v15486_v62, %v7802_v22  ;;  %v7258_v11 = vadd.f32 %v15488_v42, %v15487_v28  ;;  %v15489_v18 = vld [vmem:[#allocation114_spill] sm:$0xff]  ;;  %v7995_v41 = vadd.f32 %v15490_v4, %v7801_v53  ;;  %v15491_v21 = vld [vmem:[#allocation187_spill] sm:$0xff]  ;;  %v15492_v9 = vld [vmem:[#allocation185_spill] sm:$0xff]  ;;  %v7612_v61 = vpop.permute.xlu1 %7611 }
 0xc56   : > { %v7803_v38 = vadd.f32 %v15489_v18, %v7671_v57  ;;  %v7257_v60 = vadd.f32 %v15491_v21, %v14005_v32  ;;  %v7673_v15 = vadd.f32 %v15492_v9, %v7479_v45  ;;  %v15493_v51 = vld [vmem:[#allocation147_spill] sm:$0xff]  ;;  %v15495_v37 = vld [vmem:[#allocation164_spill] sm:$0xff]  ;;  %v15497_v7 = vld [vmem:[#allocation41_spill] sm:$0xff]  ;;  %v7420_v56 = vpop.permute.xlu0 %7419 }
 0xc57   : > { %v8512_v16 = vadd.f32 %v15493_v51, %v8318_v26  ;;  %v15494_v0 = vld [vmem:[#allocation175_spill] sm:$0xff]  ;;  %v7804_v58 = vadd.f32 %v15495_v37, %v7672_v52  ;;  %v15496_v40 = vld [vmem:[#allocation172_spill] sm:$0xff]  ;;  %v8511_v57 = vadd.f32 %v15497_v7, %v8317_v31  ;;  %v15498_v13 = vld [vmem:[#allocation170_spill] sm:$0xff]  ;;  %v14191_v2 = vadd.f32 %v7420_v56, %v7263_v27 }
 0xc58   : > { %v7674_v24 = vadd.f32 %v15494_v0, %v7480_v47  ;;  %v7482_v50 = vadd.f32 %v15496_v40, %v7258_v11  ;;  %v8319_v53 = vadd.f32 %v15498_v13, %v8187_v35  ;;  %v15499_v22 = vld [vmem:[#allocation135_spill] sm:$0xff]  ;;  %v15500_v32 = vld [vmem:[#allocation148_spill] sm:$0xff]  ;;  %v15502_v12 = vld [vmem:[#allocation102_spill] sm:$0xff] }
 0xc59   : > { %v8189_v46 = vadd.f32 %v15499_v22, %v7995_v41  ;;  %v7481_v63 = vadd.f32 %v15500_v32, %v7257_v60  ;;  %v15501_v43 = vld [vmem:[#allocation119_spill] sm:$0xff]  ;;  %v8320_v26 = vadd.f32 %v15502_v12, %v8188_v25  ;;  %v15503_v45 = vld [vmem:[#allocation173_spill] sm:$0xff]  ;;  %8589 = vrot.lane.b32.xlu1 %v8512_v16, %s9630_s18  ;;  %v15504_v52 = vld [vmem:[#allocation182_spill] sm:$0xff]  ;;  %8587 = vrot.lane.b32.xlu0 %v8511_v57, %s9630_s18  ;;  %v14201_v4 = vpop.permute.xlu1 %8127 }
 0xc5a   : > { %v8190_v10 = vadd.f32 %v15501_v43, %v7996_v17  ;;  %v7998_v47 = vadd.f32 %v15503_v45, %v7804_v58  ;;  %v7805_v29 = vadd.f32 %v15504_v52, %v7673_v15  ;;  %v15505_v31 = vld [vmem:[#allocation167_spill] sm:$0xff]  ;;  %v15506_v28 = vld [vmem:[#allocation113_spill] sm:$0xff]  ;;  %v15508_v18 = vld [vmem:[#allocation162_spill] sm:$0xff]  ;;  %v14206_v51 = vpop.permute.xlu0 %7741 }
 0xc5b   : > { %v7997_v62 = vadd.f32 %v15505_v31, %v7803_v38  ;;  %v7675_v35 = vadd.f32 %v13927_v20, %v7481_v63  ;;  %v8514_v42 = vadd.f32 %v15506_v28, %v8320_v26  ;;  %v15507_v11 = vld [vmem:[#allocation151_spill] sm:$0xff]  ;;  %v7806_v25 = vadd.f32 %v15508_v18, %v7674_v24  ;;  %v15509_v27 = vld [vmem:[#allocation169_spill] sm:$0xff]  ;;  %v15512_v38 = vld [vmem:[#allocation128_spill] sm:$0xff] }
 0xc5c   : > { %v7676_v17 = vadd.f32 %v15507_v11, %v7482_v50  ;;  %v8513_v41 = vadd.f32 %v15509_v27, %v8319_v53  ;;  %v15510_v21 = vld [vmem:[#allocation155_spill] sm:$0xff]  ;;  %v15511_v9 = vld [vmem:[#allocation193_spill] sm:$0xff]  ;;  %v8192_v20 = vadd.f32 %v15512_v38, %v7998_v47  ;;  %v15514_v37 = vld [vmem:[#allocation16_spill] sm:$0xff] }
 0xc5d   : > { %v8321_v60 = vadd.f32 %v15510_v21, %v8189_v46  ;;  %v8191_v15 = vadd.f32 %v15511_v9, %v7997_v62  ;;  %v15513_v16 = vld [vmem:[#allocation141_spill] sm:$0xff]  ;;  %v8000_v58 = vadd.f32 %v15514_v37, %v7806_v25  ;;  %8593 = vrot.lane.b32.xlu1 %v8514_v42, %s9630_s18  ;;  %v15515_v40 = vld [vmem:[#allocation179_spill] sm:$0xff]  ;;  %v15516_v50 = vld [vmem:[#allocation180_spill] sm:$0xff]  ;;  %v7418_v63 = vpop.permute.xlu1 %7417 }
 0xc5e   : > { %v8322_v0 = vadd.f32 %v15513_v16, %v8190_v10  ;;  %v7262_v24 = vadd.f32 %v13922_v39, %v15515_v40  ;;  %v7807_v7 = vadd.f32 %v15516_v50, %v7675_v35  ;;  %v15517_v57 = vld [vmem:[#allocation186_spill] sm:$0xff]  ;;  %8591 = vrot.lane.b32.xlu0 %v8513_v41, %s9630_s18  ;;  %v15518_v53 = vld [vmem:[#allocation192_spill] sm:$0xff]  ;;  %v15521_v10 = vld [vmem:[#allocation189_spill] sm:$0xff]  ;;  %v14222_v47 = vpop.permute.xlu0 %7935 }
 0xc5f   : > { %v7999_v13 = vadd.f32 %v15517_v57, %v7805_v29  ;;  %v15519_v46 = vld [vmem:[#allocation168_spill] sm:$0xff]  ;;  %v15520_v56 = vld [vmem:[#allocation174_spill] sm:$0xff]  ;;  %v8323_v12 = vadd.f32 %v15521_v10, %v8191_v15  ;;  %v15522_v39 = vld [vmem:[#allocation81_spill] sm:$0xff] }
 0xc60   : > { %v8516_v22 = vadd.f32 %v15518_v53, %v8322_v0  ;;  %v7808_v32 = vadd.f32 %v15519_v46, %v7676_v17  ;;  %v8515_v43 = vadd.f32 %v15520_v56, %v8321_v60  ;;  %v7486_v45 = vadd.f32 %v7418_v63, %v7262_v24  ;;  %v15523_v52 = vld [vmem:[#allocation131_spill] sm:$0xff]  ;;  %v15524_v29 = vld [vmem:[#allocation153_spill] sm:$0xff]  ;;  %v15525_v35 = vld [vmem:[#allocation190_spill] sm:$0xff] }
 0xc61   : > { %v8193_v26 = vadd.f32 %v13948_v34, %v7999_v13  ;;  %v7035_v31 = vmul.f32 %v15523_v52, %v15522_v39  ;;  %v8194_v62 = vadd.f32 %v15524_v29, %v8000_v58  ;;  %v8324_v28 = vadd.f32 %v15525_v35, %v8192_v20  ;;  %v15526_v11 = vld [vmem:[#allocation10_spill] sm:$0xff]  ;;  %v15527_v34 = vld [vmem:[#allocation149_spill] sm:$0xff]  ;;  %v15528_v27 = vld [vmem:[#allocation12_spill] sm:$0xff]  ;;  %v7934_v21 = vpop.permute.xlu1 %7933 }
 0xc62   : > { %v8002_v42 = vadd.f32 %v14066_v3, %v7808_v32  ;;  %8597 = vrot.lane.b32.xlu1 %v8516_v22, %s9630_s18  ;;  %v8001_v17 = vadd.f32 %v15526_v11, %v7807_v7  ;;  %v7680_v18 = vadd.f32 %v7612_v61, %v7486_v45  ;;  %8595 = vrot.lane.b32.xlu0 %v8515_v43, %s9630_s18  ;;  %v15529_v60 = vld [vmem:[#allocation129_spill] sm:$0xff]  ;;  %v15530_v15 = vld [vmem:[#allocation28_spill] sm:$0xff]  ;;  %v8258_v16 = vpop.permute.xlu0 %8257 }
 0xc63   : > { %v7259_v25 = vadd.f32 %v15527_v34, %v7035_v31  ;;  %v8518_v41 = vadd.f32 %v15528_v27, %v8324_v28  ;;  %v8517_v9 = vadd.f32 %v15529_v60, %v8323_v12  ;;  %v8325_v38 = vadd.f32 %v15530_v15, %v8193_v26  ;;  %v15531_v0 = vld [vmem:[#allocation100_spill] sm:$0xff]  ;;  %v15532_v58 = vld [vmem:[#allocation85_spill] sm:$0xff] }
 0xc64   : > { %v8195_v20 = vadd.f32 %v14145_v23, %v8001_v17  ;;  %v14238_v3 = vadd.f32 %v14139_v55, %v7680_v18  ;;  %v8196_v61 = vadd.f32 %v14024_v36, %v8002_v42  ;;  %v8326_v40 = vadd.f32 %v15532_v58, %v8194_v62 }
 0xc65   : > { %v7483_v37 = vadd.f32 %v15531_v0, %v7259_v25  ;;  %v8450_v7 = vpop.permute.xlu1 %8449  ;;  %v8519_v23 = vadd.f32 %v13914_v8, %v8325_v38  ;;  %v8004_v26 = vadd.f32 %v7934_v21, %v14074_v49  ;;  %v15534_v0 = vld [vmem:[#allocation8_spill] sm:$0xff] }
 0xc66   : > { %8601 = vrot.lane.b32.xlu1 %v8518_v41, %s9630_s18  ;;  %8599 = vrot.lane.b32.xlu0 %v8517_v9, %s9630_s18  ;;  %v8520_v24 = vadd.f32 %v14091_v19, %v8326_v40  ;;  %v8327_v55 = vadd.f32 %v14071_v1, %v8195_v20  ;;  %v8452_v57 = vpop.permute.xlu0 %8451  ;;  %v8328_v13 = vadd.f32 %v13973_v33, %v8196_v61  ;;  %v15533_v20 = vld [vmem:[#allocation5_spill] sm:$0xff] }
 0xc67   : > { %v7677_v50 = vadd.f32 %v14121_v48, %v7483_v37  ;;  %v8198_v52 = vadd.f32 %v14201_v4, %v8004_v26  ;;  %v15535_v61 = vld [vmem:[#allocation109_spill] sm:$0xff] }
 0xc68   : > { %v8522_v53 = vadd.f32 %v8450_v7, %v8328_v13  ;;  %v8521_v19 = vadd.f32 %v14097_v5, %v8327_v55  ;;  %v7041_v58 = vmul.f32 %v11004_v30, %v15535_v61 }
 0xc69   : > { %v7809_v36 = vadd.f32 %v14030_v6, %v7677_v50  ;;  %v7202_v22 = vpop.permute.xlu1 %7201  ;;  %v8330_v29 = vadd.f32 %v14163_v59, %v8198_v52 }
 0xc6a   : > { %8605 = vrot.lane.b32.xlu1 %v8520_v24, %s9630_s18  ;;  %8603 = vrot.lane.b32.xlu0 %v8519_v23, %s9630_s18  ;;  %v7610_v46 = vpop.permute.xlu0 %7609  ;;  %v7266_v37 = vadd.f32 %v7202_v22, %v15534_v0 }
 0xc6b   : > { %v8003_v1 = vadd.f32 %v14050_v54, %v7809_v36  ;;  %v7679_v62 = vadd.f32 %v7610_v46, %v14011_v44 }
 0xc6d   : > { %v7748_v8 = vpop.permute.xlu1 %7747  ;;  %v7811_v11 = vadd.f32 %v14206_v51, %v7679_v62  ;;  %v7264_v51 = vadd.f32 %v14113_v14, %v15533_v20 }
 0xc6e   : > { %8609 = vrot.lane.b32.xlu1 %v8522_v53, %s9630_s18  ;;  %8607 = vrot.lane.b32.xlu0 %v8521_v19, %s9630_s18  ;;  %v8126_v48 = vpop.permute.xlu0 %8125 }
 0xc6f   : > { %v8197_v33 = vadd.f32 %v8126_v48, %v8003_v1  ;;  %v8005_v34 = vadd.f32 %v14222_v47, %v7811_v11 }
 0xc71   : > { %v8329_v32 = vadd.f32 %v8258_v16, %v8197_v33  ;;  %v14257_v63 = vpop.permute.xlu1 %8263 }
 0xc72   : > { %v7200_v56 = vpop.permute.xlu0 %7199 }
 0xc73   : > { %v8523_v43 = vadd.f32 %v8452_v57, %v8329_v32  ;;  %v7265_v7 = vadd.f32 %v7200_v56, %v7041_v58 }
 0xc75   : > { %8611 = vrot.lane.b32.xlu0 %v8523_v43, %s9630_s18  ;;  %v7616_v6 = vpop.permute.xlu1 %7615 }
 0xc76   : > { %v7424_v10 = vpop.permute.xlu0 %7423 }
 0xc77   : > { %v7489_v13 = vadd.f32 %v7424_v10, %v7265_v7 }
 0xc79   : > { %v8132_v5 = vpop.permute.xlu1 %8131 }
 0xc7a   : > { %v7746_v12 = vpop.permute.xlu0 %7745 }
 0xc7d   : > { %v7422_v45 = vpop.permute.xlu1 %7421 }
 0xc7e   : > { %v7940_v39 = vpop.permute.xlu0 %7939  ;;  %v7488_v47 = vadd.f32 %v7422_v45, %v7264_v51 }
 0xc80   : > { %v7682_v23 = vadd.f32 %v7616_v6, %v7488_v47 }
 0xc81   : > { %v7938_v54 = vpop.permute.xlu1 %7937 }
 0xc82   : > { %v8262_v31 = vpop.permute.xlu0 %8261  ;;  %v8006_v55 = vadd.f32 %v7938_v54, %v14238_v3  ;;  %v7814_v1 = vadd.f32 %v7748_v8, %v7682_v23 }
 0xc84   : > { %v8200_v22 = vadd.f32 %v8132_v5, %v8006_v55 }
 0xc85   : > { %v8454_v35 = vpop.permute.xlu1 %8453 }
 0xc86   : > { %v8524_v28 = vadd.f32 %v8454_v35, %v8330_v29  ;;  %v8456_v42 = vpop.permute.xlu0 %8455  ;;  %v8332_v3 = vadd.f32 %v14257_v63, %v8200_v22  ;;  %v15537_v35 = vld [vmem:[#allocation24_spill] sm:$0xff] }
 0xc88   : > { %8613 = vrot.lane.b32.xlu1 %v8524_v28, %s9630_s18 }
 0xc89   : > { %v7752_v17 = vpop.permute.xlu1 %7751 }
 0xc8a   : > { %v7614_v18 = vpop.permute.xlu0 %7613 }
 0xc8b   : > { %v7681_v36 = vadd.f32 %v7614_v18, %v14191_v2  ;;  %v15536_v2 = vld [vmem:[#allocation35_spill] sm:$0xff] }
 0xc8d   : > { %v8268_v49 = vpop.permute.xlu1 %8267  ;;  %v7813_v48 = vadd.f32 %v7746_v12, %v7681_v36 }
 0xc8e   : > { %v8130_v25 = vpop.permute.xlu0 %8129 }
 0xc8f   : > { %v8199_v4 = vadd.f32 %v8130_v25, %v8005_v34  ;;  %v8007_v45 = vadd.f32 %v7940_v39, %v7813_v48 }
 0xc91   : > { %v8331_v27 = vadd.f32 %v8262_v31, %v8199_v4  ;;  %v7620_v41 = vpop.permute.xlu1 %7619 }
 0xc92   : > { %v7750_v21 = vpop.permute.xlu0 %7749 }
 0xc93   : > { %v8525_v59 = vadd.f32 %v8456_v42, %v8331_v27  ;;  %v15538_v42 = vld [vmem:[#allocation79_spill] sm:$0xff] }
 0xc95   : > { %8615 = vrot.lane.b32.xlu0 %v8525_v59, %s9630_s18  ;;  %v8136_v44 = vpop.permute.xlu1 %8135 }
 0xc96   : > { %v7944_v60 = vpop.permute.xlu0 %7943 }
 0xc99   : > { %v7946_v9 = vpop.permute.xlu1 %7945 }
 0xc9a   : > { %v8266_v15 = vpop.permute.xlu0 %8265 }
 0xc9d   : > { %v8462_v38 = vpop.permute.xlu1 %8461 }
 0xc9e   : > { %v8460_v16 = vpop.permute.xlu0 %8459 }
 0xca1   : > { %v7426_v40 = vpop.permute.xlu1 %7425 }
 0xca2   : > { %v7490_v24 = vadd.f32 %v7426_v40, %v7266_v37  ;;  %v8138_v50 = vpop.permute.xlu0 %8137 }
 0xca4   : > { %v7684_v57 = vadd.f32 %v7620_v41, %v7490_v24 }
 0xca5   : > { %v8466_v53 = vpop.permute.xlu1 %8465 }
 0xca6   : > { %v7816_v14 = vadd.f32 %v7752_v17, %v7684_v57  ;;  %v7618_v19 = vpop.permute.xlu0 %7617 }
 0xca7   : > { %v7683_v46 = vadd.f32 %v7618_v19, %v7489_v13 }
 0xca8   : > { %v8010_v32 = vadd.f32 %v7946_v9, %v7816_v14 }
 0xca9   : > { %v7815_v33 = vadd.f32 %v7750_v21, %v7683_v46  ;;  %v7942_v30 = vpop.permute.xlu1 %7941 }
 0xcaa   : > { %v8008_v43 = vadd.f32 %v7942_v30, %v7814_v1  ;;  %v8464_v26 = vpop.permute.xlu0 %8463  ;;  %v8204_v52 = vadd.f32 %v15536_v2, %v8010_v32 }
 0xcab   : > { %v8009_v56 = vadd.f32 %v7944_v60, %v7815_v33 }
 0xcac   : > { %v8202_v6 = vadd.f32 %v8136_v44, %v8008_v43  ;;  %v8336_v28 = vadd.f32 %v15537_v35, %v8204_v52 }
 0xcad   : > { %v8458_v10 = vpop.permute.xlu1 %8457  ;;  %v8203_v8 = vadd.f32 %v8138_v50, %v8009_v56 }
 0xcae   : > { %v8334_v54 = vadd.f32 %v8268_v49, %v8202_v6  ;;  %v8526_v31 = vadd.f32 %v8458_v10, %v8332_v3  ;;  %v8134_v5 = vpop.permute.xlu0 %8133  ;;  %v8530_v49 = vadd.f32 %v8466_v53, %v8336_v28 }
 0xcaf   : > { %v8201_v12 = vadd.f32 %v8134_v5, %v8007_v45  ;;  %v8335_v11 = vadd.f32 %v15538_v42, %v8203_v8 }
 0xcb0   : > { %8617 = vrot.lane.b32.xlu1 %v8526_v31, %s9630_s18  ;;  %v8528_v63 = vadd.f32 %v8462_v38, %v8334_v54 }
 0xcb1   : > { %v8333_v29 = vadd.f32 %v8266_v15, %v8201_v12  ;;  %v8566_v62 = vpop.permute.xlu1 %8565  ;;  %v8529_v25 = vadd.f32 %v8464_v26, %v8335_v11 }
 0xcb2   : > { %8661 = vst.msk [vmem:[%s9688_s9 + $0x8] sm:$0xff] %vm8659_vm0, %v8566_v62  ;;  %v8564_v39 = vpop.permute.xlu0 %8563 }
 0xcb3   : > { %v8527_v17 = vadd.f32 %v8460_v16, %v8333_v29  ;;  %8660 = vst.msk [vmem:[%s9688_s9] sm:$0xff] %vm8659_vm0, %v8564_v39 }
 0xcb4   : > { %8621 = vrot.lane.b32.xlu1 %v8528_v63, %s9630_s18 }
 0xcb5   : > { %8619 = vrot.lane.b32.xlu0 %v8527_v17, %s9630_s18  ;;  %v8570_v18 = vpop.permute.xlu1 %8569 }
 0xcb6   : > { %8663 = vst.msk [vmem:[%s9688_s9 + $0x18] sm:$0xff] %vm8659_vm0, %v8570_v18  ;;  %v8568_v34 = vpop.permute.xlu0 %8567 }
 0xcb7   : > { %8662 = vst.msk [vmem:[%s9688_s9 + $0x10] sm:$0xff] %vm8659_vm0, %v8568_v34 }
 0xcb8   : > { %8625 = vrot.lane.b32.xlu1 %v8530_v49, %s9630_s18 }
 0xcb9   : > { %8623 = vrot.lane.b32.xlu0 %v8529_v25, %s9630_s18  ;;  %v8574_v4 = vpop.permute.xlu1 %8573 }
 0xcba   : > { %8665 = vst.msk [vmem:[%s9688_s9 + $0x28] sm:$0xff] %vm8659_vm0, %v8574_v4  ;;  %v8572_v27 = vpop.permute.xlu0 %8571 }
 0xcbb   : > { %8664 = vst.msk [vmem:[%s9688_s9 + $0x20] sm:$0xff] %vm8659_vm0, %v8572_v27 }
 0xcbd   : > { %v8578_v41 = vpop.permute.xlu1 %8577 }
 0xcbe   : > { %8667 = vst.msk [vmem:[%s9688_s9 + $0x38] sm:$0xff] %vm8659_vm0, %v8578_v41  ;;  %v8576_v21 = vpop.permute.xlu0 %8575 }
 0xcbf   : > { %8666 = vst.msk [vmem:[%s9688_s9 + $0x30] sm:$0xff] %vm8659_vm0, %v8576_v21 }
 0xcc1   : > { %v8582_v59 = vpop.permute.xlu1 %8581 }
 0xcc2   : > { %8669 = vst.msk [vmem:[%s9688_s9 + $0x48] sm:$0xff] %vm8659_vm0, %v8582_v59  ;;  %v8580_v44 = vpop.permute.xlu0 %8579 }
 0xcc3   : > { %8668 = vst.msk [vmem:[%s9688_s9 + $0x40] sm:$0xff] %vm8659_vm0, %v8580_v44 }
 0xcc5   : > { %v8586_v60 = vpop.permute.xlu1 %8585 }
 0xcc6   : > { %8671 = vst.msk [vmem:[%s9688_s9 + $0x58] sm:$0xff] %vm8659_vm0, %v8586_v60  ;;  %v8584_v9 = vpop.permute.xlu0 %8583 }
 0xcc7   : > { %8670 = vst.msk [vmem:[%s9688_s9 + $0x50] sm:$0xff] %vm8659_vm0, %v8584_v9 }
 0xccb   : > { %v8590_v15 = vpop.permute.xlu1 %8589  ;;  %v8588_v38 = vpop.permute.xlu0 %8587 }
 0xccc   : > { %8673 = vst.msk [vmem:[%s9688_s9 + $0x68] sm:$0xff] %vm8659_vm0, %v8590_v15  ;;  %8672 = vst.msk [vmem:[%s9688_s9 + $0x60] sm:$0xff] %vm8659_vm0, %v8588_v38 }
 0xccf   : > { %v8594_v20 = vpop.permute.xlu1 %8593 }
 0xcd0   : > { %8675 = vst.msk [vmem:[%s9688_s9 + $0x78] sm:$0xff] %vm8659_vm0, %v8594_v20  ;;  %v8592_v51 = vpop.permute.xlu0 %8591 }
 0xcd1   : > { %8674 = vst.msk [vmem:[%s9688_s9 + $0x70] sm:$0xff] %vm8659_vm0, %v8592_v51 }
 0xcd4   : > { %v8598_v16 = vpop.permute.xlu1 %8597  ;;  %v8596_v0 = vpop.permute.xlu0 %8595 }
 0xcd5   : > { %8677 = vst.msk [vmem:[%s9688_s9 + $0x88] sm:$0xff] %vm8659_vm0, %v8598_v16  ;;  %8676 = vst.msk [vmem:[%s9688_s9 + $0x80] sm:$0xff] %vm8659_vm0, %v8596_v0 }
 0xcd8   : > { %v8602_v37 = vpop.permute.xlu1 %8601  ;;  %v8600_v47 = vpop.permute.xlu0 %8599 }
 0xcd9   : > { %8679 = vst.msk [vmem:[%s9688_s9 + $0x98] sm:$0xff] %vm8659_vm0, %v8602_v37  ;;  %8678 = vst.msk [vmem:[%s9688_s9 + $0x90] sm:$0xff] %vm8659_vm0, %v8600_v47 }
 0xcdc   : > { %v8606_v61 = vpop.permute.xlu1 %8605  ;;  %v8604_v58 = vpop.permute.xlu0 %8603 }
 0xcdd   : > { %8681 = vst.msk [vmem:[%s9688_s9 + $0xa8] sm:$0xff] %vm8659_vm0, %v8606_v61  ;;  %8680 = vst.msk [vmem:[%s9688_s9 + $0xa0] sm:$0xff] %vm8659_vm0, %v8604_v58 }
 0xce0   : > { %v8610_v40 = vpop.permute.xlu1 %8609  ;;  %v8608_v24 = vpop.permute.xlu0 %8607 }
 0xce1   : > { %8683 = vst.msk [vmem:[%s9688_s9 + $0xb8] sm:$0xff] %vm8659_vm0, %v8610_v40  ;;  %8682 = vst.msk [vmem:[%s9688_s9 + $0xb0] sm:$0xff] %vm8659_vm0, %v8608_v24 }
 0xce7   : > { %v8612_v50 = vpop.permute.xlu0 %8611 }
 0xce8   : > { %8684 = vst.msk [vmem:[%s9688_s9 + $0xc0] sm:$0xff] %vm8659_vm0, %v8612_v50 }
 0xcfa   : > { %v8614_v7 = vpop.permute.xlu1 %8613 }
 0xcfb   : > { %8685 = vst.msk [vmem:[%s9688_s9 + $0xc8] sm:$0xff] %vm8659_vm0, %v8614_v7 }
 0xd07   : > { %v8616_v23 = vpop.permute.xlu0 %8615 }
 0xd08   : > { %8686 = vst.msk [vmem:[%s9688_s9 + $0xd0] sm:$0xff] %vm8659_vm0, %v8616_v23 }
 0xd22   : > { %v8618_v55 = vpop.permute.xlu1 %8617 }
 0xd23   : > { %8687 = vst.msk [vmem:[%s9688_s9 + $0xd8] sm:$0xff] %vm8659_vm0, %v8618_v55 }
 0xd26   : > { %v8622_v57 = vpop.permute.xlu1 %8621 }
 0xd27   : > { %8689 = vst.msk [vmem:[%s9688_s9 + $0xe8] sm:$0xff] %vm8659_vm0, %v8622_v57  ;;  %v8620_v13 = vpop.permute.xlu0 %8619 }
 0xd28   : > { %8688 = vst.msk [vmem:[%s9688_s9 + $0xe0] sm:$0xff] %vm8659_vm0, %v8620_v13 }
 0xd2a   : > { %v8626_v36 = vpop.permute.xlu1 %8625 }
 0xd2b   : > { %8691 = vst.msk [vmem:[%s9688_s9 + $0xf8] sm:$0xff] %vm8659_vm0, %v8626_v36  ;;  %v8624_v53 = vpop.permute.xlu0 %8623 }
 0xd2c   : > { %8690 = vst.msk [vmem:[%s9688_s9 + $0xf0] sm:$0xff] %vm8659_vm0, %v8624_v53 }
 0xd2d PF: > { %s16_s21 = sadd.s32 1, %s9617_s21  }
 0xd2e   : > { %p13_p4 = scmp.ge.s32.totalorder %s16_s21, 4  }
 0xd30   :  { %15 = sbr.rel (!%p13_p4) target bundleno = 1 (0x1), region = 84 }

</bundles_post_ra>
